<compile_context>
chip_gen: v7x
topology: tpu7x:2x2x1
jax: 0.10.0
libtpu: 0.0.40
codegen_flags: <defaults>
</compile_context>

<pallas_src>
import functools

import jax
import jax.numpy as jnp
from jax.experimental import pallas as pl
from jax.experimental.pallas import tpu as pltpu

BN_EPS = 1e-5


def _round_up(x, m):
    return (x + m - 1) // m * m


# ----------------------------------------------------------------------------
# Pallas kernels
# ----------------------------------------------------------------------------
def _gemm_kernel(*refs, relu, has_res):
    """bf16 GEMM, f32 accumulation; epilogue: +bias (+residual) (+ReLU) -> bf16."""
    if has_res:
        x_ref, w_ref, b_ref, r_ref, o_ref, acc_ref = refs
    else:
        x_ref, w_ref, b_ref, o_ref, acc_ref = refs
        r_ref = None

    @pl.when(pl.program_id(2) == 0)
    def _():
        acc_ref[...] = jnp.zeros_like(acc_ref)

    acc_ref[...] += jnp.dot(x_ref[...], w_ref[...],
                            preferred_element_type=jnp.float32)

    @pl.when(pl.program_id(2) == pl.num_programs(2) - 1)
    def _():
        y = acc_ref[...] + b_ref[...]
        if r_ref is not None:
            y = y + r_ref[...].astype(jnp.float32)
        if relu:
            y = jnp.maximum(y, 0.0)
        o_ref[...] = y.astype(o_ref.dtype)


def _maxpool_kernel(ee_ref, eo_ref, oe_ref, oo_ref, o_ref):
    """3x3 / stride-2 / pad-1 max-pool computed from the 4 spatial parity
    planes, each pre-padded with one leading -inf row and column so every tap
    is a static contiguous slice."""
    ee = ee_ref[0].astype(jnp.float32)
    eo = eo_ref[0].astype(jnp.float32)
    oe = oe_ref[0].astype(jnp.float32)
    oo = oo_ref[0].astype(jnp.float32)
    m = ee[1:, 1:, :]
    m = jnp.maximum(m, eo[1:, 1:, :])
    m = jnp.maximum(m, eo[1:, :-1, :])
    m = jnp.maximum(m, oe[1:, 1:, :])
    m = jnp.maximum(m, oe[:-1, 1:, :])
    m = jnp.maximum(m, oo[1:, 1:, :])
    m = jnp.maximum(m, oo[1:, :-1, :])
    m = jnp.maximum(m, oo[:-1, 1:, :])
    m = jnp.maximum(m, oo[:-1, :-1, :])
    o_ref[0] = m.astype(o_ref.dtype)


# ----------------------------------------------------------------------------
# GEMM wrapper (fused BN bias / residual / ReLU epilogue)
# ----------------------------------------------------------------------------
def _pick_tiles(M, N, K):
    if M >= 512:
        tm = 256
    elif M >= 128:
        tm = 128
    else:
        tm = _round_up(M, 8)        # tiny-M deep layers: no 128-row zero padding
    if N >= 256:
        tn = 256
    elif N >= 128:
        tn = 128
    else:
        tn = N                      # e.g. Cout == 64: full, no lane padding
    if K % 256 == 0:
        tk = 256
    elif K % 128 == 0:
        tk = 128
    elif K <= 256:
        tk = K                      # single full-K step (e.g. stem K=147), no zeros
    else:
        tk = 128
    return tm, tn, tk


def gemm_bias(x2d, w2d, bias, res2d, relu):
    """out = [relu]( x2d @ w2d + bias [+ res2d] );  bf16 operands, f32 accum."""
    M, K = x2d.shape
    K2, N = w2d.shape
    assert K == K2
    tm, tn, tk = _pick_tiles(M, N, K)
    Mp, Kp, Np = _round_up(M, tm), _round_up(K, tk), _round_up(N, tn)

    xp = jnp.pad(x2d.astype(jnp.bfloat16), ((0, Mp - M), (0, Kp - K)))
    wp = jnp.pad(w2d.astype(jnp.bfloat16), ((0, Kp - K), (0, Np - N)))
    bp = jnp.pad(bias.astype(jnp.float32).reshape(1, N), ((0, 0), (0, Np - N)))

    operands = [xp, wp, bp]
    in_specs = [
        pl.BlockSpec((tm, tk), lambda i, j, k: (i, k)),
        pl.BlockSpec((tk, tn), lambda i, j, k: (k, j)),
        pl.BlockSpec((1, tn), lambda i, j, k: (0, j)),
    ]
    has_res = res2d is not None
    if has_res:
        rp = jnp.pad(res2d.astype(jnp.bfloat16), ((0, Mp - M), (0, Np - N)))
        operands.append(rp)
        # Block index ignores k -> fetched once per output tile, stays resident
        # across the reduction; only read in the last-k epilogue.
        in_specs.append(pl.BlockSpec((tm, tn), lambda i, j, k: (i, j)))

    out = pl.pallas_call(
        functools.partial(_gemm_kernel, relu=relu, has_res=has_res),
        out_shape=jax.ShapeDtypeStruct((Mp, Np), jnp.bfloat16),
        grid_spec=pltpu.PrefetchScalarGridSpec(
            num_scalar_prefetch=0,
            grid=(Mp // tm, Np // tn, Kp // tk),
            in_specs=in_specs,
            out_specs=pl.BlockSpec((tm, tn), lambda i, j, k: (i, j)),
            scratch_shapes=[pltpu.VMEM((tm, tn), jnp.float32)],
        ),
        compiler_params=pltpu.CompilerParams(
            dimension_semantics=("parallel", "parallel", "arbitrary")),
    )(*operands)
    return out[:M, :N]


# ----------------------------------------------------------------------------
# Max-pool 3x3 / stride 2 / pad 1 (parity-plane Pallas kernel)
# ----------------------------------------------------------------------------
def maxpool_3x3_s2_p1(x):
    # x: NHWC (bf16).  H and W are even for ResNet18 conv1 outputs.
    N, H, W, C = x.shape
    assert H % 2 == 0 and W % 2 == 0
    Ho, Wo = H // 2, W // 2
    pads = ((0, 0), (1, 0), (1, 0), (0, 0))
    # parity planes: (even/odd rows) x (even/odd cols); total traffic ~1x input.
    planes = [jnp.pad(x[:, dh::2, dw::2, :], pads, constant_values=-jnp.inf)
              for dh in (0, 1) for dw in (0, 1)]   # ee, eo, oe, oo
    in_spec = pl.BlockSpec((1, Ho + 1, Wo + 1, C), lambda n: (n, 0, 0, 0))
    # TODO(synk): for very large spatial sizes, additionally tile H with halo
    # handling; per-image blocks are ample for face-parsing resolutions.
    out = pl.pallas_call(
        _maxpool_kernel,
        out_shape=jax.ShapeDtypeStruct((N, Ho, Wo, C), x.dtype),
        grid=(N,),
        in_specs=[in_spec] * 4,
        out_specs=pl.BlockSpec((1, Ho, Wo, C), lambda n: (n, 0, 0, 0)),
        compiler_params=pltpu.CompilerParams(
            dimension_semantics=("parallel",),
            vmem_limit_bytes=32 * 1024 * 1024),
    )(*planes)
    return out


# ----------------------------------------------------------------------------
# Conv + folded BN (+residual, +ReLU) via im2col + Pallas GEMM
# ----------------------------------------------------------------------------
def conv_bn(x, w, bn, stride, pad, relu, residual=None):
    """x: NHWC bf16; w: OIHW f32 (PyTorch layout); bn = (gamma, beta, mean, var).

    Computes [relu]( BN(conv(x, w)) [+ residual] ) with inference-mode BN folded
    into the weights/bias and the whole epilogue fused into the Pallas GEMM.
    """
    Cout, Cin, KH, KW = w.shape
    N, H, W_, C = x.shape
    assert C == Cin
    Ho = (H + 2 * pad - KH) // stride + 1
    Wo = (W_ + 2 * pad - KW) // stride + 1

    # TODO(synk): im2col still materializes a KH*KW-inflated (bf16) copy of the
    # activations in HBM; a direct-conv kernel with the taps folded into the
    # reduction grid axis would remove that traffic.
    xp = jnp.pad(x, ((0, 0), (pad, pad), (pad, pad), (0, 0)))
    cols = []
    for i in range(KH):
        for j in range(KW):
            cols.append(xp[:, i:i + (Ho - 1) * stride + 1:stride,
                           j:j + (Wo - 1) * stride + 1:stride, :])
    patches = jnp.concatenate(cols, axis=-1).reshape(N * Ho * Wo, KH * KW * Cin)

    gamma, beta, mean, var = bn
    scale = gamma / jnp.sqrt(var + BN_EPS)
    bias = beta - mean * scale
    # Weight -> [KH, KW, Cin, Cout] -> [KH*KW*Cin, Cout]; fold BN scale in.
    w2d = jnp.transpose(w, (2, 3, 1, 0)).reshape(KH * KW * Cin, Cout)
    w2d = w2d * scale[None, :]

    res2d = residual.reshape(N * Ho * Wo, Cout) if residual is not None else None
    out2d = gemm_bias(patches, w2d, bias, res2d, relu)
    return out2d.reshape(N, Ho, Wo, Cout)


def basic_block(x, p, stride):
    r = conv_bn(x, p['conv1_w'], p['bn1'], stride=stride, pad=1, relu=True)
    if 'down_w' in p:
        sc = conv_bn(x, p['down_w'], p['down_bn'], stride=stride, pad=0,
                     relu=False)
    else:
        sc = x
    # conv2 + BN2 + residual add + ReLU all fused into one GEMM epilogue.
    return conv_bn(r, p['conv2_w'], p['bn2'], stride=1, pad=1, relu=True,
                   residual=sc)


LAYER_CFG = (('layer1', 1), ('layer2', 2), ('layer3', 2), ('layer4', 2))


def resnet18_forward(params, x_nchw):
    x = jnp.transpose(x_nchw, (0, 2, 3, 1)).astype(jnp.bfloat16)  # NCHW -> NHWC
    x = conv_bn(x, params['conv1_w'], params['bn1'], stride=2, pad=3, relu=True)
    x = maxpool_3x3_s2_p1(x)
    feats = {}
    for name, stride in LAYER_CFG:
        blocks = params[name]
        x = basic_block(x, blocks[0], stride)
        x = basic_block(x, blocks[1], 1)
        feats[name] = x
    to_nchw = lambda t: jnp.transpose(t, (0, 3, 1, 2)).astype(jnp.float32)
    return (to_nchw(feats['layer2']),   # feat8
            to_nchw(feats['layer3']),   # feat16
            to_nchw(feats['layer4']))   # feat32


# ----------------------------------------------------------------------------
# Deterministic parameter init (no checkpoint load)
# ----------------------------------------------------------------------------
def _make_conv(key, cout, cin, kh, kw):
    fan_in = cin * kh * kw
    return jax.random.normal(key, (cout, cin, kh, kw), jnp.float32) * \
        (2.0 / fan_in) ** 0.5


def _make_bn(key, c):
    k1, k2, k3, k4 = jax.random.split(key, 4)
    gamma = 1.0 + 0.1 * jax.random.normal(k1, (c,), jnp.float32)
    beta = 0.1 * jax.random.normal(k2, (c,), jnp.float32)
    mean = 0.05 * jax.random.normal(k3, (c,), jnp.float32)
    var = 1.0 + 0.1 * jnp.abs(jax.random.normal(k4, (c,), jnp.float32))
    return (gamma, beta, mean, var)


def _make_block(key, cin, cout, stride):
    ks = jax.random.split(key, 6)
    p = {
        'conv1_w': _make_conv(ks[0], cout, cin, 3, 3),
        'bn1': _make_bn(ks[1], cout),
        'conv2_w': _make_conv(ks[2], cout, cout, 3, 3),
        'bn2': _make_bn(ks[3], cout),
    }
    if cin != cout or stride != 1:
        p['down_w'] = _make_conv(ks[4], cout, cin, 1, 1)
        p['down_bn'] = _make_bn(ks[5], cout)
    return p


def init_params(key):
    keys = jax.random.split(key, 10)
    params = {
        'conv1_w': _make_conv(keys[0], 64, 3, 7, 7),
        'bn1': _make_bn(keys[1], 64),
    }
    cfg = [('layer1', 64, 64, 1), ('layer2', 64, 128, 2),
           ('layer3', 128, 256, 2), ('layer4', 256, 512, 2)]
    ki = 2
    for name, cin, cout, stride in cfg:
        params[name] = [
            _make_block(keys[ki], cin, cout, stride),
            _make_block(keys[ki + 1], cout, cout, 1),
        ]
        ki += 2
    return params


if __name__ == "__main__":
    key = jax.random.PRNGKey(0)
    pkey, xkey = jax.random.split(key)
    params = init_params(pkey)
    # small but valid input: spatial 64 -> feat8 8x8, feat16 4x4, feat32 2x2
    x = jax.random.normal(xkey, (1, 3, 64, 64), jnp.float32)

    fwd = jax.jit(resnet18_forward)
    feat8, feat16, feat32 = fwd(params, x)
    jax.block_until_ready((feat8, feat16, feat32))

    assert feat8.shape == (1, 128, 8, 8), feat8.shape
    assert feat16.shape == (1, 256, 4, 4), feat16.shape
    assert feat32.shape == (1, 512, 2, 2), feat32.shape
    assert jnp.all(jnp.isfinite(feat8))
    assert jnp.all(jnp.isfinite(feat16))
    assert jnp.all(jnp.isfinite(feat32))
    print("KERNEL_OK")
</pallas_src>

<mosaic_0001>
module attributes {stable_mosaic.version = 11 : i64} {
  func.func @_gemm_kernel(%arg0: i32, %arg1: i32, %arg2: i32, %arg3: memref<256x147xbf16, #tpu.memory_space<vmem>>, %arg4: memref<147x64xbf16, #tpu.memory_space<vmem>>, %arg5: memref<1x64xf32, #tpu.memory_space<vmem>>, %arg6: memref<256x64xbf16, #tpu.memory_space<vmem>>, %arg7: memref<256x64xf32, #tpu.memory_space<vmem>>) attributes {dimension_semantics = [#tpu.dimension_semantics<parallel>, #tpu.dimension_semantics<parallel>, #tpu.dimension_semantics<arbitrary>], iteration_bounds = array<i64: 4, 1, 1>, scalar_prefetch = 0 : i64, scratch_operands = 1 : i64, tpu.core_type = #tpu.core_type<tc>, window_params = [{transform_indices = @transform_0, window_bounds = array<i64: 256, 147>}, {transform_indices = @transform_1, window_bounds = array<i64: 147, 64>}, {transform_indices = @transform_2, window_bounds = array<i64: 1, 64>}, {transform_indices = @transform_3, window_bounds = array<i64: 256, 64>}]} {
    %c0_i32 = arith.constant 0 : i32
    %0 = arith.cmpi eq, %arg2, %c0_i32 : i32
    %1 = arith.extui %0 : i1 to i32
    %c0_i32_0 = arith.constant 0 : i32
    %2 = arith.cmpi ne, %1, %c0_i32_0 : i32
    scf.if %2 {
      %cst_10 = arith.constant 0.000000e+00 : f32
      %12 = vector.broadcast %cst_10 : f32 to vector<256x64xf32>
      %c0_11 = arith.constant 0 : index
      %c0_12 = arith.constant 0 : index
      %13 = vector.load %arg7[%c0_11, %c0_12] : memref<256x64xf32, #tpu.memory_space<vmem>>, vector<256x64xf32>
      tpu.vector_store %arg7[%c0_11, %c0_12], %12 {strides = array<i32>} : memref<256x64xf32, #tpu.memory_space<vmem>>, vector<256x64xf32>,
    } else {
    }
    %c0 = arith.constant 0 : index
    %c0_1 = arith.constant 0 : index
    %3 = vector.load %arg7[%c0, %c0_1] : memref<256x64xf32, #tpu.memory_space<vmem>>, vector<256x64xf32>
    %c0_2 = arith.constant 0 : index
    %c0_3 = arith.constant 0 : index
    %4 = vector.load %arg3[%c0_2, %c0_3] : memref<256x147xbf16, #tpu.memory_space<vmem>>, vector<256x147xbf16>
    %c0_4 = arith.constant 0 : index
    %c0_5 = arith.constant 0 : index
    %5 = vector.load %arg4[%c0_4, %c0_5] : memref<147x64xbf16, #tpu.memory_space<vmem>>, vector<147x64xbf16>
    %cst = arith.constant dense<0.000000e+00> : vector<256x64xf32>
    %6 = tpu.matmul %4, %5, %cst {dimension_numbers = #tpu.dot_dimension_numbers<[1], [0], [0], [1], [0, 0, 1, 1], [], []>} : vector<256x147xbf16>, vector<147x64xbf16>, vector<256x64xf32> -> vector<256x64xf32>
    %7 = arith.addf %3, %6 : vector<256x64xf32>
    %c0_6 = arith.constant 0 : index
    %c0_7 = arith.constant 0 : index
    %8 = vector.load %arg7[%c0_6, %c0_7] : memref<256x64xf32, #tpu.memory_space<vmem>>, vector<256x64xf32>
    tpu.vector_store %arg7[%c0_6, %c0_7], %7 {strides = array<i32>} : memref<256x64xf32, #tpu.memory_space<vmem>>, vector<256x64xf32>,
    %c0_i32_8 = arith.constant 0 : i32
    %9 = arith.cmpi eq, %arg2, %c0_i32_8 : i32
    %10 = arith.extui %9 : i1 to i32
    %c0_i32_9 = arith.constant 0 : i32
    %11 = arith.cmpi ne, %10, %c0_i32_9 : i32
    scf.if %11 {
      %c0_10 = arith.constant 0 : index
      %c0_11 = arith.constant 0 : index
      %12 = vector.load %arg7[%c0_10, %c0_11] : memref<256x64xf32, #tpu.memory_space<vmem>>, vector<256x64xf32>
      %c0_12 = arith.constant 0 : index
      %c0_13 = arith.constant 0 : index
      %13 = vector.load %arg5[%c0_12, %c0_13] : memref<1x64xf32, #tpu.memory_space<vmem>>, vector<1x64xf32>
      %14 = vector.broadcast %13 : vector<1x64xf32> to vector<256x64xf32>
      %15 = arith.addf %12, %14 : vector<256x64xf32>
      %cst_14 = arith.constant 0.000000e+00 : f32
      %16 = vector.broadcast %cst_14 : f32 to vector<256x64xf32>
      %17 = arith.maximumf %15, %16 : vector<256x64xf32>
      %18 = arith.truncf %17 : vector<256x64xf32> to vector<256x64xbf16>
      %c0_15 = arith.constant 0 : index
      %c0_16 = arith.constant 0 : index
      %19 = vector.load %arg6[%c0_15, %c0_16] : memref<256x64xbf16, #tpu.memory_space<vmem>>, vector<256x64xbf16>
      tpu.vector_store %arg6[%c0_15, %c0_16], %18 {strides = array<i32>} : memref<256x64xbf16, #tpu.memory_space<vmem>>, vector<256x64xbf16>,
    } else {
    }
    return
  }
  func.func @transform_0(%arg0: i32, %arg1: i32, %arg2: i32) -> (i32, i32) {
    %c0_i32 = arith.constant 0 : i32
    return %arg0, %arg2 : i32, i32
  }
  func.func @transform_1(%arg0: i32, %arg1: i32, %arg2: i32) -> (i32, i32) {
    %c0_i32 = arith.constant 0 : i32
    return %arg2, %arg1 : i32, i32
  }
  func.func @transform_2(%arg0: i32, %arg1: i32, %arg2: i32) -> (i32, i32) {
    %c0_i32 = arith.constant 0 : i32
    %c0_i32_0 = arith.constant 0 : i32
    return %c0_i32, %arg1 : i32, i32
  }
  func.func @transform_3(%arg0: i32, %arg1: i32, %arg2: i32) -> (i32, i32) {
    %c0_i32 = arith.constant 0 : i32
    return %arg0, %arg1 : i32, i32
  }
}

module attributes {stable_mosaic.version = 11 : i64} {
  func.func @_maxpool_kernel(%arg0: i32, %arg1: memref<1x17x17x64xbf16, #tpu.memory_space<vmem>>, %arg2: memref<1x17x17x64xbf16, #tpu.memory_space<vmem>>, %arg3: memref<1x17x17x64xbf16, #tpu.memory_space<vmem>>, %arg4: memref<1x17x17x64xbf16, #tpu.memory_space<vmem>>, %arg5: memref<1x16x16x64xbf16, #tpu.memory_space<vmem>>) attributes {dimension_semantics = [#tpu.dimension_semantics<parallel>], iteration_bounds = array<i64: 1>, scalar_prefetch = 0 : i64, scratch_operands = 0 : i64, tpu.core_type = #tpu.core_type<tc>, window_params = [{transform_indices = @transform_0, window_bounds = array<i64: 1, 17, 17, 64>}, {transform_indices = @transform_1, window_bounds = array<i64: 1, 17, 17, 64>}, {transform_indices = @transform_2, window_bounds = array<i64: 1, 17, 17, 64>}, {transform_indices = @transform_3, window_bounds = array<i64: 1, 17, 17, 64>}, {transform_indices = @transform_4, window_bounds = array<i64: 1, 16, 16, 64>}]} {
    %c0 = arith.constant 0 : index
    %c0_0 = arith.constant 0 : index
    %c0_1 = arith.constant 0 : index
    %c0_2 = arith.constant 0 : index
    %0 = vector.load %arg1[%c0, %c0_0, %c0_1, %c0_2] : memref<1x17x17x64xbf16, #tpu.memory_space<vmem>>, vector<1x17x17x64xbf16>
    %1 = vector.shape_cast %0 : vector<1x17x17x64xbf16> to vector<17x17x64xbf16>
    %2 = arith.extf %1 : vector<17x17x64xbf16> to vector<17x17x64xf32>
    %c0_3 = arith.constant 0 : index
    %c0_4 = arith.constant 0 : index
    %c0_5 = arith.constant 0 : index
    %c0_6 = arith.constant 0 : index
    %3 = vector.load %arg2[%c0_3, %c0_4, %c0_5, %c0_6] : memref<1x17x17x64xbf16, #tpu.memory_space<vmem>>, vector<1x17x17x64xbf16>
    %4 = vector.shape_cast %3 : vector<1x17x17x64xbf16> to vector<17x17x64xbf16>
    %5 = arith.extf %4 : vector<17x17x64xbf16> to vector<17x17x64xf32>
    %c0_7 = arith.constant 0 : index
    %c0_8 = arith.constant 0 : index
    %c0_9 = arith.constant 0 : index
    %c0_10 = arith.constant 0 : index
    %6 = vector.load %arg3[%c0_7, %c0_8, %c0_9, %c0_10] : memref<1x17x17x64xbf16, #tpu.memory_space<vmem>>, vector<1x17x17x64xbf16>
    %7 = vector.shape_cast %6 : vector<1x17x17x64xbf16> to vector<17x17x64xbf16>
    %8 = arith.extf %7 : vector<17x17x64xbf16> to vector<17x17x64xf32>
    %c0_11 = arith.constant 0 : index
    %c0_12 = arith.constant 0 : index
    %c0_13 = arith.constant 0 : index
    %c0_14 = arith.constant 0 : index
    %9 = vector.load %arg4[%c0_11, %c0_12, %c0_13, %c0_14] : memref<1x17x17x64xbf16, #tpu.memory_space<vmem>>, vector<1x17x17x64xbf16>
    %10 = vector.shape_cast %9 : vector<1x17x17x64xbf16> to vector<17x17x64xbf16>
    %11 = arith.extf %10 : vector<17x17x64xbf16> to vector<17x17x64xf32>
    %12 = vector.extract_strided_slice %2 {offsets = [1, 1, 0], sizes = [16, 16, 64], strides = [1, 1, 1]} : vector<17x17x64xf32> to vector<16x16x64xf32>
    %13 = vector.extract_strided_slice %5 {offsets = [1, 1, 0], sizes = [16, 16, 64], strides = [1, 1, 1]} : vector<17x17x64xf32> to vector<16x16x64xf32>
    %14 = arith.maximumf %12, %13 : vector<16x16x64xf32>
    %15 = vector.extract_strided_slice %5 {offsets = [1, 0, 0], sizes = [16, 16, 64], strides = [1, 1, 1]} : vector<17x17x64xf32> to vector<16x16x64xf32>
    %16 = arith.maximumf %14, %15 : vector<16x16x64xf32>
    %17 = vector.extract_strided_slice %8 {offsets = [1, 1, 0], sizes = [16, 16, 64], strides = [1, 1, 1]} : vector<17x17x64xf32> to vector<16x16x64xf32>
    %18 = arith.maximumf %16, %17 : vector<16x16x64xf32>
    %19 = vector.extract_strided_slice %8 {offsets = [0, 1, 0], sizes = [16, 16, 64], strides = [1, 1, 1]} : vector<17x17x64xf32> to vector<16x16x64xf32>
    %20 = arith.maximumf %18, %19 : vector<16x16x64xf32>
    %21 = vector.extract_strided_slice %11 {offsets = [1, 1, 0], sizes = [16, 16, 64], strides = [1, 1, 1]} : vector<17x17x64xf32> to vector<16x16x64xf32>
    %22 = arith.maximumf %20, %21 : vector<16x16x64xf32>
    %23 = vector.extract_strided_slice %11 {offsets = [1, 0, 0], sizes = [16, 16, 64], strides = [1, 1, 1]} : vector<17x17x64xf32> to vector<16x16x64xf32>
    %24 = arith.maximumf %22, %23 : vector<16x16x64xf32>
    %25 = vector.extract_strided_slice %11 {offsets = [0, 1, 0], sizes = [16, 16, 64], strides = [1, 1, 1]} : vector<17x17x64xf32> to vector<16x16x64xf32>
    %26 = arith.maximumf %24, %25 : vector<16x16x64xf32>
    %27 = vector.extract_strided_slice %11 {offsets = [0, 0, 0], sizes = [16, 16, 64], strides = [1, 1, 1]} : vector<17x17x64xf32> to vector<16x16x64xf32>
    %28 = arith.maximumf %26, %27 : vector<16x16x64xf32>
    %29 = arith.truncf %28 : vector<16x16x64xf32> to vector<16x16x64xbf16>
    %c0_15 = arith.constant 0 : index
    %c0_16 = arith.constant 0 : index
    %c0_17 = arith.constant 0 : index
    %c0_18 = arith.constant 0 : index
    %30 = vector.load %arg5[%c0_15, %c0_16, %c0_17, %c0_18] : memref<1x16x16x64xbf16, #tpu.memory_space<vmem>>, vector<1x16x16x64xbf16>
    %31 = vector.shape_cast %30 : vector<1x16x16x64xbf16> to vector<16x16x64xbf16>
    %32 = vector.shape_cast %29 : vector<16x16x64xbf16> to vector<1x16x16x64xbf16>
    tpu.vector_store %arg5[%c0_15, %c0_16, %c0_17, %c0_18], %32 {strides = array<i32>} : memref<1x16x16x64xbf16, #tpu.memory_space<vmem>>, vector<1x16x16x64xbf16>,
    return
  }
  func.func @transform_0(%arg0: i32) -> (i32, i32, i32, i32) {
    %c0_i32 = arith.constant 0 : i32
    %c0_i32_0 = arith.constant 0 : i32
    %c0_i32_1 = arith.constant 0 : i32
    %c0_i32_2 = arith.constant 0 : i32
    return %arg0, %c0_i32, %c0_i32_0, %c0_i32_1 : i32, i32, i32, i32
  }
  func.func @transform_1(%arg0: i32) -> (i32, i32, i32, i32) {
    %c0_i32 = arith.constant 0 : i32
    %c0_i32_0 = arith.constant 0 : i32
    %c0_i32_1 = arith.constant 0 : i32
    %c0_i32_2 = arith.constant 0 : i32
    return %arg0, %c0_i32, %c0_i32_0, %c0_i32_1 : i32, i32, i32, i32
  }
  func.func @transform_2(%arg0: i32) -> (i32, i32, i32, i32) {
    %c0_i32 = arith.constant 0 : i32
    %c0_i32_0 = arith.constant 0 : i32
    %c0_i32_1 = arith.constant 0 : i32
    %c0_i32_2 = arith.constant 0 : i32
    return %arg0, %c0_i32, %c0_i32_0, %c0_i32_1 : i32, i32, i32, i32
  }
  func.func @transform_3(%arg0: i32) -> (i32, i32, i32, i32) {
    %c0_i32 = arith.constant 0 : i32
    %c0_i32_0 = arith.constant 0 : i32
    %c0_i32_1 = arith.constant 0 : i32
    %c0_i32_2 = arith.constant 0 : i32
    return %arg0, %c0_i32, %c0_i32_0, %c0_i32_1 : i32, i32, i32, i32
  }
  func.func @transform_4(%arg0: i32) -> (i32, i32, i32, i32) {
    %c0_i32 = arith.constant 0 : i32
    %c0_i32_0 = arith.constant 0 : i32
    %c0_i32_1 = arith.constant 0 : i32
    %c0_i32_2 = arith.constant 0 : i32
    return %arg0, %c0_i32, %c0_i32_0, %c0_i32_1 : i32, i32, i32, i32
  }
}

module attributes {stable_mosaic.version = 11 : i64} {
  func.func @_gemm_kernel(%arg0: i32, %arg1: i32, %arg2: i32, %arg3: memref<128x128xbf16, #tpu.memory_space<vmem>>, %arg4: memref<128x64xbf16, #tpu.memory_space<vmem>>, %arg5: memref<1x64xf32, #tpu.memory_space<vmem>>, %arg6: memref<128x64xbf16, #tpu.memory_space<vmem>>, %arg7: memref<128x64xf32, #tpu.memory_space<vmem>>) attributes {dimension_semantics = [#tpu.dimension_semantics<parallel>, #tpu.dimension_semantics<parallel>, #tpu.dimension_semantics<arbitrary>], iteration_bounds = array<i64: 2, 1, 5>, scalar_prefetch = 0 : i64, scratch_operands = 1 : i64, tpu.core_type = #tpu.core_type<tc>, window_params = [{transform_indices = @transform_0, window_bounds = array<i64: 128, 128>}, {transform_indices = @transform_1, window_bounds = array<i64: 128, 64>}, {transform_indices = @transform_2, window_bounds = array<i64: 1, 64>}, {transform_indices = @transform_3, window_bounds = array<i64: 128, 64>}]} {
    %c0_i32 = arith.constant 0 : i32
    %0 = arith.cmpi eq, %arg2, %c0_i32 : i32
    %1 = arith.extui %0 : i1 to i32
    %c0_i32_0 = arith.constant 0 : i32
    %2 = arith.cmpi ne, %1, %c0_i32_0 : i32
    scf.if %2 {
      %cst_9 = arith.constant 0.000000e+00 : f32
      %12 = vector.broadcast %cst_9 : f32 to vector<128x64xf32>
      %c0_10 = arith.constant 0 : index
      %c0_11 = arith.constant 0 : index
      %13 = vector.load %arg7[%c0_10, %c0_11] : memref<128x64xf32, #tpu.memory_space<vmem>>, vector<128x64xf32>
      tpu.vector_store %arg7[%c0_10, %c0_11], %12 {strides = array<i32>} : memref<128x64xf32, #tpu.memory_space<vmem>>, vector<128x64xf32>,
    } else {
    }
    %c0 = arith.constant 0 : index
    %c0_1 = arith.constant 0 : index
    %3 = vector.load %arg7[%c0, %c0_1] : memref<128x64xf32, #tpu.memory_space<vmem>>, vector<128x64xf32>
    %c0_2 = arith.constant 0 : index
    %c0_3 = arith.constant 0 : index
    %4 = vector.load %arg3[%c0_2, %c0_3] : memref<128x128xbf16, #tpu.memory_space<vmem>>, vector<128x128xbf16>
    %c0_4 = arith.constant 0 : index
    %c0_5 = arith.constant 0 : index
    %5 = vector.load %arg4[%c0_4, %c0_5] : memref<128x64xbf16, #tpu.memory_space<vmem>>, vector<128x64xbf16>
    %cst = arith.constant dense<0.000000e+00> : vector<128x64xf32>
    %6 = tpu.matmul %4, %5, %cst {dimension_numbers = #tpu.dot_dimension_numbers<[1], [0], [0], [1], [0, 0, 1, 1], [], []>} : vector<128x128xbf16>, vector<128x64xbf16>, vector<128x64xf32> -> vector<128x64xf32>
    %7 = arith.addf %3, %6 : vector<128x64xf32>
    %c0_6 = arith.constant 0 : index
    %c0_7 = arith.constant 0 : index
    %8 = vector.load %arg7[%c0_6, %c0_7] : memref<128x64xf32, #tpu.memory_space<vmem>>, vector<128x64xf32>
    tpu.vector_store %arg7[%c0_6, %c0_7], %7 {strides = array<i32>} : memref<128x64xf32, #tpu.memory_space<vmem>>, vector<128x64xf32>,
    %c4_i32 = arith.constant 4 : i32
    %9 = arith.cmpi eq, %arg2, %c4_i32 : i32
    %10 = arith.extui %9 : i1 to i32
    %c0_i32_8 = arith.constant 0 : i32
    %11 = arith.cmpi ne, %10, %c0_i32_8 : i32
    scf.if %11 {
      %c0_9 = arith.constant 0 : index
      %c0_10 = arith.constant 0 : index
      %12 = vector.load %arg7[%c0_9, %c0_10] : memref<128x64xf32, #tpu.memory_space<vmem>>, vector<128x64xf32>
      %c0_11 = arith.constant 0 : index
      %c0_12 = arith.constant 0 : index
      %13 = vector.load %arg5[%c0_11, %c0_12] : memref<1x64xf32, #tpu.memory_space<vmem>>, vector<1x64xf32>
      %14 = vector.broadcast %13 : vector<1x64xf32> to vector<128x64xf32>
      %15 = arith.addf %12, %14 : vector<128x64xf32>
      %cst_13 = arith.constant 0.000000e+00 : f32
      %16 = vector.broadcast %cst_13 : f32 to vector<128x64xf32>
      %17 = arith.maximumf %15, %16 : vector<128x64xf32>
      %18 = arith.truncf %17 : vector<128x64xf32> to vector<128x64xbf16>
      %c0_14 = arith.constant 0 : index
      %c0_15 = arith.constant 0 : index
      %19 = vector.load %arg6[%c0_14, %c0_15] : memref<128x64xbf16, #tpu.memory_space<vmem>>, vector<128x64xbf16>
      tpu.vector_store %arg6[%c0_14, %c0_15], %18 {strides = array<i32>} : memref<128x64xbf16, #tpu.memory_space<vmem>>, vector<128x64xbf16>,
    } else {
    }
    return
  }
  func.func @transform_0(%arg0: i32, %arg1: i32, %arg2: i32) -> (i32, i32) {
    %c0_i32 = arith.constant 0 : i32
    return %arg0, %arg2 : i32, i32
  }
  func.func @transform_1(%arg0: i32, %arg1: i32, %arg2: i32) -> (i32, i32) {
    %c0_i32 = arith.constant 0 : i32
    return %arg2, %arg1 : i32, i32
  }
  func.func @transform_2(%arg0: i32, %arg1: i32, %arg2: i32) -> (i32, i32) {
    %c0_i32 = arith.constant 0 : i32
    %c0_i32_0 = arith.constant 0 : i32
    return %c0_i32, %arg1 : i32, i32
  }
  func.func @transform_3(%arg0: i32, %arg1: i32, %arg2: i32) -> (i32, i32) {
    %c0_i32 = arith.constant 0 : i32
    return %arg0, %arg1 : i32, i32
  }
}

module attributes {stable_mosaic.version = 11 : i64} {
  func.func @_gemm_kernel(%arg0: i32, %arg1: i32, %arg2: i32, %arg3: memref<128x128xbf16, #tpu.memory_space<vmem>>, %arg4: memref<128x64xbf16, #tpu.memory_space<vmem>>, %arg5: memref<1x64xf32, #tpu.memory_space<vmem>>, %arg6: memref<128x64xbf16, #tpu.memory_space<vmem>>, %arg7: memref<128x64xbf16, #tpu.memory_space<vmem>>, %arg8: memref<128x64xf32, #tpu.memory_space<vmem>>) attributes {dimension_semantics = [#tpu.dimension_semantics<parallel>, #tpu.dimension_semantics<parallel>, #tpu.dimension_semantics<arbitrary>], iteration_bounds = array<i64: 2, 1, 5>, scalar_prefetch = 0 : i64, scratch_operands = 1 : i64, tpu.core_type = #tpu.core_type<tc>, window_params = [{transform_indices = @transform_0, window_bounds = array<i64: 128, 128>}, {transform_indices = @transform_1, window_bounds = array<i64: 128, 64>}, {transform_indices = @transform_2, window_bounds = array<i64: 1, 64>}, {transform_indices = @transform_3, window_bounds = array<i64: 128, 64>}, {transform_indices = @transform_4, window_bounds = array<i64: 128, 64>}]} {
    %c0_i32 = arith.constant 0 : i32
    %0 = arith.cmpi eq, %arg2, %c0_i32 : i32
    %1 = arith.extui %0 : i1 to i32
    %c0_i32_0 = arith.constant 0 : i32
    %2 = arith.cmpi ne, %1, %c0_i32_0 : i32
    scf.if %2 {
      %cst_9 = arith.constant 0.000000e+00 : f32
      %12 = vector.broadcast %cst_9 : f32 to vector<128x64xf32>
      %c0_10 = arith.constant 0 : index
      %c0_11 = arith.constant 0 : index
      %13 = vector.load %arg8[%c0_10, %c0_11] : memref<128x64xf32, #tpu.memory_space<vmem>>, vector<128x64xf32>
      tpu.vector_store %arg8[%c0_10, %c0_11], %12 {strides = array<i32>} : memref<128x64xf32, #tpu.memory_space<vmem>>, vector<128x64xf32>,
    } else {
    }
    %c0 = arith.constant 0 : index
    %c0_1 = arith.constant 0 : index
    %3 = vector.load %arg8[%c0, %c0_1] : memref<128x64xf32, #tpu.memory_space<vmem>>, vector<128x64xf32>
    %c0_2 = arith.constant 0 : index
    %c0_3 = arith.constant 0 : index
    %4 = vector.load %arg3[%c0_2, %c0_3] : memref<128x128xbf16, #tpu.memory_space<vmem>>, vector<128x128xbf16>
    %c0_4 = arith.constant 0 : index
    %c0_5 = arith.constant 0 : index
    %5 = vector.load %arg4[%c0_4, %c0_5] : memref<128x64xbf16, #tpu.memory_space<vmem>>, vector<128x64xbf16>
    %cst = arith.constant dense<0.000000e+00> : vector<128x64xf32>
    %6 = tpu.matmul %4, %5, %cst {dimension_numbers = #tpu.dot_dimension_numbers<[1], [0], [0], [1], [0, 0, 1, 1], [], []>} : vector<128x128xbf16>, vector<128x64xbf16>, vector<128x64xf32> -> vector<128x64xf32>
    %7 = arith.addf %3, %6 : vector<128x64xf32>
    %c0_6 = arith.constant 0 : index
    %c0_7 = arith.constant 0 : index
    %8 = vector.load %arg8[%c0_6, %c0_7] : memref<128x64xf32, #tpu.memory_space<vmem>>, vector<128x64xf32>
    tpu.vector_store %arg8[%c0_6, %c0_7], %7 {strides = array<i32>} : memref<128x64xf32, #tpu.memory_space<vmem>>, vector<128x64xf32>,
    %c4_i32 = arith.constant 4 : i32
    %9 = arith.cmpi eq, %arg2, %c4_i32 : i32
    %10 = arith.extui %9 : i1 to i32
    %c0_i32_8 = arith.constant 0 : i32
    %11 = arith.cmpi ne, %10, %c0_i32_8 : i32
    scf.if %11 {
      %c0_9 = arith.constant 0 : index
      %c0_10 = arith.constant 0 : index
      %12 = vector.load %arg8[%c0_9, %c0_10] : memref<128x64xf32, #tpu.memory_space<vmem>>, vector<128x64xf32>
      %c0_11 = arith.constant 0 : index
      %c0_12 = arith.constant 0 : index
      %13 = vector.load %arg5[%c0_11, %c0_12] : memref<1x64xf32, #tpu.memory_space<vmem>>, vector<1x64xf32>
      %14 = vector.broadcast %13 : vector<1x64xf32> to vector<128x64xf32>
      %15 = arith.addf %12, %14 : vector<128x64xf32>
      %c0_13 = arith.constant 0 : index
      %c0_14 = arith.constant 0 : index
      %16 = vector.load %arg6[%c0_13, %c0_14] : memref<128x64xbf16, #tpu.memory_space<vmem>>, vector<128x64xbf16>
      %17 = arith.extf %16 : vector<128x64xbf16> to vector<128x64xf32>
      %18 = arith.addf %15, %17 : vector<128x64xf32>
      %cst_15 = arith.constant 0.000000e+00 : f32
      %19 = vector.broadcast %cst_15 : f32 to vector<128x64xf32>
      %20 = arith.maximumf %18, %19 : vector<128x64xf32>
      %21 = arith.truncf %20 : vector<128x64xf32> to vector<128x64xbf16>
      %c0_16 = arith.constant 0 : index
      %c0_17 = arith.constant 0 : index
      %22 = vector.load %arg7[%c0_16, %c0_17] : memref<128x64xbf16, #tpu.memory_space<vmem>>, vector<128x64xbf16>
      tpu.vector_store %arg7[%c0_16, %c0_17], %21 {strides = array<i32>} : memref<128x64xbf16, #tpu.memory_space<vmem>>, vector<128x64xbf16>,
    } else {
    }
    return
  }
  func.func @transform_0(%arg0: i32, %arg1: i32, %arg2: i32) -> (i32, i32) {
    %c0_i32 = arith.constant 0 : i32
    return %arg0, %arg2 : i32, i32
  }
  func.func @transform_1(%arg0: i32, %arg1: i32, %arg2: i32) -> (i32, i32) {
    %c0_i32 = arith.constant 0 : i32
    return %arg2, %arg1 : i32, i32
  }
  func.func @transform_2(%arg0: i32, %arg1: i32, %arg2: i32) -> (i32, i32) {
    %c0_i32 = arith.constant 0 : i32
    %c0_i32_0 = arith.constant 0 : i32
    return %c0_i32, %arg1 : i32, i32
  }
  func.func @transform_3(%arg0: i32, %arg1: i32, %arg2: i32) -> (i32, i32) {
    %c0_i32 = arith.constant 0 : i32
    return %arg0, %arg1 : i32, i32
  }
  func.func @transform_4(%arg0: i32, %arg1: i32, %arg2: i32) -> (i32, i32) {
    %c0_i32 = arith.constant 0 : i32
    return %arg0, %arg1 : i32, i32
  }
}

module attributes {stable_mosaic.version = 11 : i64} {
  func.func @_gemm_kernel(%arg0: i32, %arg1: i32, %arg2: i32, %arg3: memref<64x128xbf16, #tpu.memory_space<vmem>>, %arg4: memref<128x128xbf16, #tpu.memory_space<vmem>>, %arg5: memref<1x128xf32, #tpu.memory_space<vmem>>, %arg6: memref<64x128xbf16, #tpu.memory_space<vmem>>, %arg7: memref<64x128xf32, #tpu.memory_space<vmem>>) attributes {dimension_semantics = [#tpu.dimension_semantics<parallel>, #tpu.dimension_semantics<parallel>, #tpu.dimension_semantics<arbitrary>], iteration_bounds = array<i64: 1, 1, 5>, scalar_prefetch = 0 : i64, scratch_operands = 1 : i64, tpu.core_type = #tpu.core_type<tc>, window_params = [{transform_indices = @transform_0, window_bounds = array<i64: 64, 128>}, {transform_indices = @transform_1, window_bounds = array<i64: 128, 128>}, {transform_indices = @transform_2, window_bounds = array<i64: 1, 128>}, {transform_indices = @transform_3, window_bounds = array<i64: 64, 128>}]} {
    %c0_i32 = arith.constant 0 : i32
    %0 = arith.cmpi eq, %arg2, %c0_i32 : i32
    %1 = arith.extui %0 : i1 to i32
    %c0_i32_0 = arith.constant 0 : i32
    %2 = arith.cmpi ne, %1, %c0_i32_0 : i32
    scf.if %2 {
      %cst_9 = arith.constant 0.000000e+00 : f32
      %12 = vector.broadcast %cst_9 : f32 to vector<64x128xf32>
      %c0_10 = arith.constant 0 : index
      %c0_11 = arith.constant 0 : index
      %13 = vector.load %arg7[%c0_10, %c0_11] : memref<64x128xf32, #tpu.memory_space<vmem>>, vector<64x128xf32>
      tpu.vector_store %arg7[%c0_10, %c0_11], %12 {strides = array<i32>} : memref<64x128xf32, #tpu.memory_space<vmem>>, vector<64x128xf32>,
    } else {
    }
    %c0 = arith.constant 0 : index
    %c0_1 = arith.constant 0 : index
    %3 = vector.load %arg7[%c0, %c0_1] : memref<64x128xf32, #tpu.memory_space<vmem>>, vector<64x128xf32>
    %c0_2 = arith.constant 0 : index
    %c0_3 = arith.constant 0 : index
    %4 = vector.load %arg3[%c0_2, %c0_3] : memref<64x128xbf16, #tpu.memory_space<vmem>>, vector<64x128xbf16>
    %c0_4 = arith.constant 0 : index
    %c0_5 = arith.constant 0 : index
    %5 = vector.load %arg4[%c0_4, %c0_5] : memref<128x128xbf16, #tpu.memory_space<vmem>>, vector<128x128xbf16>
    %cst = arith.constant dense<0.000000e+00> : vector<64x128xf32>
    %6 = tpu.matmul %4, %5, %cst {dimension_numbers = #tpu.dot_dimension_numbers<[1], [0], [0], [1], [0, 0, 1, 1], [], []>} : vector<64x128xbf16>, vector<128x128xbf16>, vector<64x128xf32> -> vector<64x128xf32>
    %7 = arith.addf %3, %6 : vector<64x128xf32>
    %c0_6 = arith.constant 0 : index
    %c0_7 = arith.constant 0 : index
    %8 = vector.load %arg7[%c0_6, %c0_7] : memref<64x128xf32, #tpu.memory_space<vmem>>, vector<64x128xf32>
    tpu.vector_store %arg7[%c0_6, %c0_7], %7 {strides = array<i32>} : memref<64x128xf32, #tpu.memory_space<vmem>>, vector<64x128xf32>,
    %c4_i32 = arith.constant 4 : i32
    %9 = arith.cmpi eq, %arg2, %c4_i32 : i32
    %10 = arith.extui %9 : i1 to i32
    %c0_i32_8 = arith.constant 0 : i32
    %11 = arith.cmpi ne, %10, %c0_i32_8 : i32
    scf.if %11 {
      %c0_9 = arith.constant 0 : index
      %c0_10 = arith.constant 0 : index
      %12 = vector.load %arg7[%c0_9, %c0_10] : memref<64x128xf32, #tpu.memory_space<vmem>>, vector<64x128xf32>
      %c0_11 = arith.constant 0 : index
      %c0_12 = arith.constant 0 : index
      %13 = vector.load %arg5[%c0_11, %c0_12] : memref<1x128xf32, #tpu.memory_space<vmem>>, vector<1x128xf32>
      %14 = vector.broadcast %13 : vector<1x128xf32> to vector<64x128xf32>
      %15 = arith.addf %12, %14 : vector<64x128xf32>
      %cst_13 = arith.constant 0.000000e+00 : f32
      %16 = vector.broadcast %cst_13 : f32 to vector<64x128xf32>
      %17 = arith.maximumf %15, %16 : vector<64x128xf32>
      %18 = arith.truncf %17 : vector<64x128xf32> to vector<64x128xbf16>
      %c0_14 = arith.constant 0 : index
      %c0_15 = arith.constant 0 : index
      %19 = vector.load %arg6[%c0_14, %c0_15] : memref<64x128xbf16, #tpu.memory_space<vmem>>, vector<64x128xbf16>
      tpu.vector_store %arg6[%c0_14, %c0_15], %18 {strides = array<i32>} : memref<64x128xbf16, #tpu.memory_space<vmem>>, vector<64x128xbf16>,
    } else {
    }
    return
  }
  func.func @transform_0(%arg0: i32, %arg1: i32, %arg2: i32) -> (i32, i32) {
    %c0_i32 = arith.constant 0 : i32
    return %arg0, %arg2 : i32, i32
  }
  func.func @transform_1(%arg0: i32, %arg1: i32, %arg2: i32) -> (i32, i32) {
    %c0_i32 = arith.constant 0 : i32
    return %arg2, %arg1 : i32, i32
  }
  func.func @transform_2(%arg0: i32, %arg1: i32, %arg2: i32) -> (i32, i32) {
    %c0_i32 = arith.constant 0 : i32
    %c0_i32_0 = arith.constant 0 : i32
    return %c0_i32, %arg1 : i32, i32
  }
  func.func @transform_3(%arg0: i32, %arg1: i32, %arg2: i32) -> (i32, i32) {
    %c0_i32 = arith.constant 0 : i32
    return %arg0, %arg1 : i32, i32
  }
}

module attributes {stable_mosaic.version = 11 : i64} {
  func.func @_gemm_kernel(%arg0: i32, %arg1: i32, %arg2: i32, %arg3: memref<64x64xbf16, #tpu.memory_space<vmem>>, %arg4: memref<64x128xbf16, #tpu.memory_space<vmem>>, %arg5: memref<1x128xf32, #tpu.memory_space<vmem>>, %arg6: memref<64x128xbf16, #tpu.memory_space<vmem>>, %arg7: memref<64x128xf32, #tpu.memory_space<vmem>>) attributes {dimension_semantics = [#tpu.dimension_semantics<parallel>, #tpu.dimension_semantics<parallel>, #tpu.dimension_semantics<arbitrary>], iteration_bounds = array<i64: 1, 1, 1>, scalar_prefetch = 0 : i64, scratch_operands = 1 : i64, tpu.core_type = #tpu.core_type<tc>, window_params = [{transform_indices = @transform_0, window_bounds = array<i64: 64, 64>}, {transform_indices = @transform_1, window_bounds = array<i64: 64, 128>}, {transform_indices = @transform_2, window_bounds = array<i64: 1, 128>}, {transform_indices = @transform_3, window_bounds = array<i64: 64, 128>}]} {
    %c0_i32 = arith.constant 0 : i32
    %0 = arith.cmpi eq, %arg2, %c0_i32 : i32
    %1 = arith.extui %0 : i1 to i32
    %c0_i32_0 = arith.constant 0 : i32
    %2 = arith.cmpi ne, %1, %c0_i32_0 : i32
    scf.if %2 {
      %cst_10 = arith.constant 0.000000e+00 : f32
      %12 = vector.broadcast %cst_10 : f32 to vector<64x128xf32>
      %c0_11 = arith.constant 0 : index
      %c0_12 = arith.constant 0 : index
      %13 = vector.load %arg7[%c0_11, %c0_12] : memref<64x128xf32, #tpu.memory_space<vmem>>, vector<64x128xf32>
      tpu.vector_store %arg7[%c0_11, %c0_12], %12 {strides = array<i32>} : memref<64x128xf32, #tpu.memory_space<vmem>>, vector<64x128xf32>,
    } else {
    }
    %c0 = arith.constant 0 : index
    %c0_1 = arith.constant 0 : index
    %3 = vector.load %arg7[%c0, %c0_1] : memref<64x128xf32, #tpu.memory_space<vmem>>, vector<64x128xf32>
    %c0_2 = arith.constant 0 : index
    %c0_3 = arith.constant 0 : index
    %4 = vector.load %arg3[%c0_2, %c0_3] : memref<64x64xbf16, #tpu.memory_space<vmem>>, vector<64x64xbf16>
    %c0_4 = arith.constant 0 : index
    %c0_5 = arith.constant 0 : index
    %5 = vector.load %arg4[%c0_4, %c0_5] : memref<64x128xbf16, #tpu.memory_space<vmem>>, vector<64x128xbf16>
    %cst = arith.constant dense<0.000000e+00> : vector<64x128xf32>
    %6 = tpu.matmul %4, %5, %cst {dimension_numbers = #tpu.dot_dimension_numbers<[1], [0], [0], [1], [0, 0, 1, 1], [], []>} : vector<64x64xbf16>, vector<64x128xbf16>, vector<64x128xf32> -> vector<64x128xf32>
    %7 = arith.addf %3, %6 : vector<64x128xf32>
    %c0_6 = arith.constant 0 : index
    %c0_7 = arith.constant 0 : index
    %8 = vector.load %arg7[%c0_6, %c0_7] : memref<64x128xf32, #tpu.memory_space<vmem>>, vector<64x128xf32>
    tpu.vector_store %arg7[%c0_6, %c0_7], %7 {strides = array<i32>} : memref<64x128xf32, #tpu.memory_space<vmem>>, vector<64x128xf32>,
    %c0_i32_8 = arith.constant 0 : i32
    %9 = arith.cmpi eq, %arg2, %c0_i32_8 : i32
    %10 = arith.extui %9 : i1 to i32
    %c0_i32_9 = arith.constant 0 : i32
    %11 = arith.cmpi ne, %10, %c0_i32_9 : i32
    scf.if %11 {
      %c0_10 = arith.constant 0 : index
      %c0_11 = arith.constant 0 : index
      %12 = vector.load %arg7[%c0_10, %c0_11] : memref<64x128xf32, #tpu.memory_space<vmem>>, vector<64x128xf32>
      %c0_12 = arith.constant 0 : index
      %c0_13 = arith.constant 0 : index
      %13 = vector.load %arg5[%c0_12, %c0_13] : memref<1x128xf32, #tpu.memory_space<vmem>>, vector<1x128xf32>
      %14 = vector.broadcast %13 : vector<1x128xf32> to vector<64x128xf32>
      %15 = arith.addf %12, %14 : vector<64x128xf32>
      %16 = arith.truncf %15 : vector<64x128xf32> to vector<64x128xbf16>
      %c0_14 = arith.constant 0 : index
      %c0_15 = arith.constant 0 : index
      %17 = vector.load %arg6[%c0_14, %c0_15] : memref<64x128xbf16, #tpu.memory_space<vmem>>, vector<64x128xbf16>
      tpu.vector_store %arg6[%c0_14, %c0_15], %16 {strides = array<i32>} : memref<64x128xbf16, #tpu.memory_space<vmem>>, vector<64x128xbf16>,
    } else {
    }
    return
  }
  func.func @transform_0(%arg0: i32, %arg1: i32, %arg2: i32) -> (i32, i32) {
    %c0_i32 = arith.constant 0 : i32
    return %arg0, %arg2 : i32, i32
  }
  func.func @transform_1(%arg0: i32, %arg1: i32, %arg2: i32) -> (i32, i32) {
    %c0_i32 = arith.constant 0 : i32
    return %arg2, %arg1 : i32, i32
  }
  func.func @transform_2(%arg0: i32, %arg1: i32, %arg2: i32) -> (i32, i32) {
    %c0_i32 = arith.constant 0 : i32
    %c0_i32_0 = arith.constant 0 : i32
    return %c0_i32, %arg1 : i32, i32
  }
  func.func @transform_3(%arg0: i32, %arg1: i32, %arg2: i32) -> (i32, i32) {
    %c0_i32 = arith.constant 0 : i32
    return %arg0, %arg1 : i32, i32
  }
}

module attributes {stable_mosaic.version = 11 : i64} {
  func.func @_gemm_kernel(%arg0: i32, %arg1: i32, %arg2: i32, %arg3: memref<64x128xbf16, #tpu.memory_space<vmem>>, %arg4: memref<128x128xbf16, #tpu.memory_space<vmem>>, %arg5: memref<1x128xf32, #tpu.memory_space<vmem>>, %arg6: memref<64x128xbf16, #tpu.memory_space<vmem>>, %arg7: memref<64x128xf32, #tpu.memory_space<vmem>>) attributes {dimension_semantics = [#tpu.dimension_semantics<parallel>, #tpu.dimension_semantics<parallel>, #tpu.dimension_semantics<arbitrary>], iteration_bounds = array<i64: 1, 1, 9>, scalar_prefetch = 0 : i64, scratch_operands = 1 : i64, tpu.core_type = #tpu.core_type<tc>, window_params = [{transform_indices = @transform_0, window_bounds = array<i64: 64, 128>}, {transform_indices = @transform_1, window_bounds = array<i64: 128, 128>}, {transform_indices = @transform_2, window_bounds = array<i64: 1, 128>}, {transform_indices = @transform_3, window_bounds = array<i64: 64, 128>}]} {
    %c0_i32 = arith.constant 0 : i32
    %0 = arith.cmpi eq, %arg2, %c0_i32 : i32
    %1 = arith.extui %0 : i1 to i32
    %c0_i32_0 = arith.constant 0 : i32
    %2 = arith.cmpi ne, %1, %c0_i32_0 : i32
    scf.if %2 {
      %cst_9 = arith.constant 0.000000e+00 : f32
      %12 = vector.broadcast %cst_9 : f32 to vector<64x128xf32>
      %c0_10 = arith.constant 0 : index
      %c0_11 = arith.constant 0 : index
      %13 = vector.load %arg7[%c0_10, %c0_11] : memref<64x128xf32, #tpu.memory_space<vmem>>, vector<64x128xf32>
      tpu.vector_store %arg7[%c0_10, %c0_11], %12 {strides = array<i32>} : memref<64x128xf32, #tpu.memory_space<vmem>>, vector<64x128xf32>,
    } else {
    }
    %c0 = arith.constant 0 : index
    %c0_1 = arith.constant 0 : index
    %3 = vector.load %arg7[%c0, %c0_1] : memref<64x128xf32, #tpu.memory_space<vmem>>, vector<64x128xf32>
    %c0_2 = arith.constant 0 : index
    %c0_3 = arith.constant 0 : index
    %4 = vector.load %arg3[%c0_2, %c0_3] : memref<64x128xbf16, #tpu.memory_space<vmem>>, vector<64x128xbf16>
    %c0_4 = arith.constant 0 : index
    %c0_5 = arith.constant 0 : index
    %5 = vector.load %arg4[%c0_4, %c0_5] : memref<128x128xbf16, #tpu.memory_space<vmem>>, vector<128x128xbf16>
    %cst = arith.constant dense<0.000000e+00> : vector<64x128xf32>
    %6 = tpu.matmul %4, %5, %cst {dimension_numbers = #tpu.dot_dimension_numbers<[1], [0], [0], [1], [0, 0, 1, 1], [], []>} : vector<64x128xbf16>, vector<128x128xbf16>, vector<64x128xf32> -> vector<64x128xf32>
    %7 = arith.addf %3, %6 : vector<64x128xf32>
    %c0_6 = arith.constant 0 : index
    %c0_7 = arith.constant 0 : index
    %8 = vector.load %arg7[%c0_6, %c0_7] : memref<64x128xf32, #tpu.memory_space<vmem>>, vector<64x128xf32>
    tpu.vector_store %arg7[%c0_6, %c0_7], %7 {strides = array<i32>} : memref<64x128xf32, #tpu.memory_space<vmem>>, vector<64x128xf32>,
    %c8_i32 = arith.constant 8 : i32
    %9 = arith.cmpi eq, %arg2, %c8_i32 : i32
    %10 = arith.extui %9 : i1 to i32
    %c0_i32_8 = arith.constant 0 : i32
    %11 = arith.cmpi ne, %10, %c0_i32_8 : i32
    scf.if %11 {
      %c0_9 = arith.constant 0 : index
      %c0_10 = arith.constant 0 : index
      %12 = vector.load %arg7[%c0_9, %c0_10] : memref<64x128xf32, #tpu.memory_space<vmem>>, vector<64x128xf32>
      %c0_11 = arith.constant 0 : index
      %c0_12 = arith.constant 0 : index
      %13 = vector.load %arg5[%c0_11, %c0_12] : memref<1x128xf32, #tpu.memory_space<vmem>>, vector<1x128xf32>
      %14 = vector.broadcast %13 : vector<1x128xf32> to vector<64x128xf32>
      %15 = arith.addf %12, %14 : vector<64x128xf32>
      %cst_13 = arith.constant 0.000000e+00 : f32
      %16 = vector.broadcast %cst_13 : f32 to vector<64x128xf32>
      %17 = arith.maximumf %15, %16 : vector<64x128xf32>
      %18 = arith.truncf %17 : vector<64x128xf32> to vector<64x128xbf16>
      %c0_14 = arith.constant 0 : index
      %c0_15 = arith.constant 0 : index
      %19 = vector.load %arg6[%c0_14, %c0_15] : memref<64x128xbf16, #tpu.memory_space<vmem>>, vector<64x128xbf16>
      tpu.vector_store %arg6[%c0_14, %c0_15], %18 {strides = array<i32>} : memref<64x128xbf16, #tpu.memory_space<vmem>>, vector<64x128xbf16>,
    } else {
    }
    return
  }
  func.func @transform_0(%arg0: i32, %arg1: i32, %arg2: i32) -> (i32, i32) {
    %c0_i32 = arith.constant 0 : i32
    return %arg0, %arg2 : i32, i32
  }
  func.func @transform_1(%arg0: i32, %arg1: i32, %arg2: i32) -> (i32, i32) {
    %c0_i32 = arith.constant 0 : i32
    return %arg2, %arg1 : i32, i32
  }
  func.func @transform_2(%arg0: i32, %arg1: i32, %arg2: i32) -> (i32, i32) {
    %c0_i32 = arith.constant 0 : i32
    %c0_i32_0 = arith.constant 0 : i32
    return %c0_i32, %arg1 : i32, i32
  }
  func.func @transform_3(%arg0: i32, %arg1: i32, %arg2: i32) -> (i32, i32) {
    %c0_i32 = arith.constant 0 : i32
    return %arg0, %arg1 : i32, i32
  }
}

module attributes {stable_mosaic.version = 11 : i64} {
  func.func @_gemm_kernel(%arg0: i32, %arg1: i32, %arg2: i32, %arg3: memref<64x128xbf16, #tpu.memory_space<vmem>>, %arg4: memref<128x128xbf16, #tpu.memory_space<vmem>>, %arg5: memref<1x128xf32, #tpu.memory_space<vmem>>, %arg6: memref<64x128xbf16, #tpu.memory_space<vmem>>, %arg7: memref<64x128xbf16, #tpu.memory_space<vmem>>, %arg8: memref<64x128xf32, #tpu.memory_space<vmem>>) attributes {dimension_semantics = [#tpu.dimension_semantics<parallel>, #tpu.dimension_semantics<parallel>, #tpu.dimension_semantics<arbitrary>], iteration_bounds = array<i64: 1, 1, 9>, scalar_prefetch = 0 : i64, scratch_operands = 1 : i64, tpu.core_type = #tpu.core_type<tc>, window_params = [{transform_indices = @transform_0, window_bounds = array<i64: 64, 128>}, {transform_indices = @transform_1, window_bounds = array<i64: 128, 128>}, {transform_indices = @transform_2, window_bounds = array<i64: 1, 128>}, {transform_indices = @transform_3, window_bounds = array<i64: 64, 128>}, {transform_indices = @transform_4, window_bounds = array<i64: 64, 128>}]} {
    %c0_i32 = arith.constant 0 : i32
    %0 = arith.cmpi eq, %arg2, %c0_i32 : i32
    %1 = arith.extui %0 : i1 to i32
    %c0_i32_0 = arith.constant 0 : i32
    %2 = arith.cmpi ne, %1, %c0_i32_0 : i32
    scf.if %2 {
      %cst_9 = arith.constant 0.000000e+00 : f32
      %12 = vector.broadcast %cst_9 : f32 to vector<64x128xf32>
      %c0_10 = arith.constant 0 : index
      %c0_11 = arith.constant 0 : index
      %13 = vector.load %arg8[%c0_10, %c0_11] : memref<64x128xf32, #tpu.memory_space<vmem>>, vector<64x128xf32>
      tpu.vector_store %arg8[%c0_10, %c0_11], %12 {strides = array<i32>} : memref<64x128xf32, #tpu.memory_space<vmem>>, vector<64x128xf32>,
    } else {
    }
    %c0 = arith.constant 0 : index
    %c0_1 = arith.constant 0 : index
    %3 = vector.load %arg8[%c0, %c0_1] : memref<64x128xf32, #tpu.memory_space<vmem>>, vector<64x128xf32>
    %c0_2 = arith.constant 0 : index
    %c0_3 = arith.constant 0 : index
    %4 = vector.load %arg3[%c0_2, %c0_3] : memref<64x128xbf16, #tpu.memory_space<vmem>>, vector<64x128xbf16>
    %c0_4 = arith.constant 0 : index
    %c0_5 = arith.constant 0 : index
    %5 = vector.load %arg4[%c0_4, %c0_5] : memref<128x128xbf16, #tpu.memory_space<vmem>>, vector<128x128xbf16>
    %cst = arith.constant dense<0.000000e+00> : vector<64x128xf32>
    %6 = tpu.matmul %4, %5, %cst {dimension_numbers = #tpu.dot_dimension_numbers<[1], [0], [0], [1], [0, 0, 1, 1], [], []>} : vector<64x128xbf16>, vector<128x128xbf16>, vector<64x128xf32> -> vector<64x128xf32>
    %7 = arith.addf %3, %6 : vector<64x128xf32>
    %c0_6 = arith.constant 0 : index
    %c0_7 = arith.constant 0 : index
    %8 = vector.load %arg8[%c0_6, %c0_7] : memref<64x128xf32, #tpu.memory_space<vmem>>, vector<64x128xf32>
    tpu.vector_store %arg8[%c0_6, %c0_7], %7 {strides = array<i32>} : memref<64x128xf32, #tpu.memory_space<vmem>>, vector<64x128xf32>,
    %c8_i32 = arith.constant 8 : i32
    %9 = arith.cmpi eq, %arg2, %c8_i32 : i32
    %10 = arith.extui %9 : i1 to i32
    %c0_i32_8 = arith.constant 0 : i32
    %11 = arith.cmpi ne, %10, %c0_i32_8 : i32
    scf.if %11 {
      %c0_9 = arith.constant 0 : index
      %c0_10 = arith.constant 0 : index
      %12 = vector.load %arg8[%c0_9, %c0_10] : memref<64x128xf32, #tpu.memory_space<vmem>>, vector<64x128xf32>
      %c0_11 = arith.constant 0 : index
      %c0_12 = arith.constant 0 : index
      %13 = vector.load %arg5[%c0_11, %c0_12] : memref<1x128xf32, #tpu.memory_space<vmem>>, vector<1x128xf32>
      %14 = vector.broadcast %13 : vector<1x128xf32> to vector<64x128xf32>
      %15 = arith.addf %12, %14 : vector<64x128xf32>
      %c0_13 = arith.constant 0 : index
      %c0_14 = arith.constant 0 : index
      %16 = vector.load %arg6[%c0_13, %c0_14] : memref<64x128xbf16, #tpu.memory_space<vmem>>, vector<64x128xbf16>
      %17 = arith.extf %16 : vector<64x128xbf16> to vector<64x128xf32>
      %18 = arith.addf %15, %17 : vector<64x128xf32>
      %cst_15 = arith.constant 0.000000e+00 : f32
      %19 = vector.broadcast %cst_15 : f32 to vector<64x128xf32>
      %20 = arith.maximumf %18, %19 : vector<64x128xf32>
      %21 = arith.truncf %20 : vector<64x128xf32> to vector<64x128xbf16>
      %c0_16 = arith.constant 0 : index
      %c0_17 = arith.constant 0 : index
      %22 = vector.load %arg7[%c0_16, %c0_17] : memref<64x128xbf16, #tpu.memory_space<vmem>>, vector<64x128xbf16>
      tpu.vector_store %arg7[%c0_16, %c0_17], %21 {strides = array<i32>} : memref<64x128xbf16, #tpu.memory_space<vmem>>, vector<64x128xbf16>,
    } else {
    }
    return
  }
  func.func @transform_0(%arg0: i32, %arg1: i32, %arg2: i32) -> (i32, i32) {
    %c0_i32 = arith.constant 0 : i32
    return %arg0, %arg2 : i32, i32
  }
  func.func @transform_1(%arg0: i32, %arg1: i32, %arg2: i32) -> (i32, i32) {
    %c0_i32 = arith.constant 0 : i32
    return %arg2, %arg1 : i32, i32
  }
  func.func @transform_2(%arg0: i32, %arg1: i32, %arg2: i32) -> (i32, i32) {
    %c0_i32 = arith.constant 0 : i32
    %c0_i32_0 = arith.constant 0 : i32
    return %c0_i32, %arg1 : i32, i32
  }
  func.func @transform_3(%arg0: i32, %arg1: i32, %arg2: i32) -> (i32, i32) {
    %c0_i32 = arith.constant 0 : i32
    return %arg0, %arg1 : i32, i32
  }
  func.func @transform_4(%arg0: i32, %arg1: i32, %arg2: i32) -> (i32, i32) {
    %c0_i32 = arith.constant 0 : i32
    return %arg0, %arg1 : i32, i32
  }
}

module attributes {stable_mosaic.version = 11 : i64} {
  func.func @_gemm_kernel(%arg0: i32, %arg1: i32, %arg2: i32, %arg3: memref<16x128xbf16, #tpu.memory_space<vmem>>, %arg4: memref<128x256xbf16, #tpu.memory_space<vmem>>, %arg5: memref<1x256xf32, #tpu.memory_space<vmem>>, %arg6: memref<16x256xbf16, #tpu.memory_space<vmem>>, %arg7: memref<16x256xf32, #tpu.memory_space<vmem>>) attributes {dimension_semantics = [#tpu.dimension_semantics<parallel>, #tpu.dimension_semantics<parallel>, #tpu.dimension_semantics<arbitrary>], iteration_bounds = array<i64: 1, 1, 9>, scalar_prefetch = 0 : i64, scratch_operands = 1 : i64, tpu.core_type = #tpu.core_type<tc>, window_params = [{transform_indices = @transform_0, window_bounds = array<i64: 16, 128>}, {transform_indices = @transform_1, window_bounds = array<i64: 128, 256>}, {transform_indices = @transform_2, window_bounds = array<i64: 1, 256>}, {transform_indices = @transform_3, window_bounds = array<i64: 16, 256>}]} {
    %c0_i32 = arith.constant 0 : i32
    %0 = arith.cmpi eq, %arg2, %c0_i32 : i32
    %1 = arith.extui %0 : i1 to i32
    %c0_i32_0 = arith.constant 0 : i32
    %2 = arith.cmpi ne, %1, %c0_i32_0 : i32
    scf.if %2 {
      %cst_9 = arith.constant 0.000000e+00 : f32
      %12 = vector.broadcast %cst_9 : f32 to vector<16x256xf32>
      %c0_10 = arith.constant 0 : index
      %c0_11 = arith.constant 0 : index
      %13 = vector.load %arg7[%c0_10, %c0_11] : memref<16x256xf32, #tpu.memory_space<vmem>>, vector<16x256xf32>
      tpu.vector_store %arg7[%c0_10, %c0_11], %12 {strides = array<i32>} : memref<16x256xf32, #tpu.memory_space<vmem>>, vector<16x256xf32>,
    } else {
    }
    %c0 = arith.constant 0 : index
    %c0_1 = arith.constant 0 : index
    %3 = vector.load %arg7[%c0, %c0_1] : memref<16x256xf32, #tpu.memory_space<vmem>>, vector<16x256xf32>
    %c0_2 = arith.constant 0 : index
    %c0_3 = arith.constant 0 : index
    %4 = vector.load %arg3[%c0_2, %c0_3] : memref<16x128xbf16, #tpu.memory_space<vmem>>, vector<16x128xbf16>
    %c0_4 = arith.constant 0 : index
    %c0_5 = arith.constant 0 : index
    %5 = vector.load %arg4[%c0_4, %c0_5] : memref<128x256xbf16, #tpu.memory_space<vmem>>, vector<128x256xbf16>
    %cst = arith.constant dense<0.000000e+00> : vector<16x256xf32>
    %6 = tpu.matmul %4, %5, %cst {dimension_numbers = #tpu.dot_dimension_numbers<[1], [0], [0], [1], [0, 0, 1, 1], [], []>} : vector<16x128xbf16>, vector<128x256xbf16>, vector<16x256xf32> -> vector<16x256xf32>
    %7 = arith.addf %3, %6 : vector<16x256xf32>
    %c0_6 = arith.constant 0 : index
    %c0_7 = arith.constant 0 : index
    %8 = vector.load %arg7[%c0_6, %c0_7] : memref<16x256xf32, #tpu.memory_space<vmem>>, vector<16x256xf32>
    tpu.vector_store %arg7[%c0_6, %c0_7], %7 {strides = array<i32>} : memref<16x256xf32, #tpu.memory_space<vmem>>, vector<16x256xf32>,
    %c8_i32 = arith.constant 8 : i32
    %9 = arith.cmpi eq, %arg2, %c8_i32 : i32
    %10 = arith.extui %9 : i1 to i32
    %c0_i32_8 = arith.constant 0 : i32
    %11 = arith.cmpi ne, %10, %c0_i32_8 : i32
    scf.if %11 {
      %c0_9 = arith.constant 0 : index
      %c0_10 = arith.constant 0 : index
      %12 = vector.load %arg7[%c0_9, %c0_10] : memref<16x256xf32, #tpu.memory_space<vmem>>, vector<16x256xf32>
      %c0_11 = arith.constant 0 : index
      %c0_12 = arith.constant 0 : index
      %13 = vector.load %arg5[%c0_11, %c0_12] : memref<1x256xf32, #tpu.memory_space<vmem>>, vector<1x256xf32>
      %14 = vector.broadcast %13 : vector<1x256xf32> to vector<16x256xf32>
      %15 = arith.addf %12, %14 : vector<16x256xf32>
      %cst_13 = arith.constant 0.000000e+00 : f32
      %16 = vector.broadcast %cst_13 : f32 to vector<16x256xf32>
      %17 = arith.maximumf %15, %16 : vector<16x256xf32>
      %18 = arith.truncf %17 : vector<16x256xf32> to vector<16x256xbf16>
      %c0_14 = arith.constant 0 : index
      %c0_15 = arith.constant 0 : index
      %19 = vector.load %arg6[%c0_14, %c0_15] : memref<16x256xbf16, #tpu.memory_space<vmem>>, vector<16x256xbf16>
      tpu.vector_store %arg6[%c0_14, %c0_15], %18 {strides = array<i32>} : memref<16x256xbf16, #tpu.memory_space<vmem>>, vector<16x256xbf16>,
    } else {
    }
    return
  }
  func.func @transform_0(%arg0: i32, %arg1: i32, %arg2: i32) -> (i32, i32) {
    %c0_i32 = arith.constant 0 : i32
    return %arg0, %arg2 : i32, i32
  }
  func.func @transform_1(%arg0: i32, %arg1: i32, %arg2: i32) -> (i32, i32) {
    %c0_i32 = arith.constant 0 : i32
    return %arg2, %arg1 : i32, i32
  }
  func.func @transform_2(%arg0: i32, %arg1: i32, %arg2: i32) -> (i32, i32) {
    %c0_i32 = arith.constant 0 : i32
    %c0_i32_0 = arith.constant 0 : i32
    return %c0_i32, %arg1 : i32, i32
  }
  func.func @transform_3(%arg0: i32, %arg1: i32, %arg2: i32) -> (i32, i32) {
    %c0_i32 = arith.constant 0 : i32
    return %arg0, %arg1 : i32, i32
  }
}

module attributes {stable_mosaic.version = 11 : i64} {
  func.func @_gemm_kernel(%arg0: i32, %arg1: i32, %arg2: i32, %arg3: memref<16x128xbf16, #tpu.memory_space<vmem>>, %arg4: memref<128x256xbf16, #tpu.memory_space<vmem>>, %arg5: memref<1x256xf32, #tpu.memory_space<vmem>>, %arg6: memref<16x256xbf16, #tpu.memory_space<vmem>>, %arg7: memref<16x256xf32, #tpu.memory_space<vmem>>) attributes {dimension_semantics = [#tpu.dimension_semantics<parallel>, #tpu.dimension_semantics<parallel>, #tpu.dimension_semantics<arbitrary>], iteration_bounds = array<i64: 1, 1, 1>, scalar_prefetch = 0 : i64, scratch_operands = 1 : i64, tpu.core_type = #tpu.core_type<tc>, window_params = [{transform_indices = @transform_0, window_bounds = array<i64: 16, 128>}, {transform_indices = @transform_1, window_bounds = array<i64: 128, 256>}, {transform_indices = @transform_2, window_bounds = array<i64: 1, 256>}, {transform_indices = @transform_3, window_bounds = array<i64: 16, 256>}]} {
    %c0_i32 = arith.constant 0 : i32
    %0 = arith.cmpi eq, %arg2, %c0_i32 : i32
    %1 = arith.extui %0 : i1 to i32
    %c0_i32_0 = arith.constant 0 : i32
    %2 = arith.cmpi ne, %1, %c0_i32_0 : i32
    scf.if %2 {
      %cst_10 = arith.constant 0.000000e+00 : f32
      %12 = vector.broadcast %cst_10 : f32 to vector<16x256xf32>
      %c0_11 = arith.constant 0 : index
      %c0_12 = arith.constant 0 : index
      %13 = vector.load %arg7[%c0_11, %c0_12] : memref<16x256xf32, #tpu.memory_space<vmem>>, vector<16x256xf32>
      tpu.vector_store %arg7[%c0_11, %c0_12], %12 {strides = array<i32>} : memref<16x256xf32, #tpu.memory_space<vmem>>, vector<16x256xf32>,
    } else {
    }
    %c0 = arith.constant 0 : index
    %c0_1 = arith.constant 0 : index
    %3 = vector.load %arg7[%c0, %c0_1] : memref<16x256xf32, #tpu.memory_space<vmem>>, vector<16x256xf32>
    %c0_2 = arith.constant 0 : index
    %c0_3 = arith.constant 0 : index
    %4 = vector.load %arg3[%c0_2, %c0_3] : memref<16x128xbf16, #tpu.memory_space<vmem>>, vector<16x128xbf16>
    %c0_4 = arith.constant 0 : index
    %c0_5 = arith.constant 0 : index
    %5 = vector.load %arg4[%c0_4, %c0_5] : memref<128x256xbf16, #tpu.memory_space<vmem>>, vector<128x256xbf16>
    %cst = arith.constant dense<0.000000e+00> : vector<16x256xf32>
    %6 = tpu.matmul %4, %5, %cst {dimension_numbers = #tpu.dot_dimension_numbers<[1], [0], [0], [1], [0, 0, 1, 1], [], []>} : vector<16x128xbf16>, vector<128x256xbf16>, vector<16x256xf32> -> vector<16x256xf32>
    %7 = arith.addf %3, %6 : vector<16x256xf32>
    %c0_6 = arith.constant 0 : index
    %c0_7 = arith.constant 0 : index
    %8 = vector.load %arg7[%c0_6, %c0_7] : memref<16x256xf32, #tpu.memory_space<vmem>>, vector<16x256xf32>
    tpu.vector_store %arg7[%c0_6, %c0_7], %7 {strides = array<i32>} : memref<16x256xf32, #tpu.memory_space<vmem>>, vector<16x256xf32>,
    %c0_i32_8 = arith.constant 0 : i32
    %9 = arith.cmpi eq, %arg2, %c0_i32_8 : i32
    %10 = arith.extui %9 : i1 to i32
    %c0_i32_9 = arith.constant 0 : i32
    %11 = arith.cmpi ne, %10, %c0_i32_9 : i32
    scf.if %11 {
      %c0_10 = arith.constant 0 : index
      %c0_11 = arith.constant 0 : index
      %12 = vector.load %arg7[%c0_10, %c0_11] : memref<16x256xf32, #tpu.memory_space<vmem>>, vector<16x256xf32>
      %c0_12 = arith.constant 0 : index
      %c0_13 = arith.constant 0 : index
      %13 = vector.load %arg5[%c0_12, %c0_13] : memref<1x256xf32, #tpu.memory_space<vmem>>, vector<1x256xf32>
      %14 = vector.broadcast %13 : vector<1x256xf32> to vector<16x256xf32>
      %15 = arith.addf %12, %14 : vector<16x256xf32>
      %16 = arith.truncf %15 : vector<16x256xf32> to vector<16x256xbf16>
      %c0_14 = arith.constant 0 : index
      %c0_15 = arith.constant 0 : index
      %17 = vector.load %arg6[%c0_14, %c0_15] : memref<16x256xbf16, #tpu.memory_space<vmem>>, vector<16x256xbf16>
      tpu.vector_store %arg6[%c0_14, %c0_15], %16 {strides = array<i32>} : memref<16x256xbf16, #tpu.memory_space<vmem>>, vector<16x256xbf16>,
    } else {
    }
    return
  }
  func.func @transform_0(%arg0: i32, %arg1: i32, %arg2: i32) -> (i32, i32) {
    %c0_i32 = arith.constant 0 : i32
    return %arg0, %arg2 : i32, i32
  }
  func.func @transform_1(%arg0: i32, %arg1: i32, %arg2: i32) -> (i32, i32) {
    %c0_i32 = arith.constant 0 : i32
    return %arg2, %arg1 : i32, i32
  }
  func.func @transform_2(%arg0: i32, %arg1: i32, %arg2: i32) -> (i32, i32) {
    %c0_i32 = arith.constant 0 : i32
    %c0_i32_0 = arith.constant 0 : i32
    return %c0_i32, %arg1 : i32, i32
  }
  func.func @transform_3(%arg0: i32, %arg1: i32, %arg2: i32) -> (i32, i32) {
    %c0_i32 = arith.constant 0 : i32
    return %arg0, %arg1 : i32, i32
  }
}

module attributes {stable_mosaic.version = 11 : i64} {
  func.func @_gemm_kernel(%arg0: i32, %arg1: i32, %arg2: i32, %arg3: memref<16x256xbf16, #tpu.memory_space<vmem>>, %arg4: memref<256x256xbf16, #tpu.memory_space<vmem>>, %arg5: memref<1x256xf32, #tpu.memory_space<vmem>>, %arg6: memref<16x256xbf16, #tpu.memory_space<vmem>>, %arg7: memref<16x256xbf16, #tpu.memory_space<vmem>>, %arg8: memref<16x256xf32, #tpu.memory_space<vmem>>) attributes {dimension_semantics = [#tpu.dimension_semantics<parallel>, #tpu.dimension_semantics<parallel>, #tpu.dimension_semantics<arbitrary>], iteration_bounds = array<i64: 1, 1, 9>, scalar_prefetch = 0 : i64, scratch_operands = 1 : i64, tpu.core_type = #tpu.core_type<tc>, window_params = [{transform_indices = @transform_0, window_bounds = array<i64: 16, 256>}, {transform_indices = @transform_1, window_bounds = array<i64: 256, 256>}, {transform_indices = @transform_2, window_bounds = array<i64: 1, 256>}, {transform_indices = @transform_3, window_bounds = array<i64: 16, 256>}, {transform_indices = @transform_4, window_bounds = array<i64: 16, 256>}]} {
    %c0_i32 = arith.constant 0 : i32
    %0 = arith.cmpi eq, %arg2, %c0_i32 : i32
    %1 = arith.extui %0 : i1 to i32
    %c0_i32_0 = arith.constant 0 : i32
    %2 = arith.cmpi ne, %1, %c0_i32_0 : i32
    scf.if %2 {
      %cst_9 = arith.constant 0.000000e+00 : f32
      %12 = vector.broadcast %cst_9 : f32 to vector<16x256xf32>
      %c0_10 = arith.constant 0 : index
      %c0_11 = arith.constant 0 : index
      %13 = vector.load %arg8[%c0_10, %c0_11] : memref<16x256xf32, #tpu.memory_space<vmem>>, vector<16x256xf32>
      tpu.vector_store %arg8[%c0_10, %c0_11], %12 {strides = array<i32>} : memref<16x256xf32, #tpu.memory_space<vmem>>, vector<16x256xf32>,
    } else {
    }
    %c0 = arith.constant 0 : index
    %c0_1 = arith.constant 0 : index
    %3 = vector.load %arg8[%c0, %c0_1] : memref<16x256xf32, #tpu.memory_space<vmem>>, vector<16x256xf32>
    %c0_2 = arith.constant 0 : index
    %c0_3 = arith.constant 0 : index
    %4 = vector.load %arg3[%c0_2, %c0_3] : memref<16x256xbf16, #tpu.memory_space<vmem>>, vector<16x256xbf16>
    %c0_4 = arith.constant 0 : index
    %c0_5 = arith.constant 0 : index
    %5 = vector.load %arg4[%c0_4, %c0_5] : memref<256x256xbf16, #tpu.memory_space<vmem>>, vector<256x256xbf16>
    %cst = arith.constant dense<0.000000e+00> : vector<16x256xf32>
    %6 = tpu.matmul %4, %5, %cst {dimension_numbers = #tpu.dot_dimension_numbers<[1], [0], [0], [1], [0, 0, 1, 1], [], []>} : vector<16x256xbf16>, vector<256x256xbf16>, vector<16x256xf32> -> vector<16x256xf32>
    %7 = arith.addf %3, %6 : vector<16x256xf32>
    %c0_6 = arith.constant 0 : index
    %c0_7 = arith.constant 0 : index
    %8 = vector.load %arg8[%c0_6, %c0_7] : memref<16x256xf32, #tpu.memory_space<vmem>>, vector<16x256xf32>
    tpu.vector_store %arg8[%c0_6, %c0_7], %7 {strides = array<i32>} : memref<16x256xf32, #tpu.memory_space<vmem>>, vector<16x256xf32>,
    %c8_i32 = arith.constant 8 : i32
    %9 = arith.cmpi eq, %arg2, %c8_i32 : i32
    %10 = arith.extui %9 : i1 to i32
    %c0_i32_8 = arith.constant 0 : i32
    %11 = arith.cmpi ne, %10, %c0_i32_8 : i32
    scf.if %11 {
      %c0_9 = arith.constant 0 : index
      %c0_10 = arith.constant 0 : index
      %12 = vector.load %arg8[%c0_9, %c0_10] : memref<16x256xf32, #tpu.memory_space<vmem>>, vector<16x256xf32>
      %c0_11 = arith.constant 0 : index
      %c0_12 = arith.constant 0 : index
      %13 = vector.load %arg5[%c0_11, %c0_12] : memref<1x256xf32, #tpu.memory_space<vmem>>, vector<1x256xf32>
      %14 = vector.broadcast %13 : vector<1x256xf32> to vector<16x256xf32>
      %15 = arith.addf %12, %14 : vector<16x256xf32>
      %c0_13 = arith.constant 0 : index
      %c0_14 = arith.constant 0 : index
      %16 = vector.load %arg6[%c0_13, %c0_14] : memref<16x256xbf16, #tpu.memory_space<vmem>>, vector<16x256xbf16>
      %17 = arith.extf %16 : vector<16x256xbf16> to vector<16x256xf32>
      %18 = arith.addf %15, %17 : vector<16x256xf32>
      %cst_15 = arith.constant 0.000000e+00 : f32
      %19 = vector.broadcast %cst_15 : f32 to vector<16x256xf32>
      %20 = arith.maximumf %18, %19 : vector<16x256xf32>
      %21 = arith.truncf %20 : vector<16x256xf32> to vector<16x256xbf16>
      %c0_16 = arith.constant 0 : index
      %c0_17 = arith.constant 0 : index
      %22 = vector.load %arg7[%c0_16, %c0_17] : memref<16x256xbf16, #tpu.memory_space<vmem>>, vector<16x256xbf16>
      tpu.vector_store %arg7[%c0_16, %c0_17], %21 {strides = array<i32>} : memref<16x256xbf16, #tpu.memory_space<vmem>>, vector<16x256xbf16>,
    } else {
    }
    return
  }
  func.func @transform_0(%arg0: i32, %arg1: i32, %arg2: i32) -> (i32, i32) {
    %c0_i32 = arith.constant 0 : i32
    return %arg0, %arg2 : i32, i32
  }
  func.func @transform_1(%arg0: i32, %arg1: i32, %arg2: i32) -> (i32, i32) {
    %c0_i32 = arith.constant 0 : i32
    return %arg2, %arg1 : i32, i32
  }
  func.func @transform_2(%arg0: i32, %arg1: i32, %arg2: i32) -> (i32, i32) {
    %c0_i32 = arith.constant 0 : i32
    %c0_i32_0 = arith.constant 0 : i32
    return %c0_i32, %arg1 : i32, i32
  }
  func.func @transform_3(%arg0: i32, %arg1: i32, %arg2: i32) -> (i32, i32) {
    %c0_i32 = arith.constant 0 : i32
    return %arg0, %arg1 : i32, i32
  }
  func.func @transform_4(%arg0: i32, %arg1: i32, %arg2: i32) -> (i32, i32) {
    %c0_i32 = arith.constant 0 : i32
    return %arg0, %arg1 : i32, i32
  }
}

module attributes {stable_mosaic.version = 11 : i64} {
  func.func @_gemm_kernel(%arg0: i32, %arg1: i32, %arg2: i32, %arg3: memref<16x256xbf16, #tpu.memory_space<vmem>>, %arg4: memref<256x256xbf16, #tpu.memory_space<vmem>>, %arg5: memref<1x256xf32, #tpu.memory_space<vmem>>, %arg6: memref<16x256xbf16, #tpu.memory_space<vmem>>, %arg7: memref<16x256xf32, #tpu.memory_space<vmem>>) attributes {dimension_semantics = [#tpu.dimension_semantics<parallel>, #tpu.dimension_semantics<parallel>, #tpu.dimension_semantics<arbitrary>], iteration_bounds = array<i64: 1, 1, 9>, scalar_prefetch = 0 : i64, scratch_operands = 1 : i64, tpu.core_type = #tpu.core_type<tc>, window_params = [{transform_indices = @transform_0, window_bounds = array<i64: 16, 256>}, {transform_indices = @transform_1, window_bounds = array<i64: 256, 256>}, {transform_indices = @transform_2, window_bounds = array<i64: 1, 256>}, {transform_indices = @transform_3, window_bounds = array<i64: 16, 256>}]} {
    %c0_i32 = arith.constant 0 : i32
    %0 = arith.cmpi eq, %arg2, %c0_i32 : i32
    %1 = arith.extui %0 : i1 to i32
    %c0_i32_0 = arith.constant 0 : i32
    %2 = arith.cmpi ne, %1, %c0_i32_0 : i32
    scf.if %2 {
      %cst_9 = arith.constant 0.000000e+00 : f32
      %12 = vector.broadcast %cst_9 : f32 to vector<16x256xf32>
      %c0_10 = arith.constant 0 : index
      %c0_11 = arith.constant 0 : index
      %13 = vector.load %arg7[%c0_10, %c0_11] : memref<16x256xf32, #tpu.memory_space<vmem>>, vector<16x256xf32>
      tpu.vector_store %arg7[%c0_10, %c0_11], %12 {strides = array<i32>} : memref<16x256xf32, #tpu.memory_space<vmem>>, vector<16x256xf32>,
    } else {
    }
    %c0 = arith.constant 0 : index
    %c0_1 = arith.constant 0 : index
    %3 = vector.load %arg7[%c0, %c0_1] : memref<16x256xf32, #tpu.memory_space<vmem>>, vector<16x256xf32>
    %c0_2 = arith.constant 0 : index
    %c0_3 = arith.constant 0 : index
    %4 = vector.load %arg3[%c0_2, %c0_3] : memref<16x256xbf16, #tpu.memory_space<vmem>>, vector<16x256xbf16>
    %c0_4 = arith.constant 0 : index
    %c0_5 = arith.constant 0 : index
    %5 = vector.load %arg4[%c0_4, %c0_5] : memref<256x256xbf16, #tpu.memory_space<vmem>>, vector<256x256xbf16>
    %cst = arith.constant dense<0.000000e+00> : vector<16x256xf32>
    %6 = tpu.matmul %4, %5, %cst {dimension_numbers = #tpu.dot_dimension_numbers<[1], [0], [0], [1], [0, 0, 1, 1], [], []>} : vector<16x256xbf16>, vector<256x256xbf16>, vector<16x256xf32> -> vector<16x256xf32>
    %7 = arith.addf %3, %6 : vector<16x256xf32>
    %c0_6 = arith.constant 0 : index
    %c0_7 = arith.constant 0 : index
    %8 = vector.load %arg7[%c0_6, %c0_7] : memref<16x256xf32, #tpu.memory_space<vmem>>, vector<16x256xf32>
    tpu.vector_store %arg7[%c0_6, %c0_7], %7 {strides = array<i32>} : memref<16x256xf32, #tpu.memory_space<vmem>>, vector<16x256xf32>,
    %c8_i32 = arith.constant 8 : i32
    %9 = arith.cmpi eq, %arg2, %c8_i32 : i32
    %10 = arith.extui %9 : i1 to i32
    %c0_i32_8 = arith.constant 0 : i32
    %11 = arith.cmpi ne, %10, %c0_i32_8 : i32
    scf.if %11 {
      %c0_9 = arith.constant 0 : index
      %c0_10 = arith.constant 0 : index
      %12 = vector.load %arg7[%c0_9, %c0_10] : memref<16x256xf32, #tpu.memory_space<vmem>>, vector<16x256xf32>
      %c0_11 = arith.constant 0 : index
      %c0_12 = arith.constant 0 : index
      %13 = vector.load %arg5[%c0_11, %c0_12] : memref<1x256xf32, #tpu.memory_space<vmem>>, vector<1x256xf32>
      %14 = vector.broadcast %13 : vector<1x256xf32> to vector<16x256xf32>
      %15 = arith.addf %12, %14 : vector<16x256xf32>
      %cst_13 = arith.constant 0.000000e+00 : f32
      %16 = vector.broadcast %cst_13 : f32 to vector<16x256xf32>
      %17 = arith.maximumf %15, %16 : vector<16x256xf32>
      %18 = arith.truncf %17 : vector<16x256xf32> to vector<16x256xbf16>
      %c0_14 = arith.constant 0 : index
      %c0_15 = arith.constant 0 : index
      %19 = vector.load %arg6[%c0_14, %c0_15] : memref<16x256xbf16, #tpu.memory_space<vmem>>, vector<16x256xbf16>
      tpu.vector_store %arg6[%c0_14, %c0_15], %18 {strides = array<i32>} : memref<16x256xbf16, #tpu.memory_space<vmem>>, vector<16x256xbf16>,
    } else {
    }
    return
  }
  func.func @transform_0(%arg0: i32, %arg1: i32, %arg2: i32) -> (i32, i32) {
    %c0_i32 = arith.constant 0 : i32
    return %arg0, %arg2 : i32, i32
  }
  func.func @transform_1(%arg0: i32, %arg1: i32, %arg2: i32) -> (i32, i32) {
    %c0_i32 = arith.constant 0 : i32
    return %arg2, %arg1 : i32, i32
  }
  func.func @transform_2(%arg0: i32, %arg1: i32, %arg2: i32) -> (i32, i32) {
    %c0_i32 = arith.constant 0 : i32
    %c0_i32_0 = arith.constant 0 : i32
    return %c0_i32, %arg1 : i32, i32
  }
  func.func @transform_3(%arg0: i32, %arg1: i32, %arg2: i32) -> (i32, i32) {
    %c0_i32 = arith.constant 0 : i32
    return %arg0, %arg1 : i32, i32
  }
}

module attributes {stable_mosaic.version = 11 : i64} {
  func.func @_gemm_kernel(%arg0: i32, %arg1: i32, %arg2: i32, %arg3: memref<8x256xbf16, #tpu.memory_space<vmem>>, %arg4: memref<256x256xbf16, #tpu.memory_space<vmem>>, %arg5: memref<1x256xf32, #tpu.memory_space<vmem>>, %arg6: memref<8x256xbf16, #tpu.memory_space<vmem>>, %arg7: memref<8x256xf32, #tpu.memory_space<vmem>>) attributes {dimension_semantics = [#tpu.dimension_semantics<parallel>, #tpu.dimension_semantics<parallel>, #tpu.dimension_semantics<arbitrary>], iteration_bounds = array<i64: 1, 2, 9>, scalar_prefetch = 0 : i64, scratch_operands = 1 : i64, tpu.core_type = #tpu.core_type<tc>, window_params = [{transform_indices = @transform_0, window_bounds = array<i64: 8, 256>}, {transform_indices = @transform_1, window_bounds = array<i64: 256, 256>}, {transform_indices = @transform_2, window_bounds = array<i64: 1, 256>}, {transform_indices = @transform_3, window_bounds = array<i64: 8, 256>}]} {
    %c0_i32 = arith.constant 0 : i32
    %0 = arith.cmpi eq, %arg2, %c0_i32 : i32
    %1 = arith.extui %0 : i1 to i32
    %c0_i32_0 = arith.constant 0 : i32
    %2 = arith.cmpi ne, %1, %c0_i32_0 : i32
    scf.if %2 {
      %cst_9 = arith.constant 0.000000e+00 : f32
      %12 = vector.broadcast %cst_9 : f32 to vector<8x256xf32>
      %c0_10 = arith.constant 0 : index
      %c0_11 = arith.constant 0 : index
      %13 = vector.load %arg7[%c0_10, %c0_11] : memref<8x256xf32, #tpu.memory_space<vmem>>, vector<8x256xf32>
      tpu.vector_store %arg7[%c0_10, %c0_11], %12 {strides = array<i32>} : memref<8x256xf32, #tpu.memory_space<vmem>>, vector<8x256xf32>,
    } else {
    }
    %c0 = arith.constant 0 : index
    %c0_1 = arith.constant 0 : index
    %3 = vector.load %arg7[%c0, %c0_1] : memref<8x256xf32, #tpu.memory_space<vmem>>, vector<8x256xf32>
    %c0_2 = arith.constant 0 : index
    %c0_3 = arith.constant 0 : index
    %4 = vector.load %arg3[%c0_2, %c0_3] : memref<8x256xbf16, #tpu.memory_space<vmem>>, vector<8x256xbf16>
    %c0_4 = arith.constant 0 : index
    %c0_5 = arith.constant 0 : index
    %5 = vector.load %arg4[%c0_4, %c0_5] : memref<256x256xbf16, #tpu.memory_space<vmem>>, vector<256x256xbf16>
    %cst = arith.constant dense<0.000000e+00> : vector<8x256xf32>
    %6 = tpu.matmul %4, %5, %cst {dimension_numbers = #tpu.dot_dimension_numbers<[1], [0], [0], [1], [0, 0, 1, 1], [], []>} : vector<8x256xbf16>, vector<256x256xbf16>, vector<8x256xf32> -> vector<8x256xf32>
    %7 = arith.addf %3, %6 : vector<8x256xf32>
    %c0_6 = arith.constant 0 : index
    %c0_7 = arith.constant 0 : index
    %8 = vector.load %arg7[%c0_6, %c0_7] : memref<8x256xf32, #tpu.memory_space<vmem>>, vector<8x256xf32>
    tpu.vector_store %arg7[%c0_6, %c0_7], %7 {strides = array<i32>} : memref<8x256xf32, #tpu.memory_space<vmem>>, vector<8x256xf32>,
    %c8_i32 = arith.constant 8 : i32
    %9 = arith.cmpi eq, %arg2, %c8_i32 : i32
    %10 = arith.extui %9 : i1 to i32
    %c0_i32_8 = arith.constant 0 : i32
    %11 = arith.cmpi ne, %10, %c0_i32_8 : i32
    scf.if %11 {
      %c0_9 = arith.constant 0 : index
      %c0_10 = arith.constant 0 : index
      %12 = vector.load %arg7[%c0_9, %c0_10] : memref<8x256xf32, #tpu.memory_space<vmem>>, vector<8x256xf32>
      %c0_11 = arith.constant 0 : index
      %c0_12 = arith.constant 0 : index
      %13 = vector.load %arg5[%c0_11, %c0_12] : memref<1x256xf32, #tpu.memory_space<vmem>>, vector<1x256xf32>
      %14 = vector.broadcast %13 : vector<1x256xf32> to vector<8x256xf32>
      %15 = arith.addf %12, %14 : vector<8x256xf32>
      %cst_13 = arith.constant 0.000000e+00 : f32
      %16 = vector.broadcast %cst_13 : f32 to vector<8x256xf32>
      %17 = arith.maximumf %15, %16 : vector<8x256xf32>
      %18 = arith.truncf %17 : vector<8x256xf32> to vector<8x256xbf16>
      %c0_14 = arith.constant 0 : index
      %c0_15 = arith.constant 0 : index
      %19 = vector.load %arg6[%c0_14, %c0_15] : memref<8x256xbf16, #tpu.memory_space<vmem>>, vector<8x256xbf16>
      tpu.vector_store %arg6[%c0_14, %c0_15], %18 {strides = array<i32>} : memref<8x256xbf16, #tpu.memory_space<vmem>>, vector<8x256xbf16>,
    } else {
    }
    return
  }
  func.func @transform_0(%arg0: i32, %arg1: i32, %arg2: i32) -> (i32, i32) {
    %c0_i32 = arith.constant 0 : i32
    return %arg0, %arg2 : i32, i32
  }
  func.func @transform_1(%arg0: i32, %arg1: i32, %arg2: i32) -> (i32, i32) {
    %c0_i32 = arith.constant 0 : i32
    return %arg2, %arg1 : i32, i32
  }
  func.func @transform_2(%arg0: i32, %arg1: i32, %arg2: i32) -> (i32, i32) {
    %c0_i32 = arith.constant 0 : i32
    %c0_i32_0 = arith.constant 0 : i32
    return %c0_i32, %arg1 : i32, i32
  }
  func.func @transform_3(%arg0: i32, %arg1: i32, %arg2: i32) -> (i32, i32) {
    %c0_i32 = arith.constant 0 : i32
    return %arg0, %arg1 : i32, i32
  }
}

module attributes {stable_mosaic.version = 11 : i64} {
  func.func @_gemm_kernel(%arg0: i32, %arg1: i32, %arg2: i32, %arg3: memref<8x256xbf16, #tpu.memory_space<vmem>>, %arg4: memref<256x256xbf16, #tpu.memory_space<vmem>>, %arg5: memref<1x256xf32, #tpu.memory_space<vmem>>, %arg6: memref<8x256xbf16, #tpu.memory_space<vmem>>, %arg7: memref<8x256xf32, #tpu.memory_space<vmem>>) attributes {dimension_semantics = [#tpu.dimension_semantics<parallel>, #tpu.dimension_semantics<parallel>, #tpu.dimension_semantics<arbitrary>], iteration_bounds = array<i64: 1, 2, 1>, scalar_prefetch = 0 : i64, scratch_operands = 1 : i64, tpu.core_type = #tpu.core_type<tc>, window_params = [{transform_indices = @transform_0, window_bounds = array<i64: 8, 256>}, {transform_indices = @transform_1, window_bounds = array<i64: 256, 256>}, {transform_indices = @transform_2, window_bounds = array<i64: 1, 256>}, {transform_indices = @transform_3, window_bounds = array<i64: 8, 256>}]} {
    %c0_i32 = arith.constant 0 : i32
    %0 = arith.cmpi eq, %arg2, %c0_i32 : i32
    %1 = arith.extui %0 : i1 to i32
    %c0_i32_0 = arith.constant 0 : i32
    %2 = arith.cmpi ne, %1, %c0_i32_0 : i32
    scf.if %2 {
      %cst_10 = arith.constant 0.000000e+00 : f32
      %12 = vector.broadcast %cst_10 : f32 to vector<8x256xf32>
      %c0_11 = arith.constant 0 : index
      %c0_12 = arith.constant 0 : index
      %13 = vector.load %arg7[%c0_11, %c0_12] : memref<8x256xf32, #tpu.memory_space<vmem>>, vector<8x256xf32>
      tpu.vector_store %arg7[%c0_11, %c0_12], %12 {strides = array<i32>} : memref<8x256xf32, #tpu.memory_space<vmem>>, vector<8x256xf32>,
    } else {
    }
    %c0 = arith.constant 0 : index
    %c0_1 = arith.constant 0 : index
    %3 = vector.load %arg7[%c0, %c0_1] : memref<8x256xf32, #tpu.memory_space<vmem>>, vector<8x256xf32>
    %c0_2 = arith.constant 0 : index
    %c0_3 = arith.constant 0 : index
    %4 = vector.load %arg3[%c0_2, %c0_3] : memref<8x256xbf16, #tpu.memory_space<vmem>>, vector<8x256xbf16>
    %c0_4 = arith.constant 0 : index
    %c0_5 = arith.constant 0 : index
    %5 = vector.load %arg4[%c0_4, %c0_5] : memref<256x256xbf16, #tpu.memory_space<vmem>>, vector<256x256xbf16>
    %cst = arith.constant dense<0.000000e+00> : vector<8x256xf32>
    %6 = tpu.matmul %4, %5, %cst {dimension_numbers = #tpu.dot_dimension_numbers<[1], [0], [0], [1], [0, 0, 1, 1], [], []>} : vector<8x256xbf16>, vector<256x256xbf16>, vector<8x256xf32> -> vector<8x256xf32>
    %7 = arith.addf %3, %6 : vector<8x256xf32>
    %c0_6 = arith.constant 0 : index
    %c0_7 = arith.constant 0 : index
    %8 = vector.load %arg7[%c0_6, %c0_7] : memref<8x256xf32, #tpu.memory_space<vmem>>, vector<8x256xf32>
    tpu.vector_store %arg7[%c0_6, %c0_7], %7 {strides = array<i32>} : memref<8x256xf32, #tpu.memory_space<vmem>>, vector<8x256xf32>,
    %c0_i32_8 = arith.constant 0 : i32
    %9 = arith.cmpi eq, %arg2, %c0_i32_8 : i32
    %10 = arith.extui %9 : i1 to i32
    %c0_i32_9 = arith.constant 0 : i32
    %11 = arith.cmpi ne, %10, %c0_i32_9 : i32
    scf.if %11 {
      %c0_10 = arith.constant 0 : index
      %c0_11 = arith.constant 0 : index
      %12 = vector.load %arg7[%c0_10, %c0_11] : memref<8x256xf32, #tpu.memory_space<vmem>>, vector<8x256xf32>
      %c0_12 = arith.constant 0 : index
      %c0_13 = arith.constant 0 : index
      %13 = vector.load %arg5[%c0_12, %c0_13] : memref<1x256xf32, #tpu.memory_space<vmem>>, vector<1x256xf32>
      %14 = vector.broadcast %13 : vector<1x256xf32> to vector<8x256xf32>
      %15 = arith.addf %12, %14 : vector<8x256xf32>
      %16 = arith.truncf %15 : vector<8x256xf32> to vector<8x256xbf16>
      %c0_14 = arith.constant 0 : index
      %c0_15 = arith.constant 0 : index
      %17 = vector.load %arg6[%c0_14, %c0_15] : memref<8x256xbf16, #tpu.memory_space<vmem>>, vector<8x256xbf16>
      tpu.vector_store %arg6[%c0_14, %c0_15], %16 {strides = array<i32>} : memref<8x256xbf16, #tpu.memory_space<vmem>>, vector<8x256xbf16>,
    } else {
    }
    return
  }
  func.func @transform_0(%arg0: i32, %arg1: i32, %arg2: i32) -> (i32, i32) {
    %c0_i32 = arith.constant 0 : i32
    return %arg0, %arg2 : i32, i32
  }
  func.func @transform_1(%arg0: i32, %arg1: i32, %arg2: i32) -> (i32, i32) {
    %c0_i32 = arith.constant 0 : i32
    return %arg2, %arg1 : i32, i32
  }
  func.func @transform_2(%arg0: i32, %arg1: i32, %arg2: i32) -> (i32, i32) {
    %c0_i32 = arith.constant 0 : i32
    %c0_i32_0 = arith.constant 0 : i32
    return %c0_i32, %arg1 : i32, i32
  }
  func.func @transform_3(%arg0: i32, %arg1: i32, %arg2: i32) -> (i32, i32) {
    %c0_i32 = arith.constant 0 : i32
    return %arg0, %arg1 : i32, i32
  }
}

module attributes {stable_mosaic.version = 11 : i64} {
  func.func @_gemm_kernel(%arg0: i32, %arg1: i32, %arg2: i32, %arg3: memref<8x256xbf16, #tpu.memory_space<vmem>>, %arg4: memref<256x256xbf16, #tpu.memory_space<vmem>>, %arg5: memref<1x256xf32, #tpu.memory_space<vmem>>, %arg6: memref<8x256xbf16, #tpu.memory_space<vmem>>, %arg7: memref<8x256xbf16, #tpu.memory_space<vmem>>, %arg8: memref<8x256xf32, #tpu.memory_space<vmem>>) attributes {dimension_semantics = [#tpu.dimension_semantics<parallel>, #tpu.dimension_semantics<parallel>, #tpu.dimension_semantics<arbitrary>], iteration_bounds = array<i64: 1, 2, 18>, scalar_prefetch = 0 : i64, scratch_operands = 1 : i64, tpu.core_type = #tpu.core_type<tc>, window_params = [{transform_indices = @transform_0, window_bounds = array<i64: 8, 256>}, {transform_indices = @transform_1, window_bounds = array<i64: 256, 256>}, {transform_indices = @transform_2, window_bounds = array<i64: 1, 256>}, {transform_indices = @transform_3, window_bounds = array<i64: 8, 256>}, {transform_indices = @transform_4, window_bounds = array<i64: 8, 256>}]} {
    %c0_i32 = arith.constant 0 : i32
    %0 = arith.cmpi eq, %arg2, %c0_i32 : i32
    %1 = arith.extui %0 : i1 to i32
    %c0_i32_0 = arith.constant 0 : i32
    %2 = arith.cmpi ne, %1, %c0_i32_0 : i32
    scf.if %2 {
      %cst_9 = arith.constant 0.000000e+00 : f32
      %12 = vector.broadcast %cst_9 : f32 to vector<8x256xf32>
      %c0_10 = arith.constant 0 : index
      %c0_11 = arith.constant 0 : index
      %13 = vector.load %arg8[%c0_10, %c0_11] : memref<8x256xf32, #tpu.memory_space<vmem>>, vector<8x256xf32>
      tpu.vector_store %arg8[%c0_10, %c0_11], %12 {strides = array<i32>} : memref<8x256xf32, #tpu.memory_space<vmem>>, vector<8x256xf32>,
    } else {
    }
    %c0 = arith.constant 0 : index
    %c0_1 = arith.constant 0 : index
    %3 = vector.load %arg8[%c0, %c0_1] : memref<8x256xf32, #tpu.memory_space<vmem>>, vector<8x256xf32>
    %c0_2 = arith.constant 0 : index
    %c0_3 = arith.constant 0 : index
    %4 = vector.load %arg3[%c0_2, %c0_3] : memref<8x256xbf16, #tpu.memory_space<vmem>>, vector<8x256xbf16>
    %c0_4 = arith.constant 0 : index
    %c0_5 = arith.constant 0 : index
    %5 = vector.load %arg4[%c0_4, %c0_5] : memref<256x256xbf16, #tpu.memory_space<vmem>>, vector<256x256xbf16>
    %cst = arith.constant dense<0.000000e+00> : vector<8x256xf32>
    %6 = tpu.matmul %4, %5, %cst {dimension_numbers = #tpu.dot_dimension_numbers<[1], [0], [0], [1], [0, 0, 1, 1], [], []>} : vector<8x256xbf16>, vector<256x256xbf16>, vector<8x256xf32> -> vector<8x256xf32>
    %7 = arith.addf %3, %6 : vector<8x256xf32>
    %c0_6 = arith.constant 0 : index
    %c0_7 = arith.constant 0 : index
    %8 = vector.load %arg8[%c0_6, %c0_7] : memref<8x256xf32, #tpu.memory_space<vmem>>, vector<8x256xf32>
    tpu.vector_store %arg8[%c0_6, %c0_7], %7 {strides = array<i32>} : memref<8x256xf32, #tpu.memory_space<vmem>>, vector<8x256xf32>,
    %c17_i32 = arith.constant 17 : i32
    %9 = arith.cmpi eq, %arg2, %c17_i32 : i32
    %10 = arith.extui %9 : i1 to i32
    %c0_i32_8 = arith.constant 0 : i32
    %11 = arith.cmpi ne, %10, %c0_i32_8 : i32
    scf.if %11 {
      %c0_9 = arith.constant 0 : index
      %c0_10 = arith.constant 0 : index
      %12 = vector.load %arg8[%c0_9, %c0_10] : memref<8x256xf32, #tpu.memory_space<vmem>>, vector<8x256xf32>
      %c0_11 = arith.constant 0 : index
      %c0_12 = arith.constant 0 : index
      %13 = vector.load %arg5[%c0_11, %c0_12] : memref<1x256xf32, #tpu.memory_space<vmem>>, vector<1x256xf32>
      %14 = vector.broadcast %13 : vector<1x256xf32> to vector<8x256xf32>
      %15 = arith.addf %12, %14 : vector<8x256xf32>
      %c0_13 = arith.constant 0 : index
      %c0_14 = arith.constant 0 : index
      %16 = vector.load %arg6[%c0_13, %c0_14] : memref<8x256xbf16, #tpu.memory_space<vmem>>, vector<8x256xbf16>
      %17 = arith.extf %16 : vector<8x256xbf16> to vector<8x256xf32>
      %18 = arith.addf %15, %17 : vector<8x256xf32>
      %cst_15 = arith.constant 0.000000e+00 : f32
      %19 = vector.broadcast %cst_15 : f32 to vector<8x256xf32>
      %20 = arith.maximumf %18, %19 : vector<8x256xf32>
      %21 = arith.truncf %20 : vector<8x256xf32> to vector<8x256xbf16>
      %c0_16 = arith.constant 0 : index
      %c0_17 = arith.constant 0 : index
      %22 = vector.load %arg7[%c0_16, %c0_17] : memref<8x256xbf16, #tpu.memory_space<vmem>>, vector<8x256xbf16>
      tpu.vector_store %arg7[%c0_16, %c0_17], %21 {strides = array<i32>} : memref<8x256xbf16, #tpu.memory_space<vmem>>, vector<8x256xbf16>,
    } else {
    }
    return
  }
  func.func @transform_0(%arg0: i32, %arg1: i32, %arg2: i32) -> (i32, i32) {
    %c0_i32 = arith.constant 0 : i32
    return %arg0, %arg2 : i32, i32
  }
  func.func @transform_1(%arg0: i32, %arg1: i32, %arg2: i32) -> (i32, i32) {
    %c0_i32 = arith.constant 0 : i32
    return %arg2, %arg1 : i32, i32
  }
  func.func @transform_2(%arg0: i32, %arg1: i32, %arg2: i32) -> (i32, i32) {
    %c0_i32 = arith.constant 0 : i32
    %c0_i32_0 = arith.constant 0 : i32
    return %c0_i32, %arg1 : i32, i32
  }
  func.func @transform_3(%arg0: i32, %arg1: i32, %arg2: i32) -> (i32, i32) {
    %c0_i32 = arith.constant 0 : i32
    return %arg0, %arg1 : i32, i32
  }
  func.func @transform_4(%arg0: i32, %arg1: i32, %arg2: i32) -> (i32, i32) {
    %c0_i32 = arith.constant 0 : i32
    return %arg0, %arg1 : i32, i32
  }
}

module attributes {stable_mosaic.version = 11 : i64} {
  func.func @_gemm_kernel(%arg0: i32, %arg1: i32, %arg2: i32, %arg3: memref<8x256xbf16, #tpu.memory_space<vmem>>, %arg4: memref<256x256xbf16, #tpu.memory_space<vmem>>, %arg5: memref<1x256xf32, #tpu.memory_space<vmem>>, %arg6: memref<8x256xbf16, #tpu.memory_space<vmem>>, %arg7: memref<8x256xf32, #tpu.memory_space<vmem>>) attributes {dimension_semantics = [#tpu.dimension_semantics<parallel>, #tpu.dimension_semantics<parallel>, #tpu.dimension_semantics<arbitrary>], iteration_bounds = array<i64: 1, 2, 18>, scalar_prefetch = 0 : i64, scratch_operands = 1 : i64, tpu.core_type = #tpu.core_type<tc>, window_params = [{transform_indices = @transform_0, window_bounds = array<i64: 8, 256>}, {transform_indices = @transform_1, window_bounds = array<i64: 256, 256>}, {transform_indices = @transform_2, window_bounds = array<i64: 1, 256>}, {transform_indices = @transform_3, window_bounds = array<i64: 8, 256>}]} {
    %c0_i32 = arith.constant 0 : i32
    %0 = arith.cmpi eq, %arg2, %c0_i32 : i32
    %1 = arith.extui %0 : i1 to i32
    %c0_i32_0 = arith.constant 0 : i32
    %2 = arith.cmpi ne, %1, %c0_i32_0 : i32
    scf.if %2 {
      %cst_9 = arith.constant 0.000000e+00 : f32
      %12 = vector.broadcast %cst_9 : f32 to vector<8x256xf32>
      %c0_10 = arith.constant 0 : index
      %c0_11 = arith.constant 0 : index
      %13 = vector.load %arg7[%c0_10, %c0_11] : memref<8x256xf32, #tpu.memory_space<vmem>>, vector<8x256xf32>
      tpu.vector_store %arg7[%c0_10, %c0_11], %12 {strides = array<i32>} : memref<8x256xf32, #tpu.memory_space<vmem>>, vector<8x256xf32>,
    } else {
    }
    %c0 = arith.constant 0 : index
    %c0_1 = arith.constant 0 : index
    %3 = vector.load %arg7[%c0, %c0_1] : memref<8x256xf32, #tpu.memory_space<vmem>>, vector<8x256xf32>
    %c0_2 = arith.constant 0 : index
    %c0_3 = arith.constant 0 : index
    %4 = vector.load %arg3[%c0_2, %c0_3] : memref<8x256xbf16, #tpu.memory_space<vmem>>, vector<8x256xbf16>
    %c0_4 = arith.constant 0 : index
    %c0_5 = arith.constant 0 : index
    %5 = vector.load %arg4[%c0_4, %c0_5] : memref<256x256xbf16, #tpu.memory_space<vmem>>, vector<256x256xbf16>
    %cst = arith.constant dense<0.000000e+00> : vector<8x256xf32>
    %6 = tpu.matmul %4, %5, %cst {dimension_numbers = #tpu.dot_dimension_numbers<[1], [0], [0], [1], [0, 0, 1, 1], [], []>} : vector<8x256xbf16>, vector<256x256xbf16>, vector<8x256xf32> -> vector<8x256xf32>
    %7 = arith.addf %3, %6 : vector<8x256xf32>
    %c0_6 = arith.constant 0 : index
    %c0_7 = arith.constant 0 : index
    %8 = vector.load %arg7[%c0_6, %c0_7] : memref<8x256xf32, #tpu.memory_space<vmem>>, vector<8x256xf32>
    tpu.vector_store %arg7[%c0_6, %c0_7], %7 {strides = array<i32>} : memref<8x256xf32, #tpu.memory_space<vmem>>, vector<8x256xf32>,
    %c17_i32 = arith.constant 17 : i32
    %9 = arith.cmpi eq, %arg2, %c17_i32 : i32
    %10 = arith.extui %9 : i1 to i32
    %c0_i32_8 = arith.constant 0 : i32
    %11 = arith.cmpi ne, %10, %c0_i32_8 : i32
    scf.if %11 {
      %c0_9 = arith.constant 0 : index
      %c0_10 = arith.constant 0 : index
      %12 = vector.load %arg7[%c0_9, %c0_10] : memref<8x256xf32, #tpu.memory_space<vmem>>, vector<8x256xf32>
      %c0_11 = arith.constant 0 : index
      %c0_12 = arith.constant 0 : index
      %13 = vector.load %arg5[%c0_11, %c0_12] : memref<1x256xf32, #tpu.memory_space<vmem>>, vector<1x256xf32>
      %14 = vector.broadcast %13 : vector<1x256xf32> to vector<8x256xf32>
      %15 = arith.addf %12, %14 : vector<8x256xf32>
      %cst_13 = arith.constant 0.000000e+00 : f32
      %16 = vector.broadcast %cst_13 : f32 to vector<8x256xf32>
      %17 = arith.maximumf %15, %16 : vector<8x256xf32>
      %18 = arith.truncf %17 : vector<8x256xf32> to vector<8x256xbf16>
      %c0_14 = arith.constant 0 : index
      %c0_15 = arith.constant 0 : index
      %19 = vector.load %arg6[%c0_14, %c0_15] : memref<8x256xbf16, #tpu.memory_space<vmem>>, vector<8x256xbf16>
      tpu.vector_store %arg6[%c0_14, %c0_15], %18 {strides = array<i32>} : memref<8x256xbf16, #tpu.memory_space<vmem>>, vector<8x256xbf16>,
    } else {
    }
    return
  }
  func.func @transform_0(%arg0: i32, %arg1: i32, %arg2: i32) -> (i32, i32) {
    %c0_i32 = arith.constant 0 : i32
    return %arg0, %arg2 : i32, i32
  }
  func.func @transform_1(%arg0: i32, %arg1: i32, %arg2: i32) -> (i32, i32) {
    %c0_i32 = arith.constant 0 : i32
    return %arg2, %arg1 : i32, i32
  }
  func.func @transform_2(%arg0: i32, %arg1: i32, %arg2: i32) -> (i32, i32) {
    %c0_i32 = arith.constant 0 : i32
    %c0_i32_0 = arith.constant 0 : i32
    return %c0_i32, %arg1 : i32, i32
  }
  func.func @transform_3(%arg0: i32, %arg1: i32, %arg2: i32) -> (i32, i32) {
    %c0_i32 = arith.constant 0 : i32
    return %arg0, %arg1 : i32, i32
  }
}

</mosaic_0001>

<bundles_post_ra>
// kernel: resnet18_forward.21
= control target key start
LH: loop header
LB: loop body
LE: loop exit
PB: predicated region body
PF: predicated region fallthrough
CT: control target
= control target key end

     0   :  { %s1542_s12 = smov 0   ;;  %s1544_s13 = smov 0   ;;  %s1848_s0 = inlined_call_operand.vmem [shape: bf16[1024,147], index: 0, kind: input, shape index: {}]   ;;  %s1849_s1 = inlined_call_operand.vmem [shape: bf16[147,64], index: 1, kind: input, shape index: {}]   ;;  %s1850_s2 = inlined_call_operand.vmem [shape: f32[1,64], index: 2, kind: input, shape index: {}]   ;;  %s1851_s3 = inlined_call_operand.vmem [shape: bf16[1024,64], index: 3, kind: output, shape index: {}]  }
   0x1   :  { %s1546_s14 = smov 0  }
   0x2 LB: > { %s32_s15 = sadd.s32 1, %s1513_s13  ;;  %p1258_p0 = scmp.ge.s32.totalorder %s1517_s14, 1  ;;  %s1517_s14 = sphi %s1546_s14, %s13_s14   ;;  %s1513_s13 = sphi %s1544_s13, %s1853_s13   ;;  %s1509_s12 = sphi %s1542_s12, %s1852_s12  }
   0x3   : > { %p34_p1 = scmp.ge.s32.totalorder %s32_s15, 4  ;;  %p191_p2 = scmp.lt.s32.totalorder %s1517_s14, 5 }
   0x5   : > { %s1855_s15 = smov (%p34_p1, %s32_s15), 0  ;;  %p192_p3 = pnand %p1258_p0, %p191_p2 }
   0x6   : > { %v1437_v0 = vld [vmem:[%s1849_s1] sm:$0xff] (!%p192_p3)   ;;  %v1519_v1 = vmov (!%p192_p3), 0   ;;  %v1438_v2 = vld [vmem:[%s1849_s1 + $0x8] sm:$0xff] (!%p192_p3)   ;;  %v1439_v3 = vld [vmem:[%s1849_s1 + $0x10] sm:$0xff] (!%p192_p3)   ;;  %s1259_s22 = sshll.u32 (!%p192_p3), %s1509_s12, 5  ;;  %vm272_vm0 = vcmask (!%p192_p3), 523264  }
   0x7   : > { %195 = sbr.rel (%p192_p3) target bundleno = 337 (0x151), region = 32  ;;  %645 = vmatprep.subr.bf16.mxu0 (!%p192_p3), %v1519_v1  ;;  %1390 = vmatprep.subr.bf16.mxu1 (!%p192_p3), %v1519_v1  ;;  %p236_p4 = scmp.lt.s32.totalorder (!%p192_p3), %s1259_s22, 127  ;;  %v1440_v4 = vld [vmem:[%s1849_s1 + $0x18] sm:$0xff] (!%p192_p3)   ;;  %v1520_v5 = vmov (!%p192_p3), 0.0   ;;  %v1441_v6 = vld [vmem:[%s1849_s1 + $0x20] sm:$0xff] (!%p192_p3)   ;;  %vm589_vm1 = vcmask (!%p192_p3), 154624  }
   0x8   : > { %646 = vmatpush1.bf16.msra.mxu0 (!%p192_p3), %v1437_v0  ;;  %1400 = vmatpush1.bf16.msra.mxu1 (!%p192_p3), %v1437_v0  ;;  %273 = vst.msk [vmem:[#allocation2] sm:$0xff] (!%p192_p3), %vm272_vm0, %v1520_v5  ;;  %274 = vst.msk [vmem:[#allocation2 + $0x8] sm:$0xff] (!%p192_p3), %vm272_vm0, %v1520_v5  ;;  %v1442_v9 = vld [vmem:[%s1849_s1 + $0x28] sm:$0xff] (!%p192_p3)   ;;  %v1443_v10 = vld [vmem:[%s1849_s1 + $0x30] sm:$0xff] (!%p192_p3)   ;;  %vm638_vm2 = vcmask (!%p192_p3), 1040384   ;;  %vm639_vm3 = vcmask (!%p192_p3), 1041408  }
   0x9   : > { %647 = vmatprep.subr.bf16.mxu0 (!%p192_p3), %v1519_v1  ;;  %1391 = vmatprep.subr.bf16.mxu1 (!%p192_p3), %v1519_v1  ;;  %275 = vst.msk [vmem:[#allocation2 + $0x10] sm:$0xff] (!%p192_p3), %vm272_vm0, %v1520_v5  ;;  %276 = vst.msk [vmem:[#allocation2 + $0x18] sm:$0xff] (!%p192_p3), %vm272_vm0, %v1520_v5  ;;  %v1444_v11 = vld [vmem:[%s1849_s1 + $0x38] sm:$0xff] (!%p192_p3)   ;;  %v1521_v12 = vmov (!%p192_p3), 65535   ;;  %v1445_v14 = vld [vmem:[%s1849_s1 + $0x40] sm:$0xff] (!%p192_p3)   ;;  %vm1105_vm4 = vcmask (!%p192_p3), 519168  }
   0xa   : > { %277 = vst.msk [vmem:[#allocation2 + $0x20] sm:$0xff] (!%p192_p3), %vm272_vm0, %v1520_v5  ;;  %278 = vst.msk [vmem:[#allocation2 + $0x28] sm:$0xff] (!%p192_p3), %vm272_vm0, %v1520_v5  ;;  %v640_v13 = vsel (!%p192_p3), %vm638_vm2, 4294967295, %v1521_v12  ;;  %v1446_v15 = vld [vmem:[%s1849_s1 + $0x48] ss:$0 sps:$4 sm:$0x33] (!%p192_p3)  }
   0xb   : > { %279 = vst.msk [vmem:[#allocation2 + $0x30] sm:$0xff] (!%p192_p3), %vm272_vm0, %v1520_v5  ;;  %280 = vst.msk [vmem:[#allocation2 + $0x38] sm:$0xff] (!%p192_p3), %vm272_vm0, %v1520_v5  ;;  %v641_v16 = vsel (!%p192_p3), %vm639_vm3, %v640_v13, 0 }
   0xc   : > { %648 = vmatpush1.bf16.msra.mxu0 (!%p192_p3), %v1438_v2  ;;  %1401 = vmatpush1.bf16.msra.mxu1 (!%p192_p3), %v1438_v2  ;;  %281 = vst.msk [vmem:[#allocation2 + $0x40] sm:$0xff] (!%p192_p3), %vm272_vm0, %v1520_v5  ;;  %282 = vst.msk [vmem:[#allocation2 + $0x48] sm:$0xff] (!%p192_p3), %vm272_vm0, %v1520_v5  ;;  %v643_v17 = vand.u32 (!%p192_p3), %v1446_v15, %v641_v16  ;;  %v1707_v2 = vld [vmem:[%s1850_s2] ss:$0 sm:$0xff] (!%p192_p3) }
   0xd   : > { %649 = vmatprep.subr.bf16.mxu0 (!%p192_p3), %v1519_v1  ;;  %1392 = vmatprep.subr.bf16.mxu1 (!%p192_p3), %v1519_v1  ;;  %283 = vst.msk [vmem:[#allocation2 + $0x50] sm:$0xff] (!%p192_p3), %vm272_vm0, %v1520_v5  ;;  %284 = vst.msk [vmem:[#allocation2 + $0x58] sm:$0xff] (!%p192_p3), %vm272_vm0, %v1520_v5 }
   0xe   : > { %s1857_s22 = smov (!%p236_p4, %s1259_s22), 127  ;;  %285 = vst.msk [vmem:[#allocation2 + $0x60] sm:$0xff] %vm272_vm0, %v1520_v5  ;;  %286 = vst.msk [vmem:[#allocation2 + $0x68] sm:$0xff] %vm272_vm0, %v1520_v5 }
   0xf   : > { %s1357_s25 = sshll.u32 %s1857_s22, 3  ;;  %287 = vst.msk [vmem:[#allocation2 + $0x70] sm:$0xff] %vm272_vm0, %v1520_v5  ;;  %288 = vst.msk [vmem:[#allocation2 + $0x78] sm:$0xff] %vm272_vm0, %v1520_v5  ;;  %v305_v48 = vld [vmem:[#allocation2] sm:$0xff]  ;;  %v306_v52 = vld [vmem:[#allocation2 + $0x8] sm:$0xff]  ;;  %s1263_s19 = sshll.u32 %s1857_s22, 2 }
  0x10   : > { %650 = vmatpush1.bf16.msra.mxu0 %v1439_v3  ;;  %1402 = vmatpush1.bf16.msra.mxu1 %v1439_v3  ;;  %289 = vst.msk [vmem:[#allocation2 + $0x80] sm:$0xff] %vm272_vm0, %v1520_v5  ;;  %290 = vst.msk [vmem:[#allocation2 + $0x88] sm:$0xff] %vm272_vm0, %v1520_v5  ;;  %s1620_s28 = scalar_lea.vmem %s1848_s0, %s1357_s25  ;;  %v307_v0 = vld [vmem:[#allocation2 + $0x10] sm:$0xff]  ;;  %s1721_s22 = scalar_lea.vmem %s1851_s3, %s1263_s19 }
  0x11   : > { %651 = vmatprep.subr.bf16.mxu0 %v1519_v1  ;;  %1393 = vmatprep.subr.bf16.mxu1 %v1519_v1  ;;  %291 = vst.msk [vmem:[#allocation2 + $0x90] sm:$0xff] %vm272_vm0, %v1520_v5  ;;  %292 = vst.msk [vmem:[#allocation2 + $0x98] sm:$0xff] %vm272_vm0, %v1520_v5  ;;  %v1449_v7 = vld [vmem:[%s1620_s28 + $0x4] ss:$8 sps:$4 sm:$0xff]   ;;  %v1447_v18 = vld [vmem:[%s1620_s28] ss:$8 sps:$4 sm:$0xff]  }
  0x12   : > { %293 = vst.msk [vmem:[#allocation2 + $0xa0] sm:$0xff] %vm272_vm0, %v1520_v5  ;;  %294 = vst.msk [vmem:[#allocation2 + $0xa8] sm:$0xff] %vm272_vm0, %v1520_v5  ;;  %v1452_v8 = vld [vmem:[%s1620_s28 + $0x84] ss:$8 sps:$4 sm:$0xff]   ;;  %1306 = vmatprep.mubr.msk.bf16.mxu0 %vm589_vm1, %v1449_v7  ;;  %v1450_v19 = vld [vmem:[%s1620_s28 + $0x80] ss:$8 sps:$4 sm:$0xff]  }
  0x13   : > { %295 = vst.msk [vmem:[#allocation2 + $0xb0] sm:$0xff] %vm272_vm0, %v1520_v5  ;;  %296 = vst.msk [vmem:[#allocation2 + $0xb8] sm:$0xff] %vm272_vm0, %v1520_v5  ;;  %1314 = vmatprep.mubr.msk.bf16.mxu1 %vm589_vm1, %v1452_v8  ;;  %v1453_v20 = vld [vmem:[%s1620_s28 + $0x14] ss:$8 sps:$4 sm:$0xff]   ;;  %v1457_v22 = vld [vmem:[%s1620_s28 + $0x10] ss:$8 sps:$4 sm:$0xff]  }
  0x14   : > { %297 = vst.msk [vmem:[#allocation2 + $0xc0] sm:$0xff] %vm272_vm0, %v1520_v5  ;;  %298 = vst.msk [vmem:[#allocation2 + $0xc8] sm:$0xff] %vm272_vm0, %v1520_v5  ;;  %652 = vmatpush1.bf16.msra.mxu0 %v1440_v4  ;;  %1403 = vmatpush1.bf16.msra.mxu1 %v1440_v4  ;;  %v1455_v21 = vld [vmem:[%s1620_s28 + $0x94] ss:$8 sps:$4 sm:$0xff]   ;;  %v1458_v23 = vld [vmem:[%s1620_s28 + $0x90] ss:$8 sps:$4 sm:$0xff]  }
  0x15   : > { %299 = vst.msk [vmem:[#allocation2 + $0xd0] sm:$0xff] %vm272_vm0, %v1520_v5  ;;  %300 = vst.msk [vmem:[#allocation2 + $0xd8] sm:$0xff] %vm272_vm0, %v1520_v5  ;;  %653 = vmatprep.subr.bf16.mxu0 %v1519_v1  ;;  %1394 = vmatprep.subr.bf16.mxu1 %v1519_v1  ;;  %v1459_v24 = vld [vmem:[%s1620_s28 + $0x24] ss:$8 sps:$4 sm:$0xff]   ;;  %v1463_v26 = vld [vmem:[%s1620_s28 + $0x20] ss:$8 sps:$4 sm:$0xff]  }
  0x16   : > { %301 = vst.msk [vmem:[#allocation2 + $0xe0] sm:$0xff] %vm272_vm0, %v1520_v5  ;;  %302 = vst.msk [vmem:[#allocation2 + $0xe8] sm:$0xff] %vm272_vm0, %v1520_v5  ;;  %v1461_v25 = vld [vmem:[%s1620_s28 + $0xa4] ss:$8 sps:$4 sm:$0xff]   ;;  %v1464_v27 = vld [vmem:[%s1620_s28 + $0xa0] ss:$8 sps:$4 sm:$0xff]  }
  0x17   : > { %303 = vst.msk [vmem:[#allocation2 + $0xf0] sm:$0xff] %vm272_vm0, %v1520_v5  ;;  %304 = vst.msk [vmem:[#allocation2 + $0xf8] sm:$0xff] %vm272_vm0, %v1520_v5  ;;  %v1465_v28 = vld [vmem:[%s1620_s28 + $0x34] ss:$8 sps:$4 sm:$0xff]   ;;  %v1469_v30 = vld [vmem:[%s1620_s28 + $0x30] ss:$8 sps:$4 sm:$0xff]  }
  0x18   : > { %654 = vmatpush1.bf16.msra.mxu0 %v1441_v6  ;;  %1404 = vmatpush1.bf16.msra.mxu1 %v1441_v6  ;;  %v1467_v29 = vld [vmem:[%s1620_s28 + $0xb4] ss:$8 sps:$4 sm:$0xff]   ;;  %v1470_v31 = vld [vmem:[%s1620_s28 + $0xb0] ss:$8 sps:$4 sm:$0xff]   ;;  %v1471_v32 = vld [vmem:[%s1620_s28 + $0x44] ss:$8 sps:$4 sm:$0xff]  }
  0x19   : > { %655 = vmatprep.subr.bf16.mxu0 %v1519_v1  ;;  %1395 = vmatprep.subr.bf16.mxu1 %v1519_v1  ;;  %v1473_v33 = vld [vmem:[%s1620_s28 + $0xc4] ss:$8 sps:$4 sm:$0xff]   ;;  %v1475_v34 = vld [vmem:[%s1620_s28 + $0x40] ss:$8 sps:$4 sm:$0xff]   ;;  %v1477_v36 = vld [vmem:[%s1620_s28 + $0x54] ss:$8 sps:$4 sm:$0xff]  }
  0x1a   : > { %v1476_v35 = vld [vmem:[%s1620_s28 + $0xc0] ss:$8 sps:$4 sm:$0xff]   ;;  %v1479_v37 = vld [vmem:[%s1620_s28 + $0xd4] ss:$8 sps:$4 sm:$0xff]   ;;  %v1481_v38 = vld [vmem:[%s1620_s28 + $0x50] ss:$8 sps:$4 sm:$0xff]  }
  0x1b   : > { %v1482_v39 = vld [vmem:[%s1620_s28 + $0xd0] ss:$8 sps:$4 sm:$0xff]   ;;  %v1483_v40 = vld [vmem:[%s1620_s28 + $0x64] ss:$8 sps:$4 sm:$0xff]   ;;  %v1487_v42 = vld [vmem:[%s1620_s28 + $0x60] ss:$8 sps:$4 sm:$0xff]  }
  0x1c   : > { %656 = vmatpush1.bf16.msra.mxu0 %v1442_v9  ;;  %1405 = vmatpush1.bf16.msra.mxu1 %v1442_v9  ;;  %v1485_v41 = vld [vmem:[%s1620_s28 + $0xe4] ss:$8 sps:$4 sm:$0xff]   ;;  %v1488_v43 = vld [vmem:[%s1620_s28 + $0xe0] ss:$8 sps:$4 sm:$0xff]   ;;  %v1489_v44 = vld [vmem:[%s1620_s28 + $0x74] ss:$8 sps:$4 sm:$0xff]  }
  0x1d   : > { %657 = vmatprep.subr.bf16.mxu0 %v1519_v1  ;;  %1396 = vmatprep.subr.bf16.mxu1 %v1519_v1  ;;  %v1491_v45 = vld [vmem:[%s1620_s28 + $0xf4] ss:$8 sps:$4 sm:$0xff]   ;;  %v1493_v46 = vld [vmem:[%s1620_s28 + $0x70] ss:$8 sps:$4 sm:$0xff]   ;;  %v321_v49 = vld [vmem:[#allocation2 + $0x80] sm:$0xff] }
  0x1e   : > { %v1494_v47 = vld [vmem:[%s1620_s28 + $0xf0] ss:$8 sps:$4 sm:$0xff]   ;;  %v322_v53 = vld [vmem:[#allocation2 + $0x88] sm:$0xff] }
  0x1f   : > { %v308_v5 = vld [vmem:[#allocation2 + $0x18] sm:$0xff] }
  0x20   : > { %658 = vmatpush1.bf16.msra.mxu0 %v1443_v10  ;;  %1406 = vmatpush1.bf16.msra.mxu1 %v1443_v10  ;;  %v324_v6 = vld [vmem:[#allocation2 + $0x98] sm:$0xff] }
  0x21   : > { %659 = vmatprep.subr.bf16.mxu0 %v1519_v1  ;;  %1397 = vmatprep.subr.bf16.mxu1 %v1519_v1 }
  0x24   : > { %660 = vmatpush1.bf16.msra.mxu0 %v1444_v11  ;;  %1407 = vmatpush1.bf16.msra.mxu1 %v1444_v11 }
  0x25   : > { %661 = vmatprep.subr.bf16.mxu0 %v1519_v1  ;;  %1398 = vmatprep.subr.bf16.mxu1 %v1519_v1 }
  0x28   : > { %662 = vmatpush1.bf16.msra.mxu0 %v1445_v14  ;;  %1408 = vmatpush1.bf16.msra.mxu1 %v1445_v14 }
  0x29   : > { %663 = vmatprep.subr.bf16.mxu0 %v1519_v1  ;;  %1399 = vmatprep.subr.bf16.mxu1 %v1519_v1  ;;  %v323_v1 = vld [vmem:[#allocation2 + $0x90] sm:$0xff] }
  0x2c   : > { %664 = vmatpush1.bf16.msra.mxu0 %v643_v17  ;;  %1409 = vmatpush1.bf16.msra.mxu1 %v643_v17 }
  0x2f   : > { %678 = vmatmul.mubr.bf16.vlgmr.msra.gmra.mrb[0].mxu0 %v1447_v18  ;;  %742 = vmatmul.mubr.bf16.vlgmr.msra.gmra.mrb[0].mxu1 %v1450_v19 }
  0x30   : > { %1307 = vmatprep.mubr.msk.bf16.mxu0 %vm589_vm1, %v1453_v20  ;;  %1315 = vmatprep.mubr.msk.bf16.mxu1 %vm589_vm1, %v1455_v21 }
  0x37   : > { %686 = vmatmul.mubr.bf16.gmra.mrb[4].mxu0 %v1457_v22  ;;  %750 = vmatmul.mubr.bf16.gmra.mrb[4].mxu1 %v1458_v23 }
  0x38   : > { %1308 = vmatprep.mubr.msk.bf16.mxu0 %vm589_vm1, %v1459_v24  ;;  %1316 = vmatprep.mubr.msk.bf16.mxu1 %vm589_vm1, %v1461_v25 }
  0x3f   : > { %694 = vmatmul.mubr.bf16.gmra.mrb[8].mxu0 %v1463_v26  ;;  %758 = vmatmul.mubr.bf16.gmra.mrb[8].mxu1 %v1464_v27  ;;  %v309_v27 = vld [vmem:[#allocation2 + $0x20] sm:$0xff] }
  0x40   : > { %1309 = vmatprep.mubr.msk.bf16.mxu0 %vm589_vm1, %v1465_v28  ;;  %1317 = vmatprep.mubr.msk.bf16.mxu1 %vm589_vm1, %v1467_v29  ;;  %v325_v28 = vld [vmem:[#allocation2 + $0xa0] sm:$0xff] }
  0x47   : > { %702 = vmatmul.mubr.bf16.gmra.mrb[12].mxu0 %v1469_v30  ;;  %766 = vmatmul.mubr.bf16.gmra.mrb[12].mxu1 %v1470_v31 }
  0x48   : > { %1310 = vmatprep.mubr.msk.bf16.mxu0 %vm589_vm1, %v1471_v32  ;;  %1318 = vmatprep.mubr.msk.bf16.mxu1 %vm589_vm1, %v1473_v33 }
  0x4f   : > { %710 = vmatmul.mubr.bf16.gmra.mrb[16].mxu0 %v1475_v34  ;;  %774 = vmatmul.mubr.bf16.gmra.mrb[16].mxu1 %v1476_v35  ;;  %v310_v35 = vld [vmem:[#allocation2 + $0x28] sm:$0xff] }
  0x50   : > { %1311 = vmatprep.mubr.msk.bf16.mxu0 %vm589_vm1, %v1477_v36  ;;  %1319 = vmatprep.mubr.msk.bf16.mxu1 %vm589_vm1, %v1479_v37  ;;  %v326_v36 = vld [vmem:[#allocation2 + $0xa8] sm:$0xff] }
  0x57   : > { %718 = vmatmul.mubr.bf16.gmra.mrb[20].mxu0 %v1481_v38  ;;  %782 = vmatmul.mubr.bf16.gmra.mrb[20].mxu1 %v1482_v39 }
  0x58   : > { %1312 = vmatprep.mubr.msk.bf16.mxu0 %vm589_vm1, %v1483_v40  ;;  %1320 = vmatprep.mubr.msk.bf16.mxu1 %vm589_vm1, %v1485_v41 }
  0x5f   : > { %726 = vmatmul.mubr.bf16.gmra.mrb[24].mxu0 %v1487_v42  ;;  %790 = vmatmul.mubr.bf16.gmra.mrb[24].mxu1 %v1488_v43 }
  0x60   : > { %1313 = vmatprep.mubr.msk.bf16.mxu0 %vm589_vm1, %v1489_v44  ;;  %1321 = vmatprep.mubr.msk.bf16.mxu1 %vm589_vm1, %v1491_v45 }
  0x67   : > { %734 = vmatmul.mubr.bf16.gmra.mrb[28].mxu0 %v1493_v46  ;;  %798 = vmatmul.mubr.bf16.gmra.mrb[28].mxu1 %v1494_v47 }
 0x102   : > { %v679_v50 = vpop.f32.mrb[0].mxu0  ;;  %v743_v51 = vpop.f32.mrb[0].mxu1 }
 0x103   : > { %v806_v54 = vadd.f32 %v679_v50, %v305_v48  ;;  %v822_v55 = vadd.f32 %v743_v51, %v321_v49  ;;  %v681_v56 = vpop.f32.mrb[1].mxu0  ;;  %v745_v57 = vpop.f32.mrb[1].mxu1 }
 0x104   : > { %v682_v58 = vpop.f32.mrb[2].mxu0  ;;  %v746_v59 = vpop.f32.mrb[2].mxu1 }
 0x105   : > { %839 = vst.msk [vmem:[#allocation2] sm:$0xff] %vm272_vm0, %v806_v54  ;;  %855 = vst.msk [vmem:[#allocation2 + $0x80] sm:$0xff] %vm272_vm0, %v822_v55  ;;  %v807_v60 = vadd.f32 %v682_v58, %v306_v52  ;;  %v823_v61 = vadd.f32 %v746_v59, %v322_v53  ;;  %v684_v62 = vpop.f32.mrb[3].mxu0  ;;  %v748_v63 = vpop.f32.mrb[3].mxu1  ;;  %v311_v59 = vld [vmem:[#allocation2 + $0x30] sm:$0xff] }
 0x107   : > { %840 = vst.msk [vmem:[#allocation2 + $0x8] sm:$0xff] %vm272_vm0, %v807_v60  ;;  %856 = vst.msk [vmem:[#allocation2 + $0x88] sm:$0xff] %vm272_vm0, %v823_v61  ;;  %v327_v60 = vld [vmem:[#allocation2 + $0xb0] sm:$0xff] }
 0x10a   : > { %v687_v3 = vpop.f32.mrb[4].mxu0  ;;  %v751_v4 = vpop.f32.mrb[4].mxu1 }
 0x10b   : > { %v808_v7 = vadd.f32 %v687_v3, %v307_v0  ;;  %v824_v8 = vadd.f32 %v751_v4, %v323_v1  ;;  %v689_v9 = vpop.f32.mrb[5].mxu0  ;;  %v753_v10 = vpop.f32.mrb[5].mxu1  ;;  %v312_v4 = vld [vmem:[#allocation2 + $0x38] sm:$0xff] }
 0x10c   : > { %v874_v11 = vld [vmem:[#allocation2] sm:$0xff]  ;;  %v690_v13 = vpop.f32.mrb[6].mxu0  ;;  %v754_v14 = vpop.f32.mrb[6].mxu1 }
 0x10d   : > { %v890_v12 = vld [vmem:[#allocation2 + $0x80] sm:$0xff]  ;;  %v913_v15 = vadd.f32 %v1707_v2, %v874_v11  ;;  %841 = vst.msk [vmem:[#allocation2 + $0x10] sm:$0xff] %vm272_vm0, %v808_v7  ;;  %857 = vst.msk [vmem:[#allocation2 + $0x90] sm:$0xff] %vm272_vm0, %v824_v8  ;;  %v809_v17 = vadd.f32 %v690_v13, %v308_v5  ;;  %v825_v18 = vadd.f32 %v754_v14, %v324_v6  ;;  %v692_v19 = vpop.f32.mrb[7].mxu0  ;;  %v756_v20 = vpop.f32.mrb[7].mxu1  ;;  %v328_v5 = vld [vmem:[#allocation2 + $0xb8] sm:$0xff] }
 0x10e   : > { %v929_v16 = vadd.f32 %v1707_v2, %v890_v12  ;;  %v875_v21 = vld [vmem:[#allocation2 + $0x8] sm:$0xff] }
 0x10f   : > { %v891_v22 = vld [vmem:[#allocation2 + $0x88] sm:$0xff]  ;;  %v945_v23 = vmax.f32 %v913_v15, 0.0  ;;  %v914_v25 = vadd.f32 %v1707_v2, %v875_v21  ;;  %842 = vst.msk [vmem:[#allocation2 + $0x18] sm:$0xff] %vm272_vm0, %v809_v17  ;;  %858 = vst.msk [vmem:[#allocation2 + $0x98] sm:$0xff] %vm272_vm0, %v825_v18 }
 0x110   : > { %v961_v24 = vmax.f32 %v929_v16, 0.0  ;;  %v930_v26 = vadd.f32 %v1707_v2, %v891_v22 }
 0x111   : > { %v1358_v29 = vpack.c.bf16 %v945_v23, %v945_v23  ;;  %v946_v31 = vmax.f32 %v914_v25, 0.0 }
 0x112   : > { %v1374_v30 = vpack.c.bf16 %v961_v24, %v961_v24  ;;  %v962_v32 = vmax.f32 %v930_v26, 0.0  ;;  %v695_v33 = vpop.f32.mrb[8].mxu0  ;;  %v759_v34 = vpop.f32.mrb[8].mxu1 }
 0x113   : > { %1106 = vst.msk [vmem:[%s1721_s22] sm:$0xf] %vm1105_vm4, %v1358_v29  ;;  %v1359_v37 = vpack.c.bf16 %v946_v31, %v946_v31  ;;  %v810_v39 = vadd.f32 %v695_v33, %v309_v27  ;;  %v826_v40 = vadd.f32 %v759_v34, %v325_v28  ;;  %v697_v41 = vpop.f32.mrb[9].mxu0  ;;  %v761_v42 = vpop.f32.mrb[9].mxu1  ;;  %v313_v28 = vld [vmem:[#allocation2 + $0x40] sm:$0xff] }
 0x114   : > { %1122 = vst.msk [vmem:[%s1721_s22 + $0x40] sm:$0xf] %vm1105_vm4, %v1374_v30  ;;  %v1375_v38 = vpack.c.bf16 %v962_v32, %v962_v32  ;;  %v876_v43 = vld [vmem:[#allocation2 + $0x10] sm:$0xff]  ;;  %v698_v45 = vpop.f32.mrb[10].mxu0  ;;  %v762_v46 = vpop.f32.mrb[10].mxu1  ;;  %v329_v29 = vld [vmem:[#allocation2 + $0xc0] sm:$0xff] }
 0x115   : > { %v892_v44 = vld [vmem:[#allocation2 + $0x90] sm:$0xff]  ;;  %1107 = vst.msk [vmem:[%s1721_s22 + $0x4] sm:$0xf] %vm1105_vm4, %v1359_v37  ;;  %v915_v47 = vadd.f32 %v1707_v2, %v876_v43  ;;  %v811_v49 = vadd.f32 %v698_v45, %v310_v35  ;;  %v827_v50 = vadd.f32 %v762_v46, %v326_v36  ;;  %v700_v51 = vpop.f32.mrb[11].mxu0  ;;  %v764_v52 = vpop.f32.mrb[11].mxu1  ;;  %v314_v36 = vld [vmem:[#allocation2 + $0x48] sm:$0xff] }
 0x116   : > { %1123 = vst.msk [vmem:[%s1721_s22 + $0x44] sm:$0xf] %vm1105_vm4, %v1375_v38  ;;  %v931_v48 = vadd.f32 %v1707_v2, %v892_v44  ;;  %v877_v53 = vld [vmem:[#allocation2 + $0x18] sm:$0xff]  ;;  %v330_v37 = vld [vmem:[#allocation2 + $0xc8] sm:$0xff] }
 0x117   : > { %843 = vst.msk [vmem:[#allocation2 + $0x20] sm:$0xff] %vm272_vm0, %v810_v39  ;;  %859 = vst.msk [vmem:[#allocation2 + $0xa0] sm:$0xff] %vm272_vm0, %v826_v40  ;;  %v893_v54 = vld [vmem:[#allocation2 + $0x98] sm:$0xff]  ;;  %v947_v55 = vmax.f32 %v915_v47, 0.0  ;;  %v916_v57 = vadd.f32 %v1707_v2, %v877_v53 }
 0x118   : > { %v963_v56 = vmax.f32 %v931_v48, 0.0  ;;  %v932_v58 = vadd.f32 %v1707_v2, %v893_v54  ;;  %844 = vst.msk [vmem:[#allocation2 + $0x28] sm:$0xff] %vm272_vm0, %v811_v49  ;;  %860 = vst.msk [vmem:[#allocation2 + $0xa8] sm:$0xff] %vm272_vm0, %v827_v50 }
 0x119   : > { %v1360_v61 = vpack.c.bf16 %v947_v55, %v947_v55  ;;  %v948_v63 = vmax.f32 %v916_v57, 0.0 }
 0x11a   : > { %v1376_v62 = vpack.c.bf16 %v963_v56, %v963_v56  ;;  %v964_v0 = vmax.f32 %v932_v58, 0.0  ;;  %v703_v1 = vpop.f32.mrb[12].mxu0  ;;  %v767_v3 = vpop.f32.mrb[12].mxu1 }
 0x11b   : > { %1108 = vst.msk [vmem:[%s1721_s22 + $0x8] sm:$0xf] %vm1105_vm4, %v1360_v61  ;;  %v1361_v6 = vpack.c.bf16 %v948_v63, %v948_v63  ;;  %v812_v8 = vadd.f32 %v703_v1, %v311_v59  ;;  %v828_v9 = vadd.f32 %v767_v3, %v327_v60  ;;  %v705_v10 = vpop.f32.mrb[13].mxu0  ;;  %v769_v11 = vpop.f32.mrb[13].mxu1  ;;  %v315_v60 = vld [vmem:[#allocation2 + $0x50] sm:$0xff] }
 0x11c   : > { %1124 = vst.msk [vmem:[%s1721_s22 + $0x48] sm:$0xf] %vm1105_vm4, %v1376_v62  ;;  %v1377_v7 = vpack.c.bf16 %v964_v0, %v964_v0  ;;  %v706_v14 = vpop.f32.mrb[14].mxu0  ;;  %v770_v15 = vpop.f32.mrb[14].mxu1  ;;  %v331_v61 = vld [vmem:[#allocation2 + $0xd0] sm:$0xff] }
 0x11d   : > { %1109 = vst.msk [vmem:[%s1721_s22 + $0xc] sm:$0xf] %vm1105_vm4, %v1361_v6  ;;  %v813_v18 = vadd.f32 %v706_v14, %v312_v4  ;;  %v829_v19 = vadd.f32 %v770_v15, %v328_v5  ;;  %v708_v20 = vpop.f32.mrb[15].mxu0  ;;  %v772_v21 = vpop.f32.mrb[15].mxu1  ;;  %v316_v5 = vld [vmem:[#allocation2 + $0x58] sm:$0xff] }
 0x11e   : > { %v878_v12 = vld [vmem:[#allocation2 + $0x20] sm:$0xff]  ;;  %1125 = vst.msk [vmem:[%s1721_s22 + $0x4c] sm:$0xf] %vm1105_vm4, %v1377_v7  ;;  %v332_v6 = vld [vmem:[#allocation2 + $0xd8] sm:$0xff] }
 0x11f   : > { %v894_v13 = vld [vmem:[#allocation2 + $0xa0] sm:$0xff]  ;;  %v917_v16 = vadd.f32 %v1707_v2, %v878_v12  ;;  %845 = vst.msk [vmem:[#allocation2 + $0x30] sm:$0xff] %vm272_vm0, %v812_v8  ;;  %861 = vst.msk [vmem:[#allocation2 + $0xb0] sm:$0xff] %vm272_vm0, %v828_v9  ;;  %v879_v22 = vld [vmem:[#allocation2 + $0x28] sm:$0xff] }
 0x120   : > { %v933_v17 = vadd.f32 %v1707_v2, %v894_v13  ;;  %v895_v23 = vld [vmem:[#allocation2 + $0xa8] sm:$0xff]  ;;  %v918_v26 = vadd.f32 %v1707_v2, %v879_v22  ;;  %846 = vst.msk [vmem:[#allocation2 + $0x38] sm:$0xff] %vm272_vm0, %v813_v18  ;;  %862 = vst.msk [vmem:[#allocation2 + $0xb8] sm:$0xff] %vm272_vm0, %v829_v19 }
 0x121   : > { %v949_v24 = vmax.f32 %v917_v16, 0.0  ;;  %v934_v27 = vadd.f32 %v1707_v2, %v895_v23 }
 0x122   : > { %v965_v25 = vmax.f32 %v933_v17, 0.0  ;;  %v950_v32 = vmax.f32 %v918_v26, 0.0  ;;  %v711_v34 = vpop.f32.mrb[16].mxu0  ;;  %v775_v35 = vpop.f32.mrb[16].mxu1 }
 0x123   : > { %v1362_v30 = vpack.c.bf16 %v949_v24, %v949_v24  ;;  %v966_v33 = vmax.f32 %v934_v27, 0.0  ;;  %v814_v40 = vadd.f32 %v711_v34, %v313_v28  ;;  %v830_v41 = vadd.f32 %v775_v35, %v329_v29  ;;  %v713_v42 = vpop.f32.mrb[17].mxu0  ;;  %v777_v43 = vpop.f32.mrb[17].mxu1  ;;  %v317_v29 = vld [vmem:[#allocation2 + $0x60] sm:$0xff] }
 0x124   : > { %v1378_v31 = vpack.c.bf16 %v965_v25, %v965_v25  ;;  %v1363_v38 = vpack.c.bf16 %v950_v32, %v950_v32  ;;  %v714_v46 = vpop.f32.mrb[18].mxu0  ;;  %v778_v47 = vpop.f32.mrb[18].mxu1 }
 0x125   : > { %1110 = vst.msk [vmem:[%s1721_s22 + $0x10] sm:$0xf] %vm1105_vm4, %v1362_v30  ;;  %v1379_v39 = vpack.c.bf16 %v966_v33, %v966_v33  ;;  %v815_v50 = vadd.f32 %v714_v46, %v314_v36  ;;  %v831_v51 = vadd.f32 %v778_v47, %v330_v37  ;;  %v716_v52 = vpop.f32.mrb[19].mxu0  ;;  %v780_v53 = vpop.f32.mrb[19].mxu1  ;;  %v333_v30 = vld [vmem:[#allocation2 + $0xe0] sm:$0xff]  ;;  %v318_v37 = vld [vmem:[#allocation2 + $0x68] sm:$0xff] }
 0x126   : > { %1126 = vst.msk [vmem:[%s1721_s22 + $0x50] sm:$0xf] %vm1105_vm4, %v1378_v31  ;;  %v880_v44 = vld [vmem:[#allocation2 + $0x30] sm:$0xff]  ;;  %1111 = vst.msk [vmem:[%s1721_s22 + $0x14] sm:$0xf] %vm1105_vm4, %v1363_v38  ;;  %v334_v38 = vld [vmem:[#allocation2 + $0xe8] sm:$0xff] }
 0x127   : > { %v896_v45 = vld [vmem:[#allocation2 + $0xb0] sm:$0xff]  ;;  %1127 = vst.msk [vmem:[%s1721_s22 + $0x54] sm:$0xf] %vm1105_vm4, %v1379_v39  ;;  %v919_v48 = vadd.f32 %v1707_v2, %v880_v44  ;;  %v881_v54 = vld [vmem:[#allocation2 + $0x38] sm:$0xff] }
 0x128   : > { %v935_v49 = vadd.f32 %v1707_v2, %v896_v45  ;;  %847 = vst.msk [vmem:[#allocation2 + $0x40] sm:$0xff] %vm272_vm0, %v814_v40  ;;  %863 = vst.msk [vmem:[#allocation2 + $0xc0] sm:$0xff] %vm272_vm0, %v830_v41  ;;  %v897_v55 = vld [vmem:[#allocation2 + $0xb8] sm:$0xff]  ;;  %v920_v58 = vadd.f32 %v1707_v2, %v881_v54 }
 0x129   : > { %v951_v56 = vmax.f32 %v919_v48, 0.0  ;;  %v936_v59 = vadd.f32 %v1707_v2, %v897_v55  ;;  %848 = vst.msk [vmem:[#allocation2 + $0x48] sm:$0xff] %vm272_vm0, %v815_v50  ;;  %864 = vst.msk [vmem:[#allocation2 + $0xc8] sm:$0xff] %vm272_vm0, %v831_v51 }
 0x12a   : > { %v967_v57 = vmax.f32 %v935_v49, 0.0  ;;  %v952_v0 = vmax.f32 %v920_v58, 0.0  ;;  %v719_v3 = vpop.f32.mrb[20].mxu0  ;;  %v783_v4 = vpop.f32.mrb[20].mxu1 }
 0x12b   : > { %v1364_v62 = vpack.c.bf16 %v951_v56, %v951_v56  ;;  %v968_v1 = vmax.f32 %v936_v59, 0.0  ;;  %v816_v9 = vadd.f32 %v719_v3, %v315_v60  ;;  %v832_v10 = vadd.f32 %v783_v4, %v331_v61  ;;  %v721_v11 = vpop.f32.mrb[21].mxu0  ;;  %v785_v12 = vpop.f32.mrb[21].mxu1  ;;  %v319_v61 = vld [vmem:[#allocation2 + $0x70] sm:$0xff] }
 0x12c   : > { %v1380_v63 = vpack.c.bf16 %v967_v57, %v967_v57  ;;  %v1365_v7 = vpack.c.bf16 %v952_v0, %v952_v0  ;;  %v722_v15 = vpop.f32.mrb[22].mxu0  ;;  %v786_v16 = vpop.f32.mrb[22].mxu1 }
 0x12d   : > { %1112 = vst.msk [vmem:[%s1721_s22 + $0x18] sm:$0xf] %vm1105_vm4, %v1364_v62  ;;  %v1381_v8 = vpack.c.bf16 %v968_v1, %v968_v1  ;;  %v817_v19 = vadd.f32 %v722_v15, %v316_v5  ;;  %v833_v20 = vadd.f32 %v786_v16, %v332_v6  ;;  %v724_v21 = vpop.f32.mrb[23].mxu0  ;;  %v788_v22 = vpop.f32.mrb[23].mxu1  ;;  %v335_v62 = vld [vmem:[#allocation2 + $0xf0] sm:$0xff]  ;;  %v320_v6 = vld [vmem:[#allocation2 + $0x78] sm:$0xff] }
 0x12e   : > { %1128 = vst.msk [vmem:[%s1721_s22 + $0x58] sm:$0xf] %vm1105_vm4, %v1380_v63  ;;  %1113 = vst.msk [vmem:[%s1721_s22 + $0x1c] sm:$0xf] %vm1105_vm4, %v1365_v7  ;;  %v336_v7 = vld [vmem:[#allocation2 + $0xf8] sm:$0xff] }
 0x12f   : > { %v882_v13 = vld [vmem:[#allocation2 + $0x40] sm:$0xff]  ;;  %1129 = vst.msk [vmem:[%s1721_s22 + $0x5c] sm:$0xf] %vm1105_vm4, %v1381_v8 }
 0x130   : > { %v898_v14 = vld [vmem:[#allocation2 + $0xc0] sm:$0xff]  ;;  %v921_v17 = vadd.f32 %v1707_v2, %v882_v13  ;;  %849 = vst.msk [vmem:[#allocation2 + $0x50] sm:$0xff] %vm272_vm0, %v816_v9  ;;  %865 = vst.msk [vmem:[#allocation2 + $0xd0] sm:$0xff] %vm272_vm0, %v832_v10  ;;  %v883_v23 = vld [vmem:[#allocation2 + $0x48] sm:$0xff] }
 0x131   : > { %v937_v18 = vadd.f32 %v1707_v2, %v898_v14  ;;  %v899_v24 = vld [vmem:[#allocation2 + $0xc8] sm:$0xff]  ;;  %v922_v27 = vadd.f32 %v1707_v2, %v883_v23  ;;  %850 = vst.msk [vmem:[#allocation2 + $0x58] sm:$0xff] %vm272_vm0, %v817_v19  ;;  %866 = vst.msk [vmem:[#allocation2 + $0xd8] sm:$0xff] %vm272_vm0, %v833_v20 }
 0x132   : > { %v953_v25 = vmax.f32 %v921_v17, 0.0  ;;  %v938_v28 = vadd.f32 %v1707_v2, %v899_v24  ;;  %v727_v35 = vpop.f32.mrb[24].mxu0  ;;  %v791_v36 = vpop.f32.mrb[24].mxu1 }
 0x133   : > { %v969_v26 = vmax.f32 %v937_v18, 0.0  ;;  %v954_v33 = vmax.f32 %v922_v27, 0.0  ;;  %v818_v41 = vadd.f32 %v727_v35, %v317_v29  ;;  %v834_v42 = vadd.f32 %v791_v36, %v333_v30  ;;  %v729_v43 = vpop.f32.mrb[25].mxu0  ;;  %v793_v44 = vpop.f32.mrb[25].mxu1 }
 0x134   : > { %v1366_v31 = vpack.c.bf16 %v953_v25, %v953_v25  ;;  %v970_v34 = vmax.f32 %v938_v28, 0.0  ;;  %v730_v47 = vpop.f32.mrb[26].mxu0  ;;  %v794_v48 = vpop.f32.mrb[26].mxu1 }
 0x135   : > { %v1382_v32 = vpack.c.bf16 %v969_v26, %v969_v26  ;;  %v1367_v39 = vpack.c.bf16 %v954_v33, %v954_v33  ;;  %851 = vst.msk [vmem:[#allocation2 + $0x60] sm:$0xff] %vm272_vm0, %v818_v41  ;;  %867 = vst.msk [vmem:[#allocation2 + $0xe0] sm:$0xff] %vm272_vm0, %v834_v42  ;;  %v819_v51 = vadd.f32 %v730_v47, %v318_v37  ;;  %v732_v53 = vpop.f32.mrb[27].mxu0  ;;  %v796_v54 = vpop.f32.mrb[27].mxu1 }
 0x136   : > { %1114 = vst.msk [vmem:[%s1721_s22 + $0x20] sm:$0xf] %vm1105_vm4, %v1366_v31  ;;  %v1383_v40 = vpack.c.bf16 %v970_v34, %v970_v34  ;;  %v835_v52 = vadd.f32 %v794_v48, %v334_v38 }
 0x137   : > { %1130 = vst.msk [vmem:[%s1721_s22 + $0x60] sm:$0xf] %vm1105_vm4, %v1382_v32  ;;  %v884_v45 = vld [vmem:[#allocation2 + $0x50] sm:$0xff]  ;;  %1115 = vst.msk [vmem:[%s1721_s22 + $0x24] sm:$0xf] %vm1105_vm4, %v1367_v39 }
 0x138   : > { %v900_v46 = vld [vmem:[#allocation2 + $0xd0] sm:$0xff]  ;;  %1131 = vst.msk [vmem:[%s1721_s22 + $0x64] sm:$0xf] %vm1105_vm4, %v1383_v40  ;;  %v923_v49 = vadd.f32 %v1707_v2, %v884_v45  ;;  %v885_v55 = vld [vmem:[#allocation2 + $0x58] sm:$0xff] }
 0x139   : > { %v939_v50 = vadd.f32 %v1707_v2, %v900_v46  ;;  %v901_v56 = vld [vmem:[#allocation2 + $0xd8] sm:$0xff]  ;;  %v924_v59 = vadd.f32 %v1707_v2, %v885_v55  ;;  %852 = vst.msk [vmem:[#allocation2 + $0x68] sm:$0xff] %vm272_vm0, %v819_v51  ;;  %868 = vst.msk [vmem:[#allocation2 + $0xe8] sm:$0xff] %vm272_vm0, %v835_v52 }
 0x13a   : > { %v955_v57 = vmax.f32 %v923_v49, 0.0  ;;  %v940_v60 = vadd.f32 %v1707_v2, %v901_v56  ;;  %v735_v4 = vpop.f32.mrb[28].mxu0  ;;  %v799_v5 = vpop.f32.mrb[28].mxu1 }
 0x13b   : > { %v971_v58 = vmax.f32 %v939_v50, 0.0  ;;  %v956_v1 = vmax.f32 %v924_v59, 0.0  ;;  %v820_v10 = vadd.f32 %v735_v4, %v319_v61  ;;  %v836_v11 = vadd.f32 %v799_v5, %v335_v62  ;;  %v737_v12 = vpop.f32.mrb[29].mxu0  ;;  %v801_v13 = vpop.f32.mrb[29].mxu1 }
 0x13c   : > { %v1368_v63 = vpack.c.bf16 %v955_v57, %v955_v57  ;;  %v972_v3 = vmax.f32 %v940_v60, 0.0  ;;  %v886_v14 = vld [vmem:[#allocation2 + $0x60] sm:$0xff]  ;;  %v738_v16 = vpop.f32.mrb[30].mxu0  ;;  %v802_v17 = vpop.f32.mrb[30].mxu1 }
 0x13d   : > { %v1384_v0 = vpack.c.bf16 %v971_v58, %v971_v58  ;;  %v1369_v8 = vpack.c.bf16 %v956_v1, %v956_v1  ;;  %v902_v15 = vld [vmem:[#allocation2 + $0xe0] sm:$0xff]  ;;  %v925_v18 = vadd.f32 %v1707_v2, %v886_v14  ;;  %853 = vst.msk [vmem:[#allocation2 + $0x70] sm:$0xff] %vm272_vm0, %v820_v10  ;;  %869 = vst.msk [vmem:[#allocation2 + $0xf0] sm:$0xff] %vm272_vm0, %v836_v11  ;;  %v740_v22 = vpop.f32.mrb[31].mxu0  ;;  %v804_v23 = vpop.f32.mrb[31].mxu1 }
 0x13e   : > { %1116 = vst.msk [vmem:[%s1721_s22 + $0x28] sm:$0xf] %vm1105_vm4, %v1368_v63  ;;  %v1385_v9 = vpack.c.bf16 %v972_v3, %v972_v3  ;;  %v941_v19 = vadd.f32 %v1707_v2, %v902_v15  ;;  %v821_v20 = vadd.f32 %v738_v16, %v320_v6  ;;  %v837_v21 = vadd.f32 %v802_v17, %v336_v7 }
 0x13f   : > { %1132 = vst.msk [vmem:[%s1721_s22 + $0x68] sm:$0xf] %vm1105_vm4, %v1384_v0  ;;  %1117 = vst.msk [vmem:[%s1721_s22 + $0x2c] sm:$0xf] %vm1105_vm4, %v1369_v8  ;;  %v957_v26 = vmax.f32 %v925_v18, 0.0 }
 0x140   : > { %1133 = vst.msk [vmem:[%s1721_s22 + $0x6c] sm:$0xf] %vm1105_vm4, %v1385_v9  ;;  %v887_v24 = vld [vmem:[#allocation2 + $0x68] sm:$0xff]  ;;  %v973_v27 = vmax.f32 %v941_v19, 0.0 }
 0x141   : > { %v903_v25 = vld [vmem:[#allocation2 + $0xe8] sm:$0xff]  ;;  %v926_v28 = vadd.f32 %v1707_v2, %v887_v24  ;;  %854 = vst.msk [vmem:[#allocation2 + $0x78] sm:$0xff] %vm272_vm0, %v821_v20  ;;  %870 = vst.msk [vmem:[#allocation2 + $0xf8] sm:$0xff] %vm272_vm0, %v837_v21  ;;  %v1370_v30 = vpack.c.bf16 %v957_v26, %v957_v26 }
 0x142   : > { %v942_v29 = vadd.f32 %v1707_v2, %v903_v25  ;;  %v1386_v31 = vpack.c.bf16 %v973_v27, %v973_v27 }
 0x143   : > { %v958_v32 = vmax.f32 %v926_v28, 0.0  ;;  %1118 = vst.msk [vmem:[%s1721_s22 + $0x30] sm:$0xf] %vm1105_vm4, %v1370_v30 }
 0x144   : > { %v974_v33 = vmax.f32 %v942_v29, 0.0  ;;  %1134 = vst.msk [vmem:[%s1721_s22 + $0x70] sm:$0xf] %vm1105_vm4, %v1386_v31  ;;  %v888_v36 = vld [vmem:[#allocation2 + $0x70] sm:$0xff] }
 0x145   : > { %v1371_v34 = vpack.c.bf16 %v958_v32, %v958_v32  ;;  %v904_v37 = vld [vmem:[#allocation2 + $0xf0] sm:$0xff]  ;;  %v927_v38 = vadd.f32 %v1707_v2, %v888_v36 }
 0x146   : > { %v1387_v35 = vpack.c.bf16 %v974_v33, %v974_v33  ;;  %v943_v39 = vadd.f32 %v1707_v2, %v904_v37 }
 0x147   : > { %1119 = vst.msk [vmem:[%s1721_s22 + $0x34] sm:$0xf] %vm1105_vm4, %v1371_v34  ;;  %v959_v42 = vmax.f32 %v927_v38, 0.0 }
 0x148   : > { %1135 = vst.msk [vmem:[%s1721_s22 + $0x74] sm:$0xf] %vm1105_vm4, %v1387_v35  ;;  %v889_v40 = vld [vmem:[#allocation2 + $0x78] sm:$0xff]  ;;  %v975_v43 = vmax.f32 %v943_v39, 0.0 }
 0x149   : > { %v905_v41 = vld [vmem:[#allocation2 + $0xf8] sm:$0xff]  ;;  %v928_v44 = vadd.f32 %v1707_v2, %v889_v40  ;;  %v1372_v46 = vpack.c.bf16 %v959_v42, %v959_v42 }
 0x14a   : > { %v944_v45 = vadd.f32 %v1707_v2, %v905_v41  ;;  %v1388_v47 = vpack.c.bf16 %v975_v43, %v975_v43 }
 0x14b   : > { %v960_v48 = vmax.f32 %v928_v44, 0.0  ;;  %1120 = vst.msk [vmem:[%s1721_s22 + $0x38] sm:$0xf] %vm1105_vm4, %v1372_v46 }
 0x14c   : > { %v976_v49 = vmax.f32 %v944_v45, 0.0  ;;  %1136 = vst.msk [vmem:[%s1721_s22 + $0x78] sm:$0xf] %vm1105_vm4, %v1388_v47 }
 0x14d   : > { %v1373_v50 = vpack.c.bf16 %v960_v48, %v960_v48 }
 0x14e   : > { %v1389_v51 = vpack.c.bf16 %v976_v49, %v976_v49 }
 0x14f   : > { %1121 = vst.msk [vmem:[%s1721_s22 + $0x3c] sm:$0xf] %vm1105_vm4, %v1373_v50 }
 0x150   : > { %1137 = vst.msk [vmem:[%s1721_s22 + $0x7c] sm:$0xf] %vm1105_vm4, %v1389_v51 }
 0x151 PF: > { %s13_s14 = sadd.s32 1, %s1517_s14   ;;  %s1852_s12 = smov %s1513_s13 }
 0x152   : > { %p10_p5 = scmp.ge.s32.totalorder %s13_s14, 6   ;;  %s1853_s13 = smov %s1855_s15 }
 0x154   :  { %12 = sbr.rel (!%p10_p5) target bundleno = 2 (0x2), region = 76 }

// kernel: resnet18_forward.22
= control target key start
LH: loop header
LB: loop body
LE: loop exit
PB: predicated region body
PF: predicated region fallthrough
CT: control target
= control target key end

     0   :  { %vm493_vm0 = vcmask 1040384   ;;  %vm1222_vm1 = vsmask.f32 3328  ;;  %vm1223_vm2 = vsmask.f32 7440  ;;  %vm1641_vm3 = vcmask 519168   ;;  %s3375_s0 = inlined_call_operand.vmem [shape: bf16[1,17,17,64], index: 0, kind: input, shape index: {}]   ;;  %s3376_s1 = inlined_call_operand.vmem [shape: bf16[1,17,17,64], index: 1, kind: input, shape index: {}]   ;;  %s3377_s2 = inlined_call_operand.vmem [shape: bf16[1,17,17,64], index: 2, kind: input, shape index: {}]   ;;  %s3378_s3 = inlined_call_operand.vmem [shape: bf16[1,17,17,64], index: 3, kind: input, shape index: {}]   ;;  %s3379_s4 = inlined_call_operand.vmem [shape: bf16[1,16,16,64], index: 4, kind: output, shape index: {}]  }
   0x1   :  { %v17_v0 = vld [vmem:[%s3375_s0 + $0xc] sm:$0xff]   ;;  %v1839_v2 = vld [vmem:[%s3377_s2] sm:$0xff]   ;;  %v19_v18 = vld [vmem:[%s3375_s0 + $0x14] sm:$0x1] }
   0x2   :  { %v113_v1 = vld [vmem:[%s3376_s1 + $0xc] sm:$0xff]   ;;  %v65_v3 = vunpack.c.l.bf16 %v17_v0  ;;  %v66_v4 = vunpack.c.h.bf16 %v17_v0  ;;  %v1984_v8 = vld [vmem:[%s3378_s3] sm:$0xff]   ;;  %v1840_v10 = vunpack.c.l.bf16 %v1839_v2  ;;  %v1841_v11 = vunpack.c.h.bf16 %v1839_v2  ;;  %v115_v19 = vld [vmem:[%s3376_s1 + $0x14] sm:$0x1] }
   0x3   :  { %v161_v5 = vunpack.c.l.bf16 %v113_v1  ;;  %v162_v6 = vunpack.c.h.bf16 %v113_v1  ;;  %v1979_v7 = vld [vmem:[%s3377_s2 + $0xc] sm:$0xff]   ;;  %v1876_v14 = vunpack.c.l.bf16 %v1984_v8  ;;  %v1877_v15 = vunpack.c.h.bf16 %v1984_v8  ;;  %v211_v20 = vld [vmem:[%s3377_s2 + $0x8] sm:$0x1]  ;;  %v2009_v25 = vld [vmem:[%s3377_s2 + $0x14] sm:$0x1] }
   0x4   :  { %v314_v9 = vld [vmem:[%s3378_s3 + $0xc] sm:$0xff]   ;;  %v263_v12 = vunpack.c.l.bf16 %v1979_v7  ;;  %v264_v13 = vunpack.c.h.bf16 %v1979_v7  ;;  %v2014_v26 = vld [vmem:[%s3378_s3 + $0x8] sm:$0x1]  ;;  %v2031_v31 = vld [vmem:[%s3378_s3 + $0x14] sm:$0x1]  ;;  %v67_v34 = vunpack.c.l.bf16 %v19_v18  ;;  %v163_v35 = vunpack.c.l.bf16 %v115_v19 }
   0x5   :  { %v1993_v16 = vunpack.c.l.bf16 %v314_v9  ;;  %v1995_v17 = vunpack.c.h.bf16 %v314_v9  ;;  %v413_v21 = vmax.f32 %v65_v3, %v161_v5  ;;  %v414_v22 = vmax.f32 %v66_v4, %v162_v6  ;;  %v1910_v36 = vld [vmem:[%s3375_s0 + $0x18] sm:$0xff]   ;;  %v22_v60 = vld [vmem:[%s3375_s0 + $0x20] sm:$0x1]  ;;  %v2122_v8 = vld [vmem:[%s3376_s1 + $0x24] sm:$0xff]  }
   0x6   :  { %v494_v23 = vrot.slane %v161_v5, 7  ;;  %v495_v24 = vrot.slane %v162_v6, 7  ;;  %v1008_v29 = vrot.slane %v1876_v14, 7  ;;  %v2026_v30 = vrot.slane %v1877_v15, 7  ;;  %v1918_v41 = vld [vmem:[%s3376_s1 + $0x18] sm:$0xff]   ;;  %vm2156_vm4 = vmor %vm1222_vm1, %vm1223_vm2 }
   0x7   :  { %v2017_v27 = vrot.slane %v1993_v16, 7  ;;  %v2020_v28 = vrot.slane %v1995_v17, 7  ;;  %v262_v40 = vunpack.c.l.bf16 %v211_v20  ;;  %v2050_v42 = vld [vmem:[%s3377_s2 + $0x18] sm:$0xff]   ;;  %v265_v44 = vunpack.c.l.bf16 %v2009_v25  ;;  %v118_v5 = vld [vmem:[%s3376_s1 + $0x20] sm:$0x1]  ;;  %v320_v25 = vld [vmem:[%s3378_s3 + $0x24] sm:$0xff]  }
   0x8   :  { %v496_v32 = vsel %vm493_vm0, %v494_v23, %v495_v24  ;;  %v590_v33 = vmax.f32 %v413_v21, %v494_v23  ;;  %v1010_v39 = vsel %vm493_vm0, %v1008_v29, %v2026_v30  ;;  %v364_v45 = vunpack.c.l.bf16 %v2014_v26  ;;  %v1934_v47 = vld [vmem:[%s3378_s3 + $0x18] sm:$0xff]   ;;  %v2088_v18 = vld [vmem:[%s3377_s2 + $0x20] sm:$0x1] }
   0x9   :  { %v591_v37 = vmax.f32 %v414_v22, %v496_v32  ;;  %v2040_v38 = vsel %vm493_vm0, %v2017_v27, %v2020_v28  ;;  %v367_v46 = vunpack.c.l.bf16 %v2031_v31  ;;  %v415_v49 = vmax.f32 %v67_v34, %v163_v35  ;;  %v2095_v23 = vld [vmem:[%s3378_s3 + $0x20] sm:$0x1]  ;;  %v2107_v34 = vld [vmem:[%s3375_s0 + $0x24] sm:$0xff]  }
   0xa   :  { %v638_v43 = vmax.f32 %v590_v33, %v263_v12  ;;  %v1776_v50 = vunpack.c.l.bf16 %v1910_v36  ;;  %v1777_v51 = vunpack.c.h.bf16 %v1910_v36  ;;  %v1808_v53 = vunpack.c.l.bf16 %v1918_v41 }
   0xb   :  { %v639_v48 = vmax.f32 %v591_v37, %v264_v13  ;;  %v1809_v54 = vunpack.c.h.bf16 %v1918_v41  ;;  %v1844_v55 = vunpack.c.l.bf16 %v2050_v42  ;;  %v592_v57 = vmax.f32 %v415_v49, %v495_v24 }
   0xc   :  { %v686_v52 = vmax.f32 %v638_v43, %v1840_v10  ;;  %v1845_v58 = vunpack.c.h.bf16 %v2050_v42  ;;  %v2064_v59 = vunpack.c.l.bf16 %v1934_v47  ;;  %v2070_v62 = vunpack.c.h.bf16 %v1934_v47 }
   0xd   :  { %v687_v56 = vmax.f32 %v639_v48, %v1841_v11  ;;  %v416_v63 = vmax.f32 %v1776_v50, %v1808_v53  ;;  %v417_v0 = vmax.f32 %v1777_v51, %v1809_v54  ;;  %v640_v2 = vmax.f32 %v592_v57, %v265_v44 }
   0xe   :  { %v734_v61 = vmax.f32 %v686_v52, %v1993_v16  ;;  %v497_v3 = vrot.slane %v1808_v53, 7  ;;  %v498_v4 = vrot.slane %v1809_v54, 7  ;;  %v2080_v9 = vrot.slane %v2064_v59, 7 }
   0xf   :  { %v735_v1 = vmax.f32 %v687_v56, %v1995_v17  ;;  %v2083_v10 = vrot.slane %v2070_v62, 7  ;;  %v70_v11 = vunpack.c.l.bf16 %v22_v60  ;;  %v688_v20 = vmax.f32 %v640_v2, %v262_v40 }
  0x10   :  { %v910_v6 = vmax.f32 %v734_v61, %v2017_v27  ;;  %v499_v21 = vsel %vm493_vm0, %v497_v3, %v498_v4  ;;  %v593_v22 = vmax.f32 %v416_v63, %v497_v3  ;;  %v166_v33 = vunpack.c.l.bf16 %v118_v5  ;;  %v2144_v5 = vld [vmem:[%s3377_s2 + $0x24] sm:$0xff]  }
  0x11   :  { %v911_v19 = vmax.f32 %v735_v1, %v2040_v38  ;;  %v594_v26 = vmax.f32 %v417_v0, %v499_v21  ;;  %v2102_v32 = vsel %vm493_vm0, %v2080_v9, %v2083_v10  ;;  %v268_v37 = vunpack.c.l.bf16 %v2088_v18 }
  0x12   :  { %v958_v24 = vmax.f32 %v910_v6, %v1876_v14  ;;  %v736_v14 = vmax.f32 %v688_v20, %v367_v46  ;;  %v641_v36 = vmax.f32 %v593_v22, %v1844_v55  ;;  %v370_v43 = vunpack.c.l.bf16 %v2095_v23 }
  0x13   :  { %v959_v35 = vmax.f32 %v911_v19, %v1877_v15  ;;  %v642_v41 = vmax.f32 %v594_v26, %v1845_v58  ;;  %v418_v47 = vmax.f32 %v70_v11, %v166_v33  ;;  %v71_v50 = vunpack.c.l.bf16 %v2107_v34 }
  0x14   :  { %v1014_v40 = vmax.f32 %v958_v24, %v1008_v29  ;;  %v912_v48 = vmax.f32 %v736_v14, %v2020_v28  ;;  %v689_v49 = vmax.f32 %v641_v36, %v263_v12  ;;  %v72_v53 = vunpack.c.h.bf16 %v2107_v34 }
  0x15   :  { %v1015_v15 = vmax.f32 %v959_v35, %v1010_v39  ;;  %v690_v51 = vmax.f32 %v642_v41, %v264_v13  ;;  %v595_v52 = vmax.f32 %v418_v47, %v498_v4  ;;  %v167_v39 = vunpack.c.l.bf16 %v2122_v8 }
  0x16   :  { %v1726_v29 = vpack.c.bf16 %v1014_v40, %v1014_v40  ;;  %v960_v56 = vmax.f32 %v912_v48, %v364_v45  ;;  %v737_v57 = vmax.f32 %v689_v49, %v2064_v59  ;;  %v168_v24 = vunpack.c.h.bf16 %v2122_v8 }
  0x17   :  { %v1727_v54 = vpack.c.bf16 %v1015_v15, %v1015_v15  ;;  %v738_v12 = vmax.f32 %v690_v51, %v2070_v62  ;;  %v643_v63 = vmax.f32 %v595_v52, %v268_v37  ;;  %v270_v36 = vunpack.c.h.bf16 %v2144_v5 }
  0x18   :  { %v1226_v60 = vshrl.u32 %v1726_v29, 16  ;;  %v1229_v61 = vshll.u32 %v1726_v29, 16  ;;  %v1016_v7 = vmax.f32 %v960_v56, %v2026_v30  ;;  %v913_v1 = vmax.f32 %v737_v57, %v2080_v9 }
  0x19   :  { %v1235_v0 = vshll.u32 %v1727_v54, 16  ;;  %v1239_v13 = vshrl.u32 %v1727_v54, 16  ;;  %v914_v45 = vmax.f32 %v738_v12, %v2102_v32  ;;  %v691_v4 = vmax.f32 %v643_v63, %v265_v44  ;;  %v25_v63 = vld [vmem:[%s3375_s0 + $0x2c] sm:$0x1] }
  0x1a   :  { %v1228_v2 = vrot.slane %v1226_v60, 4  ;;  %v1231_v3 = vrot.slane %v1229_v61, 5  ;;  %v1728_v11 = vpack.c.bf16 %v1016_v7, %v1016_v7  ;;  %v961_v30 = vmax.f32 %v913_v1, %v1993_v16 }
  0x1b   :  { %v1237_v6 = vrot.slane %v1235_v0, 5  ;;  %v1241_v19 = vrot.slane %v1239_v13, 4  ;;  %v962_v21 = vmax.f32 %v914_v45, %v1995_v17  ;;  %v739_v22 = vmax.f32 %v691_v4, %v370_v43 }
  0x1c   :  { %v1232_v20 = vor.u32 %v1231_v3, %v1228_v2  ;;  %v1245_v16 = vshll.u32 %v1728_v11, 16  ;;  %v1017_v33 = vmax.f32 %v961_v30, %v2017_v27  ;;  %v269_v17 = vunpack.c.l.bf16 %v2144_v5  ;;  %v2200_v3 = vld [vmem:[%s3377_s2 + $0x2c] sm:$0x1] }
  0x1d   :  { %v1242_v26 = vor.u32 %v1241_v19, %v1237_v6  ;;  %v1018_v35 = vmax.f32 %v962_v21, %v2040_v38  ;;  %v915_v14 = vmax.f32 %v739_v22, %v2083_v10  ;;  %v2165_v8 = vunpack.c.l.bf16 %v320_v25  ;;  %v2205_v19 = vld [vmem:[%s3378_s3 + $0x2c] sm:$0x1] }
  0x1e   :  { %v1233_v34 = vrot.slane %v1232_v20, 4  ;;  %v1247_v41 = vrot.slane %v1245_v16, 5  ;;  %v1729_v47 = vpack.c.bf16 %v1017_v33, %v1017_v33  ;;  %v2171_v49 = vunpack.c.h.bf16 %v320_v25 }
  0x1f   :  { %v1243_v40 = vrot.slane %v1242_v26, 4  ;;  %v1730_v48 = vpack.c.bf16 %v1018_v35, %v1018_v35  ;;  %v963_v27 = vmax.f32 %v915_v14, %v367_v46  ;;  %v419_v52 = vmax.f32 %v71_v50, %v167_v39 }
  0x20   :  { %v1238_v15 = vsel %vm2156_vm4, %v1233_v34, %v1237_v6  ;;  %v1250_v29 = vshrl.u32 %v1729_v47, 16  ;;  %v1253_v51 = vshll.u32 %v1729_v47, 16  ;;  %v420_v56 = vmax.f32 %v72_v53, %v168_v24  ;;  %v1919_v34 = vld [vmem:[%s3376_s1 + $0x30] sm:$0xff]  }
  0x21   :  { %1642 = vst.msk [vmem:[%s3379_s4] sm:$0xf] %vm1641_vm3, %v1238_v15  ;;  %v1248_v38 = vsel %vm2156_vm4, %v1243_v40, %v1247_v41  ;;  %v1259_v31 = vshll.u32 %v1730_v48, 16  ;;  %v1019_v46 = vmax.f32 %v963_v27, %v2020_v28  ;;  %v1263_v54 = vshrl.u32 %v1730_v48, 16  ;;  %v121_v28 = vld [vmem:[%s3376_s1 + $0x2c] sm:$0x1] }
  0x22   :  { %1643 = vst.msk [vmem:[%s3379_s4 + $0x4] sm:$0xf] %vm1641_vm3, %v1248_v38  ;;  %v1252_v57 = vrot.slane %v1250_v29, 4  ;;  %v1255_v60 = vrot.slane %v1253_v51, 5  ;;  %v500_v61 = vrot.slane %v167_v39, 7  ;;  %v501_v12 = vrot.slane %v168_v24, 7 }
  0x23   :  { %v1261_v0 = vrot.slane %v1259_v31, 5  ;;  %v1731_v50 = vpack.c.bf16 %v1019_v46, %v1019_v46  ;;  %v1265_v7 = vrot.slane %v1263_v54, 4  ;;  %v2188_v13 = vrot.slane %v2165_v8, 7  ;;  %v1911_v24 = vld [vmem:[%s3375_s0 + $0x30] sm:$0xff]  }
  0x24   :  { %v1256_v1 = vor.u32 %v1255_v60, %v1252_v57  ;;  %v502_v53 = vsel %vm493_vm0, %v500_v61, %v501_v12  ;;  %v596_v2 = vmax.f32 %v419_v52, %v500_v61  ;;  %v2195_v39 = vrot.slane %v2171_v49, 7  ;;  %v2231_v47 = vld [vmem:[%s3377_s2 + $0x30] sm:$0xff]  }
  0x25   :  { %v1266_v45 = vor.u32 %v1265_v7, %v1261_v0  ;;  %v1269_v4 = vshll.u32 %v1731_v50, 16  ;;  %v597_v6 = vmax.f32 %v420_v56, %v502_v53  ;;  %v73_v11 = vunpack.c.l.bf16 %v25_v63  ;;  %v1935_v15 = vld [vmem:[%s3378_s3 + $0x30] sm:$0xff]  }
  0x26   :  { %v1257_v30 = vrot.slane %v1256_v1, 4  ;;  %v644_v20 = vmax.f32 %v596_v2, %v269_v17  ;;  %v2212_v21 = vsel %vm493_vm0, %v2188_v13, %v2195_v39  ;;  %v169_v22 = vunpack.c.l.bf16 %v121_v28 }
  0x27   :  { %v1267_v25 = vrot.slane %v1266_v45, 4  ;;  %v1271_v26 = vrot.slane %v1269_v4, 5  ;;  %v645_v16 = vmax.f32 %v597_v6, %v270_v36  ;;  %v271_v33 = vunpack.c.l.bf16 %v2200_v3  ;;  %v124_v45 = vld [vmem:[%s3376_s1 + $0x38] sm:$0x1] }
  0x28   :  { %v1262_v35 = vsel %vm2156_vm4, %v1257_v30, %v1261_v0  ;;  %v692_v14 = vmax.f32 %v644_v20, %v1844_v55  ;;  %v373_v40 = vunpack.c.l.bf16 %v2205_v19  ;;  %v421_v41 = vmax.f32 %v73_v11, %v169_v22  ;;  %v2278_v4 = vld [vmem:[%s3377_s2 + $0x38] sm:$0x1]  ;;  %v127_v19 = vld [vmem:[%s3376_s1 + $0x44] sm:$0x1] }
  0x29   :  { %1644 = vst.msk [vmem:[%s3379_s4 + $0x8] sm:$0xf] %vm1641_vm3, %v1262_v35  ;;  %v1272_v55 = vsel %vm2156_vm4, %v1267_v25, %v1271_v26  ;;  %v693_v48 = vmax.f32 %v645_v16, %v1845_v58  ;;  %v1780_v27 = vunpack.c.l.bf16 %v1911_v24  ;;  %v1781_v38 = vunpack.c.h.bf16 %v1911_v24  ;;  %v2285_v11 = vld [vmem:[%s3378_s3 + $0x38] sm:$0x1] }
  0x2a   :  { %1645 = vst.msk [vmem:[%s3379_s4 + $0xc] sm:$0xf] %vm1641_vm3, %v1272_v55  ;;  %v740_v29 = vmax.f32 %v692_v14, %v2165_v8  ;;  %v598_v51 = vmax.f32 %v421_v41, %v501_v12  ;;  %v1812_v52 = vunpack.c.l.bf16 %v1919_v34  ;;  %v1813_v31 = vunpack.c.h.bf16 %v1919_v34  ;;  %v28_v12 = vld [vmem:[%s3375_s0 + $0x38] sm:$0x1] }
  0x2b   :  { %v741_v46 = vmax.f32 %v693_v48, %v2171_v49  ;;  %v1848_v54 = vunpack.c.l.bf16 %v2231_v47  ;;  %v1849_v56 = vunpack.c.h.bf16 %v2231_v47  ;;  %v2252_v42 = vunpack.c.l.bf16 %v1935_v15 }
  0x2c   :  { %v916_v58 = vmax.f32 %v740_v29, %v2188_v13  ;;  %v646_v57 = vmax.f32 %v598_v51, %v271_v33  ;;  %v2257_v60 = vunpack.c.h.bf16 %v1935_v15  ;;  %v422_v61 = vmax.f32 %v1780_v27, %v1812_v52 }
  0x2d   :  { %v917_v63 = vmax.f32 %v741_v46, %v2212_v21  ;;  %v423_v0 = vmax.f32 %v1781_v38, %v1813_v31  ;;  %v503_v50 = vrot.slane %v1812_v52, 7  ;;  %v504_v7 = vrot.slane %v1813_v31, 7 }
  0x2e   :  { %v964_v28 = vmax.f32 %v916_v58, %v2064_v59  ;;  %v694_v1 = vmax.f32 %v646_v57, %v268_v37  ;;  %v2267_v53 = vrot.slane %v2252_v42, 7  ;;  %v2270_v2 = vrot.slane %v2257_v60, 7 }
  0x2f   :  { %v965_v59 = vmax.f32 %v917_v63, %v2070_v62  ;;  %v505_v18 = vsel %vm493_vm0, %v503_v50, %v504_v7  ;;  %v599_v37 = vmax.f32 %v422_v61, %v503_v50  ;;  %v76_v6 = vunpack.c.l.bf16 %v28_v12  ;;  %v29_v62 = vld [vmem:[%s3375_s0 + $0x3c] sm:$0xff]  }
  0x30   :  { %v1020_v30 = vmax.f32 %v964_v28, %v2080_v9  ;;  %v742_v20 = vmax.f32 %v694_v1, %v373_v40  ;;  %v600_v22 = vmax.f32 %v423_v0, %v505_v18  ;;  %v2293_v24 = vsel %vm493_vm0, %v2267_v53, %v2270_v2  ;;  %v125_v63 = vld [vmem:[%s3376_s1 + $0x3c] sm:$0xff]  }
  0x31   :  { %v1021_v25 = vmax.f32 %v965_v59, %v2102_v32  ;;  %v647_v26 = vmax.f32 %v599_v37, %v1848_v54  ;;  %v172_v16 = vunpack.c.l.bf16 %v124_v45  ;;  %v274_v9 = vunpack.c.l.bf16 %v2278_v4  ;;  %v2456_v4 = vld [vmem:[%s3377_s2 + $0x50] sm:$0x1] }
  0x32   :  { %v1732_v34 = vpack.c.bf16 %v1020_v30, %v1020_v30  ;;  %v918_v35 = vmax.f32 %v742_v20, %v2195_v39  ;;  %v648_v14 = vmax.f32 %v600_v22, %v1849_v56  ;;  %v376_v41 = vunpack.c.l.bf16 %v2285_v11  ;;  %v326_v22 = vld [vmem:[%s3378_s3 + $0x3c] sm:$0xff]  }
  0x33   :  { %v1733_v15 = vpack.c.bf16 %v1021_v25, %v1021_v25  ;;  %v695_v55 = vmax.f32 %v647_v26, %v269_v17  ;;  %v424_v48 = vmax.f32 %v76_v6, %v172_v16  ;;  %v77_v32 = vunpack.c.l.bf16 %v29_v62 }
  0x34   :  { %v1274_v27 = vshrl.u32 %v1732_v34, 16  ;;  %v1277_v38 = vshll.u32 %v1732_v34, 16  ;;  %v966_v29 = vmax.f32 %v918_v35, %v370_v43  ;;  %v696_v51 = vmax.f32 %v648_v14, %v270_v36 }
  0x35   :  { %v1283_v52 = vshll.u32 %v1733_v15, 16  ;;  %v1287_v31 = vshrl.u32 %v1733_v15, 16  ;;  %v743_v46 = vmax.f32 %v695_v55, %v2252_v42  ;;  %v601_v58 = vmax.f32 %v424_v48, %v504_v7 }
  0x36   :  { %v1276_v57 = vrot.slane %v1274_v27, 4  ;;  %v1279_v61 = vrot.slane %v1277_v38, 5  ;;  %v1022_v12 = vmax.f32 %v966_v29, %v2083_v10  ;;  %v744_v17 = vmax.f32 %v696_v51, %v2257_v60  ;;  %v2325_v10 = vld [vmem:[%s3377_s2 + $0x3c] sm:$0xff]  }
  0x37   :  { %v1285_v23 = vrot.slane %v1283_v52, 5  ;;  %v1289_v43 = vrot.slane %v1287_v31, 4  ;;  %v919_v5 = vmax.f32 %v743_v46, %v2267_v53  ;;  %v649_v36 = vmax.f32 %v601_v58, %v274_v9 }
  0x38   :  { %v1280_v0 = vor.u32 %v1279_v61, %v1276_v57  ;;  %v1734_v50 = vpack.c.bf16 %v1022_v12, %v1022_v12  ;;  %v920_v7 = vmax.f32 %v744_v17, %v2293_v24  ;;  %v78_v28 = vunpack.c.h.bf16 %v29_v62  ;;  %v31_v17 = vld [vmem:[%s3375_s0 + $0x44] sm:$0x1] }
  0x39   :  { %v1290_v1 = vor.u32 %v1289_v43, %v1285_v23  ;;  %v967_v45 = vmax.f32 %v919_v5, %v2165_v8  ;;  %v697_v59 = vmax.f32 %v649_v36, %v271_v33  ;;  %v173_v18 = vunpack.c.l.bf16 %v125_v63 }
  0x3a   :  { %v1281_v37 = vrot.slane %v1280_v0, 4  ;;  %v1293_v6 = vshll.u32 %v1734_v50, 16  ;;  %v968_v30 = vmax.f32 %v920_v7, %v2171_v49  ;;  %v174_v20 = vunpack.c.h.bf16 %v125_v63  ;;  %v2378_v50 = vld [vmem:[%s3377_s2 + $0x44] sm:$0x1] }
  0x3b   :  { %v1291_v62 = vrot.slane %v1290_v1, 4  ;;  %v1023_v25 = vmax.f32 %v967_v45, %v2188_v13  ;;  %v745_v26 = vmax.f32 %v697_v59, %v376_v41  ;;  %v275_v8 = vunpack.c.l.bf16 %v2325_v10  ;;  %v2383_v7 = vld [vmem:[%s3378_s3 + $0x44] sm:$0x1] }
  0x3c   :  { %v1286_v3 = vsel %vm2156_vm4, %v1281_v37, %v1285_v23  ;;  %v1295_v33 = vrot.slane %v1293_v6, 5  ;;  %v1024_v16 = vmax.f32 %v968_v30, %v2212_v21  ;;  %v276_v49 = vunpack.c.h.bf16 %v2325_v10  ;;  %v2500_v10 = vld [vmem:[%s3377_s2 + $0x54] sm:$0xff]  }
  0x3d   :  { %1646 = vst.msk [vmem:[%s3379_s4 + $0x10] sm:$0xf] %vm1641_vm3, %v1286_v3  ;;  %v1735_v34 = vpack.c.bf16 %v1023_v25, %v1023_v25  ;;  %v921_v13 = vmax.f32 %v745_v26, %v2270_v2  ;;  %v2347_v35 = vunpack.c.l.bf16 %v326_v22  ;;  %v2349_v14 = vunpack.c.h.bf16 %v326_v22  ;;  %v1920_v22 = vld [vmem:[%s3376_s1 + $0x48] sm:$0xff]  }
  0x3e   :  { %v1296_v15 = vsel %vm2156_vm4, %v1291_v62, %v1295_v33  ;;  %v1736_v55 = vpack.c.bf16 %v1024_v16, %v1024_v16  ;;  %v425_v48 = vmax.f32 %v77_v32, %v173_v18  ;;  %v426_v21 = vmax.f32 %v78_v28, %v174_v20 }
  0x3f   :  { %1647 = vst.msk [vmem:[%s3379_s4 + $0x14] sm:$0xf] %vm1641_vm3, %v1296_v15  ;;  %v1298_v27 = vshrl.u32 %v1735_v34, 16  ;;  %v1301_v38 = vshll.u32 %v1735_v34, 16  ;;  %v969_v29 = vmax.f32 %v921_v13, %v373_v40  ;;  %v506_v51 = vrot.slane %v173_v18, 7  ;;  %v2410_v13 = vld [vmem:[%s3377_s2 + $0x48] sm:$0xff]  }
  0x40   :  { %v1307_v52 = vshll.u32 %v1736_v55, 16  ;;  %v1311_v31 = vshrl.u32 %v1736_v55, 16  ;;  %v507_v46 = vrot.slane %v174_v20, 7  ;;  %v2360_v58 = vrot.slane %v2347_v35, 7  ;;  %v1912_v20 = vld [vmem:[%s3375_s0 + $0x48] sm:$0xff]  }
  0x41   :  { %v1300_v57 = vrot.slane %v1298_v27, 4  ;;  %v1303_v32 = vrot.slane %v1301_v38, 5  ;;  %v1025_v61 = vmax.f32 %v969_v29, %v2195_v39  ;;  %v602_v12 = vmax.f32 %v425_v48, %v506_v51  ;;  %v1936_v15 = vld [vmem:[%s3378_s3 + $0x48] sm:$0xff]  }
  0x42   :  { %v1309_v40 = vrot.slane %v1307_v52, 5  ;;  %v1313_v63 = vrot.slane %v1311_v31, 4  ;;  %v508_v23 = vsel %vm493_vm0, %v506_v51, %v507_v46  ;;  %v2371_v43 = vrot.slane %v2349_v14, 7 }
  0x43   :  { %v1304_v5 = vor.u32 %v1303_v32, %v1300_v57  ;;  %v1737_v36 = vpack.c.bf16 %v1025_v61, %v1025_v61  ;;  %v603_v0 = vmax.f32 %v426_v21, %v508_v23  ;;  %v650_v39 = vmax.f32 %v602_v12, %v275_v8 }
  0x44   :  { %v1314_v28 = vor.u32 %v1313_v63, %v1309_v40  ;;  %v2388_v1 = vsel %vm493_vm0, %v2360_v58, %v2371_v43  ;;  %v79_v45 = vunpack.c.l.bf16 %v31_v17  ;;  %v175_v59 = vunpack.c.l.bf16 %v127_v19  ;;  %v34_v17 = vld [vmem:[%s3375_s0 + $0x50] sm:$0x1] }
  0x45   :  { %v1305_v18 = vrot.slane %v1304_v5, 4  ;;  %v1317_v37 = vshll.u32 %v1737_v36, 16  ;;  %v651_v6 = vmax.f32 %v603_v0, %v276_v49  ;;  %v698_v30 = vmax.f32 %v650_v39, %v1848_v54  ;;  %v130_v39 = vld [vmem:[%s3376_s1 + $0x50] sm:$0x1] }
  0x46   :  { %v1315_v62 = vrot.slane %v1314_v28, 4  ;;  %v277_v25 = vunpack.c.l.bf16 %v2378_v50  ;;  %v379_v26 = vunpack.c.l.bf16 %v2383_v7  ;;  %v427_v3 = vmax.f32 %v79_v45, %v175_v59  ;;  %v2552_v7 = vld [vmem:[%s3377_s2 + $0x5c] sm:$0x1] }
  0x47   :  { %v1310_v33 = vsel %vm2156_vm4, %v1305_v18, %v1309_v40  ;;  %v1319_v16 = vrot.slane %v1317_v37, 5  ;;  %v699_v54 = vmax.f32 %v651_v6, %v1849_v56  ;;  %v746_v34 = vmax.f32 %v698_v30, %v2347_v35  ;;  %v2470_v6 = vld [vmem:[%s3378_s3 + $0x50] sm:$0x1] }
  0x48   :  { %1648 = vst.msk [vmem:[%s3379_s4 + $0x18] sm:$0xf] %vm1641_vm3, %v1310_v33  ;;  %v604_v55 = vmax.f32 %v427_v3, %v507_v46  ;;  %v1784_v48 = vunpack.c.l.bf16 %v1912_v20  ;;  %v1785_v47 = vunpack.c.h.bf16 %v1912_v20  ;;  %v1816_v56 = vunpack.c.l.bf16 %v1920_v22 }
  0x49   :  { %v1320_v21 = vsel %vm2156_vm4, %v1315_v62, %v1319_v16  ;;  %v747_v27 = vmax.f32 %v699_v54, %v2349_v14  ;;  %v922_v38 = vmax.f32 %v746_v34, %v2360_v58  ;;  %v1817_v29 = vunpack.c.h.bf16 %v1920_v22 }
  0x4a   :  { %1649 = vst.msk [vmem:[%s3379_s4 + $0x1c] sm:$0xf] %vm1641_vm3, %v1320_v21  ;;  %v652_v51 = vmax.f32 %v604_v55, %v277_v25  ;;  %v1852_v52 = vunpack.c.l.bf16 %v2410_v13  ;;  %v1853_v31 = vunpack.c.h.bf16 %v2410_v13  ;;  %v2431_v46 = vunpack.c.l.bf16 %v1936_v15 }
  0x4b   :  { %v923_v57 = vmax.f32 %v747_v27, %v2388_v1  ;;  %v970_v32 = vmax.f32 %v922_v38, %v2252_v42  ;;  %v2435_v61 = vunpack.c.h.bf16 %v1936_v15  ;;  %v428_v12 = vmax.f32 %v1784_v48, %v1816_v56  ;;  %v35_v48 = vld [vmem:[%s3375_s0 + $0x54] sm:$0xff]  }
  0x4c   :  { %v700_v19 = vmax.f32 %v652_v51, %v274_v9  ;;  %v429_v40 = vmax.f32 %v1785_v47, %v1817_v29  ;;  %v509_v63 = vrot.slane %v1816_v56, 7  ;;  %v510_v23 = vrot.slane %v1817_v29, 7 }
  0x4d   :  { %v971_v5 = vmax.f32 %v923_v57, %v2257_v60  ;;  %v1026_v36 = vmax.f32 %v970_v32, %v2267_v53  ;;  %v2445_v0 = vrot.slane %v2431_v46, 7  ;;  %v2448_v42 = vrot.slane %v2435_v61, 7 }
  0x4e   :  { %v748_v60 = vmax.f32 %v700_v19, %v379_v26  ;;  %v511_v53 = vsel %vm493_vm0, %v509_v63, %v510_v23  ;;  %v605_v9 = vmax.f32 %v428_v12, %v509_v63  ;;  %v82_v28 = vunpack.c.l.bf16 %v34_v17 }
  0x4f   :  { %v1027_v45 = vmax.f32 %v971_v5, %v2293_v24  ;;  %v1738_v59 = vpack.c.bf16 %v1026_v36, %v1026_v36  ;;  %v606_v18 = vmax.f32 %v429_v40, %v511_v53  ;;  %v2465_v37 = vsel %vm493_vm0, %v2445_v0, %v2448_v42 }
  0x50   :  { %v924_v30 = vmax.f32 %v748_v60, %v2371_v43  ;;  %v653_v20 = vmax.f32 %v605_v9, %v1852_v52  ;;  %v178_v22 = vunpack.c.l.bf16 %v130_v39  ;;  %v280_v24 = vunpack.c.l.bf16 %v2456_v4  ;;  %v332_v9 = vld [vmem:[%s3378_s3 + $0x54] sm:$0xff]  }
  0x51   :  { %v1739_v62 = vpack.c.bf16 %v1027_v45, %v1027_v45  ;;  %v1322_v3 = vshrl.u32 %v1738_v59, 16  ;;  %v1325_v33 = vshll.u32 %v1738_v59, 16  ;;  %v654_v16 = vmax.f32 %v606_v18, %v1853_v31 }
  0x52   :  { %v972_v54 = vmax.f32 %v924_v30, %v376_v41  ;;  %v701_v34 = vmax.f32 %v653_v20, %v275_v8  ;;  %v382_v15 = vunpack.c.l.bf16 %v2470_v6  ;;  %v430_v55 = vmax.f32 %v82_v28, %v178_v22  ;;  %v131_v8 = vld [vmem:[%s3376_s1 + $0x54] sm:$0xff]  }
  0x53   :  { %v1324_v47 = vrot.slane %v1322_v3, 4  ;;  %v1327_v56 = vrot.slane %v1325_v33, 5  ;;  %v1331_v21 = vshll.u32 %v1739_v62, 16  ;;  %v1335_v27 = vshrl.u32 %v1739_v62, 16 }
  0x54   :  { %v1028_v38 = vmax.f32 %v972_v54, %v2270_v2  ;;  %v702_v11 = vmax.f32 %v654_v16, %v276_v49  ;;  %v749_v41 = vmax.f32 %v701_v34, %v2431_v46  ;;  %v607_v29 = vmax.f32 %v430_v55, %v510_v23 }
  0x55   :  { %v1328_v51 = vor.u32 %v1327_v56, %v1324_v47  ;;  %v1333_v57 = vrot.slane %v1331_v21, 5  ;;  %v1337_v32 = vrot.slane %v1335_v27, 4  ;;  %v83_v12 = vunpack.c.l.bf16 %v35_v48 }
  0x56   :  { %v1740_v17 = vpack.c.bf16 %v1028_v38, %v1028_v38  ;;  %v750_v19 = vmax.f32 %v702_v11, %v2435_v61  ;;  %v925_v40 = vmax.f32 %v749_v41, %v2445_v0  ;;  %v655_v2 = vmax.f32 %v607_v29, %v280_v24 }
  0x57   :  { %v1329_v49 = vrot.slane %v1328_v51, 4  ;;  %v1338_v63 = vor.u32 %v1337_v32, %v1333_v57  ;;  %v84_v23 = vunpack.c.h.bf16 %v35_v48  ;;  %v179_v5 = vunpack.c.l.bf16 %v131_v8 }
  0x58   :  { %v1341_v36 = vshll.u32 %v1740_v17, 16  ;;  %v926_v39 = vmax.f32 %v750_v19, %v2465_v37  ;;  %v973_v60 = vmax.f32 %v925_v40, %v2347_v35  ;;  %v703_v53 = vmax.f32 %v655_v2, %v277_v25  ;;  %v2564_v2 = vld [vmem:[%s3378_s3 + $0x5c] sm:$0x1] }
  0x59   :  { %v1334_v28 = vsel %vm2156_vm4, %v1329_v49, %v1333_v57  ;;  %v1339_v45 = vrot.slane %v1338_v63, 4  ;;  %v180_v59 = vunpack.c.h.bf16 %v131_v8  ;;  %v281_v18 = vunpack.c.l.bf16 %v2500_v10  ;;  %v133_v8 = vld [vmem:[%s3376_s1 + $0x5c] sm:$0x1] }
  0x5a   :  { %1650 = vst.msk [vmem:[%s3379_s4 + $0x20] sm:$0xf] %vm1641_vm3, %v1334_v28  ;;  %v1343_v35 = vrot.slane %v1341_v36, 5  ;;  %v974_v50 = vmax.f32 %v926_v39, %v2349_v14  ;;  %v1029_v25 = vmax.f32 %v973_v60, %v2360_v58  ;;  %v751_v30 = vmax.f32 %v703_v53, %v382_v15  ;;  %v37_v58 = vld [vmem:[%s3375_s0 + $0x5c] sm:$0x1] }
  0x5b   :  { %v282_v20 = vunpack.c.h.bf16 %v2500_v10  ;;  %v2521_v22 = vunpack.c.l.bf16 %v332_v9  ;;  %v2523_v62 = vunpack.c.h.bf16 %v332_v9  ;;  %v431_v3 = vmax.f32 %v83_v12, %v179_v5  ;;  %v2673_v10 = vld [vmem:[%s3377_s2 + $0x6c] sm:$0xff]  }
  0x5c   :  { %v1344_v33 = vsel %vm2156_vm4, %v1339_v45, %v1343_v35  ;;  %v1030_v16 = vmax.f32 %v974_v50, %v2388_v1  ;;  %v1741_v54 = vpack.c.bf16 %v1029_v25, %v1029_v25  ;;  %v927_v14 = vmax.f32 %v751_v30, %v2448_v42  ;;  %v1921_v35 = vld [vmem:[%s3376_s1 + $0x60] sm:$0xff]  }
  0x5d   :  { %1651 = vst.msk [vmem:[%s3379_s4 + $0x24] sm:$0xf] %vm1641_vm3, %v1344_v33  ;;  %v432_v34 = vmax.f32 %v84_v23, %v180_v59  ;;  %v512_v55 = vrot.slane %v179_v5, 7  ;;  %v513_v48 = vrot.slane %v180_v59, 7  ;;  %v2537_v47 = vrot.slane %v2521_v22, 7  ;;  %v1913_v5 = vld [vmem:[%s3375_s0 + $0x60] sm:$0xff]  }
  0x5e   :  { %v1742_v56 = vpack.c.bf16 %v1030_v16, %v1030_v16  ;;  %v1346_v1 = vshrl.u32 %v1741_v54, 16  ;;  %v1349_v21 = vshll.u32 %v1741_v54, 16  ;;  %v975_v27 = vmax.f32 %v927_v14, %v379_v26 }
  0x5f   :  { %v514_v38 = vsel %vm493_vm0, %v512_v55, %v513_v48  ;;  %v608_v11 = vmax.f32 %v431_v3, %v512_v55  ;;  %v2543_v41 = vrot.slane %v2523_v62, 7  ;;  %v85_v29 = vunpack.c.l.bf16 %v37_v58  ;;  %v1937_v58 = vld [vmem:[%s3378_s3 + $0x60] sm:$0xff]  }
  0x60   :  { %v1348_v51 = vrot.slane %v1346_v1, 4  ;;  %v1351_v57 = vrot.slane %v1349_v21, 5  ;;  %v1355_v32 = vshll.u32 %v1742_v56, 16  ;;  %v1031_v12 = vmax.f32 %v975_v27, %v2371_v43 }
  0x61   :  { %v1359_v26 = vshrl.u32 %v1742_v56, 16  ;;  %v609_v17 = vmax.f32 %v432_v34, %v514_v38  ;;  %v656_v19 = vmax.f32 %v608_v11, %v281_v18  ;;  %v2559_v40 = vsel %vm493_vm0, %v2537_v47, %v2543_v41 }
  0x62   :  { %v1352_v43 = vor.u32 %v1351_v57, %v1348_v51  ;;  %v1357_v49 = vrot.slane %v1355_v32, 5  ;;  %v1743_v63 = vpack.c.bf16 %v1031_v12, %v1031_v12  ;;  %v181_v23 = vunpack.c.l.bf16 %v133_v8  ;;  %v40_v8 = vld [vmem:[%s3375_s0 + $0x68] sm:$0x1] }
  0x63   :  { %v1361_v36 = vrot.slane %v1359_v26, 4  ;;  %v657_v39 = vmax.f32 %v609_v17, %v282_v20  ;;  %v704_v60 = vmax.f32 %v656_v19, %v1852_v52  ;;  %v283_v53 = vunpack.c.l.bf16 %v2552_v7  ;;  %v2584_v52 = vld [vmem:[%s3377_s2 + $0x60] sm:$0xff]   ;;  %v139_v7 = vld [vmem:[%s3376_s1 + $0x74] sm:$0x1] }
  0x64   :  { %v1353_v9 = vrot.slane %v1352_v43, 4  ;;  %v1365_v28 = vshll.u32 %v1743_v63, 16  ;;  %v385_v45 = vunpack.c.l.bf16 %v2564_v2  ;;  %v433_v59 = vmax.f32 %v85_v29, %v181_v23  ;;  %v136_v43 = vld [vmem:[%s3376_s1 + $0x68] sm:$0x1]  ;;  %v2739_v2 = vld [vmem:[%s3378_s3 + $0x74] sm:$0x1] }
  0x65   :  { %v1362_v50 = vor.u32 %v1361_v36, %v1357_v49  ;;  %v705_v25 = vmax.f32 %v657_v39, %v1853_v31  ;;  %v752_v30 = vmax.f32 %v704_v60, %v2521_v22  ;;  %v1788_v3 = vunpack.c.l.bf16 %v1913_v5  ;;  %v2636_v36 = vld [vmem:[%s3377_s2 + $0x68] sm:$0x1] }
  0x66   :  { %v1358_v33 = vsel %vm2156_vm4, %v1353_v9, %v1357_v49  ;;  %v1367_v16 = vrot.slane %v1365_v28, 5  ;;  %v610_v54 = vmax.f32 %v433_v59, %v513_v48  ;;  %v1789_v14 = vunpack.c.h.bf16 %v1913_v5  ;;  %v2641_v39 = vld [vmem:[%s3378_s3 + $0x68] sm:$0x1] }
  0x67   :  { %1652 = vst.msk [vmem:[%s3379_s4 + $0x28] sm:$0xf] %vm1641_vm3, %v1358_v33  ;;  %v1363_v13 = vrot.slane %v1362_v50, 4  ;;  %v753_v31 = vmax.f32 %v705_v25, %v2523_v62  ;;  %v928_v34 = vmax.f32 %v752_v30, %v2537_v47  ;;  %v1820_v55 = vunpack.c.l.bf16 %v1921_v35 }
  0x68   :  { %v658_v56 = vmax.f32 %v610_v54, %v283_v53  ;;  %v1821_v48 = vunpack.c.h.bf16 %v1921_v35  ;;  %v1856_v1 = vunpack.c.l.bf16 %v2584_v52  ;;  %v1857_v21 = vunpack.c.h.bf16 %v2584_v52  ;;  %v41_v54 = vld [vmem:[%s3375_s0 + $0x6c] sm:$0xff]   ;;  %v1938_v52 = vld [vmem:[%s3378_s3 + $0x78] sm:$0xff]  }
  0x69   :  { %v1368_v27 = vsel %vm2156_vm4, %v1363_v13, %v1367_v16  ;;  %v929_v38 = vmax.f32 %v753_v31, %v2559_v40  ;;  %v976_v11 = vmax.f32 %v928_v34, %v2431_v46  ;;  %v2605_v29 = vunpack.c.l.bf16 %v1937_v58 }
  0x6a   :  { %1653 = vst.msk [vmem:[%s3379_s4 + $0x2c] sm:$0xf] %vm1641_vm3, %v1368_v27  ;;  %v706_v51 = vmax.f32 %v658_v56, %v280_v24  ;;  %v2616_v57 = vunpack.c.h.bf16 %v1937_v58  ;;  %v434_v32 = vmax.f32 %v1788_v3, %v1820_v55  ;;  %v435_v12 = vmax.f32 %v1789_v14, %v1821_v48  ;;  %v137_v56 = vld [vmem:[%s3376_s1 + $0x6c] sm:$0xff]  }
  0x6b   :  { %v977_v46 = vmax.f32 %v929_v38, %v2435_v61  ;;  %v1032_v26 = vmax.f32 %v976_v11, %v2445_v0  ;;  %v515_v17 = vrot.slane %v1820_v55, 7  ;;  %v516_v19 = vrot.slane %v1821_v48, 7 }
  0x6c   :  { %v754_v49 = vmax.f32 %v706_v51, %v385_v45  ;;  %v2626_v4 = vrot.slane %v2605_v29, 7  ;;  %v2629_v24 = vrot.slane %v2616_v57, 7  ;;  %v88_v63 = vunpack.c.l.bf16 %v40_v8 }
  0x6d   :  { %v1033_v61 = vmax.f32 %v977_v46, %v2465_v37  ;;  %v1744_v23 = vpack.c.bf16 %v1032_v26, %v1032_v26  ;;  %v517_v0 = vsel %vm493_vm0, %v515_v17, %v516_v19  ;;  %v611_v5 = vmax.f32 %v434_v32, %v515_v17 }
  0x6e   :  { %v930_v60 = vmax.f32 %v754_v49, %v2543_v41  ;;  %v612_v9 = vmax.f32 %v435_v12, %v517_v0  ;;  %v2647_v37 = vsel %vm493_vm0, %v2626_v4, %v2629_v24  ;;  %v184_v28 = vunpack.c.l.bf16 %v136_v43 }
  0x6f   :  { %v1745_v59 = vpack.c.bf16 %v1033_v61, %v1033_v61  ;;  %v1370_v35 = vshrl.u32 %v1744_v23, 16  ;;  %v1373_v50 = vshll.u32 %v1744_v23, 16  ;;  %v659_v25 = vmax.f32 %v611_v5, %v1856_v1 }
  0x70   :  { %v978_v30 = vmax.f32 %v930_v60, %v382_v15  ;;  %v660_v3 = vmax.f32 %v612_v9, %v1857_v21  ;;  %v286_v33 = vunpack.c.l.bf16 %v2636_v36  ;;  %v388_v16 = vunpack.c.l.bf16 %v2641_v39 }
  0x71   :  { %v1372_v14 = vrot.slane %v1370_v35, 4  ;;  %v1375_v58 = vrot.slane %v1373_v50, 5  ;;  %v1379_v13 = vshll.u32 %v1745_v59, 16  ;;  %v1383_v31 = vshrl.u32 %v1745_v59, 16 }
  0x72   :  { %v1034_v34 = vmax.f32 %v978_v30, %v2448_v42  ;;  %v707_v6 = vmax.f32 %v659_v25, %v281_v18  ;;  %v708_v15 = vmax.f32 %v660_v3, %v282_v20  ;;  %v436_v55 = vmax.f32 %v88_v63, %v184_v28 }
  0x73   :  { %v1376_v48 = vor.u32 %v1375_v58, %v1372_v14  ;;  %v1381_v27 = vrot.slane %v1379_v13, 5  ;;  %v1385_v38 = vrot.slane %v1383_v31, 4  ;;  %v89_v11 = vunpack.c.l.bf16 %v41_v54 }
  0x74   :  { %v1746_v8 = vpack.c.bf16 %v1034_v34, %v1034_v34  ;;  %v755_v51 = vmax.f32 %v707_v6, %v2605_v29  ;;  %v756_v42 = vmax.f32 %v708_v15, %v2616_v57  ;;  %v613_v32 = vmax.f32 %v436_v55, %v516_v19  ;;  %v338_v19 = vld [vmem:[%s3378_s3 + $0x6c] sm:$0xff]  }
  0x75   :  { %v1377_v18 = vrot.slane %v1376_v48, 4  ;;  %v1386_v20 = vor.u32 %v1385_v38, %v1381_v27  ;;  %v90_v12 = vunpack.c.h.bf16 %v41_v54  ;;  %v185_v46 = vunpack.c.l.bf16 %v137_v56 }
  0x76   :  { %v1389_v26 = vshll.u32 %v1746_v8, 16  ;;  %v931_v17 = vmax.f32 %v755_v51, %v2626_v4  ;;  %v932_v43 = vmax.f32 %v756_v42, %v2647_v37  ;;  %v661_v49 = vmax.f32 %v613_v32, %v286_v33  ;;  %v2727_v8 = vld [vmem:[%s3377_s2 + $0x74] sm:$0x1] }
  0x77   :  { %v1382_v63 = vsel %vm2156_vm4, %v1377_v18, %v1381_v27  ;;  %v1387_v61 = vrot.slane %v1386_v20, 4  ;;  %v186_v23 = vunpack.c.h.bf16 %v137_v56  ;;  %v287_v0 = vunpack.c.l.bf16 %v2673_v10 }
  0x78   :  { %1654 = vst.msk [vmem:[%s3379_s4 + $0x30] sm:$0xf] %vm1641_vm3, %v1382_v63  ;;  %v1391_v5 = vrot.slane %v1389_v26, 5  ;;  %v979_v60 = vmax.f32 %v931_v17, %v2521_v22  ;;  %v980_v9 = vmax.f32 %v932_v43, %v2523_v62  ;;  %v709_v28 = vmax.f32 %v661_v49, %v283_v53  ;;  %v43_v62 = vld [vmem:[%s3375_s0 + $0x74] sm:$0x1]  ;;  %v1914_v26 = vld [vmem:[%s3375_s0 + $0x78] sm:$0xff]  }
  0x79   :  { %v288_v59 = vunpack.c.h.bf16 %v2673_v10  ;;  %v2694_v35 = vunpack.c.l.bf16 %v338_v19  ;;  %v2696_v50 = vunpack.c.h.bf16 %v338_v19  ;;  %v437_v25 = vmax.f32 %v89_v11, %v185_v46  ;;  %v344_v10 = vld [vmem:[%s3378_s3 + $0x84] sm:$0xff]  }
  0x7a   :  { %v1392_v30 = vsel %vm2156_vm4, %v1387_v61, %v1391_v5  ;;  %v1035_v3 = vmax.f32 %v979_v60, %v2537_v47  ;;  %v1036_v54 = vmax.f32 %v980_v9, %v2559_v40  ;;  %v757_v22 = vmax.f32 %v709_v28, %v388_v16 }
  0x7b   :  { %1655 = vst.msk [vmem:[%s3379_s4 + $0x34] sm:$0xf] %vm1641_vm3, %v1392_v30  ;;  %v438_v53 = vmax.f32 %v90_v12, %v186_v23  ;;  %v518_v47 = vrot.slane %v185_v46, 7  ;;  %v519_v14 = vrot.slane %v186_v23, 7  ;;  %v2715_v40 = vrot.slane %v2694_v35, 7 }
  0x7c   :  { %v1747_v58 = vpack.c.bf16 %v1035_v3, %v1035_v3  ;;  %v1748_v13 = vpack.c.bf16 %v1036_v54, %v1036_v54  ;;  %v933_v31 = vmax.f32 %v757_v22, %v2629_v24  ;;  %v2719_v34 = vrot.slane %v2696_v50, 7  ;;  %v2760_v22 = vld [vmem:[%s3377_s2 + $0x78] sm:$0xff]  }
  0x7d   :  { %v520_v6 = vsel %vm493_vm0, %v518_v47, %v519_v14  ;;  %v614_v15 = vmax.f32 %v437_v25, %v518_v47  ;;  %v91_v55 = vunpack.c.l.bf16 %v43_v62  ;;  %v187_v56 = vunpack.c.l.bf16 %v139_v7 }
  0x7e   :  { %v1394_v48 = vshrl.u32 %v1747_v58, 16  ;;  %v1397_v27 = vshll.u32 %v1747_v58, 16  ;;  %v1403_v38 = vshll.u32 %v1748_v13, 16  ;;  %v981_v11 = vmax.f32 %v933_v31, %v385_v45 }
  0x7f   :  { %v1407_v51 = vshrl.u32 %v1748_v13, 16  ;;  %v615_v42 = vmax.f32 %v438_v53, %v520_v6  ;;  %v662_v32 = vmax.f32 %v614_v15, %v287_v0  ;;  %v2734_v18 = vsel %vm493_vm0, %v2715_v40, %v2719_v34 }
  0x80   :  { %v1396_v45 = vrot.slane %v1394_v48, 4  ;;  %v1399_v20 = vrot.slane %v1397_v27, 5  ;;  %v1405_v12 = vrot.slane %v1403_v38, 5  ;;  %v1037_v46 = vmax.f32 %v981_v11, %v2543_v41  ;;  %v1922_v41 = vld [vmem:[%s3376_s1 + $0x78] sm:$0xff]   ;;  %v46_v11 = vld [vmem:[%s3375_s0 + $0x80] sm:$0x1] }
  0x81   :  { %v1409_v17 = vrot.slane %v1407_v51, 4  ;;  %v663_v43 = vmax.f32 %v615_v42, %v288_v59  ;;  %v710_v49 = vmax.f32 %v662_v32, %v1856_v1  ;;  %v289_v19 = vunpack.c.l.bf16 %v2727_v8 }
  0x82   :  { %v1400_v63 = vor.u32 %v1399_v20, %v1396_v45  ;;  %v1749_v61 = vpack.c.bf16 %v1037_v46, %v1037_v46  ;;  %v391_v23 = vunpack.c.l.bf16 %v2739_v2  ;;  %v439_v5 = vmax.f32 %v91_v55, %v187_v56 }
  0x83   :  { %v1410_v60 = vor.u32 %v1409_v17, %v1405_v12  ;;  %v711_v9 = vmax.f32 %v663_v43, %v1857_v21  ;;  %v758_v28 = vmax.f32 %v710_v49, %v2694_v35  ;;  %v1792_v25 = vunpack.c.l.bf16 %v1914_v26  ;;  %v2811_v17 = vld [vmem:[%s3377_s2 + $0x80] sm:$0x1] }
  0x84   :  { %v1401_v30 = vrot.slane %v1400_v63, 4  ;;  %v1413_v1 = vshll.u32 %v1749_v61, 16  ;;  %v616_v3 = vmax.f32 %v439_v5, %v519_v14  ;;  %v1793_v54 = vunpack.c.h.bf16 %v1914_v26 }
  0x85   :  { %v1411_v62 = vrot.slane %v1410_v60, 4  ;;  %v759_v7 = vmax.f32 %v711_v9, %v2696_v50  ;;  %v934_v53 = vmax.f32 %v758_v28, %v2715_v40  ;;  %v1824_v47 = vunpack.c.l.bf16 %v1922_v41  ;;  %v2818_v9 = vld [vmem:[%s3378_s3 + $0x80] sm:$0x1] }
  0x86   :  { %v1406_v21 = vsel %vm2156_vm4, %v1401_v30, %v1405_v12  ;;  %v1415_v14 = vrot.slane %v1413_v1, 5  ;;  %v664_v58 = vmax.f32 %v616_v3, %v289_v19  ;;  %v1825_v13 = vunpack.c.h.bf16 %v1922_v41 }
  0x87   :  { %1656 = vst.msk [vmem:[%s3379_s4 + $0x38] sm:$0xf] %vm1641_vm3, %v1406_v21  ;;  %v935_v31 = vmax.f32 %v759_v7, %v2734_v18  ;;  %v982_v6 = vmax.f32 %v934_v53, %v2605_v29  ;;  %v1860_v15 = vunpack.c.l.bf16 %v2760_v22  ;;  %v1861_v55 = vunpack.c.h.bf16 %v2760_v22  ;;  %v47_v53 = vld [vmem:[%s3375_s0 + $0x84] sm:$0xff]   ;;  %v2938_v22 = vld [vmem:[%s3377_s2 + $0x90] sm:$0xff]  }
  0x88   :  { %v1416_v56 = vsel %vm2156_vm4, %v1411_v62, %v1415_v14  ;;  %v712_v48 = vmax.f32 %v664_v58, %v286_v33  ;;  %v2783_v27 = vunpack.c.l.bf16 %v1938_v52  ;;  %v2785_v38 = vunpack.c.h.bf16 %v1938_v52  ;;  %v142_v33 = vld [vmem:[%s3376_s1 + $0x80] sm:$0x1] }
  0x89   :  { %1657 = vst.msk [vmem:[%s3379_s4 + $0x3c] sm:$0xf] %vm1641_vm3, %v1416_v56  ;;  %v983_v29 = vmax.f32 %v935_v31, %v2616_v57  ;;  %v1038_v51 = vmax.f32 %v982_v6, %v2626_v4  ;;  %v440_v42 = vmax.f32 %v1792_v25, %v1824_v47  ;;  %v441_v36 = vmax.f32 %v1793_v54, %v1825_v13  ;;  %v143_v31 = vld [vmem:[%s3376_s1 + $0x84] sm:$0xff]  }
  0x8a   :  { %v760_v32 = vmax.f32 %v712_v48, %v391_v23  ;;  %v521_v45 = vrot.slane %v1824_v47, 7  ;;  %v522_v20 = vrot.slane %v1825_v13, 7  ;;  %v2802_v12 = vrot.slane %v2783_v27, 7 }
  0x8b   :  { %v1039_v46 = vmax.f32 %v983_v29, %v2647_v37  ;;  %v1750_v26 = vpack.c.bf16 %v1038_v51, %v1038_v51  ;;  %v2806_v57 = vrot.slane %v2785_v38, 7  ;;  %v94_v4 = vunpack.c.l.bf16 %v46_v11 }
  0x8c   :  { %v936_v43 = vmax.f32 %v760_v32, %v2719_v34  ;;  %v523_v49 = vsel %vm493_vm0, %v521_v45, %v522_v20  ;;  %v617_v63 = vmax.f32 %v440_v42, %v521_v45  ;;  %v190_v61 = vunpack.c.l.bf16 %v142_v33  ;;  %v2848_v42 = vld [vmem:[%s3377_s2 + $0x84] sm:$0xff]  }
  0x8d   :  { %v1751_v5 = vpack.c.bf16 %v1039_v46, %v1039_v46  ;;  %v1418_v41 = vshrl.u32 %v1750_v26, 16  ;;  %v1421_v60 = vshll.u32 %v1750_v26, 16  ;;  %v618_v37 = vmax.f32 %v441_v36, %v523_v49 }
  0x8e   :  { %v984_v28 = vmax.f32 %v936_v43, %v388_v16  ;;  %v665_v25 = vmax.f32 %v617_v63, %v1860_v15  ;;  %v2827_v30 = vsel %vm493_vm0, %v2802_v12, %v2806_v57  ;;  %v292_v1 = vunpack.c.l.bf16 %v2811_v17  ;;  %v52_v17 = vld [vmem:[%s3375_s0 + $0x98] sm:$0x1] }
  0x8f   :  { %v1420_v3 = vrot.slane %v1418_v41, 4  ;;  %v1423_v54 = vrot.slane %v1421_v60, 5  ;;  %v1427_v62 = vshll.u32 %v1751_v5, 16  ;;  %v1431_v7 = vshrl.u32 %v1751_v5, 16 }
  0x90   :  { %v1040_v39 = vmax.f32 %v984_v28, %v2629_v24  ;;  %v666_v16 = vmax.f32 %v618_v37, %v1861_v55  ;;  %v713_v47 = vmax.f32 %v665_v25, %v287_v0  ;;  %v394_v52 = vunpack.c.l.bf16 %v2818_v9  ;;  %v53_v9 = vld [vmem:[%s3375_s0 + $0x9c] sm:$0xff]  }
  0x91   :  { %v1424_v21 = vor.u32 %v1423_v54, %v1420_v3  ;;  %v1429_v14 = vrot.slane %v1427_v62, 5  ;;  %v1433_v58 = vrot.slane %v1431_v7, 4  ;;  %v442_v13 = vmax.f32 %v94_v4, %v190_v61 }
  0x92   :  { %v1752_v6 = vpack.c.bf16 %v1040_v39, %v1040_v39  ;;  %v714_v24 = vmax.f32 %v666_v16, %v288_v59  ;;  %v761_v56 = vmax.f32 %v713_v47, %v2783_v27  ;;  %v95_v48 = vunpack.c.l.bf16 %v47_v53  ;;  %v145_v39 = vld [vmem:[%s3376_s1 + $0x8c] sm:$0x1] }
  0x93   :  { %v1425_v11 = vrot.slane %v1424_v21, 4  ;;  %v1434_v29 = vor.u32 %v1433_v58, %v1429_v14  ;;  %v619_v0 = vmax.f32 %v442_v13, %v522_v20  ;;  %v96_v51 = vunpack.c.h.bf16 %v47_v53 }
  0x94   :  { %v1437_v36 = vshll.u32 %v1752_v6, 16  ;;  %v762_v33 = vmax.f32 %v714_v24, %v2785_v38  ;;  %v937_v32 = vmax.f32 %v761_v56, %v2802_v12  ;;  %v191_v45 = vunpack.c.l.bf16 %v143_v31  ;;  %v2901_v6 = vld [vmem:[%s3377_s2 + $0x8c] sm:$0x1] }
  0x95   :  { %v1430_v59 = vsel %vm2156_vm4, %v1425_v11, %v1429_v14  ;;  %v1435_v20 = vrot.slane %v1434_v29, 4  ;;  %v667_v46 = vmax.f32 %v619_v0, %v292_v1  ;;  %v192_v26 = vunpack.c.h.bf16 %v143_v31  ;;  %v2915_v29 = vld [vmem:[%s3378_s3 + $0x8c] sm:$0x1] }
  0x96   :  { %1658 = vst.msk [vmem:[%s3379_s4 + $0x40] sm:$0xf] %vm1641_vm3, %v1430_v59  ;;  %v1439_v4 = vrot.slane %v1437_v36, 5  ;;  %v938_v43 = vmax.f32 %v762_v33, %v2827_v30  ;;  %v985_v49 = vmax.f32 %v937_v32, %v2694_v35  ;;  %v293_v63 = vunpack.c.l.bf16 %v2848_v42  ;;  %v49_v35 = vld [vmem:[%s3375_s0 + $0x8c] sm:$0x1] }
  0x97   :  { %v715_v61 = vmax.f32 %v667_v46, %v289_v19  ;;  %v294_v5 = vunpack.c.h.bf16 %v2848_v42  ;;  %v2869_v41 = vunpack.c.l.bf16 %v344_v10  ;;  %v2871_v60 = vunpack.c.h.bf16 %v344_v10  ;;  %v1915_v10 = vld [vmem:[%s3375_s0 + $0x90] sm:$0xff]   ;;  %v3026_v42 = vld [vmem:[%s3377_s2 + $0x9c] sm:$0xff]  }
  0x98   :  { %v1440_v37 = vsel %vm2156_vm4, %v1435_v20, %v1439_v4  ;;  %v986_v28 = vmax.f32 %v938_v43, %v2696_v50  ;;  %v1041_v25 = vmax.f32 %v985_v49, %v2715_v40  ;;  %v443_v3 = vmax.f32 %v95_v48, %v191_v45 }
  0x99   :  { %1659 = vst.msk [vmem:[%s3379_s4 + $0x44] sm:$0xf] %vm1641_vm3, %v1440_v37  ;;  %v763_v8 = vmax.f32 %v715_v61, %v394_v52  ;;  %v444_v19 = vmax.f32 %v96_v51, %v192_v26  ;;  %v524_v54 = vrot.slane %v191_v45, 7  ;;  %v525_v62 = vrot.slane %v192_v26, 7 }
  0x9a   :  { %v1042_v50 = vmax.f32 %v986_v28, %v2734_v18  ;;  %v1753_v7 = vpack.c.bf16 %v1041_v25, %v1041_v25  ;;  %v2888_v40 = vrot.slane %v2869_v41, 7  ;;  %v2891_v53 = vrot.slane %v2871_v60, 7 }
  0x9b   :  { %v939_v16 = vmax.f32 %v763_v8, %v2806_v57  ;;  %v526_v47 = vsel %vm493_vm0, %v524_v54, %v525_v62  ;;  %v620_v21 = vmax.f32 %v443_v3, %v524_v54  ;;  %v97_v14 = vunpack.c.l.bf16 %v49_v35 }
  0x9c   :  { %v1754_v58 = vpack.c.bf16 %v1042_v50, %v1042_v50  ;;  %v1442_v13 = vshrl.u32 %v1753_v7, 16  ;;  %v1445_v18 = vshll.u32 %v1753_v7, 16  ;;  %v621_v31 = vmax.f32 %v444_v19, %v526_v47 }
  0x9d   :  { %v987_v24 = vmax.f32 %v939_v16, %v391_v23  ;;  %v668_v56 = vmax.f32 %v620_v21, %v293_v63  ;;  %v2910_v48 = vsel %vm493_vm0, %v2888_v40, %v2891_v53  ;;  %v193_v11 = vunpack.c.l.bf16 %v145_v39 }
  0x9e   :  { %v1444_v0 = vrot.slane %v1442_v13, 4  ;;  %v1447_v51 = vrot.slane %v1445_v18, 5  ;;  %v1451_v36 = vshll.u32 %v1754_v58, 16  ;;  %v1455_v33 = vshrl.u32 %v1754_v58, 16 }
  0x9f   :  { %v1043_v2 = vmax.f32 %v987_v24, %v2719_v34  ;;  %v669_v23 = vmax.f32 %v621_v31, %v294_v5  ;;  %v716_v32 = vmax.f32 %v668_v56, %v1860_v15  ;;  %v295_v45 = vunpack.c.l.bf16 %v2901_v6  ;;  %v1923_v15 = vld [vmem:[%s3376_s1 + $0x90] sm:$0xff]  }
  0xa0   :  { %v1448_v59 = vor.u32 %v1447_v51, %v1444_v0  ;;  %v1453_v20 = vrot.slane %v1451_v36, 5  ;;  %v1457_v46 = vrot.slane %v1455_v33, 4  ;;  %v397_v26 = vunpack.c.l.bf16 %v2915_v29  ;;  %v1916_v29 = vld [vmem:[%s3375_s0 + $0xa8] sm:$0xff]  }
  0xa1   :  { %v1755_v4 = vpack.c.bf16 %v1043_v2, %v1043_v2  ;;  %v717_v34 = vmax.f32 %v669_v23, %v1861_v55  ;;  %v764_v43 = vmax.f32 %v716_v32, %v2869_v41  ;;  %v445_v49 = vmax.f32 %v97_v14, %v193_v11  ;;  %v1939_v55 = vld [vmem:[%s3378_s3 + $0x90] sm:$0xff]  }
  0xa2   :  { %v1449_v61 = vrot.slane %v1448_v59, 4  ;;  %v1458_v37 = vor.u32 %v1457_v46, %v1453_v20  ;;  %v1796_v28 = vunpack.c.l.bf16 %v1915_v10  ;;  %v1797_v25 = vunpack.c.h.bf16 %v1915_v10 }
  0xa3   :  { %v1461_v3 = vshll.u32 %v1755_v4, 16  ;;  %v765_v35 = vmax.f32 %v717_v34, %v2871_v60  ;;  %v940_v8 = vmax.f32 %v764_v43, %v2888_v40  ;;  %v622_v19 = vmax.f32 %v445_v49, %v525_v62 }
  0xa4   :  { %v1454_v54 = vsel %vm2156_vm4, %v1449_v61, %v1453_v20  ;;  %v1459_v50 = vrot.slane %v1458_v37, 4  ;;  %v1828_v7 = vunpack.c.l.bf16 %v1923_v15  ;;  %v1829_v39 = vunpack.c.h.bf16 %v1923_v15  ;;  %v2991_v15 = vld [vmem:[%s3377_s2 + $0x98] sm:$0x1] }
  0xa5   :  { %1660 = vst.msk [vmem:[%s3379_s4 + $0x48] sm:$0xf] %vm1641_vm3, %v1454_v54  ;;  %v1463_v62 = vrot.slane %v1461_v3, 5  ;;  %v941_v16 = vmax.f32 %v765_v35, %v2910_v48  ;;  %v988_v47 = vmax.f32 %v940_v8, %v2783_v27  ;;  %v670_v21 = vmax.f32 %v622_v19, %v295_v45 }
  0xa6   :  { %v1864_v14 = vunpack.c.l.bf16 %v2938_v22  ;;  %v2954_v58 = vunpack.c.l.bf16 %v1939_v55  ;;  %v2956_v13 = vunpack.c.h.bf16 %v1939_v55  ;;  %v446_v27 = vmax.f32 %v1796_v28, %v1828_v7  ;;  %v3007_v55 = vld [vmem:[%s3378_s3 + $0x98] sm:$0x1] }
  0xa7   :  { %v1464_v18 = vsel %vm2156_vm4, %v1459_v50, %v1463_v62  ;;  %v989_v31 = vmax.f32 %v941_v16, %v2785_v38  ;;  %v1044_v24 = vmax.f32 %v988_v47, %v2802_v12  ;;  %v718_v56 = vmax.f32 %v670_v21, %v292_v1  ;;  %v148_v1 = vld [vmem:[%s3376_s1 + $0x98] sm:$0x1]  ;;  %v149_v47 = vld [vmem:[%s3376_s1 + $0x9c] sm:$0xff]  }
  0xa8   :  { %1661 = vst.msk [vmem:[%s3379_s4 + $0x4c] sm:$0xf] %vm1641_vm3, %v1464_v18  ;;  %v447_v11 = vmax.f32 %v1797_v25, %v1829_v39  ;;  %v527_v0 = vrot.slane %v1828_v7, 7  ;;  %v528_v51 = vrot.slane %v1829_v39, 7  ;;  %v1865_v12 = vunpack.c.h.bf16 %v2938_v22 }
  0xa9   :  { %v1045_v36 = vmax.f32 %v989_v31, %v2827_v30  ;;  %v1756_v33 = vpack.c.bf16 %v1044_v24, %v1044_v24  ;;  %v766_v38 = vmax.f32 %v718_v56, %v397_v26  ;;  %v2980_v32 = vrot.slane %v2954_v58, 7 }
  0xaa   :  { %v529_v2 = vsel %vm493_vm0, %v527_v0, %v528_v51  ;;  %v623_v23 = vmax.f32 %v446_v27, %v527_v0  ;;  %v2983_v30 = vrot.slane %v2956_v13, 7  ;;  %v100_v43 = vunpack.c.l.bf16 %v52_v17 }
  0xab   :  { %v1757_v10 = vpack.c.bf16 %v1045_v36, %v1045_v36  ;;  %v1466_v59 = vshrl.u32 %v1756_v33, 16  ;;  %v1469_v20 = vshll.u32 %v1756_v33, 16  ;;  %v942_v46 = vmax.f32 %v766_v38, %v2891_v53 }
  0xac   :  { %v624_v4 = vmax.f32 %v447_v11, %v529_v2  ;;  %v671_v34 = vmax.f32 %v623_v23, %v1864_v14  ;;  %v196_v49 = vunpack.c.l.bf16 %v148_v1  ;;  %v3002_v19 = vsel %vm493_vm0, %v2980_v32, %v2983_v30 }
  0xad   :  { %v1468_v61 = vrot.slane %v1466_v59, 4  ;;  %v1471_v37 = vrot.slane %v1469_v20, 5  ;;  %v1475_v28 = vshll.u32 %v1757_v10, 16  ;;  %v990_v25 = vmax.f32 %v942_v46, %v394_v52 }
  0xae   :  { %v1479_v3 = vshrl.u32 %v1757_v10, 16  ;;  %v672_v35 = vmax.f32 %v624_v4, %v1865_v12  ;;  %v719_v8 = vmax.f32 %v671_v34, %v293_v63  ;;  %v298_v63 = vunpack.c.l.bf16 %v2991_v15 }
  0xaf   :  { %v1472_v52 = vor.u32 %v1471_v37, %v1468_v61  ;;  %v1477_v54 = vrot.slane %v1475_v28, 5  ;;  %v1046_v50 = vmax.f32 %v990_v25, %v2806_v57  ;;  %v448_v16 = vmax.f32 %v100_v43, %v196_v49  ;;  %v55_v28 = vld [vmem:[%s3375_s0 + $0xa4] sm:$0x1] }
  0xb0   :  { %v1481_v7 = vrot.slane %v1479_v3, 4  ;;  %v720_v39 = vmax.f32 %v672_v35, %v294_v5  ;;  %v767_v62 = vmax.f32 %v719_v8, %v2954_v58  ;;  %v400_v31 = vunpack.c.l.bf16 %v3007_v55  ;;  %v350_v5 = vld [vmem:[%s3378_s3 + $0x9c] sm:$0xff]   ;;  %v151_v25 = vld [vmem:[%s3376_s1 + $0xa4] sm:$0x1] }
  0xb1   :  { %v1473_v21 = vrot.slane %v1472_v52, 4  ;;  %v1758_v18 = vpack.c.bf16 %v1046_v50, %v1046_v50  ;;  %v101_v24 = vunpack.c.l.bf16 %v53_v9  ;;  %v625_v11 = vmax.f32 %v448_v16, %v528_v51 }
  0xb2   :  { %v1482_v56 = vor.u32 %v1481_v7, %v1477_v54  ;;  %v768_v57 = vmax.f32 %v720_v39, %v2956_v13  ;;  %v943_v27 = vmax.f32 %v767_v62, %v2980_v32  ;;  %v197_v33 = vunpack.c.l.bf16 %v149_v47 }
  0xb3   :  { %v1478_v0 = vsel %vm2156_vm4, %v1473_v21, %v1477_v54  ;;  %v1485_v36 = vshll.u32 %v1758_v18, 16  ;;  %v198_v38 = vunpack.c.h.bf16 %v149_v47  ;;  %v673_v2 = vmax.f32 %v625_v11, %v298_v63  ;;  %v3079_v47 = vld [vmem:[%s3377_s2 + $0xa4] sm:$0x1] }
  0xb4   :  { %1662 = vst.msk [vmem:[%s3379_s4 + $0x50] sm:$0xf] %vm1641_vm3, %v1478_v0  ;;  %v1483_v51 = vrot.slane %v1482_v56, 4  ;;  %v944_v17 = vmax.f32 %v768_v57, %v3002_v19  ;;  %v991_v1 = vmax.f32 %v943_v27, %v2869_v41  ;;  %v102_v10 = vunpack.c.h.bf16 %v53_v9  ;;  %v3093_v0 = vld [vmem:[%s3378_s3 + $0xa4] sm:$0x1] }
  0xb5   :  { %v1487_v23 = vrot.slane %v1485_v36, 5  ;;  %v299_v59 = vunpack.c.l.bf16 %v3026_v42  ;;  %v3042_v20 = vunpack.c.l.bf16 %v350_v5  ;;  %v721_v34 = vmax.f32 %v673_v2, %v295_v45  ;;  %v1924_v2 = vld [vmem:[%s3376_s1 + $0xa8] sm:$0xff]  }
  0xb6   :  { %v992_v46 = vmax.f32 %v944_v17, %v2871_v60  ;;  %v1047_v4 = vmax.f32 %v991_v1, %v2888_v40  ;;  %v3048_v43 = vunpack.c.h.bf16 %v350_v5  ;;  %v300_v49 = vunpack.c.h.bf16 %v3026_v42  ;;  %v356_v42 = vld [vmem:[%s3378_s3 + $0xb4] sm:$0xff]  }
  0xb7   :  { %v1488_v41 = vsel %vm2156_vm4, %v1483_v51, %v1487_v23  ;;  %v449_v61 = vmax.f32 %v101_v24, %v197_v33  ;;  %v530_v37 = vrot.slane %v197_v33, 7  ;;  %v769_v6 = vmax.f32 %v721_v34, %v400_v31 }
  0xb8   :  { %1663 = vst.msk [vmem:[%s3379_s4 + $0x54] sm:$0xf] %vm1641_vm3, %v1488_v41  ;;  %v1048_v60 = vmax.f32 %v992_v46, %v2910_v48  ;;  %v1759_v40 = vpack.c.bf16 %v1047_v4, %v1047_v4  ;;  %v531_v45 = vrot.slane %v198_v38, 7  ;;  %v450_v3 = vmax.f32 %v102_v10, %v198_v38 }
  0xb9   :  { %v626_v35 = vmax.f32 %v449_v61, %v530_v37  ;;  %v3067_v8 = vrot.slane %v3042_v20, 7  ;;  %v3070_v48 = vrot.slane %v3048_v43, 7  ;;  %v945_v50 = vmax.f32 %v769_v6, %v2983_v30 }
  0xba   :  { %v1760_v9 = vpack.c.bf16 %v1048_v60, %v1048_v60  ;;  %v1490_v52 = vshrl.u32 %v1759_v40, 16  ;;  %v1493_v54 = vshll.u32 %v1759_v40, 16  ;;  %v532_v7 = vsel %vm493_vm0, %v530_v37, %v531_v45  ;;  %v3113_v37 = vld [vmem:[%s3377_s2 + $0xa8] sm:$0xff]  }
  0xbb   :  { %v674_v39 = vmax.f32 %v626_v35, %v299_v59  ;;  %v103_v62 = vunpack.c.l.bf16 %v55_v28  ;;  %v199_v16 = vunpack.c.l.bf16 %v151_v25  ;;  %v993_v56 = vmax.f32 %v945_v50, %v397_v26  ;;  %v1940_v60 = vld [vmem:[%s3378_s3 + $0xa8] sm:$0xff]  }
  0xbc   :  { %v1492_v21 = vrot.slane %v1490_v52, 4  ;;  %v1495_v18 = vrot.slane %v1493_v54, 5  ;;  %v1499_v24 = vshll.u32 %v1760_v9, 16  ;;  %v1503_v57 = vshrl.u32 %v1760_v9, 16 }
  0xbd   :  { %v627_v27 = vmax.f32 %v450_v3, %v532_v7  ;;  %v722_v11 = vmax.f32 %v674_v39, %v1864_v14  ;;  %v3088_v5 = vsel %vm493_vm0, %v3067_v8, %v3070_v48  ;;  %v1049_v33 = vmax.f32 %v993_v56, %v2891_v53  ;;  %v58_v56 = vld [vmem:[%s3375_s0 + $0xb0] sm:$0x1] }
  0xbe   :  { %v1496_v26 = vor.u32 %v1495_v18, %v1492_v21  ;;  %v1501_v36 = vrot.slane %v1499_v24, 5  ;;  %v301_v14 = vunpack.c.l.bf16 %v3079_v47  ;;  %v1505_v38 = vrot.slane %v1503_v57, 4  ;;  %v154_v57 = vld [vmem:[%s3376_s1 + $0xb0] sm:$0x1] }
  0xbf   :  { %v675_v51 = vmax.f32 %v627_v27, %v300_v49  ;;  %v770_v17 = vmax.f32 %v722_v11, %v3042_v20  ;;  %v451_v1 = vmax.f32 %v103_v62, %v199_v16  ;;  %v1761_v10 = vpack.c.bf16 %v1049_v33, %v1049_v33 }
  0xc0   :  { %v1497_v23 = vrot.slane %v1496_v26, 4  ;;  %v403_v46 = vunpack.c.l.bf16 %v3093_v0  ;;  %v1800_v4 = vunpack.c.l.bf16 %v1916_v29  ;;  %v1506_v34 = vor.u32 %v1505_v38, %v1501_v36 }
  0xc1   :  { %v723_v53 = vmax.f32 %v675_v51, %v1865_v12  ;;  %v946_v41 = vmax.f32 %v770_v17, %v3067_v8  ;;  %v628_v61 = vmax.f32 %v451_v1, %v531_v45  ;;  %v1509_v6 = vshll.u32 %v1761_v10, 16  ;;  %v3164_v51 = vld [vmem:[%s3377_s2 + $0xb0] sm:$0x1] }
  0xc2   :  { %v1502_v40 = vsel %vm2156_vm4, %v1497_v23, %v1501_v36  ;;  %v1832_v28 = vunpack.c.l.bf16 %v1924_v2  ;;  %v1833_v25 = vunpack.c.h.bf16 %v1924_v2  ;;  %v1507_v22 = vrot.slane %v1506_v34, 4 }
  0xc3   :  { %1664 = vst.msk [vmem:[%s3379_s4 + $0x58] sm:$0xf] %vm1641_vm3, %v1502_v40  ;;  %v771_v12 = vmax.f32 %v723_v53, %v3048_v43  ;;  %v994_v45 = vmax.f32 %v946_v41, %v2954_v58  ;;  %v676_v3 = vmax.f32 %v628_v61, %v301_v14  ;;  %v1511_v35 = vrot.slane %v1509_v6, 5  ;;  %v3174_v53 = vld [vmem:[%s3378_s3 + $0xb0] sm:$0x1] }
  0xc4   :  { %v1801_v9 = vunpack.c.h.bf16 %v1916_v29  ;;  %v1868_v52 = vunpack.c.l.bf16 %v3113_v37  ;;  %v3129_v54 = vunpack.c.l.bf16 %v1940_v60  ;;  %v3135_v62 = vunpack.c.h.bf16 %v1940_v60 }
  0xc5   :  { %v947_v50 = vmax.f32 %v771_v12, %v3088_v5  ;;  %v1050_v7 = vmax.f32 %v994_v45, %v2980_v32  ;;  %v724_v39 = vmax.f32 %v676_v3, %v298_v63  ;;  %v1512_v58 = vsel %vm2156_vm4, %v1507_v22, %v1511_v35  ;;  %v155_v3 = vld [vmem:[%s3376_s1 + $0xb4] sm:$0xff]  }
  0xc6   :  { %v1869_v16 = vunpack.c.h.bf16 %v3113_v37  ;;  %v452_v21 = vmax.f32 %v1800_v4, %v1832_v28  ;;  %v533_v18 = vrot.slane %v1832_v28, 7  ;;  %1665 = vst.msk [vmem:[%s3379_s4 + $0x5c] sm:$0xf] %vm1641_vm3, %v1512_v58  ;;  %v534_v63 = vrot.slane %v1833_v25, 7 }
  0xc7   :  { %v995_v24 = vmax.f32 %v947_v50, %v2956_v13  ;;  %v1762_v32 = vpack.c.bf16 %v1050_v7, %v1050_v7  ;;  %v772_v15 = vmax.f32 %v724_v39, %v403_v46  ;;  %v453_v27 = vmax.f32 %v1801_v9, %v1833_v25  ;;  %v59_v25 = vld [vmem:[%s3375_s0 + $0xb4] sm:$0xff]  }
  0xc8   :  { %v629_v11 = vmax.f32 %v452_v21, %v533_v18  ;;  %v3154_v29 = vrot.slane %v3129_v54, 7  ;;  %v3157_v13 = vrot.slane %v3135_v62, 7  ;;  %v535_v17 = vsel %vm493_vm0, %v533_v18, %v534_v63  ;;  %v3201_v18 = vld [vmem:[%s3377_s2 + $0xb4] sm:$0xff]  }
  0xc9   :  { %v1051_v26 = vmax.f32 %v995_v24, %v3002_v19  ;;  %v1514_v36 = vshrl.u32 %v1762_v32, 16  ;;  %v1517_v33 = vshll.u32 %v1762_v32, 16  ;;  %v948_v38 = vmax.f32 %v772_v15, %v3070_v48 }
  0xca   :  { %v677_v1 = vmax.f32 %v629_v11, %v1868_v52  ;;  %v106_v2 = vunpack.c.l.bf16 %v58_v56  ;;  %v202_v23 = vunpack.c.l.bf16 %v154_v57  ;;  %v630_v41 = vmax.f32 %v453_v27, %v535_v17 }
  0xcb   :  { %v1763_v10 = vpack.c.bf16 %v1051_v26, %v1051_v26  ;;  %v1516_v4 = vrot.slane %v1514_v36, 4  ;;  %v1519_v34 = vrot.slane %v1517_v33, 5  ;;  %v996_v19 = vmax.f32 %v948_v38, %v400_v31 }
  0xcc   :  { %v725_v61 = vmax.f32 %v677_v1, %v299_v59  ;;  %v3181_v60 = vsel %vm493_vm0, %v3154_v29, %v3157_v13  ;;  %v304_v40 = vunpack.c.l.bf16 %v3164_v51  ;;  %v678_v22 = vmax.f32 %v630_v41, %v1869_v16  ;;  %v157_v41 = vld [vmem:[%s3376_s1 + $0xbc] sm:$0x1] }
  0xcd   :  { %v1520_v6 = vor.u32 %v1519_v34, %v1516_v4  ;;  %v1523_v28 = vshll.u32 %v1763_v10, 16  ;;  %v1052_v55 = vmax.f32 %v996_v19, %v2983_v30  ;;  %v1527_v31 = vshrl.u32 %v1763_v10, 16  ;;  %v61_v19 = vld [vmem:[%s3375_s0 + $0xbc] sm:$0x1] }
  0xce   :  { %v773_v59 = vmax.f32 %v725_v61, %v3129_v54  ;;  %v406_v12 = vunpack.c.l.bf16 %v3174_v53  ;;  %v454_v45 = vmax.f32 %v106_v2, %v202_v23  ;;  %v726_v7 = vmax.f32 %v678_v22, %v300_v49 }
  0xcf   :  { %v1521_v35 = vrot.slane %v1520_v6, 4  ;;  %v1525_v9 = vrot.slane %v1523_v28, 5  ;;  %v1764_v30 = vpack.c.bf16 %v1052_v55, %v1052_v55  ;;  %v1529_v50 = vrot.slane %v1527_v31, 4 }
  0xd0   :  { %v949_v39 = vmax.f32 %v773_v59, %v3154_v29  ;;  %v631_v58 = vmax.f32 %v454_v45, %v534_v63  ;;  %v107_v21 = vunpack.c.l.bf16 %v59_v25  ;;  %v203_v56 = vunpack.c.l.bf16 %v155_v3 }
  0xd1   :  { %v1526_v24 = vsel %vm2156_vm4, %v1521_v35, %v1525_v9  ;;  %v1530_v32 = vor.u32 %v1529_v50, %v1525_v9  ;;  %v1533_v15 = vshll.u32 %v1764_v30, 16  ;;  %v774_v49 = vmax.f32 %v726_v7, %v3135_v62 }
  0xd2   :  { %1666 = vst.msk [vmem:[%s3379_s4 + $0x60] sm:$0xf] %vm1641_vm3, %v1526_v24  ;;  %v997_v63 = vmax.f32 %v949_v39, %v3042_v20  ;;  %v679_v57 = vmax.f32 %v631_v58, %v304_v40  ;;  %v108_v27 = vunpack.c.h.bf16 %v59_v25  ;;  %v204_v36 = vunpack.c.h.bf16 %v155_v3  ;;  %v3255_v39 = vld [vmem:[%s3377_s2 + $0xbc] sm:$0x1] }
  0xd3   :  { %v1531_v11 = vrot.slane %v1530_v32, 4  ;;  %v1535_v26 = vrot.slane %v1533_v15, 5  ;;  %v305_v33 = vunpack.c.l.bf16 %v3201_v18  ;;  %v950_v38 = vmax.f32 %v774_v49, %v3181_v60 }
  0xd4   :  { %v1053_v17 = vmax.f32 %v997_v63, %v3067_v8  ;;  %v727_v1 = vmax.f32 %v679_v57, %v301_v14  ;;  %v3221_v2 = vunpack.c.l.bf16 %v356_v42  ;;  %v306_v23 = vunpack.c.h.bf16 %v3201_v18  ;;  %v1925_v57 = vld [vmem:[%s3376_s1 + $0xc0] sm:$0xff]  }
  0xd5   :  { %v1536_v20 = vsel %vm2156_vm4, %v1531_v11, %v1535_v26  ;;  %v3226_v10 = vunpack.c.h.bf16 %v356_v42  ;;  %v455_v4 = vmax.f32 %v107_v21, %v203_v56  ;;  %v998_v8 = vmax.f32 %v950_v38, %v3048_v43 }
  0xd6   :  { %1667 = vst.msk [vmem:[%s3379_s4 + $0x64] sm:$0xf] %vm1641_vm3, %v1536_v20  ;;  %v1765_v34 = vpack.c.bf16 %v1053_v17, %v1053_v17  ;;  %v775_v47 = vmax.f32 %v727_v1, %v406_v12  ;;  %v536_v14 = vrot.slane %v203_v56, 7  ;;  %v456_v61 = vmax.f32 %v108_v27, %v204_v36 }
  0xd7   :  { %v537_v6 = vrot.slane %v204_v36, 7  ;;  %v3242_v28 = vrot.slane %v3221_v2, 7  ;;  %v3245_v43 = vrot.slane %v3226_v10, 7  ;;  %v1054_v55 = vmax.f32 %v998_v8, %v3088_v5  ;;  %v3279_v36 = vld [vmem:[%s3378_s3 + $0xbc] sm:$0x1] }
  0xd8   :  { %v1538_v31 = vshrl.u32 %v1765_v34, 16  ;;  %v1541_v25 = vshll.u32 %v1765_v34, 16  ;;  %v951_v22 = vmax.f32 %v775_v47, %v3157_v13  ;;  %v632_v45 = vmax.f32 %v455_v4, %v536_v14  ;;  %v1933_v47 = vld [vmem:[%s3377_s2 + $0xc0] sm:$0xff]  }
  0xd9   :  { %v538_v59 = vsel %vm493_vm0, %v536_v14, %v537_v6  ;;  %v109_v3 = vunpack.c.l.bf16 %v61_v19  ;;  %v205_v35 = vunpack.c.l.bf16 %v157_v41  ;;  %v1766_v9 = vpack.c.bf16 %v1054_v55, %v1054_v55  ;;  %v3301_v41 = vld [vmem:[%s3378_s3 + $0xc0] sm:$0xff]  }
  0xda   :  { %v1540_v30 = vrot.slane %v1538_v31, 4  ;;  %v1543_v50 = vrot.slane %v1541_v25, 5  ;;  %v999_v7 = vmax.f32 %v951_v22, %v403_v46  ;;  %v633_v5 = vmax.f32 %v456_v61, %v538_v59  ;;  %v1917_v46 = vld [vmem:[%s3375_s0 + $0xc0] sm:$0xff]  }
  0xdb   :  { %v680_v58 = vmax.f32 %v632_v45, %v305_v33  ;;  %v3262_v21 = vsel %vm493_vm0, %v3242_v28, %v3245_v43  ;;  %v1547_v32 = vshll.u32 %v1766_v9, 16  ;;  %v1551_v0 = vshrl.u32 %v1766_v9, 16 }
  0xdc   :  { %v1544_v24 = vor.u32 %v1543_v50, %v1540_v30  ;;  %v1055_v15 = vmax.f32 %v999_v7, %v3070_v48  ;;  %v681_v56 = vmax.f32 %v633_v5, %v306_v23  ;;  %v307_v49 = vunpack.c.l.bf16 %v3255_v39  ;;  %v160_v5 = vld [vmem:[%s3376_s1 + $0xc8] sm:$0x1] }
  0xdd   :  { %v728_v42 = vmax.f32 %v680_v58, %v1868_v52  ;;  %v457_v63 = vmax.f32 %v109_v3, %v205_v35  ;;  %v1549_v48 = vrot.slane %v1547_v32, 5  ;;  %v1553_v26 = vrot.slane %v1551_v0, 4  ;;  %v64_v3 = vld [vmem:[%s3375_s0 + $0xc8] sm:$0x1] }
  0xde   :  { %v1545_v27 = vrot.slane %v1544_v24, 4  ;;  %v1767_v11 = vpack.c.bf16 %v1055_v15, %v1055_v15  ;;  %v729_v38 = vmax.f32 %v681_v56, %v1869_v16  ;;  %v1804_v1 = vunpack.c.l.bf16 %v1917_v46 }
  0xdf   :  { %v776_v52 = vmax.f32 %v728_v42, %v3221_v2  ;;  %v634_v17 = vmax.f32 %v457_v63, %v537_v6  ;;  %v1554_v4 = vor.u32 %v1553_v26, %v1549_v48  ;;  %v1836_v34 = vunpack.c.l.bf16 %v1925_v57 }
  0xe0   :  { %v1550_v20 = vsel %vm2156_vm4, %v1545_v27, %v1549_v48  ;;  %v1557_v8 = vshll.u32 %v1767_v11, 16  ;;  %v777_v37 = vmax.f32 %v729_v38, %v3226_v10  ;;  %v409_v14 = vunpack.c.l.bf16 %v3279_v36 }
  0xe1   :  { %1668 = vst.msk [vmem:[%s3379_s4 + $0x68] sm:$0xf] %vm1641_vm3, %v1550_v20  ;;  %v952_v16 = vmax.f32 %v776_v52, %v3242_v28  ;;  %v682_v19 = vmax.f32 %v634_v17, %v307_v49  ;;  %v1555_v61 = vrot.slane %v1554_v4, 4  ;;  %v1805_v55 = vunpack.c.h.bf16 %v1917_v46 }
  0xe2   :  { %v1559_v6 = vrot.slane %v1557_v8, 5  ;;  %v1837_v31 = vunpack.c.h.bf16 %v1925_v57  ;;  %v953_v25 = vmax.f32 %v777_v37, %v3262_v21  ;;  %v1872_v45 = vunpack.c.l.bf16 %v1933_v47 }
  0xe3   :  { %v1000_v22 = vmax.f32 %v952_v16, %v3129_v54  ;;  %v730_v59 = vmax.f32 %v682_v19, %v304_v40  ;;  %v1908_v9 = vunpack.c.l.bf16 %v3301_v41  ;;  %v1909_v30 = vunpack.c.h.bf16 %v3301_v41 }
  0xe4   :  { %v1560_v35 = vsel %vm2156_vm4, %v1555_v61, %v1559_v6  ;;  %v458_v50 = vmax.f32 %v1804_v1, %v1836_v34  ;;  %v1001_v54 = vmax.f32 %v953_v25, %v3135_v62  ;;  %v539_v7 = vrot.slane %v1836_v34, 7  ;;  %v361_v1 = vld [vmem:[%s3378_s3 + $0xc8] sm:$0x1] }
  0xe5   :  { %1669 = vst.msk [vmem:[%s3379_s4 + $0x6c] sm:$0xf] %vm1641_vm3, %v1560_v35  ;;  %v1056_v51 = vmax.f32 %v1000_v22, %v3154_v29  ;;  %v778_v40 = vmax.f32 %v730_v59, %v409_v14  ;;  %v1873_v58 = vunpack.c.h.bf16 %v1933_v47  ;;  %v459_v24 = vmax.f32 %v1805_v55, %v1837_v31  ;;  %v259_v29 = vld [vmem:[%s3377_s2 + $0xc8] sm:$0x1] }
  0xe6   :  { %v540_v32 = vrot.slane %v1837_v31, 7  ;;  %v112_v15 = vunpack.c.l.bf16 %v64_v3  ;;  %v1057_v0 = vmax.f32 %v1001_v54, %v3181_v60  ;;  %v635_v62 = vmax.f32 %v458_v50, %v539_v7 }
  0xe7   :  { %v1768_v46 = vpack.c.bf16 %v1056_v51, %v1056_v51  ;;  %v954_v56 = vmax.f32 %v778_v40, %v3245_v43  ;;  %v859_v63 = vrot.slane %v1908_v9, 7  ;;  %v860_v57 = vrot.slane %v1909_v30, 7 }
  0xe8   :  { %v541_v42 = vsel %vm493_vm0, %v539_v7, %v540_v32  ;;  %v208_v27 = vunpack.c.l.bf16 %v160_v5  ;;  %v1769_v48 = vpack.c.bf16 %v1057_v0, %v1057_v0  ;;  %v683_v52 = vmax.f32 %v635_v62, %v1872_v45 }
  0xe9   :  { %v1562_v11 = vshrl.u32 %v1768_v46, 16  ;;  %v1565_v26 = vshll.u32 %v1768_v46, 16  ;;  %v1002_v38 = vmax.f32 %v954_v56, %v406_v12  ;;  %v636_v60 = vmax.f32 %v459_v24, %v541_v42 }
  0xea   :  { %v310_v17 = vunpack.c.l.bf16 %v259_v29  ;;  %v460_v20 = vmax.f32 %v112_v15, %v208_v27  ;;  %v1571_v34 = vshll.u32 %v1769_v48, 16  ;;  %v1575_v37 = vshrl.u32 %v1769_v48, 16 }
  0xeb   :  { %v1564_v4 = vrot.slane %v1562_v11, 4  ;;  %v1567_v8 = vrot.slane %v1565_v26, 5  ;;  %v1058_v47 = vmax.f32 %v1002_v38, %v3157_v13  ;;  %v684_v16 = vmax.f32 %v636_v60, %v1873_v58 }
  0xec   :  { %v731_v19 = vmax.f32 %v683_v52, %v305_v33  ;;  %v637_v53 = vmax.f32 %v460_v20, %v540_v32  ;;  %v1573_v41 = vrot.slane %v1571_v34, 5  ;;  %v412_v6 = vunpack.c.l.bf16 %v361_v1 }
  0xed   :  { %v1568_v12 = vor.u32 %v1567_v8, %v1564_v4  ;;  %v1770_v61 = vpack.c.bf16 %v1058_v47, %v1058_v47  ;;  %v1577_v55 = vrot.slane %v1575_v37, 4  ;;  %v732_v31 = vmax.f32 %v684_v16, %v306_v23 }
  0xee   :  { %v779_v25 = vmax.f32 %v731_v19, %v1908_v9  ;;  %v685_v22 = vmax.f32 %v637_v53, %v310_v17  ;;  %v861_v13 = vsel %vm493_vm0, %v859_v63, %v860_v57 }
  0xef   :  { %v1569_v59 = vrot.slane %v1568_v12, 4  ;;  %v1581_v45 = vshll.u32 %v1770_v61, 16  ;;  %v1578_v3 = vor.u32 %v1577_v55, %v1573_v41  ;;  %v780_v35 = vmax.f32 %v732_v31, %v1909_v30 }
  0xf0   :  { %v955_v50 = vmax.f32 %v779_v25, %v859_v63  ;;  %v733_v33 = vmax.f32 %v685_v22, %v307_v49 }
  0xf1   :  { %v1574_v54 = vsel %vm2156_vm4, %v1569_v59, %v1573_v41  ;;  %v1583_v51 = vrot.slane %v1581_v45, 5  ;;  %v1579_v18 = vrot.slane %v1578_v3, 4  ;;  %v956_v23 = vmax.f32 %v780_v35, %v861_v13 }
  0xf2   :  { %1670 = vst.msk [vmem:[%s3379_s4 + $0x70] sm:$0xf] %vm1641_vm3, %v1574_v54  ;;  %v1003_v9 = vmax.f32 %v955_v50, %v3221_v2  ;;  %v781_v40 = vmax.f32 %v733_v33, %v412_v6 }
  0xf3   :  { %v1584_v30 = vsel %vm2156_vm4, %v1579_v18, %v1583_v51  ;;  %v1004_v39 = vmax.f32 %v956_v23, %v3226_v10 }
  0xf4   :  { %v1059_v49 = vmax.f32 %v1003_v9, %v3242_v28  ;;  %v957_v7 = vmax.f32 %v781_v40, %v860_v57  ;;  %1671 = vst.msk [vmem:[%s3379_s4 + $0x74] sm:$0xf] %vm1641_vm3, %v1584_v30 }
  0xf5   :  { %v1060_v5 = vmax.f32 %v1004_v39, %v3262_v21 }
  0xf6   :  { %v1771_v58 = vpack.c.bf16 %v1059_v49, %v1059_v49  ;;  %v1005_v2 = vmax.f32 %v957_v7, %v409_v14 }
  0xf7   :  { %v1772_v24 = vpack.c.bf16 %v1060_v5, %v1060_v5 }
  0xf8   :  { %v1586_v32 = vshrl.u32 %v1771_v58, 16  ;;  %v1589_v15 = vshll.u32 %v1771_v58, 16  ;;  %v1061_v0 = vmax.f32 %v1005_v2, %v3245_v43 }
  0xf9   :  { %v1595_v28 = vshll.u32 %v1772_v24, 16  ;;  %v1599_v62 = vshrl.u32 %v1772_v24, 16 }
  0xfa   :  { %v1588_v10 = vrot.slane %v1586_v32, 4  ;;  %v1591_v46 = vrot.slane %v1589_v15, 5  ;;  %v1773_v56 = vpack.c.bf16 %v1061_v0, %v1061_v0 }
  0xfb   :  { %v1597_v42 = vrot.slane %v1595_v28, 5  ;;  %v1601_v57 = vrot.slane %v1599_v62, 4 }
  0xfc   :  { %v1592_v29 = vor.u32 %v1591_v46, %v1588_v10  ;;  %v1605_v63 = vshll.u32 %v1773_v56, 16 }
  0xfd   :  { %v1602_v21 = vor.u32 %v1601_v57, %v1597_v42 }
  0xfe   :  { %v1593_v27 = vrot.slane %v1592_v29, 4  ;;  %v1607_v48 = vrot.slane %v1605_v63, 5 }
  0xff   :  { %v1603_v43 = vrot.slane %v1602_v21, 4 }
 0x100   :  { %v1598_v36 = vsel %vm2156_vm4, %v1593_v27, %v1597_v42 }
 0x101   :  { %1672 = vst.msk [vmem:[%s3379_s4 + $0x78] sm:$0xf] %vm1641_vm3, %v1598_v36  ;;  %v1608_v14 = vsel %vm2156_vm4, %v1603_v43, %v1607_v48 }
 0x102   :  { %1673 = vst.msk [vmem:[%s3379_s4 + $0x7c] sm:$0xf] %vm1641_vm3, %v1608_v14 }

// kernel: resnet18_forward.23
= control target key start
LH: loop header
LB: loop body
LE: loop exit
PB: predicated region body
PF: predicated region fallthrough
CT: control target
= control target key end

     0   :  { %s1188_s12 = smov 0   ;;  %s1190_s13 = smov 0   ;;  %s1389_s0 = inlined_call_operand.vmem [shape: bf16[256,640], index: 0, kind: input, shape index: {}]   ;;  %s1390_s1 = inlined_call_operand.vmem [shape: bf16[640,64], index: 1, kind: input, shape index: {}]   ;;  %s1391_s2 = inlined_call_operand.vmem [shape: f32[1,64], index: 2, kind: input, shape index: {}]   ;;  %s1392_s3 = inlined_call_operand.vmem [shape: bf16[256,64], index: 3, kind: output, shape index: {}]  }
   0x1   :  { %s1192_s14 = smov 0   ;;  %s1194_s15 = smov 0  }
   0x2   :  { %s1196_s16 = smov 0   ;;  %s1198_s17 = smov 0  }
   0x3   :  { %s1200_s18 = smov 0  }
   0x4 LB: > { %s25_s19 = sadd.s32 1, %s1157_s16  ;;  %s32_s20 = sadd.s32 1, %s1161_s17  ;;  %s1165_s18 = sphi %s1200_s18, %s13_s18   ;;  %s1161_s17 = sphi %s1198_s17, %s1398_s17   ;;  %s1157_s16 = sphi %s1196_s16, %s1397_s16   ;;  %s1153_s15 = sphi %s1194_s15, %s1396_s15   ;;  %s1149_s14 = sphi %s1192_s14, %s1395_s14   ;;  %s1145_s13 = sphi %s1190_s13, %s1394_s13   ;;  %s1141_s12 = sphi %s1188_s12, %s1393_s12  }
   0x5   : > { %p26_p0 = scmp.ge.s32.totalorder %s25_s19, 5  ;;  %p48_p1 = scmp.ne.s32.totalorder %s1145_s13, %s1141_s12 }
   0x6   : > { %p49_p2 = scmp.eq.s32.totalorder %s1165_s18, 0  ;;  %s41_s24 = sadd.s32 1, %s1145_s13 }
   0x7   : > { %s1400_s19 = smov (%p26_p0, %s25_s19), 0  ;;  %s1402_s20 = smov (!%p26_p0, %s32_s20), %s1161_s17 }
   0x8   : > { %p50_p3 = por %p49_p2, %p48_p1  ;;  %p34_p4 = scmp.ge.s32.totalorder %s1402_s20, 2 }
   0x9   : > { %s37_s21 = ssub.s32 %s1157_s16, %s1400_s19  ;;  %p909_p6 = scmp.ge.s32.totalorder %s1165_s18, 10 }
   0xa   : > { %s1404_s20 = smov (%p34_p4, %s1402_s20), 0 }
   0xb   : > { %s36_s22 = ssub.s32 %s1161_s17, %s1404_s20  ;;  %162 = sbr.rel (%p909_p6) target bundleno = 35 (0x23), region = 20 }
   0xc   : > { %s38_s23 = sor.u32 %s37_s21, %s36_s22 }
   0xd   : > { %p39_p5 = scmp.eq.s32.totalorder %s38_s23, 0 }
   0xf   : > { %s1239_s25 = scalar_select %p39_p5, %s1145_s13, %s41_s24  }
  0x12   : > { %165 = sbr.rel (!%p50_p3) target bundleno = 35 (0x23), region = 24  ;;  %s167_s26 = sand.u32 (%p50_p3), 1, %s1145_s13  }
  0x13   : > { %s1037_s27 = smul.u32 (%p50_p3), 80, %s1161_s17  ;;  %s910_s28 = sshll.u32 (%p50_p3), %s167_s26, 6 }
  0x14   : > { %s169_s7 = scalar_lea.vmem (%p50_p3), [#allocation3], %s910_s28 }
  0x15   : > { %s172_s29 = sadd.s32 (%p50_p3), %s1157_s16, %s1037_s27 }
  0x16   : > { %s913_s30 = sshll.u32 (%p50_p3), %s172_s29, 2 }
  0x17   : > { %s1248_s6 = scalar_lea.vmem (%p50_p3), %s1389_s0, %s913_s30 }
  0x18   : > { %v190_v0 = vld [vmem:[%s1248_s6] sm:$0xf] (%p50_p3)  ;;  %v192_v1 = vld [vmem:[%s1248_s6 + $0x14] sm:$0xf] (%p50_p3)  ;;  %v194_v2 = vld [vmem:[%s1248_s6 + $0x28] sm:$0xf] (%p50_p3) }
  0x19   : > { %191 = vst [vmem:[%s169_s7] sm:$0xf] %v190_v0  ;;  %193 = vst [vmem:[%s169_s7 + $0x4] sm:$0xf] %v192_v1  ;;  %v196_v3 = vld [vmem:[%s1248_s6 + $0x3c] sm:$0xf] }
  0x1a   : > { %195 = vst [vmem:[%s169_s7 + $0x8] sm:$0xf] %v194_v2  ;;  %v198_v4 = vld [vmem:[%s1248_s6 + $0x50] sm:$0xf]  ;;  %v200_v5 = vld [vmem:[%s1248_s6 + $0x64] sm:$0xf] }
  0x1b   : > { %197 = vst [vmem:[%s169_s7 + $0xc] sm:$0xf] %v196_v3  ;;  %199 = vst [vmem:[%s169_s7 + $0x10] sm:$0xf] %v198_v4  ;;  %v202_v6 = vld [vmem:[%s1248_s6 + $0x78] sm:$0xf] }
  0x1c   : > { %201 = vst [vmem:[%s169_s7 + $0x14] sm:$0xf] %v200_v5  ;;  %v204_v7 = vld [vmem:[%s1248_s6 + $0x8c] sm:$0xf]  ;;  %v206_v8 = vld [vmem:[%s1248_s6 + $0xa0] sm:$0xf] }
  0x1d   : > { %203 = vst [vmem:[%s169_s7 + $0x18] sm:$0xf] %v202_v6  ;;  %205 = vst [vmem:[%s169_s7 + $0x1c] sm:$0xf] %v204_v7  ;;  %v208_v9 = vld [vmem:[%s1248_s6 + $0xb4] sm:$0xf] }
  0x1e   : > { %207 = vst [vmem:[%s169_s7 + $0x20] sm:$0xf] %v206_v8  ;;  %v210_v10 = vld [vmem:[%s1248_s6 + $0xc8] sm:$0xf]  ;;  %v212_v11 = vld [vmem:[%s1248_s6 + $0xdc] sm:$0xf] }
  0x1f   : > { %209 = vst [vmem:[%s169_s7 + $0x24] sm:$0xf] %v208_v9  ;;  %211 = vst [vmem:[%s169_s7 + $0x28] sm:$0xf] %v210_v10  ;;  %v214_v12 = vld [vmem:[%s1248_s6 + $0xf0] sm:$0xf] }
  0x20   : > { %213 = vst [vmem:[%s169_s7 + $0x2c] sm:$0xf] %v212_v11  ;;  %v216_v13 = vld [vmem:[%s1248_s6 + $0x104] sm:$0xf]  ;;  %v218_v14 = vld [vmem:[%s1248_s6 + $0x118] sm:$0xf] }
  0x21   : > { %215 = vst [vmem:[%s169_s7 + $0x30] sm:$0xf] %v214_v12  ;;  %217 = vst [vmem:[%s169_s7 + $0x34] sm:$0xf] %v216_v13  ;;  %v220_v15 = vld [vmem:[%s1248_s6 + $0x12c] sm:$0xf] }
  0x22   : > { %219 = vst [vmem:[%s169_s7 + $0x38] sm:$0xf] %v218_v14  ;;  %221 = vst [vmem:[%s169_s7 + $0x3c] sm:$0xf] %v220_v15 }
  0x23 PF: > { %p914_p7 = scmp.ge.s32.totalorder %s1165_s18, 1  ;;  %p287_p8 = scmp.lt.s32.totalorder %s1165_s18, 11 }
  0x25   : > { %p288_p9 = pnand %p914_p7, %p287_p8 }
  0x26   : > { %s294_s8 = sand.u32 (!%p288_p9), 1, %s1141_s12   ;;  %s916_s9 = sshll.u32 (!%p288_p9), %s1149_s14, 4 }
  0x27   : > { %291 = sbr.rel (%p288_p9) target bundleno = 330 (0x14a), region = 69  ;;  %s915_s10 = sshll.u32 (!%p288_p9), %s294_s8, 6 }
  0x28   : > { %p333_p10 = scmp.lt.s32.totalorder (!%p288_p9), %s916_s9, 79  ;;  %s918_s11 = sshll.u32 (!%p288_p9), %s1153_s15, 4 }
  0x29   : > { %p345_p11 = scmp.lt.s32.totalorder (!%p288_p9), %s918_s11, 31  ;;  %s1281_s12 = scalar_lea.vmem (!%p288_p9), [#allocation3], %s915_s10 }
  0x2a   : > { %p920_p12 = scmp.ne.s32.totalorder (!%p288_p9), %s1149_s14, 0 }
  0x2e   : > { %s1406_s9 = smov (!%p333_p10, %s916_s9), 79  ;;  %s1408_s11 = smov (!%p345_p11, %s918_s11), 31 }
  0x2f   : > { %s917_s21 = sshll.u32 %s1406_s9, 2  ;;  %s919_s26 = sshll.u32 %s1408_s11, 2  ;;  %vm358_vm0 = vcmask (!%p920_p12), 523264   ;;  %v1167_v16 = vmov (!%p920_p12), 0.0  }
  0x30   : > { %s1274_s24 = scalar_lea.vmem %s1390_s1, %s917_s21  ;;  %s1279_s29 = scalar_lea.vmem %s1392_s3, %s919_s26  ;;  %359 = vst.msk [vmem:[#allocation2] sm:$0xff] (!%p920_p12), %vm358_vm0, %v1167_v16  ;;  %360 = vst.msk [vmem:[#allocation2 + $0x8] sm:$0xff] (!%p920_p12), %vm358_vm0, %v1167_v16 }
  0x31   : > { %357 = sbr.rel (%p920_p12) target bundleno = 56 (0x38), region = 77  ;;  %361 = vst.msk [vmem:[#allocation2 + $0x10] sm:$0xff] (!%p920_p12), %vm358_vm0, %v1167_v16  ;;  %362 = vst.msk [vmem:[#allocation2 + $0x18] sm:$0xff] (!%p920_p12), %vm358_vm0, %v1167_v16 }
  0x32   : > { %363 = vst.msk [vmem:[#allocation2 + $0x20] sm:$0xff] (!%p920_p12), %vm358_vm0, %v1167_v16  ;;  %364 = vst.msk [vmem:[#allocation2 + $0x28] sm:$0xff] (!%p920_p12), %vm358_vm0, %v1167_v16 }
  0x33   : > { %365 = vst.msk [vmem:[#allocation2 + $0x30] sm:$0xff] (!%p920_p12), %vm358_vm0, %v1167_v16  ;;  %366 = vst.msk [vmem:[#allocation2 + $0x38] sm:$0xff] (!%p920_p12), %vm358_vm0, %v1167_v16 }
  0x34   : > { %367 = vst.msk [vmem:[#allocation2 + $0x40] sm:$0xff] (!%p920_p12), %vm358_vm0, %v1167_v16  ;;  %368 = vst.msk [vmem:[#allocation2 + $0x48] sm:$0xff] (!%p920_p12), %vm358_vm0, %v1167_v16 }
  0x35   : > { %369 = vst.msk [vmem:[#allocation2 + $0x50] sm:$0xff] (!%p920_p12), %vm358_vm0, %v1167_v16  ;;  %370 = vst.msk [vmem:[#allocation2 + $0x58] sm:$0xff] (!%p920_p12), %vm358_vm0, %v1167_v16 }
  0x36   : > { %371 = vst.msk [vmem:[#allocation2 + $0x60] sm:$0xff] (!%p920_p12), %vm358_vm0, %v1167_v16  ;;  %372 = vst.msk [vmem:[#allocation2 + $0x68] sm:$0xff] (!%p920_p12), %vm358_vm0, %v1167_v16 }
  0x37   : > { %373 = vst.msk [vmem:[#allocation2 + $0x70] sm:$0xff] (!%p920_p12), %vm358_vm0, %v1167_v16  ;;  %374 = vst.msk [vmem:[#allocation2 + $0x78] sm:$0xff] (!%p920_p12), %vm358_vm0, %v1167_v16 }
  0x38 PF: > { %v1095_v17 = vld [vmem:[%s1274_s24] sm:$0xff]   ;;  %v1096_v18 = vld [vmem:[%s1274_s24 + $0x8] sm:$0xff]   ;;  %v1097_v19 = vld [vmem:[%s1274_s24 + $0x10] sm:$0xff]   ;;  %vm632_vm1 = vcmask 523264   ;;  %p937_p13 = scmp.ne.s32.totalorder %s1149_s14, 4 }
  0x39   : > { %989 = vmatprep.subr.bf16.mxu0 %v1095_v17  ;;  %1021 = vmatprep.subr.bf16.mxu1 %v1095_v17  ;;  %v1098_v20 = vld [vmem:[%s1274_s24 + $0x18] sm:$0xff]   ;;  %v1103_v21 = vld [vmem:[%s1281_s12] sm:$0xff]   ;;  %v1100_v24 = vld [vmem:[%s1274_s24 + $0x28] sm:$0xff]   ;;  %vm772_vm2 = vcmask (!%p937_p13), 519168  }
  0x3a   : > { %990 = vmatpush3.bf16.msra.mxu0 %v1095_v17  ;;  %1029 = vmatpush3.bf16.msra.mxu1 %v1095_v17  ;;  %v1104_v22 = vld [vmem:[%s1281_s12 + $0x20] sm:$0xff]   ;;  %v1101_v25 = vld [vmem:[%s1274_s24 + $0x30] sm:$0xff]   ;;  %v1102_v26 = vld [vmem:[%s1274_s24 + $0x38] sm:$0xff]  }
  0x3b   : > { %991 = vmatprep.subr.bf16.mxu0 %v1096_v18  ;;  %1022 = vmatprep.subr.bf16.mxu1 %v1096_v18  ;;  %v1099_v23 = vld [vmem:[%s1274_s24 + $0x20] sm:$0xff]   ;;  %v1105_v27 = vld [vmem:[%s1281_s12 + $0x8] sm:$0xff]   ;;  %v1107_v29 = vld [vmem:[%s1281_s12 + $0x10] sm:$0xff]  }
  0x3c   : > { %1005 = vmatprep.mubr.bf16.mxu0 %v1103_v21  ;;  %1013 = vmatprep.mubr.bf16.mxu1 %v1104_v22  ;;  %v1106_v28 = vld [vmem:[%s1281_s12 + $0x28] sm:$0xff]   ;;  %v1108_v30 = vld [vmem:[%s1281_s12 + $0x30] sm:$0xff]   ;;  %v1109_v31 = vld [vmem:[%s1281_s12 + $0x18] sm:$0xff]  }
  0x3d   : > { %v1110_v32 = vld [vmem:[%s1281_s12 + $0x38] sm:$0xff]   ;;  %v377_v33 = vld [vmem:[#allocation2 + $0x10] sm:$0xff]  ;;  %v375_v35 = vld [vmem:[#allocation2] sm:$0xff] }
  0x3e   : > { %992 = vmatpush3.bf16.msra.mxu0 %v1096_v18  ;;  %1030 = vmatpush3.bf16.msra.mxu1 %v1096_v18  ;;  %v385_v34 = vld [vmem:[#allocation2 + $0x50] sm:$0xff]  ;;  %v383_v36 = vld [vmem:[#allocation2 + $0x40] sm:$0xff]  ;;  %v378_v39 = vld [vmem:[#allocation2 + $0x18] sm:$0xff] }
  0x3f   : > { %993 = vmatprep.subr.bf16.mxu0 %v1097_v19  ;;  %1023 = vmatprep.subr.bf16.mxu1 %v1097_v19  ;;  %v386_v40 = vld [vmem:[#allocation2 + $0x58] sm:$0xff]  ;;  %v376_v45 = vld [vmem:[#allocation2 + $0x8] sm:$0xff]  ;;  %v381_v57 = vld [vmem:[#allocation2 + $0x30] sm:$0xff] }
  0x40   : > { %v384_v46 = vld [vmem:[#allocation2 + $0x48] sm:$0xff]  ;;  %v389_v58 = vld [vmem:[#allocation2 + $0x70] sm:$0xff]  ;;  %v379_v59 = vld [vmem:[#allocation2 + $0x20] sm:$0xff] }
  0x41   : > { %v387_v60 = vld [vmem:[#allocation2 + $0x60] sm:$0xff]  ;;  %v382_v63 = vld [vmem:[#allocation2 + $0x38] sm:$0xff]  ;;  %v380_v5 = vld [vmem:[#allocation2 + $0x28] sm:$0xff] }
  0x42   : > { %994 = vmatpush3.bf16.msra.mxu0 %v1097_v19  ;;  %1031 = vmatpush3.bf16.msra.mxu1 %v1097_v19  ;;  %v390_v0 = vld [vmem:[#allocation2 + $0x78] sm:$0xff]  ;;  %v388_v6 = vld [vmem:[#allocation2 + $0x68] sm:$0xff]  ;;  %v938_v18 = vld [vmem:[%s1391_s2] ss:$0 sm:$0xff] (!%p937_p13) }
  0x43   : > { %995 = vmatprep.subr.bf16.mxu0 %v1098_v20  ;;  %1024 = vmatprep.subr.bf16.mxu1 %v1098_v20 }
  0x46   : > { %996 = vmatpush3.bf16.msra.mxu0 %v1098_v20  ;;  %1032 = vmatpush3.bf16.msra.mxu1 %v1098_v20 }
  0x47   : > { %997 = vmatprep.subr.bf16.mxu0 %v1099_v23  ;;  %1025 = vmatprep.subr.bf16.mxu1 %v1099_v23 }
  0x4a   : > { %998 = vmatpush3.bf16.msra.mxu0 %v1099_v23  ;;  %1033 = vmatpush3.bf16.msra.mxu1 %v1099_v23 }
  0x4b   : > { %999 = vmatprep.subr.bf16.mxu0 %v1100_v24  ;;  %1026 = vmatprep.subr.bf16.mxu1 %v1100_v24 }
  0x4e   : > { %1000 = vmatpush3.bf16.msra.mxu0 %v1100_v24  ;;  %1034 = vmatpush3.bf16.msra.mxu1 %v1100_v24 }
  0x4f   : > { %1001 = vmatprep.subr.bf16.mxu0 %v1101_v25  ;;  %1027 = vmatprep.subr.bf16.mxu1 %v1101_v25 }
  0x52   : > { %1002 = vmatpush3.bf16.msra.mxu0 %v1101_v25  ;;  %1035 = vmatpush3.bf16.msra.mxu1 %v1101_v25 }
  0x53   : > { %1003 = vmatprep.subr.bf16.mxu0 %v1102_v26  ;;  %1028 = vmatprep.subr.bf16.mxu1 %v1102_v26 }
  0x56   : > { %1004 = vmatpush3.bf16.msra.mxu0 %v1102_v26  ;;  %1036 = vmatpush3.bf16.msra.mxu1 %v1102_v26 }
  0x59   : > { %1006 = vmatmul.mubr.bf16.vlgmr.msra.gmra.mrb[0].mxu0 %v1105_v27  ;;  %1014 = vmatmul.mubr.bf16.vlgmr.msra.gmra.mrb[0].mxu1 %v1106_v28 }
  0x5a   : > { %1009 = vmatprep.mubr.bf16.mxu0 %v1107_v29  ;;  %1017 = vmatprep.mubr.bf16.mxu1 %v1108_v30 }
  0x61   : > { %1010 = vmatmul.mubr.bf16.gmra.mrb[4].mxu0 %v1109_v31  ;;  %1018 = vmatmul.mubr.bf16.gmra.mrb[4].mxu1 %v1110_v32 }
 0x12c   : > { %v1007_v37 = vpop.f32.mrb[0].mxu0  ;;  %v1015_v38 = vpop.f32.mrb[0].mxu1 }
 0x12d   : > { %v618_v41 = vadd.f32 %v1007_v37, %v377_v33  ;;  %v626_v42 = vadd.f32 %v1015_v38, %v385_v34  ;;  %v553_v43 = vpop.f32.mrb[1].mxu0  ;;  %v585_v44 = vpop.f32.mrb[1].mxu1 }
 0x12e   : > { %v616_v47 = vadd.f32 %v553_v43, %v375_v35  ;;  %v624_v48 = vadd.f32 %v585_v44, %v383_v36  ;;  %v1008_v49 = vpop.f32.mrb[2].mxu0  ;;  %v1016_v50 = vpop.f32.mrb[2].mxu1 }
 0x12f   : > { %635 = vst.msk [vmem:[#allocation2 + $0x10] sm:$0xff] %vm632_vm1, %v618_v41  ;;  %643 = vst.msk [vmem:[#allocation2 + $0x50] sm:$0xff] %vm632_vm1, %v626_v42  ;;  %v619_v51 = vadd.f32 %v1008_v49, %v378_v39  ;;  %v627_v52 = vadd.f32 %v1016_v50, %v386_v40  ;;  %v556_v53 = vpop.f32.mrb[3].mxu0  ;;  %v588_v54 = vpop.f32.mrb[3].mxu1 }
 0x130   : > { %633 = vst.msk [vmem:[#allocation2] sm:$0xff] %vm632_vm1, %v616_v47  ;;  %641 = vst.msk [vmem:[#allocation2 + $0x40] sm:$0xff] %vm632_vm1, %v624_v48  ;;  %v617_v55 = vadd.f32 %v556_v53, %v376_v45  ;;  %v625_v56 = vadd.f32 %v588_v54, %v384_v46 }
 0x131   : > { %636 = vst.msk [vmem:[#allocation2 + $0x18] sm:$0xff] %vm632_vm1, %v619_v51  ;;  %644 = vst.msk [vmem:[#allocation2 + $0x58] sm:$0xff] %vm632_vm1, %v627_v52 }
 0x132   : > { %634 = vst.msk [vmem:[#allocation2 + $0x8] sm:$0xff] %vm632_vm1, %v617_v55  ;;  %642 = vst.msk [vmem:[#allocation2 + $0x48] sm:$0xff] %vm632_vm1, %v625_v56 }
 0x134   : > { %v1011_v61 = vpop.f32.mrb[4].mxu0  ;;  %v1019_v62 = vpop.f32.mrb[4].mxu1  ;;  %652 = sbr.rel (%p937_p13) target bundleno = 330 (0x14a), region = 81 }
 0x135   : > { %v622_v1 = vadd.f32 %v1011_v61, %v381_v57  ;;  %v630_v2 = vadd.f32 %v1019_v62, %v389_v58  ;;  %v569_v3 = vpop.f32.mrb[5].mxu0  ;;  %v601_v4 = vpop.f32.mrb[5].mxu1 }
 0x136   : > { %v620_v7 = vadd.f32 %v569_v3, %v379_v59  ;;  %v628_v8 = vadd.f32 %v601_v4, %v387_v60  ;;  %v1012_v9 = vpop.f32.mrb[6].mxu0  ;;  %v1020_v10 = vpop.f32.mrb[6].mxu1  ;;  %v655_v22 = vld [vmem:[#allocation2 + $0x10] sm:$0xff] (!%p937_p13) }
 0x137   : > { %639 = vst.msk [vmem:[#allocation2 + $0x30] sm:$0xff] %vm632_vm1, %v622_v1  ;;  %647 = vst.msk [vmem:[#allocation2 + $0x70] sm:$0xff] %vm632_vm1, %v630_v2  ;;  %v623_v11 = vadd.f32 %v1012_v9, %v382_v63  ;;  %v631_v12 = vadd.f32 %v1020_v10, %v390_v0  ;;  %v572_v13 = vpop.f32.mrb[7].mxu0  ;;  %v604_v14 = vpop.f32.mrb[7].mxu1  ;;  %v653_v17 = vld [vmem:[#allocation2] sm:$0xff] (!%p937_p13)  ;;  %v678_v25 = vadd.f32 (!%p937_p13), %v938_v18, %v655_v22  ;;  %v663_v45 = vld [vmem:[#allocation2 + $0x50] sm:$0xff] (!%p937_p13) }
 0x138   : > { %637 = vst.msk [vmem:[#allocation2 + $0x20] sm:$0xff] %vm632_vm1, %v620_v7  ;;  %645 = vst.msk [vmem:[#allocation2 + $0x60] sm:$0xff] %vm632_vm1, %v628_v8  ;;  %v621_v15 = vadd.f32 %v572_v13, %v380_v5  ;;  %v629_v16 = vadd.f32 %v604_v14, %v388_v6  ;;  %v676_v20 = vadd.f32 (!%p937_p13), %v938_v18, %v653_v17  ;;  %v656_v23 = vld [vmem:[#allocation2 + $0x18] sm:$0xff] (!%p937_p13)  ;;  %v661_v39 = vld [vmem:[#allocation2 + $0x40] sm:$0xff] (!%p937_p13) }
 0x139   : > { %640 = vst.msk [vmem:[#allocation2 + $0x38] sm:$0xff] %vm632_vm1, %v623_v11  ;;  %648 = vst.msk [vmem:[#allocation2 + $0x78] sm:$0xff] %vm632_vm1, %v631_v12  ;;  %v654_v19 = vld [vmem:[#allocation2 + $0x8] sm:$0xff] (!%p937_p13)  ;;  %v679_v26 = vadd.f32 (!%p937_p13), %v938_v18, %v656_v23  ;;  %v694_v35 = vmax.f32 (!%p937_p13), %v678_v25, 0.0  ;;  %v664_v46 = vld [vmem:[#allocation2 + $0x58] sm:$0xff] (!%p937_p13)  ;;  %v684_v56 = vadd.f32 (!%p937_p13), %v938_v18, %v661_v39  ;;  %v686_v60 = vadd.f32 (!%p937_p13), %v938_v18, %v663_v45 }
 0x13a   : > { %638 = vst.msk [vmem:[#allocation2 + $0x28] sm:$0xff] %vm632_vm1, %v621_v15  ;;  %646 = vst.msk [vmem:[#allocation2 + $0x68] sm:$0xff] %vm632_vm1, %v629_v16  ;;  %v677_v21 = vadd.f32 (!%p937_p13), %v938_v18, %v654_v19  ;;  %v692_v31 = vmax.f32 (!%p937_p13), %v676_v20, 0.0  ;;  %v662_v40 = vld [vmem:[#allocation2 + $0x48] sm:$0xff] (!%p937_p13)  ;;  %v687_v61 = vadd.f32 (!%p937_p13), %v938_v18, %v664_v46 }
 0x13b   : > { %v695_v36 = vmax.f32 %v679_v26, 0.0  ;;  %v959_v48 = vpack.c.bf16 %v694_v35, %v694_v35  ;;  %v685_v57 = vadd.f32 %v938_v18, %v662_v40  ;;  %v700_v63 = vmax.f32 %v684_v56, 0.0 }
 0x13c   : > { %v693_v32 = vmax.f32 %v677_v21, 0.0  ;;  %v957_v41 = vpack.c.bf16 %v692_v31, %v692_v31  ;;  %v702_v3 = vmax.f32 %v686_v60, 0.0  ;;  %v703_v4 = vmax.f32 %v687_v61, 0.0 }
 0x13d   : > { %v960_v49 = vpack.c.bf16 %v695_v36, %v695_v36  ;;  %775 = vst.msk [vmem:[%s1279_s29 + $0x8] sm:$0xf] %vm772_vm2, %v959_v48  ;;  %v701_v0 = vmax.f32 %v685_v57, 0.0  ;;  %v965_v7 = vpack.c.bf16 %v700_v63, %v700_v63 }
 0x13e   : > { %v659_v29 = vld [vmem:[#allocation2 + $0x30] sm:$0xff]  ;;  %v958_v42 = vpack.c.bf16 %v693_v32, %v693_v32  ;;  %773 = vst.msk [vmem:[%s1279_s29] sm:$0xf] %vm772_vm2, %v957_v41  ;;  %v967_v11 = vpack.c.bf16 %v702_v3, %v702_v3  ;;  %v968_v12 = vpack.c.bf16 %v703_v4, %v703_v4 }
 0x13f   : > { %v657_v24 = vld [vmem:[#allocation2 + $0x20] sm:$0xff]  ;;  %v682_v34 = vadd.f32 %v938_v18, %v659_v29  ;;  %v667_v53 = vld [vmem:[#allocation2 + $0x70] sm:$0xff]  ;;  %776 = vst.msk [vmem:[%s1279_s29 + $0xc] sm:$0xf] %vm772_vm2, %v960_v49  ;;  %v966_v8 = vpack.c.bf16 %v701_v0, %v701_v0  ;;  %781 = vst.msk [vmem:[%s1279_s29 + $0x20] sm:$0xf] %vm772_vm2, %v965_v7 }
 0x140   : > { %v680_v27 = vadd.f32 %v938_v18, %v657_v24  ;;  %v660_v30 = vld [vmem:[#allocation2 + $0x38] sm:$0xff]  ;;  %v665_v47 = vld [vmem:[#allocation2 + $0x60] sm:$0xff]  ;;  %774 = vst.msk [vmem:[%s1279_s29 + $0x4] sm:$0xf] %vm772_vm2, %v958_v42  ;;  %v690_v2 = vadd.f32 %v938_v18, %v667_v53  ;;  %783 = vst.msk [vmem:[%s1279_s29 + $0x28] sm:$0xf] %vm772_vm2, %v967_v11 }
 0x141   : > { %v658_v28 = vld [vmem:[#allocation2 + $0x28] sm:$0xff]  ;;  %v683_v38 = vadd.f32 %v938_v18, %v660_v30  ;;  %v698_v44 = vmax.f32 %v682_v34, 0.0  ;;  %v668_v58 = vld [vmem:[#allocation2 + $0x78] sm:$0xff]  ;;  %v688_v62 = vadd.f32 %v938_v18, %v665_v47  ;;  %782 = vst.msk [vmem:[%s1279_s29 + $0x24] sm:$0xf] %vm772_vm2, %v966_v8 }
 0x142   : > { %v681_v33 = vadd.f32 %v938_v18, %v658_v28  ;;  %v696_v37 = vmax.f32 %v680_v27, 0.0  ;;  %v666_v52 = vld [vmem:[#allocation2 + $0x68] sm:$0xff]  ;;  %v691_v6 = vadd.f32 %v938_v18, %v668_v58  ;;  %v706_v10 = vmax.f32 %v690_v2, 0.0  ;;  %784 = vst.msk [vmem:[%s1279_s29 + $0x2c] sm:$0xf] %vm772_vm2, %v968_v12 }
 0x143   : > { %v699_v51 = vmax.f32 %v683_v38, 0.0  ;;  %v963_v55 = vpack.c.bf16 %v698_v44, %v698_v44  ;;  %v689_v1 = vadd.f32 %v938_v18, %v666_v52  ;;  %v704_v5 = vmax.f32 %v688_v62, 0.0 }
 0x144   : > { %v697_v43 = vmax.f32 %v681_v33, 0.0  ;;  %v961_v50 = vpack.c.bf16 %v696_v37, %v696_v37  ;;  %v707_v14 = vmax.f32 %v691_v6, 0.0  ;;  %v971_v16 = vpack.c.bf16 %v706_v10, %v706_v10 }
 0x145   : > { %v964_v59 = vpack.c.bf16 %v699_v51, %v699_v51  ;;  %779 = vst.msk [vmem:[%s1279_s29 + $0x18] sm:$0xf] %vm772_vm2, %v963_v55  ;;  %v705_v9 = vmax.f32 %v689_v1, 0.0  ;;  %v969_v13 = vpack.c.bf16 %v704_v5, %v704_v5 }
 0x146   : > { %v962_v54 = vpack.c.bf16 %v697_v43, %v697_v43  ;;  %777 = vst.msk [vmem:[%s1279_s29 + $0x10] sm:$0xf] %vm772_vm2, %v961_v50  ;;  %v972_v17 = vpack.c.bf16 %v707_v14, %v707_v14  ;;  %787 = vst.msk [vmem:[%s1279_s29 + $0x38] sm:$0xf] %vm772_vm2, %v971_v16 }
 0x147   : > { %780 = vst.msk [vmem:[%s1279_s29 + $0x1c] sm:$0xf] %vm772_vm2, %v964_v59  ;;  %v970_v15 = vpack.c.bf16 %v705_v9, %v705_v9  ;;  %785 = vst.msk [vmem:[%s1279_s29 + $0x30] sm:$0xf] %vm772_vm2, %v969_v13 }
 0x148   : > { %778 = vst.msk [vmem:[%s1279_s29 + $0x14] sm:$0xf] %vm772_vm2, %v962_v54  ;;  %788 = vst.msk [vmem:[%s1279_s29 + $0x3c] sm:$0xf] %vm772_vm2, %v972_v17 }
 0x149   : > { %786 = vst.msk [vmem:[%s1279_s29 + $0x34] sm:$0xf] %vm772_vm2, %v970_v15 }
 0x14a PF: > { %s13_s18 = sadd.s32 1, %s1165_s18   ;;  %s1393_s12 = smov %s1145_s13 }
 0x14b   : > { %p10_p0 = scmp.ge.s32.totalorder %s13_s18, 12   ;;  %s1394_s13 = smov %s1239_s25 }
 0x14c   : > { %s1395_s14 = smov %s1157_s16  ;;  %s1396_s15 = smov %s1161_s17 }
 0x14d   : > { %s1397_s16 = smov %s1400_s19  ;;  %s1398_s17 = smov %s1404_s20 }
 0x14e   :  { %12 = sbr.rel (!%p10_p0) target bundleno = 4 (0x4), region = 122 }

// kernel: resnet18_forward.24
= control target key start
LH: loop header
LB: loop body
LE: loop exit
PB: predicated region body
PF: predicated region fallthrough
CT: control target
= control target key end

     0   :  { %s1357_s15 = smov 0   ;;  %s1359_s16 = smov 0   ;;  %s1589_s0 = inlined_call_operand.vmem [shape: bf16[256,640], index: 0, kind: input, shape index: {}]   ;;  %s1590_s1 = inlined_call_operand.vmem [shape: bf16[640,64], index: 1, kind: input, shape index: {}]   ;;  %s1591_s2 = inlined_call_operand.vmem [shape: f32[1,64], index: 2, kind: input, shape index: {}]   ;;  %s1592_s3 = inlined_call_operand.vmem [shape: bf16[256,64], index: 3, kind: input, shape index: {}]   ;;  %s1593_s4 = inlined_call_operand.vmem [shape: bf16[256,64], index: 4, kind: output, shape index: {}]  }
   0x1   :  { %s1361_s17 = smov 0   ;;  %s1363_s18 = smov 0  }
   0x2   :  { %s1365_s19 = smov 0   ;;  %s1367_s20 = smov 0  }
   0x3   :  { %s1369_s21 = smov 0  }
   0x4 LB: > { %s26_s22 = sadd.s32 1, %s1321_s19  ;;  %s33_s23 = sadd.s32 1, %s1325_s20  ;;  %s1329_s21 = sphi %s1369_s21, %s14_s21   ;;  %s1325_s20 = sphi %s1367_s20, %s1599_s20   ;;  %s1321_s19 = sphi %s1365_s19, %s1598_s19   ;;  %s1317_s18 = sphi %s1363_s18, %s1597_s18   ;;  %s1313_s17 = sphi %s1361_s17, %s1596_s17   ;;  %s1309_s16 = sphi %s1359_s16, %s1595_s16   ;;  %s1305_s15 = sphi %s1357_s15, %s1594_s15  }
   0x5   : > { %p27_p0 = scmp.ge.s32.totalorder %s26_s22, 5  ;;  %p49_p1 = scmp.ne.s32.totalorder %s1309_s16, %s1305_s15 }
   0x6   : > { %p50_p2 = scmp.eq.s32.totalorder %s1329_s21, 0  ;;  %s42_s27 = sadd.s32 1, %s1309_s16 }
   0x7   : > { %s1601_s22 = smov (%p27_p0, %s26_s22), 0  ;;  %s1603_s23 = smov (!%p27_p0, %s33_s23), %s1325_s20 }
   0x8   : > { %p51_p3 = por %p50_p2, %p49_p1  ;;  %p35_p4 = scmp.ge.s32.totalorder %s1603_s23, 2 }
   0x9   : > { %s38_s24 = ssub.s32 %s1321_s19, %s1601_s22  ;;  %p1032_p6 = scmp.ge.s32.totalorder %s1329_s21, 10 }
   0xa   : > { %s1605_s23 = smov (%p35_p4, %s1603_s23), 0 }
   0xb   : > { %s37_s25 = ssub.s32 %s1325_s20, %s1605_s23  ;;  %191 = sbr.rel (%p1032_p6) target bundleno = 35 (0x23), region = 20 }
   0xc   : > { %s39_s26 = sor.u32 %s38_s24, %s37_s25 }
   0xd   : > { %p40_p5 = scmp.eq.s32.totalorder %s39_s26, 0 }
   0xf   : > { %s1408_s28 = scalar_select %p40_p5, %s1309_s16, %s42_s27  }
  0x12   : > { %194 = sbr.rel (!%p51_p3) target bundleno = 35 (0x23), region = 24  ;;  %s196_s29 = sand.u32 (%p51_p3), 1, %s1309_s16  }
  0x13   : > { %s1201_s30 = smul.u32 (%p51_p3), 80, %s1325_s20  ;;  %s1033_s5 = sshll.u32 (%p51_p3), %s196_s29, 6 }
  0x14   : > { %s198_s11 = scalar_lea.vmem (%p51_p3), [#allocation3], %s1033_s5 }
  0x15   : > { %s201_s6 = sadd.s32 (%p51_p3), %s1321_s19, %s1201_s30 }
  0x16   : > { %s1036_s7 = sshll.u32 (%p51_p3), %s201_s6, 2 }
  0x17   : > { %s1417_s10 = scalar_lea.vmem (%p51_p3), %s1589_s0, %s1036_s7 }
  0x18   : > { %v219_v0 = vld [vmem:[%s1417_s10] sm:$0xf] (%p51_p3)  ;;  %v221_v1 = vld [vmem:[%s1417_s10 + $0x14] sm:$0xf] (%p51_p3)  ;;  %v223_v2 = vld [vmem:[%s1417_s10 + $0x28] sm:$0xf] (%p51_p3) }
  0x19   : > { %220 = vst [vmem:[%s198_s11] sm:$0xf] %v219_v0  ;;  %222 = vst [vmem:[%s198_s11 + $0x4] sm:$0xf] %v221_v1  ;;  %v225_v3 = vld [vmem:[%s1417_s10 + $0x3c] sm:$0xf] }
  0x1a   : > { %224 = vst [vmem:[%s198_s11 + $0x8] sm:$0xf] %v223_v2  ;;  %v227_v4 = vld [vmem:[%s1417_s10 + $0x50] sm:$0xf]  ;;  %v229_v5 = vld [vmem:[%s1417_s10 + $0x64] sm:$0xf] }
  0x1b   : > { %226 = vst [vmem:[%s198_s11 + $0xc] sm:$0xf] %v225_v3  ;;  %228 = vst [vmem:[%s198_s11 + $0x10] sm:$0xf] %v227_v4  ;;  %v231_v6 = vld [vmem:[%s1417_s10 + $0x78] sm:$0xf] }
  0x1c   : > { %230 = vst [vmem:[%s198_s11 + $0x14] sm:$0xf] %v229_v5  ;;  %v233_v7 = vld [vmem:[%s1417_s10 + $0x8c] sm:$0xf]  ;;  %v235_v8 = vld [vmem:[%s1417_s10 + $0xa0] sm:$0xf] }
  0x1d   : > { %232 = vst [vmem:[%s198_s11 + $0x18] sm:$0xf] %v231_v6  ;;  %234 = vst [vmem:[%s198_s11 + $0x1c] sm:$0xf] %v233_v7  ;;  %v237_v9 = vld [vmem:[%s1417_s10 + $0xb4] sm:$0xf] }
  0x1e   : > { %236 = vst [vmem:[%s198_s11 + $0x20] sm:$0xf] %v235_v8  ;;  %v239_v10 = vld [vmem:[%s1417_s10 + $0xc8] sm:$0xf]  ;;  %v241_v11 = vld [vmem:[%s1417_s10 + $0xdc] sm:$0xf] }
  0x1f   : > { %238 = vst [vmem:[%s198_s11 + $0x24] sm:$0xf] %v237_v9  ;;  %240 = vst [vmem:[%s198_s11 + $0x28] sm:$0xf] %v239_v10  ;;  %v243_v12 = vld [vmem:[%s1417_s10 + $0xf0] sm:$0xf] }
  0x20   : > { %242 = vst [vmem:[%s198_s11 + $0x2c] sm:$0xf] %v241_v11  ;;  %v245_v13 = vld [vmem:[%s1417_s10 + $0x104] sm:$0xf]  ;;  %v247_v14 = vld [vmem:[%s1417_s10 + $0x118] sm:$0xf] }
  0x21   : > { %244 = vst [vmem:[%s198_s11 + $0x30] sm:$0xf] %v243_v12  ;;  %246 = vst [vmem:[%s198_s11 + $0x34] sm:$0xf] %v245_v13  ;;  %v249_v15 = vld [vmem:[%s1417_s10 + $0x12c] sm:$0xf] }
  0x22   : > { %248 = vst [vmem:[%s198_s11 + $0x38] sm:$0xf] %v247_v14  ;;  %250 = vst [vmem:[%s198_s11 + $0x3c] sm:$0xf] %v249_v15 }
  0x23 PF: > { %p1037_p7 = scmp.ge.s32.totalorder %s1329_s21, 1  ;;  %p328_p8 = scmp.lt.s32.totalorder %s1329_s21, 11 }
  0x25   : > { %p329_p9 = pnand %p1037_p7, %p328_p8 }
  0x26   : > { %s335_s12 = sand.u32 (!%p329_p9), 1, %s1305_s15   ;;  %s1039_s13 = sshll.u32 (!%p329_p9), %s1313_s17, 4 }
  0x27   : > { %332 = sbr.rel (%p329_p9) target bundleno = 336 (0x150), region = 73  ;;  %s1038_s14 = sshll.u32 (!%p329_p9), %s335_s12, 6 }
  0x28   : > { %p384_p10 = scmp.lt.s32.totalorder (!%p329_p9), %s1039_s13, 79  ;;  %s1041_s24 = sshll.u32 (!%p329_p9), %s1317_s18, 4 }
  0x29   : > { %p396_p11 = scmp.lt.s32.totalorder (!%p329_p9), %s1041_s24, 31  ;;  %s1455_s18 = scalar_lea.vmem (!%p329_p9), [#allocation3], %s1038_s14 }
  0x2a   : > { %p1045_p12 = scmp.ne.s32.totalorder (!%p329_p9), %s1313_s17, 0 }
  0x2e   : > { %s1607_s13 = smov (!%p384_p10, %s1039_s13), 79  ;;  %s1609_s24 = smov (!%p396_p11, %s1041_s24), 31 }
  0x2f   : > { %s1040_s25 = sshll.u32 %s1607_s13, 2  ;;  %s1042_s30 = sshll.u32 %s1609_s24, 2  ;;  %vm418_vm0 = vcmask (!%p1045_p12), 523264   ;;  %v1331_v16 = vmov (!%p1045_p12), 0.0  }
  0x30   : > { %s1443_s29 = scalar_lea.vmem %s1590_s1, %s1040_s25  ;;  %s1448_s7 = scalar_lea.vmem %s1592_s3, %s1042_s30  ;;  %419 = vst.msk [vmem:[#allocation2] sm:$0xff] (!%p1045_p12), %vm418_vm0, %v1331_v16  ;;  %420 = vst.msk [vmem:[#allocation2 + $0x8] sm:$0xff] (!%p1045_p12), %vm418_vm0, %v1331_v16 }
  0x31   : > { %s1453_s9 = scalar_lea.vmem %s1593_s4, %s1042_s30  ;;  %417 = sbr.rel (%p1045_p12) target bundleno = 56 (0x38), region = 81  ;;  %421 = vst.msk [vmem:[#allocation2 + $0x10] sm:$0xff] (!%p1045_p12), %vm418_vm0, %v1331_v16  ;;  %422 = vst.msk [vmem:[#allocation2 + $0x18] sm:$0xff] (!%p1045_p12), %vm418_vm0, %v1331_v16 }
  0x32   : > { %423 = vst.msk [vmem:[#allocation2 + $0x20] sm:$0xff] (!%p1045_p12), %vm418_vm0, %v1331_v16  ;;  %424 = vst.msk [vmem:[#allocation2 + $0x28] sm:$0xff] (!%p1045_p12), %vm418_vm0, %v1331_v16 }
  0x33   : > { %425 = vst.msk [vmem:[#allocation2 + $0x30] sm:$0xff] (!%p1045_p12), %vm418_vm0, %v1331_v16  ;;  %426 = vst.msk [vmem:[#allocation2 + $0x38] sm:$0xff] (!%p1045_p12), %vm418_vm0, %v1331_v16 }
  0x34   : > { %427 = vst.msk [vmem:[#allocation2 + $0x40] sm:$0xff] (!%p1045_p12), %vm418_vm0, %v1331_v16  ;;  %428 = vst.msk [vmem:[#allocation2 + $0x48] sm:$0xff] (!%p1045_p12), %vm418_vm0, %v1331_v16 }
  0x35   : > { %429 = vst.msk [vmem:[#allocation2 + $0x50] sm:$0xff] (!%p1045_p12), %vm418_vm0, %v1331_v16  ;;  %430 = vst.msk [vmem:[#allocation2 + $0x58] sm:$0xff] (!%p1045_p12), %vm418_vm0, %v1331_v16 }
  0x36   : > { %431 = vst.msk [vmem:[#allocation2 + $0x60] sm:$0xff] (!%p1045_p12), %vm418_vm0, %v1331_v16  ;;  %432 = vst.msk [vmem:[#allocation2 + $0x68] sm:$0xff] (!%p1045_p12), %vm418_vm0, %v1331_v16 }
  0x37   : > { %433 = vst.msk [vmem:[#allocation2 + $0x70] sm:$0xff] (!%p1045_p12), %vm418_vm0, %v1331_v16  ;;  %434 = vst.msk [vmem:[#allocation2 + $0x78] sm:$0xff] (!%p1045_p12), %vm418_vm0, %v1331_v16 }
  0x38 PF: > { %v1259_v17 = vld [vmem:[%s1443_s29] sm:$0xff]   ;;  %v1260_v18 = vld [vmem:[%s1443_s29 + $0x8] sm:$0xff]   ;;  %v1261_v19 = vld [vmem:[%s1443_s29 + $0x10] sm:$0xff]   ;;  %vm692_vm1 = vcmask 523264   ;;  %p1062_p13 = scmp.ne.s32.totalorder %s1313_s17, 4 }
  0x39   : > { %1153 = vmatprep.subr.bf16.mxu0 %v1259_v17  ;;  %1185 = vmatprep.subr.bf16.mxu1 %v1259_v17  ;;  %v1262_v20 = vld [vmem:[%s1443_s29 + $0x18] sm:$0xff]   ;;  %v1267_v21 = vld [vmem:[%s1455_s18] sm:$0xff]   ;;  %v1264_v24 = vld [vmem:[%s1443_s29 + $0x28] sm:$0xff]   ;;  %vm880_vm2 = vcmask (!%p1062_p13), 519168  }
  0x3a   : > { %1154 = vmatpush3.bf16.msra.mxu0 %v1259_v17  ;;  %1193 = vmatpush3.bf16.msra.mxu1 %v1259_v17  ;;  %v1268_v22 = vld [vmem:[%s1455_s18 + $0x20] sm:$0xff]   ;;  %v1265_v25 = vld [vmem:[%s1443_s29 + $0x30] sm:$0xff]   ;;  %v1266_v26 = vld [vmem:[%s1443_s29 + $0x38] sm:$0xff]  }
  0x3b   : > { %1155 = vmatprep.subr.bf16.mxu0 %v1260_v18  ;;  %1186 = vmatprep.subr.bf16.mxu1 %v1260_v18  ;;  %v1263_v23 = vld [vmem:[%s1443_s29 + $0x20] sm:$0xff]   ;;  %v1269_v27 = vld [vmem:[%s1455_s18 + $0x8] sm:$0xff]   ;;  %v1271_v29 = vld [vmem:[%s1455_s18 + $0x10] sm:$0xff]  }
  0x3c   : > { %1169 = vmatprep.mubr.bf16.mxu0 %v1267_v21  ;;  %1177 = vmatprep.mubr.bf16.mxu1 %v1268_v22  ;;  %v1270_v28 = vld [vmem:[%s1455_s18 + $0x28] sm:$0xff]   ;;  %v1272_v30 = vld [vmem:[%s1455_s18 + $0x30] sm:$0xff]   ;;  %v1273_v31 = vld [vmem:[%s1455_s18 + $0x18] sm:$0xff]  }
  0x3d   : > { %v1274_v32 = vld [vmem:[%s1455_s18 + $0x38] sm:$0xff]   ;;  %v437_v33 = vld [vmem:[#allocation2 + $0x10] sm:$0xff]  ;;  %v435_v35 = vld [vmem:[#allocation2] sm:$0xff] }
  0x3e   : > { %1156 = vmatpush3.bf16.msra.mxu0 %v1260_v18  ;;  %1194 = vmatpush3.bf16.msra.mxu1 %v1260_v18  ;;  %v445_v34 = vld [vmem:[#allocation2 + $0x50] sm:$0xff]  ;;  %v443_v36 = vld [vmem:[#allocation2 + $0x40] sm:$0xff]  ;;  %v438_v39 = vld [vmem:[#allocation2 + $0x18] sm:$0xff] }
  0x3f   : > { %1157 = vmatprep.subr.bf16.mxu0 %v1261_v19  ;;  %1187 = vmatprep.subr.bf16.mxu1 %v1261_v19  ;;  %v446_v40 = vld [vmem:[#allocation2 + $0x58] sm:$0xff]  ;;  %v436_v45 = vld [vmem:[#allocation2 + $0x8] sm:$0xff]  ;;  %v441_v57 = vld [vmem:[#allocation2 + $0x30] sm:$0xff] }
  0x40   : > { %v444_v46 = vld [vmem:[#allocation2 + $0x48] sm:$0xff]  ;;  %v449_v58 = vld [vmem:[#allocation2 + $0x70] sm:$0xff]  ;;  %v439_v59 = vld [vmem:[#allocation2 + $0x20] sm:$0xff] }
  0x41   : > { %v447_v60 = vld [vmem:[#allocation2 + $0x60] sm:$0xff]  ;;  %v442_v63 = vld [vmem:[#allocation2 + $0x38] sm:$0xff]  ;;  %v440_v5 = vld [vmem:[#allocation2 + $0x28] sm:$0xff] }
  0x42   : > { %1158 = vmatpush3.bf16.msra.mxu0 %v1261_v19  ;;  %1195 = vmatpush3.bf16.msra.mxu1 %v1261_v19  ;;  %v450_v0 = vld [vmem:[#allocation2 + $0x78] sm:$0xff]  ;;  %v448_v6 = vld [vmem:[#allocation2 + $0x68] sm:$0xff]  ;;  %v1510_v18 = vld [vmem:[%s1591_s2] ss:$0 sm:$0xff] (!%p1062_p13) }
  0x43   : > { %1159 = vmatprep.subr.bf16.mxu0 %v1262_v20  ;;  %1188 = vmatprep.subr.bf16.mxu1 %v1262_v20  ;;  %v1099_v19 = vld [vmem:[%s1448_s7] sm:$0xff] (!%p1062_p13)  }
  0x44   : > { %v1100_v21 = vunpack.c.l.bf16 (!%p1062_p13), %v1099_v19 }
  0x46   : > { %1160 = vmatpush3.bf16.msra.mxu0 %v1262_v20  ;;  %1196 = vmatpush3.bf16.msra.mxu1 %v1262_v20 }
  0x47   : > { %1161 = vmatprep.subr.bf16.mxu0 %v1263_v23  ;;  %1189 = vmatprep.subr.bf16.mxu1 %v1263_v23 }
  0x4a   : > { %1162 = vmatpush3.bf16.msra.mxu0 %v1263_v23  ;;  %1197 = vmatpush3.bf16.msra.mxu1 %v1263_v23  ;;  %v1101_v23 = vunpack.c.h.bf16 (!%p1062_p13), %v1099_v19 }
  0x4b   : > { %1163 = vmatprep.subr.bf16.mxu0 %v1264_v24  ;;  %1190 = vmatprep.subr.bf16.mxu1 %v1264_v24 }
  0x4e   : > { %1164 = vmatpush3.bf16.msra.mxu0 %v1264_v24  ;;  %1198 = vmatpush3.bf16.msra.mxu1 %v1264_v24 }
  0x4f   : > { %1165 = vmatprep.subr.bf16.mxu0 %v1265_v25  ;;  %1191 = vmatprep.subr.bf16.mxu1 %v1265_v25 }
  0x52   : > { %1166 = vmatpush3.bf16.msra.mxu0 %v1265_v25  ;;  %1199 = vmatpush3.bf16.msra.mxu1 %v1265_v25  ;;  %v1130_v25 = vld [vmem:[%s1448_s7 + $0x8] sm:$0xff] (!%p1062_p13)  }
  0x53   : > { %1167 = vmatprep.subr.bf16.mxu0 %v1266_v26  ;;  %1192 = vmatprep.subr.bf16.mxu1 %v1266_v26 }
  0x56   : > { %1168 = vmatpush3.bf16.msra.mxu0 %v1266_v26  ;;  %1200 = vmatpush3.bf16.msra.mxu1 %v1266_v26 }
  0x59   : > { %1170 = vmatmul.mubr.bf16.vlgmr.msra.gmra.mrb[0].mxu0 %v1269_v27  ;;  %1178 = vmatmul.mubr.bf16.vlgmr.msra.gmra.mrb[0].mxu1 %v1270_v28  ;;  %v1104_v28 = vunpack.c.l.bf16 (!%p1062_p13), %v1130_v25 }
  0x5a   : > { %1173 = vmatprep.mubr.bf16.mxu0 %v1271_v29  ;;  %1181 = vmatprep.mubr.bf16.mxu1 %v1272_v30  ;;  %v1105_v30 = vunpack.c.h.bf16 (!%p1062_p13), %v1130_v25 }
  0x61   : > { %1174 = vmatmul.mubr.bf16.gmra.mrb[4].mxu0 %v1273_v31  ;;  %1182 = vmatmul.mubr.bf16.gmra.mrb[4].mxu1 %v1274_v32  ;;  %v1131_v32 = vld [vmem:[%s1448_s7 + $0x10] sm:$0xff] (!%p1062_p13)  }
 0x12c   : > { %v1171_v37 = vpop.f32.mrb[0].mxu0  ;;  %v1179_v38 = vpop.f32.mrb[0].mxu1 }
 0x12d   : > { %v678_v41 = vadd.f32 %v1171_v37, %v437_v33  ;;  %v686_v42 = vadd.f32 %v1179_v38, %v445_v34  ;;  %v613_v43 = vpop.f32.mrb[1].mxu0  ;;  %v645_v44 = vpop.f32.mrb[1].mxu1 }
 0x12e   : > { %v676_v47 = vadd.f32 %v613_v43, %v435_v35  ;;  %v684_v48 = vadd.f32 %v645_v44, %v443_v36  ;;  %v1172_v49 = vpop.f32.mrb[2].mxu0  ;;  %v1180_v50 = vpop.f32.mrb[2].mxu1  ;;  %v1108_v36 = vunpack.c.l.bf16 (!%p1062_p13), %v1131_v32  ;;  %v1109_v43 = vunpack.c.h.bf16 (!%p1062_p13), %v1131_v32  ;;  %v1136_v32 = vld [vmem:[%s1448_s7 + $0x38] sm:$0xff] (!%p1062_p13)  }
 0x12f   : > { %695 = vst.msk [vmem:[#allocation2 + $0x10] sm:$0xff] %vm692_vm1, %v678_v41  ;;  %703 = vst.msk [vmem:[#allocation2 + $0x50] sm:$0xff] %vm692_vm1, %v686_v42  ;;  %v679_v51 = vadd.f32 %v1172_v49, %v438_v39  ;;  %v687_v52 = vadd.f32 %v1180_v50, %v446_v40  ;;  %v616_v53 = vpop.f32.mrb[3].mxu0  ;;  %v648_v54 = vpop.f32.mrb[3].mxu1  ;;  %v1132_v39 = vld [vmem:[%s1448_s7 + $0x18] sm:$0xff] (!%p1062_p13)  }
 0x130   : > { %693 = vst.msk [vmem:[#allocation2] sm:$0xff] %vm692_vm1, %v676_v47  ;;  %701 = vst.msk [vmem:[#allocation2 + $0x40] sm:$0xff] %vm692_vm1, %v684_v48  ;;  %v677_v55 = vadd.f32 %v616_v53, %v436_v45  ;;  %v685_v56 = vadd.f32 %v648_v54, %v444_v46 }
 0x131   : > { %696 = vst.msk [vmem:[#allocation2 + $0x18] sm:$0xff] %vm692_vm1, %v679_v51  ;;  %704 = vst.msk [vmem:[#allocation2 + $0x58] sm:$0xff] %vm692_vm1, %v687_v52  ;;  %v1112_v52 = vunpack.c.l.bf16 (!%p1062_p13), %v1132_v39 }
 0x132   : > { %694 = vst.msk [vmem:[#allocation2 + $0x8] sm:$0xff] %vm692_vm1, %v677_v55  ;;  %702 = vst.msk [vmem:[#allocation2 + $0x48] sm:$0xff] %vm692_vm1, %v685_v56 }
 0x134   : > { %v1175_v61 = vpop.f32.mrb[4].mxu0  ;;  %v1183_v62 = vpop.f32.mrb[4].mxu1  ;;  %712 = sbr.rel (%p1062_p13) target bundleno = 336 (0x150), region = 85 }
 0x135   : > { %v682_v1 = vadd.f32 %v1175_v61, %v441_v57  ;;  %v690_v2 = vadd.f32 %v1183_v62, %v449_v58  ;;  %v629_v3 = vpop.f32.mrb[5].mxu0  ;;  %v661_v4 = vpop.f32.mrb[5].mxu1  ;;  %v1133_v58 = vld [vmem:[%s1448_s7 + $0x20] sm:$0xff] (!%p1062_p13)  }
 0x136   : > { %v680_v7 = vadd.f32 %v629_v3, %v439_v59  ;;  %v688_v8 = vadd.f32 %v661_v4, %v447_v60  ;;  %v1176_v9 = vpop.f32.mrb[6].mxu0  ;;  %v1184_v10 = vpop.f32.mrb[6].mxu1  ;;  %v715_v24 = vld [vmem:[#allocation2 + $0x10] sm:$0xff] (!%p1062_p13)  ;;  %v1113_v4 = vunpack.c.h.bf16 (!%p1062_p13), %v1132_v39 }
 0x137   : > { %699 = vst.msk [vmem:[#allocation2 + $0x30] sm:$0xff] %vm692_vm1, %v682_v1  ;;  %707 = vst.msk [vmem:[#allocation2 + $0x70] sm:$0xff] %vm692_vm1, %v690_v2  ;;  %v683_v11 = vadd.f32 %v1176_v9, %v442_v63  ;;  %v691_v12 = vadd.f32 %v1184_v10, %v450_v0  ;;  %v632_v13 = vpop.f32.mrb[7].mxu0  ;;  %v664_v14 = vpop.f32.mrb[7].mxu1  ;;  %v713_v17 = vld [vmem:[#allocation2] sm:$0xff] (!%p1062_p13)  ;;  %v738_v27 = vadd.f32 (!%p1062_p13), %v1510_v18, %v715_v24  ;;  %v723_v0 = vld [vmem:[#allocation2 + $0x50] sm:$0xff] (!%p1062_p13)  ;;  %v1116_v9 = vunpack.c.l.bf16 (!%p1062_p13), %v1133_v58 }
 0x138   : > { %697 = vst.msk [vmem:[#allocation2 + $0x20] sm:$0xff] %vm692_vm1, %v680_v7  ;;  %705 = vst.msk [vmem:[#allocation2 + $0x60] sm:$0xff] %vm692_vm1, %v688_v8  ;;  %v681_v15 = vadd.f32 %v632_v13, %v440_v5  ;;  %v689_v16 = vadd.f32 %v664_v14, %v448_v6  ;;  %v736_v20 = vadd.f32 (!%p1062_p13), %v1510_v18, %v713_v17  ;;  %v716_v29 = vld [vmem:[#allocation2 + $0x18] sm:$0xff] (!%p1062_p13)  ;;  %v721_v53 = vld [vmem:[#allocation2 + $0x40] sm:$0xff] (!%p1062_p13)  ;;  %v1117_v13 = vunpack.c.h.bf16 (!%p1062_p13), %v1133_v58 }
 0x139   : > { %700 = vst.msk [vmem:[#allocation2 + $0x38] sm:$0xff] %vm692_vm1, %v683_v11  ;;  %708 = vst.msk [vmem:[#allocation2 + $0x78] sm:$0xff] %vm692_vm1, %v691_v12  ;;  %v714_v22 = vld [vmem:[#allocation2 + $0x8] sm:$0xff] (!%p1062_p13)  ;;  %v739_v34 = vadd.f32 (!%p1062_p13), %v1510_v18, %v716_v29  ;;  %v786_v41 = vadd.f32 (!%p1062_p13), %v1104_v28, %v738_v27  ;;  %v744_v5 = vadd.f32 (!%p1062_p13), %v1510_v18, %v721_v53  ;;  %v724_v6 = vld [vmem:[#allocation2 + $0x58] sm:$0xff] (!%p1062_p13) }
 0x13a   : > { %698 = vst.msk [vmem:[#allocation2 + $0x28] sm:$0xff] %vm692_vm1, %v681_v15  ;;  %706 = vst.msk [vmem:[#allocation2 + $0x68] sm:$0xff] %vm692_vm1, %v689_v16  ;;  %v737_v26 = vadd.f32 (!%p1062_p13), %v1510_v18, %v714_v22  ;;  %v784_v33 = vadd.f32 (!%p1062_p13), %v1100_v21, %v736_v20  ;;  %v722_v59 = vld [vmem:[#allocation2 + $0x48] sm:$0xff] (!%p1062_p13)  ;;  %v746_v14 = vadd.f32 (!%p1062_p13), %v1510_v18, %v723_v0  ;;  %v1135_v16 = vld [vmem:[%s1448_s7 + $0x30] sm:$0xff] (!%p1062_p13)  }
 0x13b   : > { %v787_v46 = vadd.f32 %v1105_v30, %v739_v34  ;;  %v802_v50 = vmax.f32 %v786_v41, 0.0  ;;  %v1134_v1 = vld [vmem:[%s1448_s7 + $0x28] sm:$0xff]   ;;  %v745_v10 = vadd.f32 %v1510_v18, %v722_v59  ;;  %v792_v20 = vadd.f32 %v1116_v9, %v744_v5 }
 0x13c   : > { %v785_v40 = vadd.f32 %v1101_v23, %v737_v26  ;;  %v800_v45 = vmax.f32 %v784_v33, 0.0  ;;  %v1120_v15 = vunpack.c.l.bf16 %v1134_v1  ;;  %v747_v21 = vadd.f32 %v1510_v18, %v724_v6 }
 0x13d   : > { %v803_v55 = vmax.f32 %v787_v46, 0.0  ;;  %v1084_v61 = vpack.c.bf16 %v802_v50, %v802_v50  ;;  %v1121_v22 = vunpack.c.h.bf16 %v1134_v1  ;;  %v793_v24 = vadd.f32 %v1117_v13, %v745_v10 }
 0x13e   : > { %v719_v38 = vld [vmem:[#allocation2 + $0x30] sm:$0xff]  ;;  %v801_v49 = vmax.f32 %v785_v40, 0.0  ;;  %v1082_v54 = vpack.c.bf16 %v800_v45, %v800_v45  ;;  %v794_v25 = vadd.f32 %v1120_v15, %v746_v14  ;;  %v808_v28 = vmax.f32 %v792_v20, 0.0 }
 0x13f   : > { %v717_v31 = vld [vmem:[#allocation2 + $0x20] sm:$0xff]  ;;  %v742_v48 = vadd.f32 %v1510_v18, %v719_v38  ;;  %v1085_v2 = vpack.c.bf16 %v803_v55, %v803_v55  ;;  %883 = vst.msk [vmem:[%s1453_s9 + $0x8] sm:$0xf] %vm880_vm2, %v1084_v61  ;;  %v727_v27 = vld [vmem:[#allocation2 + $0x70] sm:$0xff]  ;;  %v795_v29 = vadd.f32 %v1121_v22, %v747_v21  ;;  %v1124_v30 = vunpack.c.l.bf16 %v1135_v16 }
 0x140   : > { %v740_v35 = vadd.f32 %v1510_v18, %v717_v31  ;;  %v720_v44 = vld [vmem:[#allocation2 + $0x38] sm:$0xff]  ;;  %v1083_v60 = vpack.c.bf16 %v801_v49, %v801_v49  ;;  %881 = vst.msk [vmem:[%s1453_s9] sm:$0xf] %vm880_vm2, %v1082_v54  ;;  %v725_v11 = vld [vmem:[#allocation2 + $0x60] sm:$0xff]  ;;  %v809_v34 = vmax.f32 %v793_v24, 0.0  ;;  %v1090_v38 = vpack.c.bf16 %v808_v28, %v808_v28 }
 0x141   : > { %v718_v37 = vld [vmem:[#allocation2 + $0x28] sm:$0xff]  ;;  %v743_v57 = vadd.f32 %v1510_v18, %v720_v44  ;;  %v790_v63 = vadd.f32 %v1112_v52, %v742_v48  ;;  %884 = vst.msk [vmem:[%s1453_s9 + $0xc] sm:$0xf] %vm880_vm2, %v1085_v2  ;;  %v748_v26 = vadd.f32 %v1510_v18, %v725_v11  ;;  %v811_v39 = vmax.f32 %v795_v29, 0.0 }
 0x142   : > { %v741_v42 = vadd.f32 %v1510_v18, %v718_v37  ;;  %v788_v47 = vadd.f32 %v1108_v36, %v740_v35  ;;  %882 = vst.msk [vmem:[%s1453_s9 + $0x4] sm:$0xf] %vm880_vm2, %v1083_v60  ;;  %v726_v17 = vld [vmem:[#allocation2 + $0x68] sm:$0xff]  ;;  %v810_v35 = vmax.f32 %v794_v25, 0.0  ;;  %v1125_v36 = vunpack.c.h.bf16 %v1135_v16  ;;  %v728_v37 = vld [vmem:[#allocation2 + $0x78] sm:$0xff] }
 0x143   : > { %v806_v8 = vmax.f32 %v790_v63, 0.0  ;;  %v791_v12 = vadd.f32 %v1113_v4, %v743_v57  ;;  %v749_v31 = vadd.f32 %v1510_v18, %v726_v17  ;;  %v796_v40 = vadd.f32 %v1124_v30, %v748_v26  ;;  %889 = vst.msk [vmem:[%s1453_s9 + $0x20] sm:$0xf] %vm880_vm2, %v1090_v38 }
 0x144   : > { %v789_v51 = vadd.f32 %v1109_v43, %v741_v42  ;;  %v804_v56 = vmax.f32 %v788_v47, 0.0  ;;  %v750_v41 = vadd.f32 %v1510_v18, %v727_v27  ;;  %v1091_v42 = vpack.c.bf16 %v809_v34, %v809_v34 }
 0x145   : > { %v1088_v19 = vpack.c.bf16 %v806_v8, %v806_v8  ;;  %v807_v23 = vmax.f32 %v791_v12, 0.0  ;;  %v1092_v43 = vpack.c.bf16 %v810_v35, %v810_v35  ;;  %v797_v44 = vadd.f32 %v1125_v36, %v749_v31 }
 0x146   : > { %v805_v62 = vmax.f32 %v789_v51, 0.0  ;;  %v1086_v3 = vpack.c.bf16 %v804_v56, %v804_v56  ;;  %v1128_v45 = vunpack.c.l.bf16 %v1136_v32  ;;  %v1093_v46 = vpack.c.bf16 %v811_v39, %v811_v39  ;;  %890 = vst.msk [vmem:[%s1453_s9 + $0x24] sm:$0xf] %vm880_vm2, %v1091_v42 }
 0x147   : > { %887 = vst.msk [vmem:[%s1453_s9 + $0x18] sm:$0xf] %vm880_vm2, %v1088_v19  ;;  %v1089_v33 = vpack.c.bf16 %v807_v23, %v807_v23  ;;  %v812_v47 = vmax.f32 %v796_v40, 0.0  ;;  %v751_v48 = vadd.f32 %v1510_v18, %v728_v37  ;;  %v1129_v49 = vunpack.c.h.bf16 %v1136_v32  ;;  %891 = vst.msk [vmem:[%s1453_s9 + $0x28] sm:$0xf] %vm880_vm2, %v1092_v43 }
 0x148   : > { %v1087_v7 = vpack.c.bf16 %v805_v62, %v805_v62  ;;  %885 = vst.msk [vmem:[%s1453_s9 + $0x10] sm:$0xf] %vm880_vm2, %v1086_v3  ;;  %v813_v50 = vmax.f32 %v797_v44, 0.0  ;;  %v798_v51 = vadd.f32 %v1128_v45, %v750_v41  ;;  %892 = vst.msk [vmem:[%s1453_s9 + $0x2c] sm:$0xf] %vm880_vm2, %v1093_v46 }
 0x149   : > { %888 = vst.msk [vmem:[%s1453_s9 + $0x1c] sm:$0xf] %vm880_vm2, %v1089_v33  ;;  %v1094_v52 = vpack.c.bf16 %v812_v47, %v812_v47  ;;  %v799_v53 = vadd.f32 %v1129_v49, %v751_v48 }
 0x14a   : > { %886 = vst.msk [vmem:[%s1453_s9 + $0x14] sm:$0xf] %vm880_vm2, %v1087_v7  ;;  %v1095_v54 = vpack.c.bf16 %v813_v50, %v813_v50  ;;  %v814_v55 = vmax.f32 %v798_v51, 0.0 }
 0x14b   : > { %893 = vst.msk [vmem:[%s1453_s9 + $0x30] sm:$0xf] %vm880_vm2, %v1094_v52  ;;  %v815_v56 = vmax.f32 %v799_v53, 0.0 }
 0x14c   : > { %894 = vst.msk [vmem:[%s1453_s9 + $0x34] sm:$0xf] %vm880_vm2, %v1095_v54  ;;  %v1096_v18 = vpack.c.bf16 %v814_v55, %v814_v55 }
 0x14d   : > { %v1097_v57 = vpack.c.bf16 %v815_v56, %v815_v56 }
 0x14e   : > { %895 = vst.msk [vmem:[%s1453_s9 + $0x38] sm:$0xf] %vm880_vm2, %v1096_v18 }
 0x14f   : > { %896 = vst.msk [vmem:[%s1453_s9 + $0x3c] sm:$0xf] %vm880_vm2, %v1097_v57 }
 0x150 PF: > { %s14_s21 = sadd.s32 1, %s1329_s21   ;;  %s1594_s15 = smov %s1309_s16 }
 0x151   : > { %p11_p0 = scmp.ge.s32.totalorder %s14_s21, 12   ;;  %s1595_s16 = smov %s1408_s28 }
 0x152   : > { %s1596_s17 = smov %s1321_s19  ;;  %s1597_s18 = smov %s1325_s20 }
 0x153   : > { %s1598_s19 = smov %s1601_s22  ;;  %s1599_s20 = smov %s1605_s23 }
 0x154   :  { %13 = sbr.rel (!%p11_p0) target bundleno = 4 (0x4), region = 129 }

// kernel: resnet18_forward.27
= control target key start
LH: loop header
LB: loop body
LE: loop exit
PB: predicated region body
PF: predicated region fallthrough
CT: control target
= control target key end

     0   :  { %s938_s12 = smov 0   ;;  %s940_s13 = smov 0   ;;  %s1036_s0 = inlined_call_operand.vmem [shape: bf16[64,640], index: 0, kind: input, shape index: {}]   ;;  %s1037_s1 = inlined_call_operand.vmem [shape: bf16[640,128], index: 1, kind: input, shape index: {}]   ;;  %s1038_s2 = inlined_call_operand.vmem [shape: f32[1,128], index: 2, kind: input, shape index: {}]   ;;  %s1039_s3 = inlined_call_operand.vmem [shape: bf16[64,128], index: 3, kind: output, shape index: {}]  }
   0x1   :  { %s942_s14 = smov 0   ;;  %s944_s15 = smov 0  }
   0x2   :  { %s946_s16 = smov 0  }
   0x3 LB: > { %s25_s17 = sadd.s32 1, %s911_s15  ;;  %p48_p1 = scmp.ne.s32.totalorder %s903_s13, %s899_s12  ;;  %s915_s16 = sphi %s946_s16, %s13_s16   ;;  %s911_s15 = sphi %s944_s15, %s1043_s15   ;;  %s907_s14 = sphi %s942_s14, %s1042_s14   ;;  %s903_s13 = sphi %s940_s13, %s1041_s13   ;;  %s899_s12 = sphi %s938_s12, %s1040_s12  }
   0x4   : > { %p26_p0 = scmp.ge.s32.totalorder %s25_s17, 5  ;;  %p49_p2 = scmp.eq.s32.totalorder %s915_s16, 0 }
   0x5   : > { %s41_s19 = sadd.s32 1, %s903_s13  ;;  %p707_p5 = scmp.ge.s32.totalorder %s915_s16, 5 }
   0x6   : > { %s1045_s17 = smov (%p26_p0, %s25_s17), 0  ;;  %p50_p3 = por %p49_p2, %p48_p1 }
   0x7   : > { %s37_s18 = ssub.s32 %s911_s15, %s1045_s17  ;;  %162 = sbr.rel (%p707_p5) target bundleno = 23 (0x17), region = 20 }
   0x8   : > { %p39_p4 = scmp.eq.s32.totalorder %s37_s18, 0 }
   0xa   : > { %s973_s20 = scalar_select %p39_p4, %s903_s13, %s41_s19  }
   0xe   : > { %165 = sbr.rel (!%p50_p3) target bundleno = 23 (0x17), region = 24  ;;  %s167_s21 = sand.u32 (%p50_p3), 1, %s903_s13  }
   0xf   : > { %s709_s22 = sshll.u32 (%p50_p3), %s911_s15, 2  ;;  %s708_s23 = sshll.u32 (%p50_p3), %s167_s21, 5 }
  0x10   : > { %s174_s26 = scalar_lea.vmem (%p50_p3), %s1036_s0, %s709_s22  ;;  %s169_s27 = scalar_lea.vmem (%p50_p3), [#allocation3], %s708_s23 }
  0x11   : > { %v190_v0 = vld [vmem:[%s174_s26] sm:$0xf] (%p50_p3)  ;;  %v192_v1 = vld [vmem:[%s174_s26 + $0x14] sm:$0xf] (%p50_p3)  ;;  %v194_v2 = vld [vmem:[%s174_s26 + $0x28] sm:$0xf] (%p50_p3) }
  0x12   : > { %191 = vst [vmem:[%s169_s27] sm:$0xf] (%p50_p3), %v190_v0  ;;  %193 = vst [vmem:[%s169_s27 + $0x4] sm:$0xf] (%p50_p3), %v192_v1  ;;  %v196_v3 = vld [vmem:[%s174_s26 + $0x3c] sm:$0xf] (%p50_p3) }
  0x13   : > { %v198_v4 = vld [vmem:[%s174_s26 + $0x50] sm:$0xf] (%p50_p3)  ;;  %195 = vst [vmem:[%s169_s27 + $0x8] sm:$0xf] (%p50_p3), %v194_v2  ;;  %197 = vst [vmem:[%s169_s27 + $0xc] sm:$0xf] (%p50_p3), %v196_v3 }
  0x14   : > { %199 = vst [vmem:[%s169_s27 + $0x10] sm:$0xf] (%p50_p3), %v198_v4  ;;  %v200_v5 = vld [vmem:[%s174_s26 + $0x64] sm:$0xf] (%p50_p3)  ;;  %v202_v6 = vld [vmem:[%s174_s26 + $0x78] sm:$0xf] (%p50_p3) }
  0x15   : > { %v204_v7 = vld [vmem:[%s174_s26 + $0x8c] sm:$0xf]  ;;  %201 = vst [vmem:[%s169_s27 + $0x14] sm:$0xf] %v200_v5  ;;  %203 = vst [vmem:[%s169_s27 + $0x18] sm:$0xf] %v202_v6 }
  0x16   : > { %205 = vst [vmem:[%s169_s27 + $0x1c] sm:$0xf] %v204_v7 }
  0x17 PF: > { %p710_p6 = scmp.ge.s32.totalorder %s915_s16, 1  ;;  %p255_p7 = scmp.lt.s32.totalorder %s915_s16, 6 }
  0x19   : > { %p256_p8 = pnand %p710_p6, %p255_p7 }
  0x1a   : > { %s262_s28 = sand.u32 (!%p256_p8), 1, %s899_s12   ;;  %s712_s29 = sshll.u32 (!%p256_p8), %s907_s14, 4 }
  0x1b   : > { %259 = sbr.rel (%p256_p8) target bundleno = 307 (0x133), region = 69  ;;  %s711_s30 = sshll.u32 (!%p256_p8), %s262_s28, 5 }
  0x1c   : > { %p301_p9 = scmp.lt.s32.totalorder (!%p256_p8), %s712_s29, 79  ;;  %s990_s8 = scalar_lea.vmem (!%p256_p8), [#allocation3], %s711_s30 }
  0x1d   : > { %p714_p10 = scmp.ne.s32.totalorder (!%p256_p8), %s907_s14, 0 }
  0x22   : > { %s1047_s29 = smov (!%p301_p9, %s712_s29), 79  ;;  %325 = sbr.rel (%p714_p10) target bundleno = 41 (0x29), region = 77 }
  0x23   : > { %s713_s4 = sshll.u32 %s1047_s29, 2  ;;  %v917_v8 = vmov (!%p714_p10), 0.0  }
  0x24   : > { %s988_s7 = scalar_lea.vmem %s1037_s1, %s713_s4  ;;  %326 = vst [vmem:[#allocation2] sm:$0xff] (!%p714_p10), %v917_v8  ;;  %327 = vst [vmem:[#allocation2 + $0x8] sm:$0xff] (!%p714_p10), %v917_v8 }
  0x25   : > { %328 = vst [vmem:[#allocation2 + $0x10] sm:$0xff] (!%p714_p10), %v917_v8  ;;  %329 = vst [vmem:[#allocation2 + $0x18] sm:$0xff] (!%p714_p10), %v917_v8 }
  0x26   : > { %330 = vst [vmem:[#allocation2 + $0x20] sm:$0xff] (!%p714_p10), %v917_v8  ;;  %331 = vst [vmem:[#allocation2 + $0x28] sm:$0xff] (!%p714_p10), %v917_v8 }
  0x27   : > { %332 = vst [vmem:[#allocation2 + $0x30] sm:$0xff] (!%p714_p10), %v917_v8  ;;  %333 = vst [vmem:[#allocation2 + $0x38] sm:$0xff] (!%p714_p10), %v917_v8 }
  0x29 PF: > { %v865_v9 = vld [vmem:[%s988_s7] sm:$0xff]   ;;  %v866_v10 = vld [vmem:[%s988_s7 + $0x8] sm:$0xff]   ;;  %v867_v11 = vld [vmem:[%s988_s7 + $0x10] sm:$0xff]   ;;  %p727_p11 = scmp.ne.s32.totalorder %s907_s14, 4 }
  0x2a   : > { %784 = vmatprep.subr.bf16.mxu0 %v865_v9  ;;  %808 = vmatprep.subr.bf16.mxu1 %v865_v9  ;;  %v868_v12 = vld [vmem:[%s988_s7 + $0x18] sm:$0xff]   ;;  %v873_v13 = vld [vmem:[%s990_s8] sm:$0xff]   ;;  %v874_v14 = vld [vmem:[%s990_s8 + $0x10] sm:$0xff]  }
  0x2b   : > { %785 = vmatpush3.bf16.msra.mxu0 %v865_v9  ;;  %816 = vmatpush3.bf16.msra.mxu1 %v865_v9  ;;  %v869_v15 = vld [vmem:[%s988_s7 + $0x20] sm:$0xff]   ;;  %v870_v16 = vld [vmem:[%s988_s7 + $0x28] sm:$0xff]   ;;  %v871_v17 = vld [vmem:[%s988_s7 + $0x30] sm:$0xff]  }
  0x2c   : > { %786 = vmatprep.subr.bf16.mxu0 %v866_v10  ;;  %809 = vmatprep.subr.bf16.mxu1 %v866_v10  ;;  %v872_v18 = vld [vmem:[%s988_s7 + $0x38] sm:$0xff]   ;;  %v875_v19 = vld [vmem:[%s990_s8 + $0x8] sm:$0xff]   ;;  %v336_v21 = vld [vmem:[#allocation2 + $0x10] sm:$0xff] }
  0x2d   : > { %800 = vmatprep.mubr.bf16.mxu0 %v873_v13  ;;  %804 = vmatprep.mubr.bf16.mxu1 %v874_v14  ;;  %v876_v20 = vld [vmem:[%s990_s8 + $0x18] sm:$0xff]   ;;  %v334_v23 = vld [vmem:[#allocation2] sm:$0xff]  ;;  %v335_v33 = vld [vmem:[#allocation2 + $0x8] sm:$0xff] }
  0x2e   : > { %v340_v22 = vld [vmem:[#allocation2 + $0x30] sm:$0xff]  ;;  %v338_v24 = vld [vmem:[#allocation2 + $0x20] sm:$0xff]  ;;  %v337_v27 = vld [vmem:[#allocation2 + $0x18] sm:$0xff] }
  0x2f   : > { %787 = vmatpush3.bf16.msra.mxu0 %v866_v10  ;;  %817 = vmatpush3.bf16.msra.mxu1 %v866_v10  ;;  %v341_v28 = vld [vmem:[#allocation2 + $0x38] sm:$0xff]  ;;  %v339_v34 = vld [vmem:[#allocation2 + $0x28] sm:$0xff]  ;;  %v728_v47 = vld [vmem:[%s1038_s2] ss:$0 sm:$0xff] (!%p727_p11) }
  0x30   : > { %788 = vmatprep.subr.bf16.mxu0 %v867_v11  ;;  %810 = vmatprep.subr.bf16.mxu1 %v867_v11 }
  0x33   : > { %789 = vmatpush3.bf16.msra.mxu0 %v867_v11  ;;  %818 = vmatpush3.bf16.msra.mxu1 %v867_v11 }
  0x34   : > { %790 = vmatprep.subr.bf16.mxu0 %v868_v12  ;;  %811 = vmatprep.subr.bf16.mxu1 %v868_v12 }
  0x37   : > { %791 = vmatpush3.bf16.msra.mxu0 %v868_v12  ;;  %819 = vmatpush3.bf16.msra.mxu1 %v868_v12 }
  0x38   : > { %792 = vmatprep.subr.bf16.mxu0 %v869_v15  ;;  %812 = vmatprep.subr.bf16.mxu1 %v869_v15 }
  0x3b   : > { %793 = vmatpush3.bf16.msra.mxu0 %v869_v15  ;;  %820 = vmatpush3.bf16.msra.mxu1 %v869_v15 }
  0x3c   : > { %794 = vmatprep.subr.bf16.mxu0 %v870_v16  ;;  %813 = vmatprep.subr.bf16.mxu1 %v870_v16 }
  0x3f   : > { %795 = vmatpush3.bf16.msra.mxu0 %v870_v16  ;;  %821 = vmatpush3.bf16.msra.mxu1 %v870_v16 }
  0x40   : > { %796 = vmatprep.subr.bf16.mxu0 %v871_v17  ;;  %814 = vmatprep.subr.bf16.mxu1 %v871_v17 }
  0x43   : > { %797 = vmatpush3.bf16.msra.mxu0 %v871_v17  ;;  %822 = vmatpush3.bf16.msra.mxu1 %v871_v17 }
  0x44   : > { %798 = vmatprep.subr.bf16.mxu0 %v872_v18  ;;  %815 = vmatprep.subr.bf16.mxu1 %v872_v18 }
  0x47   : > { %799 = vmatpush3.bf16.msra.mxu0 %v872_v18  ;;  %823 = vmatpush3.bf16.msra.mxu1 %v872_v18 }
  0x4a   : > { %801 = vmatmul.mubr.bf16.vlgmr.msra.gmra.mrb[0].mxu0 %v875_v19  ;;  %805 = vmatmul.mubr.bf16.vlgmr.msra.gmra.mrb[0].mxu1 %v876_v20 }
 0x11d   : > { %v802_v25 = vpop.f32.mrb[0].mxu0  ;;  %v806_v26 = vpop.f32.mrb[0].mxu1  ;;  %522 = sbr.rel (%p727_p11) target bundleno = 307 (0x133), region = 81 }
 0x11e   : > { %v505_v29 = vadd.f32 %v802_v25, %v336_v21  ;;  %v509_v30 = vadd.f32 %v806_v26, %v340_v22  ;;  %v472_v31 = vpop.f32.mrb[1].mxu0  ;;  %v488_v32 = vpop.f32.mrb[1].mxu1 }
 0x11f   : > { %v503_v35 = vadd.f32 %v472_v31, %v334_v23  ;;  %v507_v36 = vadd.f32 %v488_v32, %v338_v24  ;;  %v803_v37 = vpop.f32.mrb[2].mxu0  ;;  %v807_v38 = vpop.f32.mrb[2].mxu1 }
 0x120   : > { %513 = vst [vmem:[#allocation2 + $0x10] sm:$0xff] %v505_v29  ;;  %517 = vst [vmem:[#allocation2 + $0x30] sm:$0xff] %v509_v30  ;;  %v506_v39 = vadd.f32 %v803_v37, %v337_v27  ;;  %v510_v40 = vadd.f32 %v807_v38, %v341_v28  ;;  %v475_v41 = vpop.f32.mrb[3].mxu0  ;;  %v491_v42 = vpop.f32.mrb[3].mxu1 }
 0x121   : > { %511 = vst [vmem:[#allocation2] sm:$0xff] %v503_v35  ;;  %515 = vst [vmem:[#allocation2 + $0x20] sm:$0xff] %v507_v36  ;;  %v504_v43 = vadd.f32 %v475_v41, %v335_v33  ;;  %v508_v44 = vadd.f32 %v491_v42, %v339_v34 }
 0x122   : > { %514 = vst [vmem:[#allocation2 + $0x18] sm:$0xff] %v506_v39  ;;  %518 = vst [vmem:[#allocation2 + $0x38] sm:$0xff] %v510_v40 }
 0x123   : > { %512 = vst [vmem:[#allocation2 + $0x8] sm:$0xff] %v504_v43  ;;  %516 = vst [vmem:[#allocation2 + $0x28] sm:$0xff] %v508_v44 }
 0x127   : > { %v525_v50 = vld [vmem:[#allocation2 + $0x10] sm:$0xff] }
 0x128   : > { %v523_v45 = vld [vmem:[#allocation2] sm:$0xff]  ;;  %v540_v53 = vadd.f32 %v728_v47, %v525_v50  ;;  %v529_v57 = vld [vmem:[#allocation2 + $0x30] sm:$0xff] }
 0x129   : > { %v538_v48 = vadd.f32 %v728_v47, %v523_v45  ;;  %v526_v51 = vld [vmem:[#allocation2 + $0x18] sm:$0xff]  ;;  %v527_v52 = vld [vmem:[#allocation2 + $0x20] sm:$0xff]  ;;  %v544_v62 = vadd.f32 %v728_v47, %v529_v57 }
 0x12a   : > { %v524_v46 = vld [vmem:[#allocation2 + $0x8] sm:$0xff]  ;;  %v541_v54 = vadd.f32 %v728_v47, %v526_v51  ;;  %v542_v56 = vadd.f32 %v728_v47, %v527_v52  ;;  %v530_v58 = vld [vmem:[#allocation2 + $0x38] sm:$0xff]  ;;  %v548_v63 = vmax.f32 %v540_v53, 0.0 }
 0x12b   : > { %v539_v49 = vadd.f32 %v728_v47, %v524_v46  ;;  %v528_v55 = vld [vmem:[#allocation2 + $0x28] sm:$0xff]  ;;  %v546_v59 = vmax.f32 %v538_v48, 0.0  ;;  %v545_v2 = vadd.f32 %v728_v47, %v530_v58  ;;  %v552_v5 = vmax.f32 %v544_v62, 0.0 }
 0x12c   : > { %v543_v61 = vadd.f32 %v728_v47, %v528_v55  ;;  %v549_v0 = vmax.f32 %v541_v54, 0.0  ;;  %v550_v1 = vmax.f32 %v542_v56, 0.0 }
 0x12d   : > { %v547_v60 = vmax.f32 %v539_v49, 0.0  ;;  %v553_v7 = vmax.f32 %v545_v2, 0.0 }
 0x12e   : > { %v551_v4 = vmax.f32 %v543_v61, 0.0  ;;  %v757_v6 = vpack.c.bf16 %v549_v0, %v548_v63 }
 0x12f   : > { %v752_v3 = vpack.c.bf16 %v547_v60, %v546_v59  ;;  %v767_v9 = vpack.c.bf16 %v553_v7, %v552_v5 }
 0x130   : > { %v762_v8 = vpack.c.bf16 %v551_v4, %v550_v1  ;;  %769 = vst [vmem:[%s1039_s3 + $0x8] sm:$0xff] %v757_v6  }
 0x131   : > { %753 = vst [vmem:[%s1039_s3] sm:$0xff] %v752_v3   ;;  %771 = vst [vmem:[%s1039_s3 + $0x18] sm:$0xff] %v767_v9  }
 0x132   : > { %770 = vst [vmem:[%s1039_s3 + $0x10] sm:$0xff] %v762_v8  }
 0x133 PF: > { %s13_s16 = sadd.s32 1, %s915_s16   ;;  %s1040_s12 = smov %s903_s13 }
 0x134   : > { %p10_p12 = scmp.ge.s32.totalorder %s13_s16, 7   ;;  %s1041_s13 = smov %s973_s20 }
 0x135   : > { %s1042_s14 = smov %s911_s15  ;;  %s1043_s15 = smov %s1045_s17 }
 0x136   :  { %12 = sbr.rel (!%p10_p12) target bundleno = 3 (0x3), region = 122 }

// kernel: resnet18_forward.28
= control target key start
LH: loop header
LB: loop body
LE: loop exit
PB: predicated region body
PF: predicated region fallthrough
CT: control target
= control target key end

     0   :  { %vm95_vm0 = vcmask 523264   ;;  %s414_s1 = inlined_call_operand.vmem [shape: bf16[64,128], index: 1, kind: input, shape index: {}]   ;;  %s415_s0 = inlined_call_operand.vmem [shape: bf16[64,64], index: 0, kind: input, shape index: {}]   ;;  %s416_s2 = inlined_call_operand.vmem [shape: f32[1,128], index: 2, kind: input, shape index: {}]   ;;  %s417_s3 = inlined_call_operand.vmem [shape: bf16[64,128], index: 3, kind: output, shape index: {}]  }
   0x1   :  { %v343_v0 = vld [vmem:[%s414_s1] sm:$0xff]   ;;  %v344_v1 = vld [vmem:[%s414_s1 + $0x8] sm:$0xff]   ;;  %v345_v2 = vld [vmem:[%s414_s1 + $0x10] sm:$0xff]  }
   0x2   :  { %319 = vmatprep.subr.bf16.mxu0 %v343_v0  ;;  %335 = vmatprep.subr.bf16.mxu1 %v343_v0  ;;  %v347_v3 = vld [vmem:[%s415_s0] sm:$0xff]   ;;  %v348_v4 = vld [vmem:[%s415_s0 + $0x10] sm:$0xff]   ;;  %v346_v5 = vld [vmem:[%s414_s1 + $0x18] sm:$0xff]  }
   0x3   :  { %320 = vmatpush3.bf16.msra.mxu0 %v343_v0  ;;  %339 = vmatpush3.bf16.msra.mxu1 %v343_v0  ;;  %v349_v6 = vld [vmem:[%s415_s0 + $0x8] sm:$0xff]   ;;  %v350_v7 = vld [vmem:[%s415_s0 + $0x18] sm:$0xff]   ;;  %v271_v9 = vld [vmem:[%s416_s2] ss:$0 sm:$0xff] }
   0x4   :  { %321 = vmatprep.subr.bf16.mxu0 %v344_v1  ;;  %336 = vmatprep.subr.bf16.mxu1 %v344_v1 }
   0x5   :  { %327 = vmatprep.mubr.msk.bf16.mxu0 %vm95_vm0, %v347_v3  ;;  %331 = vmatprep.mubr.msk.bf16.mxu1 %vm95_vm0, %v348_v4 }
   0x7   :  { %322 = vmatpush3.bf16.msra.mxu0 %v344_v1  ;;  %340 = vmatpush3.bf16.msra.mxu1 %v344_v1 }
   0x8   :  { %323 = vmatprep.subr.bf16.mxu0 %v345_v2  ;;  %337 = vmatprep.subr.bf16.mxu1 %v345_v2 }
   0xb   :  { %324 = vmatpush3.bf16.msra.mxu0 %v345_v2  ;;  %341 = vmatpush3.bf16.msra.mxu1 %v345_v2 }
   0xc   :  { %325 = vmatprep.subr.bf16.mxu0 %v346_v5  ;;  %338 = vmatprep.subr.bf16.mxu1 %v346_v5 }
   0xf   :  { %326 = vmatpush3.bf16.msra.mxu0 %v346_v5  ;;  %342 = vmatpush3.bf16.msra.mxu1 %v346_v5 }
  0x12   :  { %328 = vmatmul.mubr.msk.bf16.vlgmr.msra.gmra.mrb[0].mxu0 %vm95_vm0, %v349_v6  ;;  %332 = vmatmul.mubr.msk.bf16.vlgmr.msra.gmra.mrb[0].mxu1 %vm95_vm0, %v350_v7 }
  0xe5   :  { %v329_v8 = vpop.f32.mrb[0].mxu0  ;;  %v333_v10 = vpop.f32.mrb[0].mxu1 }
  0xe6   :  { %v142_v11 = vpop.f32.mrb[1].mxu0  ;;  %v158_v12 = vpop.f32.mrb[1].mxu1  ;;  %v209_v15 = vadd.f32 %v329_v8, %v271_v9  ;;  %v213_v16 = vadd.f32 %v333_v10, %v271_v9 }
  0xe7   :  { %v330_v13 = vpop.f32.mrb[2].mxu0  ;;  %v334_v14 = vpop.f32.mrb[2].mxu1  ;;  %v207_v21 = vadd.f32 %v271_v9, %v142_v11  ;;  %v211_v22 = vadd.f32 %v271_v9, %v158_v12 }
  0xe8   :  { %v210_v17 = vadd.f32 %v330_v13, %v271_v9  ;;  %v214_v18 = vadd.f32 %v334_v14, %v271_v9  ;;  %v145_v19 = vpop.f32.mrb[3].mxu0  ;;  %v161_v20 = vpop.f32.mrb[3].mxu1 }
  0xe9   :  { %v208_v23 = vadd.f32 %v271_v9, %v145_v19  ;;  %v212_v24 = vadd.f32 %v271_v9, %v161_v20 }
  0xea   :  { %v296_v25 = vpack.c.bf16 %v210_v17, %v209_v15  ;;  %v306_v26 = vpack.c.bf16 %v214_v18, %v213_v16 }
  0xeb   :  { %v291_v27 = vpack.c.bf16 %v208_v23, %v207_v21  ;;  %v301_v28 = vpack.c.bf16 %v212_v24, %v211_v22 }
  0xec   :  { %308 = vst [vmem:[%s417_s3 + $0x8] sm:$0xff] %v296_v25   ;;  %310 = vst [vmem:[%s417_s3 + $0x18] sm:$0xff] %v306_v26  }
  0xed   :  { %292 = vst [vmem:[%s417_s3] sm:$0xff] %v291_v27   ;;  %309 = vst [vmem:[%s417_s3 + $0x10] sm:$0xff] %v301_v28  }

// kernel: resnet18_forward.30
= control target key start
LH: loop header
LB: loop body
LE: loop exit
PB: predicated region body
PF: predicated region fallthrough
CT: control target
= control target key end

     0   :  { %s938_s12 = smov 0   ;;  %s940_s13 = smov 0   ;;  %s1036_s0 = inlined_call_operand.vmem [shape: bf16[64,1152], index: 0, kind: input, shape index: {}]   ;;  %s1037_s1 = inlined_call_operand.vmem [shape: bf16[1152,128], index: 1, kind: input, shape index: {}]   ;;  %s1038_s2 = inlined_call_operand.vmem [shape: f32[1,128], index: 2, kind: input, shape index: {}]   ;;  %s1039_s3 = inlined_call_operand.vmem [shape: bf16[64,128], index: 3, kind: output, shape index: {}]  }
   0x1   :  { %s942_s14 = smov 0   ;;  %s944_s15 = smov 0  }
   0x2   :  { %s946_s16 = smov 0  }
   0x3 LB: > { %s25_s17 = sadd.s32 1, %s911_s15  ;;  %p48_p1 = scmp.ne.s32.totalorder %s903_s13, %s899_s12  ;;  %s915_s16 = sphi %s946_s16, %s13_s16   ;;  %s911_s15 = sphi %s944_s15, %s1043_s15   ;;  %s907_s14 = sphi %s942_s14, %s1042_s14   ;;  %s903_s13 = sphi %s940_s13, %s1041_s13   ;;  %s899_s12 = sphi %s938_s12, %s1040_s12  }
   0x4   : > { %p26_p0 = scmp.ge.s32.totalorder %s25_s17, 9  ;;  %p49_p2 = scmp.eq.s32.totalorder %s915_s16, 0 }
   0x5   : > { %s41_s19 = sadd.s32 1, %s903_s13  ;;  %p707_p5 = scmp.ge.s32.totalorder %s915_s16, 9 }
   0x6   : > { %s1045_s17 = smov (%p26_p0, %s25_s17), 0  ;;  %p50_p3 = por %p49_p2, %p48_p1 }
   0x7   : > { %s37_s18 = ssub.s32 %s911_s15, %s1045_s17  ;;  %162 = sbr.rel (%p707_p5) target bundleno = 23 (0x17), region = 20 }
   0x8   : > { %p39_p4 = scmp.eq.s32.totalorder %s37_s18, 0 }
   0xa   : > { %s973_s20 = scalar_select %p39_p4, %s903_s13, %s41_s19  }
   0xe   : > { %165 = sbr.rel (!%p50_p3) target bundleno = 23 (0x17), region = 24  ;;  %s167_s21 = sand.u32 (%p50_p3), 1, %s903_s13  }
   0xf   : > { %s709_s22 = sshll.u32 (%p50_p3), %s911_s15, 2  ;;  %s708_s23 = sshll.u32 (%p50_p3), %s167_s21, 5 }
  0x10   : > { %s174_s26 = scalar_lea.vmem (%p50_p3), %s1036_s0, %s709_s22  ;;  %s169_s27 = scalar_lea.vmem (%p50_p3), [#allocation3], %s708_s23 }
  0x11   : > { %v190_v0 = vld [vmem:[%s174_s26] sm:$0xf] (%p50_p3)  ;;  %v192_v1 = vld [vmem:[%s174_s26 + $0x24] sm:$0xf] (%p50_p3)  ;;  %v194_v2 = vld [vmem:[%s174_s26 + $0x48] sm:$0xf] (%p50_p3) }
  0x12   : > { %191 = vst [vmem:[%s169_s27] sm:$0xf] (%p50_p3), %v190_v0  ;;  %193 = vst [vmem:[%s169_s27 + $0x4] sm:$0xf] (%p50_p3), %v192_v1  ;;  %v196_v3 = vld [vmem:[%s174_s26 + $0x6c] sm:$0xf] (%p50_p3) }
  0x13   : > { %v198_v4 = vld [vmem:[%s174_s26 + $0x90] sm:$0xf] (%p50_p3)  ;;  %195 = vst [vmem:[%s169_s27 + $0x8] sm:$0xf] (%p50_p3), %v194_v2  ;;  %197 = vst [vmem:[%s169_s27 + $0xc] sm:$0xf] (%p50_p3), %v196_v3 }
  0x14   : > { %199 = vst [vmem:[%s169_s27 + $0x10] sm:$0xf] (%p50_p3), %v198_v4  ;;  %v200_v5 = vld [vmem:[%s174_s26 + $0xb4] sm:$0xf] (%p50_p3)  ;;  %v202_v6 = vld [vmem:[%s174_s26 + $0xd8] sm:$0xf] (%p50_p3) }
  0x15   : > { %v204_v7 = vld [vmem:[%s174_s26 + $0xfc] sm:$0xf]  ;;  %201 = vst [vmem:[%s169_s27 + $0x14] sm:$0xf] %v200_v5  ;;  %203 = vst [vmem:[%s169_s27 + $0x18] sm:$0xf] %v202_v6 }
  0x16   : > { %205 = vst [vmem:[%s169_s27 + $0x1c] sm:$0xf] %v204_v7 }
  0x17 PF: > { %p710_p6 = scmp.ge.s32.totalorder %s915_s16, 1  ;;  %p255_p7 = scmp.lt.s32.totalorder %s915_s16, 10 }
  0x19   : > { %p256_p8 = pnand %p710_p6, %p255_p7 }
  0x1a   : > { %s262_s28 = sand.u32 (!%p256_p8), 1, %s899_s12   ;;  %s712_s29 = sshll.u32 (!%p256_p8), %s907_s14, 4 }
  0x1b   : > { %259 = sbr.rel (%p256_p8) target bundleno = 307 (0x133), region = 69  ;;  %s711_s30 = sshll.u32 (!%p256_p8), %s262_s28, 5 }
  0x1c   : > { %p301_p9 = scmp.lt.s32.totalorder (!%p256_p8), %s712_s29, 143  ;;  %s990_s8 = scalar_lea.vmem (!%p256_p8), [#allocation3], %s711_s30 }
  0x1d   : > { %p714_p10 = scmp.ne.s32.totalorder (!%p256_p8), %s907_s14, 0 }
  0x22   : > { %s1047_s29 = smov (!%p301_p9, %s712_s29), 143  ;;  %325 = sbr.rel (%p714_p10) target bundleno = 41 (0x29), region = 77 }
  0x23   : > { %s713_s4 = sshll.u32 %s1047_s29, 2  ;;  %v917_v8 = vmov (!%p714_p10), 0.0  }
  0x24   : > { %s988_s7 = scalar_lea.vmem %s1037_s1, %s713_s4  ;;  %326 = vst [vmem:[#allocation2] sm:$0xff] (!%p714_p10), %v917_v8  ;;  %327 = vst [vmem:[#allocation2 + $0x8] sm:$0xff] (!%p714_p10), %v917_v8 }
  0x25   : > { %328 = vst [vmem:[#allocation2 + $0x10] sm:$0xff] (!%p714_p10), %v917_v8  ;;  %329 = vst [vmem:[#allocation2 + $0x18] sm:$0xff] (!%p714_p10), %v917_v8 }
  0x26   : > { %330 = vst [vmem:[#allocation2 + $0x20] sm:$0xff] (!%p714_p10), %v917_v8  ;;  %331 = vst [vmem:[#allocation2 + $0x28] sm:$0xff] (!%p714_p10), %v917_v8 }
  0x27   : > { %332 = vst [vmem:[#allocation2 + $0x30] sm:$0xff] (!%p714_p10), %v917_v8  ;;  %333 = vst [vmem:[#allocation2 + $0x38] sm:$0xff] (!%p714_p10), %v917_v8 }
  0x29 PF: > { %v865_v9 = vld [vmem:[%s988_s7] sm:$0xff]   ;;  %v866_v10 = vld [vmem:[%s988_s7 + $0x8] sm:$0xff]   ;;  %v867_v11 = vld [vmem:[%s988_s7 + $0x10] sm:$0xff]   ;;  %p727_p11 = scmp.ne.s32.totalorder %s907_s14, 8 }
  0x2a   : > { %784 = vmatprep.subr.bf16.mxu0 %v865_v9  ;;  %808 = vmatprep.subr.bf16.mxu1 %v865_v9  ;;  %v868_v12 = vld [vmem:[%s988_s7 + $0x18] sm:$0xff]   ;;  %v873_v13 = vld [vmem:[%s990_s8] sm:$0xff]   ;;  %v874_v14 = vld [vmem:[%s990_s8 + $0x10] sm:$0xff]  }
  0x2b   : > { %785 = vmatpush3.bf16.msra.mxu0 %v865_v9  ;;  %816 = vmatpush3.bf16.msra.mxu1 %v865_v9  ;;  %v869_v15 = vld [vmem:[%s988_s7 + $0x20] sm:$0xff]   ;;  %v870_v16 = vld [vmem:[%s988_s7 + $0x28] sm:$0xff]   ;;  %v871_v17 = vld [vmem:[%s988_s7 + $0x30] sm:$0xff]  }
  0x2c   : > { %786 = vmatprep.subr.bf16.mxu0 %v866_v10  ;;  %809 = vmatprep.subr.bf16.mxu1 %v866_v10  ;;  %v872_v18 = vld [vmem:[%s988_s7 + $0x38] sm:$0xff]   ;;  %v875_v19 = vld [vmem:[%s990_s8 + $0x8] sm:$0xff]   ;;  %v336_v21 = vld [vmem:[#allocation2 + $0x10] sm:$0xff] }
  0x2d   : > { %800 = vmatprep.mubr.bf16.mxu0 %v873_v13  ;;  %804 = vmatprep.mubr.bf16.mxu1 %v874_v14  ;;  %v876_v20 = vld [vmem:[%s990_s8 + $0x18] sm:$0xff]   ;;  %v334_v23 = vld [vmem:[#allocation2] sm:$0xff]  ;;  %v335_v33 = vld [vmem:[#allocation2 + $0x8] sm:$0xff] }
  0x2e   : > { %v340_v22 = vld [vmem:[#allocation2 + $0x30] sm:$0xff]  ;;  %v338_v24 = vld [vmem:[#allocation2 + $0x20] sm:$0xff]  ;;  %v337_v27 = vld [vmem:[#allocation2 + $0x18] sm:$0xff] }
  0x2f   : > { %787 = vmatpush3.bf16.msra.mxu0 %v866_v10  ;;  %817 = vmatpush3.bf16.msra.mxu1 %v866_v10  ;;  %v341_v28 = vld [vmem:[#allocation2 + $0x38] sm:$0xff]  ;;  %v339_v34 = vld [vmem:[#allocation2 + $0x28] sm:$0xff]  ;;  %v728_v47 = vld [vmem:[%s1038_s2] ss:$0 sm:$0xff] (!%p727_p11) }
  0x30   : > { %788 = vmatprep.subr.bf16.mxu0 %v867_v11  ;;  %810 = vmatprep.subr.bf16.mxu1 %v867_v11 }
  0x33   : > { %789 = vmatpush3.bf16.msra.mxu0 %v867_v11  ;;  %818 = vmatpush3.bf16.msra.mxu1 %v867_v11 }
  0x34   : > { %790 = vmatprep.subr.bf16.mxu0 %v868_v12  ;;  %811 = vmatprep.subr.bf16.mxu1 %v868_v12 }
  0x37   : > { %791 = vmatpush3.bf16.msra.mxu0 %v868_v12  ;;  %819 = vmatpush3.bf16.msra.mxu1 %v868_v12 }
  0x38   : > { %792 = vmatprep.subr.bf16.mxu0 %v869_v15  ;;  %812 = vmatprep.subr.bf16.mxu1 %v869_v15 }
  0x3b   : > { %793 = vmatpush3.bf16.msra.mxu0 %v869_v15  ;;  %820 = vmatpush3.bf16.msra.mxu1 %v869_v15 }
  0x3c   : > { %794 = vmatprep.subr.bf16.mxu0 %v870_v16  ;;  %813 = vmatprep.subr.bf16.mxu1 %v870_v16 }
  0x3f   : > { %795 = vmatpush3.bf16.msra.mxu0 %v870_v16  ;;  %821 = vmatpush3.bf16.msra.mxu1 %v870_v16 }
  0x40   : > { %796 = vmatprep.subr.bf16.mxu0 %v871_v17  ;;  %814 = vmatprep.subr.bf16.mxu1 %v871_v17 }
  0x43   : > { %797 = vmatpush3.bf16.msra.mxu0 %v871_v17  ;;  %822 = vmatpush3.bf16.msra.mxu1 %v871_v17 }
  0x44   : > { %798 = vmatprep.subr.bf16.mxu0 %v872_v18  ;;  %815 = vmatprep.subr.bf16.mxu1 %v872_v18 }
  0x47   : > { %799 = vmatpush3.bf16.msra.mxu0 %v872_v18  ;;  %823 = vmatpush3.bf16.msra.mxu1 %v872_v18 }
  0x4a   : > { %801 = vmatmul.mubr.bf16.vlgmr.msra.gmra.mrb[0].mxu0 %v875_v19  ;;  %805 = vmatmul.mubr.bf16.vlgmr.msra.gmra.mrb[0].mxu1 %v876_v20 }
 0x11d   : > { %v802_v25 = vpop.f32.mrb[0].mxu0  ;;  %v806_v26 = vpop.f32.mrb[0].mxu1  ;;  %522 = sbr.rel (%p727_p11) target bundleno = 307 (0x133), region = 81 }
 0x11e   : > { %v505_v29 = vadd.f32 %v802_v25, %v336_v21  ;;  %v509_v30 = vadd.f32 %v806_v26, %v340_v22  ;;  %v472_v31 = vpop.f32.mrb[1].mxu0  ;;  %v488_v32 = vpop.f32.mrb[1].mxu1 }
 0x11f   : > { %v503_v35 = vadd.f32 %v472_v31, %v334_v23  ;;  %v507_v36 = vadd.f32 %v488_v32, %v338_v24  ;;  %v803_v37 = vpop.f32.mrb[2].mxu0  ;;  %v807_v38 = vpop.f32.mrb[2].mxu1 }
 0x120   : > { %513 = vst [vmem:[#allocation2 + $0x10] sm:$0xff] %v505_v29  ;;  %517 = vst [vmem:[#allocation2 + $0x30] sm:$0xff] %v509_v30  ;;  %v506_v39 = vadd.f32 %v803_v37, %v337_v27  ;;  %v510_v40 = vadd.f32 %v807_v38, %v341_v28  ;;  %v475_v41 = vpop.f32.mrb[3].mxu0  ;;  %v491_v42 = vpop.f32.mrb[3].mxu1 }
 0x121   : > { %511 = vst [vmem:[#allocation2] sm:$0xff] %v503_v35  ;;  %515 = vst [vmem:[#allocation2 + $0x20] sm:$0xff] %v507_v36  ;;  %v504_v43 = vadd.f32 %v475_v41, %v335_v33  ;;  %v508_v44 = vadd.f32 %v491_v42, %v339_v34 }
 0x122   : > { %514 = vst [vmem:[#allocation2 + $0x18] sm:$0xff] %v506_v39  ;;  %518 = vst [vmem:[#allocation2 + $0x38] sm:$0xff] %v510_v40 }
 0x123   : > { %512 = vst [vmem:[#allocation2 + $0x8] sm:$0xff] %v504_v43  ;;  %516 = vst [vmem:[#allocation2 + $0x28] sm:$0xff] %v508_v44 }
 0x127   : > { %v525_v50 = vld [vmem:[#allocation2 + $0x10] sm:$0xff] }
 0x128   : > { %v523_v45 = vld [vmem:[#allocation2] sm:$0xff]  ;;  %v540_v53 = vadd.f32 %v728_v47, %v525_v50  ;;  %v529_v57 = vld [vmem:[#allocation2 + $0x30] sm:$0xff] }
 0x129   : > { %v538_v48 = vadd.f32 %v728_v47, %v523_v45  ;;  %v526_v51 = vld [vmem:[#allocation2 + $0x18] sm:$0xff]  ;;  %v527_v52 = vld [vmem:[#allocation2 + $0x20] sm:$0xff]  ;;  %v544_v62 = vadd.f32 %v728_v47, %v529_v57 }
 0x12a   : > { %v524_v46 = vld [vmem:[#allocation2 + $0x8] sm:$0xff]  ;;  %v541_v54 = vadd.f32 %v728_v47, %v526_v51  ;;  %v542_v56 = vadd.f32 %v728_v47, %v527_v52  ;;  %v530_v58 = vld [vmem:[#allocation2 + $0x38] sm:$0xff]  ;;  %v548_v63 = vmax.f32 %v540_v53, 0.0 }
 0x12b   : > { %v539_v49 = vadd.f32 %v728_v47, %v524_v46  ;;  %v528_v55 = vld [vmem:[#allocation2 + $0x28] sm:$0xff]  ;;  %v546_v59 = vmax.f32 %v538_v48, 0.0  ;;  %v545_v2 = vadd.f32 %v728_v47, %v530_v58  ;;  %v552_v5 = vmax.f32 %v544_v62, 0.0 }
 0x12c   : > { %v543_v61 = vadd.f32 %v728_v47, %v528_v55  ;;  %v549_v0 = vmax.f32 %v541_v54, 0.0  ;;  %v550_v1 = vmax.f32 %v542_v56, 0.0 }
 0x12d   : > { %v547_v60 = vmax.f32 %v539_v49, 0.0  ;;  %v553_v7 = vmax.f32 %v545_v2, 0.0 }
 0x12e   : > { %v551_v4 = vmax.f32 %v543_v61, 0.0  ;;  %v757_v6 = vpack.c.bf16 %v549_v0, %v548_v63 }
 0x12f   : > { %v752_v3 = vpack.c.bf16 %v547_v60, %v546_v59  ;;  %v767_v9 = vpack.c.bf16 %v553_v7, %v552_v5 }
 0x130   : > { %v762_v8 = vpack.c.bf16 %v551_v4, %v550_v1  ;;  %769 = vst [vmem:[%s1039_s3 + $0x8] sm:$0xff] %v757_v6  }
 0x131   : > { %753 = vst [vmem:[%s1039_s3] sm:$0xff] %v752_v3   ;;  %771 = vst [vmem:[%s1039_s3 + $0x18] sm:$0xff] %v767_v9  }
 0x132   : > { %770 = vst [vmem:[%s1039_s3 + $0x10] sm:$0xff] %v762_v8  }
 0x133 PF: > { %s13_s16 = sadd.s32 1, %s915_s16   ;;  %s1040_s12 = smov %s903_s13 }
 0x134   : > { %p10_p12 = scmp.ge.s32.totalorder %s13_s16, 11   ;;  %s1041_s13 = smov %s973_s20 }
 0x135   : > { %s1042_s14 = smov %s911_s15  ;;  %s1043_s15 = smov %s1045_s17 }
 0x136   :  { %12 = sbr.rel (!%p10_p12) target bundleno = 3 (0x3), region = 122 }

// kernel: resnet18_forward.29
= control target key start
LH: loop header
LB: loop body
LE: loop exit
PB: predicated region body
PF: predicated region fallthrough
CT: control target
= control target key end

     0   :  { %s1065_s15 = smov 0   ;;  %s1067_s16 = smov 0   ;;  %s1175_s0 = inlined_call_operand.vmem [shape: bf16[64,1152], index: 0, kind: input, shape index: {}]   ;;  %s1176_s1 = inlined_call_operand.vmem [shape: bf16[1152,128], index: 1, kind: input, shape index: {}]   ;;  %s1177_s2 = inlined_call_operand.vmem [shape: f32[1,128], index: 2, kind: input, shape index: {}]   ;;  %s1178_s3 = inlined_call_operand.vmem [shape: bf16[64,128], index: 3, kind: input, shape index: {}]   ;;  %s1179_s4 = inlined_call_operand.vmem [shape: bf16[64,128], index: 4, kind: output, shape index: {}]  }
   0x1   :  { %s1069_s17 = smov 0   ;;  %s1071_s18 = smov 0  }
   0x2   :  { %s1073_s19 = smov 0  }
   0x3 LB: > { %s26_s20 = sadd.s32 1, %s1033_s18  ;;  %p49_p1 = scmp.ne.s32.totalorder %s1025_s16, %s1021_s15  ;;  %s1037_s19 = sphi %s1073_s19, %s14_s19   ;;  %s1033_s18 = sphi %s1071_s18, %s1183_s18   ;;  %s1029_s17 = sphi %s1069_s17, %s1182_s17   ;;  %s1025_s16 = sphi %s1067_s16, %s1181_s16   ;;  %s1021_s15 = sphi %s1065_s15, %s1180_s15  }
   0x4   : > { %p27_p0 = scmp.ge.s32.totalorder %s26_s20, 9  ;;  %p50_p2 = scmp.eq.s32.totalorder %s1037_s19, 0 }
   0x5   : > { %s42_s22 = sadd.s32 1, %s1025_s16  ;;  %p810_p5 = scmp.ge.s32.totalorder %s1037_s19, 9 }
   0x6   : > { %s1185_s20 = smov (%p27_p0, %s26_s20), 0  ;;  %p51_p3 = por %p50_p2, %p49_p1 }
   0x7   : > { %s38_s21 = ssub.s32 %s1033_s18, %s1185_s20  ;;  %203 = sbr.rel (%p810_p5) target bundleno = 23 (0x17), region = 24 }
   0x8   : > { %p40_p4 = scmp.eq.s32.totalorder %s38_s21, 0 }
   0xa   : > { %s1100_s23 = scalar_select %p40_p4, %s1025_s16, %s42_s22  }
   0xe   : > { %206 = sbr.rel (!%p51_p3) target bundleno = 23 (0x17), region = 28  ;;  %s208_s24 = sand.u32 (%p51_p3), 1, %s1025_s16  }
   0xf   : > { %s812_s25 = sshll.u32 (%p51_p3), %s1033_s18, 2  ;;  %s811_s26 = sshll.u32 (%p51_p3), %s208_s24, 5 }
  0x10   : > { %s215_s29 = scalar_lea.vmem (%p51_p3), %s1175_s0, %s812_s25  ;;  %s210_s30 = scalar_lea.vmem (%p51_p3), [#allocation3], %s811_s26 }
  0x11   : > { %v231_v0 = vld [vmem:[%s215_s29] sm:$0xf] (%p51_p3)  ;;  %v233_v1 = vld [vmem:[%s215_s29 + $0x24] sm:$0xf] (%p51_p3)  ;;  %v235_v2 = vld [vmem:[%s215_s29 + $0x48] sm:$0xf] (%p51_p3) }
  0x12   : > { %232 = vst [vmem:[%s210_s30] sm:$0xf] (%p51_p3), %v231_v0  ;;  %234 = vst [vmem:[%s210_s30 + $0x4] sm:$0xf] (%p51_p3), %v233_v1  ;;  %v237_v3 = vld [vmem:[%s215_s29 + $0x6c] sm:$0xf] (%p51_p3) }
  0x13   : > { %v239_v4 = vld [vmem:[%s215_s29 + $0x90] sm:$0xf] (%p51_p3)  ;;  %236 = vst [vmem:[%s210_s30 + $0x8] sm:$0xf] (%p51_p3), %v235_v2  ;;  %238 = vst [vmem:[%s210_s30 + $0xc] sm:$0xf] (%p51_p3), %v237_v3 }
  0x14   : > { %240 = vst [vmem:[%s210_s30 + $0x10] sm:$0xf] (%p51_p3), %v239_v4  ;;  %v241_v5 = vld [vmem:[%s215_s29 + $0xb4] sm:$0xf] (%p51_p3)  ;;  %v243_v6 = vld [vmem:[%s215_s29 + $0xd8] sm:$0xf] (%p51_p3) }
  0x15   : > { %v245_v7 = vld [vmem:[%s215_s29 + $0xfc] sm:$0xf]  ;;  %242 = vst [vmem:[%s210_s30 + $0x14] sm:$0xf] %v241_v5  ;;  %244 = vst [vmem:[%s210_s30 + $0x18] sm:$0xf] %v243_v6 }
  0x16   : > { %246 = vst [vmem:[%s210_s30 + $0x1c] sm:$0xf] %v245_v7 }
  0x17 PF: > { %p813_p6 = scmp.ge.s32.totalorder %s1037_s19, 1  ;;  %p296_p7 = scmp.lt.s32.totalorder %s1037_s19, 10 }
  0x19   : > { %p297_p8 = pnand %p813_p6, %p296_p7 }
  0x1a   : > { %s303_s5 = sand.u32 (!%p297_p8), 1, %s1021_s15   ;;  %s815_s6 = sshll.u32 (!%p297_p8), %s1029_s17, 4 }
  0x1b   : > { %300 = sbr.rel (%p297_p8) target bundleno = 309 (0x135), region = 73  ;;  %s814_s7 = sshll.u32 (!%p297_p8), %s303_s5, 5 }
  0x1c   : > { %p352_p9 = scmp.lt.s32.totalorder (!%p297_p8), %s815_s6, 143  ;;  %s1117_s12 = scalar_lea.vmem (!%p297_p8), [#allocation3], %s814_s7 }
  0x1d   : > { %p817_p10 = scmp.ne.s32.totalorder (!%p297_p8), %s1029_s17, 0 }
  0x22   : > { %s1187_s6 = smov (!%p352_p9, %s815_s6), 143  ;;  %385 = sbr.rel (%p817_p10) target bundleno = 41 (0x29), region = 81 }
  0x23   : > { %s816_s8 = sshll.u32 %s1187_s6, 2  ;;  %v1039_v8 = vmov (!%p817_p10), 0.0  }
  0x24   : > { %s1115_s11 = scalar_lea.vmem %s1176_s1, %s816_s8  ;;  %386 = vst [vmem:[#allocation2] sm:$0xff] (!%p817_p10), %v1039_v8  ;;  %387 = vst [vmem:[#allocation2 + $0x8] sm:$0xff] (!%p817_p10), %v1039_v8 }
  0x25   : > { %388 = vst [vmem:[#allocation2 + $0x10] sm:$0xff] (!%p817_p10), %v1039_v8  ;;  %389 = vst [vmem:[#allocation2 + $0x18] sm:$0xff] (!%p817_p10), %v1039_v8 }
  0x26   : > { %390 = vst [vmem:[#allocation2 + $0x20] sm:$0xff] (!%p817_p10), %v1039_v8  ;;  %391 = vst [vmem:[#allocation2 + $0x28] sm:$0xff] (!%p817_p10), %v1039_v8 }
  0x27   : > { %392 = vst [vmem:[#allocation2 + $0x30] sm:$0xff] (!%p817_p10), %v1039_v8  ;;  %393 = vst [vmem:[#allocation2 + $0x38] sm:$0xff] (!%p817_p10), %v1039_v8 }
  0x29 PF: > { %v987_v9 = vld [vmem:[%s1115_s11] sm:$0xff]   ;;  %v988_v10 = vld [vmem:[%s1115_s11 + $0x8] sm:$0xff]   ;;  %v989_v11 = vld [vmem:[%s1115_s11 + $0x10] sm:$0xff]   ;;  %p830_p11 = scmp.ne.s32.totalorder %s1029_s17, 8 }
  0x2a   : > { %906 = vmatprep.subr.bf16.mxu0 %v987_v9  ;;  %930 = vmatprep.subr.bf16.mxu1 %v987_v9  ;;  %v990_v12 = vld [vmem:[%s1115_s11 + $0x18] sm:$0xff]   ;;  %v995_v13 = vld [vmem:[%s1117_s12] sm:$0xff]   ;;  %v996_v14 = vld [vmem:[%s1117_s12 + $0x10] sm:$0xff]  }
  0x2b   : > { %907 = vmatpush3.bf16.msra.mxu0 %v987_v9  ;;  %938 = vmatpush3.bf16.msra.mxu1 %v987_v9  ;;  %v991_v15 = vld [vmem:[%s1115_s11 + $0x20] sm:$0xff]   ;;  %v992_v16 = vld [vmem:[%s1115_s11 + $0x28] sm:$0xff]   ;;  %v993_v17 = vld [vmem:[%s1115_s11 + $0x30] sm:$0xff]  }
  0x2c   : > { %908 = vmatprep.subr.bf16.mxu0 %v988_v10  ;;  %931 = vmatprep.subr.bf16.mxu1 %v988_v10  ;;  %v994_v18 = vld [vmem:[%s1115_s11 + $0x38] sm:$0xff]   ;;  %v997_v19 = vld [vmem:[%s1117_s12 + $0x8] sm:$0xff]   ;;  %v396_v21 = vld [vmem:[#allocation2 + $0x10] sm:$0xff] }
  0x2d   : > { %922 = vmatprep.mubr.bf16.mxu0 %v995_v13  ;;  %926 = vmatprep.mubr.bf16.mxu1 %v996_v14  ;;  %v998_v20 = vld [vmem:[%s1117_s12 + $0x18] sm:$0xff]   ;;  %v394_v23 = vld [vmem:[#allocation2] sm:$0xff]  ;;  %v395_v33 = vld [vmem:[#allocation2 + $0x8] sm:$0xff] }
  0x2e   : > { %v400_v22 = vld [vmem:[#allocation2 + $0x30] sm:$0xff]  ;;  %v398_v24 = vld [vmem:[#allocation2 + $0x20] sm:$0xff]  ;;  %v397_v27 = vld [vmem:[#allocation2 + $0x18] sm:$0xff] }
  0x2f   : > { %909 = vmatpush3.bf16.msra.mxu0 %v988_v10  ;;  %939 = vmatpush3.bf16.msra.mxu1 %v988_v10  ;;  %v401_v28 = vld [vmem:[#allocation2 + $0x38] sm:$0xff]  ;;  %v399_v34 = vld [vmem:[#allocation2 + $0x28] sm:$0xff]  ;;  %v831_v47 = vld [vmem:[%s1177_s2] ss:$0 sm:$0xff] (!%p830_p11) }
  0x30   : > { %910 = vmatprep.subr.bf16.mxu0 %v989_v11  ;;  %932 = vmatprep.subr.bf16.mxu1 %v989_v11  ;;  %v853_v50 = vld [vmem:[%s1178_s3] sm:$0xff] (!%p830_p11)   ;;  %v888_v57 = vld [vmem:[%s1178_s3 + $0x8] sm:$0xff] (!%p830_p11)   ;;  %v889_v0 = vld [vmem:[%s1178_s3 + $0x10] sm:$0xff] (!%p830_p11)  }
  0x31   : > { %v854_v53 = vunpack.c.l.bf16 (!%p830_p11), %v853_v50  ;;  %v855_v54 = vunpack.c.h.bf16 (!%p830_p11), %v853_v50  ;;  %v858_v60 = vunpack.c.l.bf16 (!%p830_p11), %v888_v57  ;;  %v859_v61 = vunpack.c.h.bf16 (!%p830_p11), %v888_v57  ;;  %v890_v7 = vld [vmem:[%s1178_s3 + $0x18] sm:$0xff] (!%p830_p11)  }
  0x32   : > { %v862_v5 = vunpack.c.l.bf16 (!%p830_p11), %v889_v0  ;;  %v863_v6 = vunpack.c.h.bf16 (!%p830_p11), %v889_v0 }
  0x33   : > { %911 = vmatpush3.bf16.msra.mxu0 %v989_v11  ;;  %940 = vmatpush3.bf16.msra.mxu1 %v989_v11 }
  0x34   : > { %912 = vmatprep.subr.bf16.mxu0 %v990_v12  ;;  %933 = vmatprep.subr.bf16.mxu1 %v990_v12 }
  0x37   : > { %913 = vmatpush3.bf16.msra.mxu0 %v990_v12  ;;  %941 = vmatpush3.bf16.msra.mxu1 %v990_v12 }
  0x38   : > { %914 = vmatprep.subr.bf16.mxu0 %v991_v15  ;;  %934 = vmatprep.subr.bf16.mxu1 %v991_v15 }
  0x3b   : > { %915 = vmatpush3.bf16.msra.mxu0 %v991_v15  ;;  %942 = vmatpush3.bf16.msra.mxu1 %v991_v15 }
  0x3c   : > { %916 = vmatprep.subr.bf16.mxu0 %v992_v16  ;;  %935 = vmatprep.subr.bf16.mxu1 %v992_v16 }
  0x3f   : > { %917 = vmatpush3.bf16.msra.mxu0 %v992_v16  ;;  %943 = vmatpush3.bf16.msra.mxu1 %v992_v16 }
  0x40   : > { %918 = vmatprep.subr.bf16.mxu0 %v993_v17  ;;  %936 = vmatprep.subr.bf16.mxu1 %v993_v17 }
  0x43   : > { %919 = vmatpush3.bf16.msra.mxu0 %v993_v17  ;;  %944 = vmatpush3.bf16.msra.mxu1 %v993_v17 }
  0x44   : > { %920 = vmatprep.subr.bf16.mxu0 %v994_v18  ;;  %937 = vmatprep.subr.bf16.mxu1 %v994_v18 }
  0x47   : > { %921 = vmatpush3.bf16.msra.mxu0 %v994_v18  ;;  %945 = vmatpush3.bf16.msra.mxu1 %v994_v18  ;;  %v866_v18 = vunpack.c.l.bf16 (!%p830_p11), %v890_v7 }
  0x4a   : > { %923 = vmatmul.mubr.bf16.vlgmr.msra.gmra.mrb[0].mxu0 %v997_v19  ;;  %927 = vmatmul.mubr.bf16.vlgmr.msra.gmra.mrb[0].mxu1 %v998_v20  ;;  %v867_v19 = vunpack.c.h.bf16 (!%p830_p11), %v890_v7 }
 0x11d   : > { %v924_v25 = vpop.f32.mrb[0].mxu0  ;;  %v928_v26 = vpop.f32.mrb[0].mxu1  ;;  %582 = sbr.rel (%p830_p11) target bundleno = 309 (0x135), region = 85 }
 0x11e   : > { %v565_v29 = vadd.f32 %v924_v25, %v396_v21  ;;  %v569_v30 = vadd.f32 %v928_v26, %v400_v22  ;;  %v532_v31 = vpop.f32.mrb[1].mxu0  ;;  %v548_v32 = vpop.f32.mrb[1].mxu1 }
 0x11f   : > { %v563_v35 = vadd.f32 %v532_v31, %v394_v23  ;;  %v567_v36 = vadd.f32 %v548_v32, %v398_v24  ;;  %v925_v37 = vpop.f32.mrb[2].mxu0  ;;  %v929_v38 = vpop.f32.mrb[2].mxu1 }
 0x120   : > { %573 = vst [vmem:[#allocation2 + $0x10] sm:$0xff] %v565_v29  ;;  %577 = vst [vmem:[#allocation2 + $0x30] sm:$0xff] %v569_v30  ;;  %v566_v39 = vadd.f32 %v925_v37, %v397_v27  ;;  %v570_v40 = vadd.f32 %v929_v38, %v401_v28  ;;  %v535_v41 = vpop.f32.mrb[3].mxu0  ;;  %v551_v42 = vpop.f32.mrb[3].mxu1 }
 0x121   : > { %571 = vst [vmem:[#allocation2] sm:$0xff] %v563_v35  ;;  %575 = vst [vmem:[#allocation2 + $0x20] sm:$0xff] %v567_v36  ;;  %v564_v43 = vadd.f32 %v535_v41, %v395_v33  ;;  %v568_v44 = vadd.f32 %v551_v42, %v399_v34 }
 0x122   : > { %574 = vst [vmem:[#allocation2 + $0x18] sm:$0xff] %v566_v39  ;;  %578 = vst [vmem:[#allocation2 + $0x38] sm:$0xff] %v570_v40 }
 0x123   : > { %572 = vst [vmem:[#allocation2 + $0x8] sm:$0xff] %v564_v43  ;;  %576 = vst [vmem:[#allocation2 + $0x28] sm:$0xff] %v568_v44 }
 0x127   : > { %v585_v51 = vld [vmem:[#allocation2 + $0x10] sm:$0xff] }
 0x128   : > { %v583_v45 = vld [vmem:[#allocation2] sm:$0xff]  ;;  %v600_v55 = vadd.f32 %v831_v47, %v585_v51  ;;  %v589_v1 = vld [vmem:[#allocation2 + $0x30] sm:$0xff] }
 0x129   : > { %v598_v48 = vadd.f32 %v831_v47, %v583_v45  ;;  %v586_v52 = vld [vmem:[#allocation2 + $0x18] sm:$0xff]  ;;  %v587_v58 = vld [vmem:[#allocation2 + $0x20] sm:$0xff]  ;;  %v604_v10 = vadd.f32 %v831_v47, %v589_v1 }
 0x12a   : > { %v584_v46 = vld [vmem:[#allocation2 + $0x8] sm:$0xff]  ;;  %v601_v56 = vadd.f32 %v831_v47, %v586_v52  ;;  %v602_v62 = vadd.f32 %v831_v47, %v587_v58  ;;  %v590_v2 = vld [vmem:[#allocation2 + $0x38] sm:$0xff]  ;;  %v624_v8 = vadd.f32 %v858_v60, %v600_v55 }
 0x12b   : > { %v599_v49 = vadd.f32 %v831_v47, %v584_v46  ;;  %v588_v59 = vld [vmem:[#allocation2 + $0x28] sm:$0xff]  ;;  %v622_v3 = vadd.f32 %v854_v53, %v598_v48  ;;  %v605_v11 = vadd.f32 %v831_v47, %v590_v2  ;;  %v628_v24 = vadd.f32 %v866_v18, %v604_v10 }
 0x12c   : > { %v603_v63 = vadd.f32 %v831_v47, %v588_v59  ;;  %v625_v9 = vadd.f32 %v859_v61, %v601_v56  ;;  %v626_v14 = vadd.f32 %v862_v5, %v602_v62  ;;  %v632_v16 = vmax.f32 %v624_v8, 0.0 }
 0x12d   : > { %v623_v4 = vadd.f32 %v855_v54, %v599_v49  ;;  %v630_v12 = vmax.f32 %v622_v3, 0.0  ;;  %v629_v25 = vadd.f32 %v867_v19, %v605_v11  ;;  %v636_v27 = vmax.f32 %v628_v24, 0.0 }
 0x12e   : > { %v627_v15 = vadd.f32 %v863_v6, %v603_v63  ;;  %v633_v17 = vmax.f32 %v625_v9, 0.0  ;;  %v634_v21 = vmax.f32 %v626_v14, 0.0 }
 0x12f   : > { %v631_v13 = vmax.f32 %v623_v4, 0.0  ;;  %v637_v28 = vmax.f32 %v629_v25, 0.0 }
 0x130   : > { %v635_v22 = vmax.f32 %v627_v15, 0.0  ;;  %v876_v23 = vpack.c.bf16 %v633_v17, %v632_v16 }
 0x131   : > { %v871_v20 = vpack.c.bf16 %v631_v13, %v630_v12  ;;  %v886_v29 = vpack.c.bf16 %v637_v28, %v636_v27 }
 0x132   : > { %v881_v26 = vpack.c.bf16 %v635_v22, %v634_v21  ;;  %891 = vst [vmem:[%s1179_s4 + $0x8] sm:$0xff] %v876_v23  }
 0x133   : > { %872 = vst [vmem:[%s1179_s4] sm:$0xff] %v871_v20   ;;  %893 = vst [vmem:[%s1179_s4 + $0x18] sm:$0xff] %v886_v29  }
 0x134   : > { %892 = vst [vmem:[%s1179_s4 + $0x10] sm:$0xff] %v881_v26  }
 0x135 PF: > { %s14_s19 = sadd.s32 1, %s1037_s19   ;;  %s1180_s15 = smov %s1025_s16 }
 0x136   : > { %p11_p12 = scmp.ge.s32.totalorder %s14_s19, 11   ;;  %s1181_s16 = smov %s1100_s23 }
 0x137   : > { %s1182_s17 = smov %s1033_s18  ;;  %s1183_s18 = smov %s1185_s20 }
 0x138   :  { %13 = sbr.rel (!%p11_p12) target bundleno = 3 (0x3), region = 129 }

// kernel: resnet18_forward.32
= control target key start
LH: loop header
LB: loop body
LE: loop exit
PB: predicated region body
PF: predicated region fallthrough
CT: control target
= control target key end

     0   :  { %s815_s12 = smov 0   ;;  %s817_s13 = smov 0   ;;  %s914_s0 = inlined_call_operand.vmem [shape: bf16[16,1152], index: 0, kind: input, shape index: {}]   ;;  %s915_s1 = inlined_call_operand.vmem [shape: bf16[1152,256], index: 1, kind: input, shape index: {}]   ;;  %s916_s2 = inlined_call_operand.vmem [shape: f32[1,256], index: 2, kind: input, shape index: {}]   ;;  %s917_s3 = inlined_call_operand.vmem [shape: bf16[16,256], index: 3, kind: output, shape index: {}]  }
   0x1   :  { %s819_s14 = smov 0   ;;  %s821_s15 = smov 0  }
   0x2   :  { %s823_s16 = smov 0  }
   0x3 LB: > { %s25_s17 = sadd.s32 1, %s787_s15  ;;  %p48_p1 = scmp.ne.s32.totalorder %s779_s13, %s775_s12  ;;  %s791_s16 = sphi %s823_s16, %s13_s16   ;;  %s787_s15 = sphi %s821_s15, %s921_s15   ;;  %s783_s14 = sphi %s819_s14, %s920_s14   ;;  %s779_s13 = sphi %s817_s13, %s919_s13   ;;  %s775_s12 = sphi %s815_s12, %s918_s12  }
   0x4   : > { %p26_p0 = scmp.ge.s32.totalorder %s25_s17, 9  ;;  %p49_p2 = scmp.eq.s32.totalorder %s791_s16, 0 }
   0x5   : > { %s41_s19 = sadd.s32 1, %s779_s13  ;;  %p650_p5 = scmp.ge.s32.totalorder %s791_s16, 9 }
   0x6   : > { %s923_s17 = smov (%p26_p0, %s25_s17), 0  ;;  %p50_p3 = por %p49_p2, %p48_p1 }
   0x7   : > { %s37_s18 = ssub.s32 %s787_s15, %s923_s17  ;;  %164 = sbr.rel (%p650_p5) target bundleno = 21 (0x15), region = 20 }
   0x8   : > { %p39_p4 = scmp.eq.s32.totalorder %s37_s18, 0 }
   0xa   : > { %s850_s20 = scalar_select %p39_p4, %s779_s13, %s41_s19  }
   0xe   : > { %167 = sbr.rel (!%p50_p3) target bundleno = 21 (0x15), region = 24  ;;  %s169_s21 = sand.u32 (%p50_p3), 1, %s779_s13  }
   0xf   : > { %s652_s22 = sshll.u32 (%p50_p3), %s787_s15, 2  ;;  %s651_s23 = sshll.u32 (%p50_p3), %s169_s21, 3 }
  0x10   : > { %s176_s26 = scalar_lea.vmem (%p50_p3), %s914_s0, %s652_s22  ;;  %s171_s27 = scalar_lea.vmem (%p50_p3), [#allocation3], %s651_s23 }
  0x11   : > { %v192_v0 = vld [vmem:[%s176_s26] sm:$0xf] (%p50_p3)  ;;  %v194_v1 = vld [vmem:[%s176_s26 + $0x24] sm:$0xf] (%p50_p3) }
  0x12   : > { %193 = vst [vmem:[%s171_s27] sm:$0xf] (%p50_p3), %v192_v0  ;;  %195 = vst [vmem:[%s171_s27 + $0x4] sm:$0xf] (%p50_p3), %v194_v1 }
  0x15 PF: > { %p653_p6 = scmp.ge.s32.totalorder %s791_s16, 1  ;;  %p236_p7 = scmp.lt.s32.totalorder %s791_s16, 10 }
  0x17   : > { %p237_p8 = pnand %p653_p6, %p236_p7 }
  0x18   : > { %s243_s28 = sand.u32 (!%p237_p8), 1, %s775_s12   ;;  %s655_s29 = sshll.u32 (!%p237_p8), %s783_s14, 4 }
  0x19   : > { %240 = sbr.rel (%p237_p8) target bundleno = 304 (0x130), region = 69  ;;  %s862_s30 = sshll.u32 (!%p237_p8), %s243_s28, 3 }
  0x1a   : > { %p288_p9 = scmp.lt.s32.totalorder (!%p237_p8), %s655_s29, 143  ;;  %s245_s8 = scalar_lea.vmem (!%p237_p8), [#allocation3], %s862_s30 }
  0x1b   : > { %p658_p10 = scmp.ne.s32.totalorder (!%p237_p8), %s783_s14, 0 }
  0x20   : > { %s925_s29 = smov (!%p288_p9, %s655_s29), 143  ;;  %319 = sbr.rel (%p658_p10) target bundleno = 39 (0x27), region = 77 }
  0x21   : > { %s683_s4 = sshll.u32 %s925_s29, 3  ;;  %v793_v2 = vmov (!%p658_p10), 0.0  }
  0x22   : > { %s867_s7 = scalar_lea.vmem %s915_s1, %s683_s4  ;;  %320 = vst [vmem:[#allocation2] sm:$0xff] (!%p658_p10), %v793_v2  ;;  %321 = vst [vmem:[#allocation2 + $0x8] sm:$0xff] (!%p658_p10), %v793_v2 }
  0x23   : > { %322 = vst [vmem:[#allocation2 + $0x10] sm:$0xff] (!%p658_p10), %v793_v2  ;;  %323 = vst [vmem:[#allocation2 + $0x18] sm:$0xff] (!%p658_p10), %v793_v2 }
  0x27 PF: > { %v728_v3 = vld [vmem:[%s867_s7 + $0x4] ss:$8 sps:$4 sm:$0xff]   ;;  %v730_v4 = vld [vmem:[%s867_s7] ss:$8 sps:$4 sm:$0xff]   ;;  %v794_v5 = vmov 0   ;;  %p676_p11 = scmp.ne.s32.totalorder %s783_s14, 8 }
  0x28   : > { %464 = vmatprep.mubr.bf16.mxu0 %v794_v5  ;;  %432 = vmatprep.subr.bf16.mxu0 %v728_v3  ;;  %v731_v6 = vld [vmem:[%s867_s7 + $0x14] ss:$8 sps:$4 sm:$0xff]   ;;  %v733_v7 = vld [vmem:[%s867_s7 + $0x10] ss:$8 sps:$4 sm:$0xff]   ;;  %v734_v8 = vld [vmem:[%s867_s7 + $0x24] ss:$8 sps:$4 sm:$0xff]   ;;  %v493_v33 = vlaneseq (!%p676_p11) }
  0x29   : > { %433 = vmatpush1.bf16.msra.mxu0 %v730_v4  ;;  %v736_v9 = vld [vmem:[%s867_s7 + $0x20] ss:$8 sps:$4 sm:$0xff]   ;;  %v737_v10 = vld [vmem:[%s867_s7 + $0x34] ss:$8 sps:$4 sm:$0xff]   ;;  %v739_v11 = vld [vmem:[%s867_s7 + $0x30] ss:$8 sps:$4 sm:$0xff]  }
  0x2a   : > { %434 = vmatprep.subr.bf16.mxu0 %v731_v6  ;;  %v740_v12 = vld [vmem:[%s867_s7 + $0x44] ss:$8 sps:$4 sm:$0xff]   ;;  %v742_v13 = vld [vmem:[%s867_s7 + $0x40] ss:$8 sps:$4 sm:$0xff]   ;;  %v743_v14 = vld [vmem:[%s867_s7 + $0x54] ss:$8 sps:$4 sm:$0xff]  }
  0x2b   : > { %v745_v15 = vld [vmem:[%s867_s7 + $0x50] ss:$8 sps:$4 sm:$0xff]   ;;  %v746_v16 = vld [vmem:[%s867_s7 + $0x64] ss:$8 sps:$4 sm:$0xff]   ;;  %v748_v17 = vld [vmem:[%s867_s7 + $0x60] ss:$8 sps:$4 sm:$0xff]  }
  0x2c   : > { %v749_v18 = vld [vmem:[%s867_s7 + $0x74] ss:$8 sps:$4 sm:$0xff]   ;;  %v751_v19 = vld [vmem:[%s867_s7 + $0x70] ss:$8 sps:$4 sm:$0xff]   ;;  %v752_v20 = vld [vmem:[%s245_s8] sm:$0xff]   ;;  %v494_v34 = vshrl.u32 (!%p676_p11), %v493_v33, 7 }
  0x2d   : > { %435 = vmatpush1.bf16.msra.mxu0 %v733_v7  ;;  %v324_v21 = vld [vmem:[#allocation2] sm:$0xff]  ;;  %v325_v22 = vld [vmem:[#allocation2 + $0x8] sm:$0xff]  ;;  %v326_v24 = vld [vmem:[#allocation2 + $0x10] sm:$0xff] }
  0x2e   : > { %436 = vmatprep.subr.bf16.mxu0 %v734_v8  ;;  %v327_v27 = vld [vmem:[#allocation2 + $0x18] sm:$0xff]  ;;  %v491_v35 = vld [vmem:[%s916_s2] sm:$0x3] (!%p676_p11)  ;;  %v495_v37 = vsub.s32 (!%p676_p11), 0, %v494_v34  ;;  %v499_v38 = vsub.s32 (!%p676_p11), 1, %v494_v34 }
  0x30   : > { %v496_v42 = vrot.slane (!%p676_p11), %v491_v35, %v495_v37  ;;  %v500_v43 = vrot.slane (!%p676_p11), %v491_v35, %v499_v38 }
  0x31   : > { %437 = vmatpush1.bf16.msra.mxu0 %v736_v9 }
  0x32   : > { %438 = vmatprep.subr.bf16.mxu0 %v737_v10 }
  0x35   : > { %439 = vmatpush1.bf16.msra.mxu0 %v739_v11 }
  0x36   : > { %440 = vmatprep.subr.bf16.mxu0 %v740_v12 }
  0x39   : > { %441 = vmatpush1.bf16.msra.mxu0 %v742_v13 }
  0x3a   : > { %442 = vmatprep.subr.bf16.mxu0 %v743_v14 }
  0x3d   : > { %443 = vmatpush1.bf16.msra.mxu0 %v745_v15 }
  0x3e   : > { %444 = vmatprep.subr.bf16.mxu0 %v746_v16 }
  0x41   : > { %445 = vmatpush1.bf16.msra.mxu0 %v748_v17 }
  0x42   : > { %446 = vmatprep.subr.bf16.mxu0 %v749_v18 }
  0x45   : > { %447 = vmatpush1.bf16.msra.mxu0 %v751_v19 }
  0x48   : > { %465 = vmatmul.mubr.bf16.vlgmr.msra.gmra.mrb[0].mxu0 %v752_v20 }
 0x11b   : > { %v466_v23 = vpop.f32.mrb[0].mxu0  ;;  %486 = sbr.rel (%p676_p11) target bundleno = 304 (0x130), region = 81 }
 0x11c   : > { %v475_v25 = vadd.f32 %v466_v23, %v324_v21  ;;  %v468_v26 = vpop.f32.mrb[1].mxu0 }
 0x11d   : > { %v476_v28 = vadd.f32 %v468_v26, %v325_v22  ;;  %v470_v29 = vpop.f32.mrb[2].mxu0 }
 0x11e   : > { %479 = vst [vmem:[#allocation2] sm:$0xff] %v475_v25  ;;  %v477_v30 = vadd.f32 %v470_v29, %v326_v24  ;;  %v472_v31 = vpop.f32.mrb[3].mxu0 }
 0x11f   : > { %480 = vst [vmem:[#allocation2 + $0x8] sm:$0xff] %v476_v28  ;;  %v478_v32 = vadd.f32 %v472_v31, %v327_v27 }
 0x120   : > { %481 = vst [vmem:[#allocation2 + $0x10] sm:$0xff] %v477_v30 }
 0x121   : > { %482 = vst [vmem:[#allocation2 + $0x18] sm:$0xff] %v478_v32 }
 0x125   : > { %v487_v36 = vld [vmem:[#allocation2] sm:$0xff] }
 0x126   : > { %v488_v39 = vld [vmem:[#allocation2 + $0x8] sm:$0xff]  ;;  %v503_v44 = vadd.f32 %v496_v42, %v487_v36 }
 0x127   : > { %v489_v40 = vld [vmem:[#allocation2 + $0x10] sm:$0xff]  ;;  %v504_v45 = vadd.f32 %v500_v43, %v488_v39 }
 0x128   : > { %v490_v41 = vld [vmem:[#allocation2 + $0x18] sm:$0xff]  ;;  %v505_v46 = vadd.f32 %v496_v42, %v489_v40  ;;  %v507_v48 = vmax.f32 %v503_v44, 0.0 }
 0x129   : > { %v506_v47 = vadd.f32 %v500_v43, %v490_v41  ;;  %v508_v49 = vmax.f32 %v504_v45, 0.0 }
 0x12a   : > { %v509_v50 = vmax.f32 %v505_v46, 0.0 }
 0x12b   : > { %v510_v51 = vmax.f32 %v506_v47, 0.0  ;;  %v684_v52 = vpack.c.bf16 %v508_v49, %v507_v48 }
 0x12d   : > { %v685_v53 = vpack.c.bf16 %v510_v51, %v509_v50  ;;  %523 = vst [vmem:[%s917_s3] sm:$0xff] %v684_v52 }
 0x12f   : > { %524 = vst [vmem:[%s917_s3 + $0x8] sm:$0xff] %v685_v53 }
 0x130 PF: > { %s13_s16 = sadd.s32 1, %s791_s16   ;;  %s918_s12 = smov %s779_s13 }
 0x131   : > { %p10_p12 = scmp.ge.s32.totalorder %s13_s16, 11   ;;  %s919_s13 = smov %s850_s20 }
 0x132   : > { %s920_s14 = smov %s787_s15  ;;  %s921_s15 = smov %s923_s17 }
 0x133   :  { %12 = sbr.rel (!%p10_p12) target bundleno = 3 (0x3), region = 122 }

// kernel: resnet18_forward.33
= control target key start
LH: loop header
LB: loop body
LE: loop exit
PB: predicated region body
PF: predicated region fallthrough
CT: control target
= control target key end

     0   :  { %v270_v1 = vmov 0   ;;  %v191_v18 = vlaneseq  ;;  %s351_s1 = inlined_call_operand.vmem [shape: bf16[128,256], index: 1, kind: input, shape index: {}]   ;;  %s352_s0 = inlined_call_operand.vmem [shape: bf16[16,128], index: 0, kind: input, shape index: {}]   ;;  %s353_s2 = inlined_call_operand.vmem [shape: f32[1,256], index: 2, kind: input, shape index: {}]   ;;  %s354_s3 = inlined_call_operand.vmem [shape: bf16[16,256], index: 3, kind: output, shape index: {}]  }
   0x1   :  { %v245_v0 = vld [vmem:[%s351_s1 + $0x4] ss:$8 sps:$4 sm:$0xff]   ;;  %163 = vmatprep.mubr.bf16.mxu0 %v270_v1  ;;  %v247_v2 = vld [vmem:[%s351_s1] ss:$8 sps:$4 sm:$0xff]   ;;  %v248_v3 = vld [vmem:[%s351_s1 + $0x14] ss:$8 sps:$4 sm:$0xff]  }
   0x2   :  { %131 = vmatprep.subr.bf16.mxu0 %v245_v0  ;;  %v250_v4 = vld [vmem:[%s351_s1 + $0x10] ss:$8 sps:$4 sm:$0xff]   ;;  %v251_v5 = vld [vmem:[%s351_s1 + $0x24] ss:$8 sps:$4 sm:$0xff]   ;;  %v253_v6 = vld [vmem:[%s351_s1 + $0x20] ss:$8 sps:$4 sm:$0xff]  }
   0x3   :  { %132 = vmatpush1.bf16.msra.mxu0 %v247_v2  ;;  %v254_v7 = vld [vmem:[%s351_s1 + $0x34] ss:$8 sps:$4 sm:$0xff]   ;;  %v256_v8 = vld [vmem:[%s351_s1 + $0x30] ss:$8 sps:$4 sm:$0xff]   ;;  %v257_v9 = vld [vmem:[%s351_s1 + $0x44] ss:$8 sps:$4 sm:$0xff]  }
   0x4   :  { %133 = vmatprep.subr.bf16.mxu0 %v248_v3  ;;  %v259_v10 = vld [vmem:[%s351_s1 + $0x40] ss:$8 sps:$4 sm:$0xff]   ;;  %v260_v11 = vld [vmem:[%s351_s1 + $0x54] ss:$8 sps:$4 sm:$0xff]   ;;  %v262_v12 = vld [vmem:[%s351_s1 + $0x50] ss:$8 sps:$4 sm:$0xff]  }
   0x5   :  { %v263_v13 = vld [vmem:[%s351_s1 + $0x64] ss:$8 sps:$4 sm:$0xff]   ;;  %v265_v14 = vld [vmem:[%s351_s1 + $0x60] ss:$8 sps:$4 sm:$0xff]   ;;  %v266_v15 = vld [vmem:[%s351_s1 + $0x74] ss:$8 sps:$4 sm:$0xff]  }
   0x6   :  { %v268_v16 = vld [vmem:[%s351_s1 + $0x70] ss:$8 sps:$4 sm:$0xff]   ;;  %v269_v17 = vld [vmem:[%s352_s0] sm:$0xff]   ;;  %v192_v19 = vshrl.u32 %v191_v18, 7 }
   0x7   :  { %134 = vmatpush1.bf16.msra.mxu0 %v250_v4  ;;  %v189_v21 = vld [vmem:[%s353_s2] sm:$0x3] }
   0x8   :  { %135 = vmatprep.subr.bf16.mxu0 %v251_v5  ;;  %v193_v20 = vsub.s32 0, %v192_v19  ;;  %v197_v22 = vsub.s32 1, %v192_v19 }
   0xa   :  { %v194_v23 = vrot.slane %v189_v21, %v193_v20  ;;  %v198_v24 = vrot.slane %v189_v21, %v197_v22 }
   0xb   :  { %136 = vmatpush1.bf16.msra.mxu0 %v253_v6 }
   0xc   :  { %137 = vmatprep.subr.bf16.mxu0 %v254_v7 }
   0xf   :  { %138 = vmatpush1.bf16.msra.mxu0 %v256_v8 }
  0x10   :  { %139 = vmatprep.subr.bf16.mxu0 %v257_v9 }
  0x13   :  { %140 = vmatpush1.bf16.msra.mxu0 %v259_v10 }
  0x14   :  { %141 = vmatprep.subr.bf16.mxu0 %v260_v11 }
  0x17   :  { %142 = vmatpush1.bf16.msra.mxu0 %v262_v12 }
  0x18   :  { %143 = vmatprep.subr.bf16.mxu0 %v263_v13 }
  0x1b   :  { %144 = vmatpush1.bf16.msra.mxu0 %v265_v14 }
  0x1c   :  { %145 = vmatprep.subr.bf16.mxu0 %v266_v15 }
  0x1f   :  { %146 = vmatpush1.bf16.msra.mxu0 %v268_v16 }
  0x22   :  { %164 = vmatmul.mubr.bf16.vlgmr.msra.gmra.mrb[0].mxu0 %v269_v17 }
  0xf5   :  { %v165_v25 = vpop.f32.mrb[0].mxu0 }
  0xf6   :  { %v201_v26 = vadd.f32 %v194_v23, %v165_v25  ;;  %v167_v27 = vpop.f32.mrb[1].mxu0 }
  0xf7   :  { %v202_v28 = vadd.f32 %v198_v24, %v167_v27  ;;  %v169_v29 = vpop.f32.mrb[2].mxu0 }
  0xf8   :  { %v203_v30 = vadd.f32 %v194_v23, %v169_v29  ;;  %v171_v31 = vpop.f32.mrb[3].mxu0 }
  0xf9   :  { %v242_v32 = vpack.c.bf16 %v202_v28, %v201_v26  ;;  %v204_v33 = vadd.f32 %v198_v24, %v171_v31 }
  0xfb   :  { %217 = vst [vmem:[%s354_s3] sm:$0xff] %v242_v32  ;;  %v243_v34 = vpack.c.bf16 %v204_v33, %v203_v30 }
  0xfd   :  { %218 = vst [vmem:[%s354_s3 + $0x8] sm:$0xff] %v243_v34 }

// kernel: resnet18_forward.34
= control target key start
LH: loop header
LB: loop body
LE: loop exit
PB: predicated region body
PF: predicated region fallthrough
CT: control target
= control target key end

     0   :  { %s1058_s15 = smov 0   ;;  %s1060_s16 = smov 0   ;;  %s1181_s0 = inlined_call_operand.vmem [shape: bf16[16,2304], index: 0, kind: input, shape index: {}]   ;;  %s1182_s1 = inlined_call_operand.vmem [shape: bf16[2304,256], index: 1, kind: input, shape index: {}]   ;;  %s1183_s2 = inlined_call_operand.vmem [shape: f32[1,256], index: 2, kind: input, shape index: {}]   ;;  %s1184_s3 = inlined_call_operand.vmem [shape: bf16[16,256], index: 3, kind: input, shape index: {}]   ;;  %s1185_s4 = inlined_call_operand.vmem [shape: bf16[16,256], index: 4, kind: output, shape index: {}]  }
   0x1   :  { %s1062_s17 = smov 0   ;;  %s1064_s18 = smov 0  }
   0x2   :  { %s1066_s19 = smov 0  }
   0x3 LB: > { %s26_s20 = sadd.s32 1, %s1026_s18  ;;  %p49_p1 = scmp.ne.s32.totalorder %s1018_s16, %s1014_s15  ;;  %s1030_s19 = sphi %s1066_s19, %s14_s19   ;;  %s1026_s18 = sphi %s1064_s18, %s1189_s18   ;;  %s1022_s17 = sphi %s1062_s17, %s1188_s17   ;;  %s1018_s16 = sphi %s1060_s16, %s1187_s16   ;;  %s1014_s15 = sphi %s1058_s15, %s1186_s15  }
   0x4   : > { %p27_p0 = scmp.ge.s32.totalorder %s26_s20, 9  ;;  %p50_p2 = scmp.eq.s32.totalorder %s1030_s19, 0 }
   0x5   : > { %s42_s22 = sadd.s32 1, %s1018_s16  ;;  %p845_p5 = scmp.ge.s32.totalorder %s1030_s19, 9 }
   0x6   : > { %s1191_s20 = smov (%p27_p0, %s26_s20), 0  ;;  %p51_p3 = por %p50_p2, %p49_p1 }
   0x7   : > { %s38_s21 = ssub.s32 %s1026_s18, %s1191_s20  ;;  %208 = sbr.rel (%p845_p5) target bundleno = 21 (0x15), region = 24 }
   0x8   : > { %p40_p4 = scmp.eq.s32.totalorder %s38_s21, 0 }
   0xa   : > { %s1093_s23 = scalar_select %p40_p4, %s1018_s16, %s42_s22  }
   0xe   : > { %211 = sbr.rel (!%p51_p3) target bundleno = 21 (0x15), region = 28  ;;  %s213_s24 = sand.u32 (%p51_p3), 1, %s1018_s16  }
   0xf   : > { %s896_s25 = sshll.u32 (%p51_p3), %s1026_s18, 3  ;;  %s846_s26 = sshll.u32 (%p51_p3), %s213_s24, 4 }
  0x10   : > { %s221_s29 = scalar_lea.vmem (%p51_p3), %s1181_s0, %s896_s25  ;;  %s215_s30 = scalar_lea.vmem (%p51_p3), [#allocation3], %s846_s26 }
  0x11   : > { %v251_v0 = vld [vmem:[%s221_s29] sm:$0xff] (%p51_p3)  ;;  %v253_v1 = vld [vmem:[%s221_s29 + $0x48] sm:$0xff] (%p51_p3) }
  0x12   : > { %252 = vst [vmem:[%s215_s30] sm:$0xff] (%p51_p3), %v251_v0  ;;  %254 = vst [vmem:[%s215_s30 + $0x8] sm:$0xff] (%p51_p3), %v253_v1 }
  0x15 PF: > { %p849_p6 = scmp.ge.s32.totalorder %s1030_s19, 1  ;;  %p274_p7 = scmp.lt.s32.totalorder %s1030_s19, 10 }
  0x17   : > { %p275_p8 = pnand %p849_p6, %p274_p7 }
  0x18   : > { %s281_s5 = sand.u32 (!%p275_p8), 1, %s1014_s15   ;;  %s851_s6 = sshll.u32 (!%p275_p8), %s1022_s17, 5 }
  0x19   : > { %278 = sbr.rel (%p275_p8) target bundleno = 338 (0x152), region = 70  ;;  %s1105_s7 = sshll.u32 (!%p275_p8), %s281_s5, 4 }
  0x1a   : > { %p339_p9 = scmp.lt.s32.totalorder (!%p275_p8), %s851_s6, 287  ;;  %s283_s12 = scalar_lea.vmem (!%p275_p8), [#allocation3], %s1105_s7 }
  0x1b   : > { %p854_p10 = scmp.ne.s32.totalorder (!%p275_p8), %s1022_s17, 0 }
  0x20   : > { %s1193_s6 = smov (!%p339_p9, %s851_s6), 287  ;;  %381 = sbr.rel (%p854_p10) target bundleno = 39 (0x27), region = 78 }
  0x21   : > { %s897_s8 = sshll.u32 %s1193_s6, 3  ;;  %v1032_v2 = vmov (!%p854_p10), 0.0  }
  0x22   : > { %s1110_s11 = scalar_lea.vmem %s1182_s1, %s897_s8  ;;  %382 = vst [vmem:[#allocation2] sm:$0xff] (!%p854_p10), %v1032_v2  ;;  %383 = vst [vmem:[#allocation2 + $0x8] sm:$0xff] (!%p854_p10), %v1032_v2 }
  0x23   : > { %384 = vst [vmem:[#allocation2 + $0x10] sm:$0xff] (!%p854_p10), %v1032_v2  ;;  %385 = vst [vmem:[#allocation2 + $0x18] sm:$0xff] (!%p854_p10), %v1032_v2 }
  0x27 PF: > { %v941_v3 = vld [vmem:[%s1110_s11 + $0x4] ss:$8 sps:$4 sm:$0xff]   ;;  %v943_v4 = vld [vmem:[%s1110_s11] ss:$8 sps:$4 sm:$0xff]   ;;  %v944_v5 = vld [vmem:[%s1110_s11 + $0x14] ss:$8 sps:$4 sm:$0xff]  }
  0x28   : > { %594 = vmatprep.subr.bf16.mxu0 %v941_v3  ;;  %v946_v6 = vld [vmem:[%s1110_s11 + $0x10] ss:$8 sps:$4 sm:$0xff]   ;;  %v947_v7 = vld [vmem:[%s1110_s11 + $0x24] ss:$8 sps:$4 sm:$0xff]   ;;  %v949_v8 = vld [vmem:[%s1110_s11 + $0x20] ss:$8 sps:$4 sm:$0xff]  }
  0x29   : > { %595 = vmatpush1.bf16.msra.mxu0 %v943_v4  ;;  %v950_v9 = vld [vmem:[%s1110_s11 + $0x34] ss:$8 sps:$4 sm:$0xff]   ;;  %v952_v10 = vld [vmem:[%s1110_s11 + $0x30] ss:$8 sps:$4 sm:$0xff]   ;;  %v953_v11 = vld [vmem:[%s1110_s11 + $0x44] ss:$8 sps:$4 sm:$0xff]  }
  0x2a   : > { %596 = vmatprep.subr.bf16.mxu0 %v944_v5  ;;  %v955_v12 = vld [vmem:[%s1110_s11 + $0x40] ss:$8 sps:$4 sm:$0xff]   ;;  %v956_v13 = vld [vmem:[%s1110_s11 + $0x54] ss:$8 sps:$4 sm:$0xff]   ;;  %v958_v14 = vld [vmem:[%s1110_s11 + $0x50] ss:$8 sps:$4 sm:$0xff]  }
  0x2b   : > { %v959_v15 = vld [vmem:[%s1110_s11 + $0x64] ss:$8 sps:$4 sm:$0xff]   ;;  %v961_v17 = vld [vmem:[%s1110_s11 + $0x60] ss:$8 sps:$4 sm:$0xff]   ;;  %v962_v18 = vld [vmem:[%s1110_s11 + $0x74] ss:$8 sps:$4 sm:$0xff]  }
  0x2c   : > { %v991_v16 = vld [vmem:[%s283_s12 + $0x4] ss:$8 sps:$4 sm:$0xff]   ;;  %v964_v19 = vld [vmem:[%s1110_s11 + $0x70] ss:$8 sps:$4 sm:$0xff]   ;;  %v967_v21 = vld [vmem:[%s1110_s11 + $0x80] ss:$8 sps:$4 sm:$0xff]  }
  0x2d   : > { %597 = vmatpush1.bf16.msra.mxu0 %v946_v6  ;;  %626 = vmatprep.mubr.bf16.mxu0 %v991_v16  ;;  %v965_v20 = vld [vmem:[%s1110_s11 + $0x84] ss:$8 sps:$4 sm:$0xff]   ;;  %v968_v22 = vld [vmem:[%s1110_s11 + $0x94] ss:$8 sps:$4 sm:$0xff]   ;;  %v970_v23 = vld [vmem:[%s1110_s11 + $0x90] ss:$8 sps:$4 sm:$0xff]  }
  0x2e   : > { %598 = vmatprep.subr.bf16.mxu0 %v947_v7  ;;  %v971_v24 = vld [vmem:[%s1110_s11 + $0xa4] ss:$8 sps:$4 sm:$0xff]   ;;  %v973_v25 = vld [vmem:[%s1110_s11 + $0xa0] ss:$8 sps:$4 sm:$0xff]   ;;  %v974_v26 = vld [vmem:[%s1110_s11 + $0xb4] ss:$8 sps:$4 sm:$0xff]  }
  0x2f   : > { %v976_v27 = vld [vmem:[%s1110_s11 + $0xb0] ss:$8 sps:$4 sm:$0xff]   ;;  %v977_v28 = vld [vmem:[%s1110_s11 + $0xc4] ss:$8 sps:$4 sm:$0xff]   ;;  %v979_v29 = vld [vmem:[%s1110_s11 + $0xc0] ss:$8 sps:$4 sm:$0xff]  }
  0x30   : > { %v980_v30 = vld [vmem:[%s1110_s11 + $0xd4] ss:$8 sps:$4 sm:$0xff]   ;;  %v982_v31 = vld [vmem:[%s1110_s11 + $0xd0] ss:$8 sps:$4 sm:$0xff]   ;;  %v983_v32 = vld [vmem:[%s1110_s11 + $0xe4] ss:$8 sps:$4 sm:$0xff]  }
  0x31   : > { %599 = vmatpush1.bf16.msra.mxu0 %v949_v8  ;;  %v985_v33 = vld [vmem:[%s1110_s11 + $0xe0] ss:$8 sps:$4 sm:$0xff]   ;;  %v986_v34 = vld [vmem:[%s1110_s11 + $0xf4] ss:$8 sps:$4 sm:$0xff]   ;;  %v988_v35 = vld [vmem:[%s1110_s11 + $0xf0] ss:$8 sps:$4 sm:$0xff]  }
  0x32   : > { %600 = vmatprep.subr.bf16.mxu0 %v950_v9  ;;  %v989_v36 = vld [vmem:[%s283_s12] ss:$8 sps:$4 sm:$0xff]   ;;  %p889_p11 = scmp.ne.s32.totalorder %s1022_s17, 8 }
  0x33   : > { %v386_v37 = vld [vmem:[#allocation2] sm:$0xff]  ;;  %v387_v38 = vld [vmem:[#allocation2 + $0x8] sm:$0xff]  ;;  %v388_v40 = vld [vmem:[#allocation2 + $0x10] sm:$0xff]  ;;  %v655_v49 = vlaneseq (!%p889_p11) }
  0x34   : > { %v389_v43 = vld [vmem:[#allocation2 + $0x18] sm:$0xff]  ;;  %v669_v51 = vld [vmem:[%s1184_s3] sm:$0xff] (!%p889_p11)  ;;  %v670_v53 = vld [vmem:[%s1184_s3 + $0x8] sm:$0xff] (!%p889_p11) }
  0x35   : > { %601 = vmatpush1.bf16.msra.mxu0 %v952_v10  ;;  %v656_v50 = vshrl.u32 (!%p889_p11), %v655_v49, 7  ;;  %v653_v52 = vld [vmem:[%s1183_s2] sm:$0x3] (!%p889_p11)  ;;  %v671_v58 = vunpack.c.l.bf16 (!%p889_p11), %v669_v51  ;;  %v672_v59 = vunpack.c.h.bf16 (!%p889_p11), %v669_v51  ;;  %v673_v0 = vunpack.c.l.bf16 (!%p889_p11), %v670_v53 }
  0x36   : > { %602 = vmatprep.subr.bf16.mxu0 %v953_v11  ;;  %v674_v1 = vunpack.c.h.bf16 (!%p889_p11), %v670_v53 }
  0x37   : > { %v657_v55 = vsub.s32 (!%p889_p11), 0, %v656_v50  ;;  %v661_v56 = vsub.s32 (!%p889_p11), 1, %v656_v50 }
  0x39   : > { %603 = vmatpush1.bf16.msra.mxu0 %v955_v12  ;;  %v658_v62 = vrot.slane (!%p889_p11), %v653_v52, %v657_v55  ;;  %v662_v63 = vrot.slane (!%p889_p11), %v653_v52, %v661_v56 }
  0x3a   : > { %604 = vmatprep.subr.bf16.mxu0 %v956_v13 }
  0x3d   : > { %605 = vmatpush1.bf16.msra.mxu0 %v958_v14 }
  0x3e   : > { %606 = vmatprep.subr.bf16.mxu0 %v959_v15 }
  0x41   : > { %607 = vmatpush1.bf16.msra.mxu0 %v961_v17 }
  0x42   : > { %608 = vmatprep.subr.bf16.mxu0 %v962_v18 }
  0x45   : > { %609 = vmatpush1.bf16.msra.mxu0 %v964_v19 }
  0x46   : > { %610 = vmatprep.subr.bf16.mxu0 %v965_v20 }
  0x49   : > { %611 = vmatpush1.bf16.msra.mxu0 %v967_v21 }
  0x4a   : > { %612 = vmatprep.subr.bf16.mxu0 %v968_v22 }
  0x4d   : > { %613 = vmatpush1.bf16.msra.mxu0 %v970_v23 }
  0x4e   : > { %614 = vmatprep.subr.bf16.mxu0 %v971_v24 }
  0x51   : > { %615 = vmatpush1.bf16.msra.mxu0 %v973_v25 }
  0x52   : > { %616 = vmatprep.subr.bf16.mxu0 %v974_v26 }
  0x55   : > { %617 = vmatpush1.bf16.msra.mxu0 %v976_v27 }
  0x56   : > { %618 = vmatprep.subr.bf16.mxu0 %v977_v28 }
  0x59   : > { %619 = vmatpush1.bf16.msra.mxu0 %v979_v29 }
  0x5a   : > { %620 = vmatprep.subr.bf16.mxu0 %v980_v30 }
  0x5d   : > { %621 = vmatpush1.bf16.msra.mxu0 %v982_v31 }
  0x5e   : > { %622 = vmatprep.subr.bf16.mxu0 %v983_v32 }
  0x61   : > { %623 = vmatpush1.bf16.msra.mxu0 %v985_v33 }
  0x62   : > { %624 = vmatprep.subr.bf16.mxu0 %v986_v34 }
  0x65   : > { %625 = vmatpush1.bf16.msra.mxu0 %v988_v35 }
  0x68   : > { %627 = vmatmul.mubr.bf16.vlgmr.msra.gmra.mrb[0].mxu0 %v989_v36 }
 0x13b   : > { %v628_v39 = vpop.f32.mrb[0].mxu0  ;;  %648 = sbr.rel (%p889_p11) target bundleno = 338 (0x152), region = 82 }
 0x13c   : > { %v637_v41 = vadd.f32 %v628_v39, %v386_v37  ;;  %v630_v42 = vpop.f32.mrb[1].mxu0 }
 0x13d   : > { %v638_v44 = vadd.f32 %v630_v42, %v387_v38  ;;  %v632_v45 = vpop.f32.mrb[2].mxu0 }
 0x13e   : > { %641 = vst [vmem:[#allocation2] sm:$0xff] %v637_v41  ;;  %v639_v46 = vadd.f32 %v632_v45, %v388_v40  ;;  %v634_v47 = vpop.f32.mrb[3].mxu0 }
 0x13f   : > { %642 = vst [vmem:[#allocation2 + $0x8] sm:$0xff] %v638_v44  ;;  %v640_v48 = vadd.f32 %v634_v47, %v389_v43 }
 0x140   : > { %643 = vst [vmem:[#allocation2 + $0x10] sm:$0xff] %v639_v46 }
 0x141   : > { %644 = vst [vmem:[#allocation2 + $0x18] sm:$0xff] %v640_v48 }
 0x145   : > { %v649_v54 = vld [vmem:[#allocation2] sm:$0xff] }
 0x146   : > { %v650_v57 = vld [vmem:[#allocation2 + $0x8] sm:$0xff]  ;;  %v665_v2 = vadd.f32 %v658_v62, %v649_v54 }
 0x147   : > { %v651_v60 = vld [vmem:[#allocation2 + $0x10] sm:$0xff]  ;;  %v666_v3 = vadd.f32 %v662_v63, %v650_v57 }
 0x148   : > { %v652_v61 = vld [vmem:[#allocation2 + $0x18] sm:$0xff]  ;;  %v667_v4 = vadd.f32 %v658_v62, %v651_v60  ;;  %v675_v6 = vadd.f32 %v671_v58, %v665_v2 }
 0x149   : > { %v668_v5 = vadd.f32 %v662_v63, %v652_v61  ;;  %v676_v7 = vadd.f32 %v672_v59, %v666_v3 }
 0x14a   : > { %v677_v8 = vadd.f32 %v673_v0, %v667_v4  ;;  %v679_v10 = vmax.f32 %v675_v6, 0.0 }
 0x14b   : > { %v678_v9 = vadd.f32 %v674_v1, %v668_v5  ;;  %v680_v11 = vmax.f32 %v676_v7, 0.0 }
 0x14c   : > { %v681_v12 = vmax.f32 %v677_v8, 0.0 }
 0x14d   : > { %v682_v13 = vmax.f32 %v678_v9, 0.0  ;;  %v898_v14 = vpack.c.bf16 %v680_v11, %v679_v10 }
 0x14f   : > { %v899_v15 = vpack.c.bf16 %v682_v13, %v681_v12  ;;  %695 = vst [vmem:[%s1185_s4] sm:$0xff] %v898_v14 }
 0x151   : > { %696 = vst [vmem:[%s1185_s4 + $0x8] sm:$0xff] %v899_v15 }
 0x152 PF: > { %s14_s19 = sadd.s32 1, %s1030_s19   ;;  %s1186_s15 = smov %s1018_s16 }
 0x153   : > { %p11_p12 = scmp.ge.s32.totalorder %s14_s19, 11   ;;  %s1187_s16 = smov %s1093_s23 }
 0x154   : > { %s1188_s17 = smov %s1026_s18  ;;  %s1189_s18 = smov %s1191_s20 }
 0x155   :  { %13 = sbr.rel (!%p11_p12) target bundleno = 3 (0x3), region = 126 }

// kernel: resnet18_forward.35
= control target key start
LH: loop header
LB: loop body
LE: loop exit
PB: predicated region body
PF: predicated region fallthrough
CT: control target
= control target key end

     0   :  { %s953_s12 = smov 0   ;;  %s955_s13 = smov 0   ;;  %s1070_s0 = inlined_call_operand.vmem [shape: bf16[16,2304], index: 0, kind: input, shape index: {}]   ;;  %s1071_s1 = inlined_call_operand.vmem [shape: bf16[2304,256], index: 1, kind: input, shape index: {}]   ;;  %s1072_s2 = inlined_call_operand.vmem [shape: f32[1,256], index: 2, kind: input, shape index: {}]   ;;  %s1073_s3 = inlined_call_operand.vmem [shape: bf16[16,256], index: 3, kind: output, shape index: {}]  }
   0x1   :  { %s957_s14 = smov 0   ;;  %s959_s15 = smov 0  }
   0x2   :  { %s961_s16 = smov 0  }
   0x3 LB: > { %s25_s17 = sadd.s32 1, %s926_s15  ;;  %p48_p1 = scmp.ne.s32.totalorder %s918_s13, %s914_s12  ;;  %s930_s16 = sphi %s961_s16, %s13_s16   ;;  %s926_s15 = sphi %s959_s15, %s1077_s15   ;;  %s922_s14 = sphi %s957_s14, %s1076_s14   ;;  %s918_s13 = sphi %s955_s13, %s1075_s13   ;;  %s914_s12 = sphi %s953_s12, %s1074_s12  }
   0x4   : > { %p26_p0 = scmp.ge.s32.totalorder %s25_s17, 9  ;;  %p49_p2 = scmp.eq.s32.totalorder %s930_s16, 0 }
   0x5   : > { %s41_s19 = sadd.s32 1, %s918_s13  ;;  %p745_p5 = scmp.ge.s32.totalorder %s930_s16, 9 }
   0x6   : > { %s1079_s17 = smov (%p26_p0, %s25_s17), 0  ;;  %p50_p3 = por %p49_p2, %p48_p1 }
   0x7   : > { %s37_s18 = ssub.s32 %s926_s15, %s1079_s17  ;;  %164 = sbr.rel (%p745_p5) target bundleno = 21 (0x15), region = 20 }
   0x8   : > { %p39_p4 = scmp.eq.s32.totalorder %s37_s18, 0 }
   0xa   : > { %s988_s20 = scalar_select %p39_p4, %s918_s13, %s41_s19  }
   0xe   : > { %167 = sbr.rel (!%p50_p3) target bundleno = 21 (0x15), region = 24  ;;  %s169_s21 = sand.u32 (%p50_p3), 1, %s918_s13  }
   0xf   : > { %s796_s22 = sshll.u32 (%p50_p3), %s926_s15, 3  ;;  %s746_s23 = sshll.u32 (%p50_p3), %s169_s21, 4 }
  0x10   : > { %s177_s26 = scalar_lea.vmem (%p50_p3), %s1070_s0, %s796_s22  ;;  %s171_s27 = scalar_lea.vmem (%p50_p3), [#allocation3], %s746_s23 }
  0x11   : > { %v207_v0 = vld [vmem:[%s177_s26] sm:$0xff] (%p50_p3)  ;;  %v209_v1 = vld [vmem:[%s177_s26 + $0x48] sm:$0xff] (%p50_p3) }
  0x12   : > { %208 = vst [vmem:[%s171_s27] sm:$0xff] (%p50_p3), %v207_v0  ;;  %210 = vst [vmem:[%s171_s27 + $0x8] sm:$0xff] (%p50_p3), %v209_v1 }
  0x15 PF: > { %p749_p6 = scmp.ge.s32.totalorder %s930_s16, 1  ;;  %p230_p7 = scmp.lt.s32.totalorder %s930_s16, 10 }
  0x17   : > { %p231_p8 = pnand %p749_p6, %p230_p7 }
  0x18   : > { %s237_s28 = sand.u32 (!%p231_p8), 1, %s914_s12   ;;  %s751_s29 = sshll.u32 (!%p231_p8), %s922_s14, 5 }
  0x19   : > { %234 = sbr.rel (%p231_p8) target bundleno = 336 (0x150), region = 66  ;;  %s1000_s30 = sshll.u32 (!%p231_p8), %s237_s28, 4 }
  0x1a   : > { %p283_p9 = scmp.lt.s32.totalorder (!%p231_p8), %s751_s29, 287  ;;  %s239_s8 = scalar_lea.vmem (!%p231_p8), [#allocation3], %s1000_s30 }
  0x1b   : > { %p754_p10 = scmp.ne.s32.totalorder (!%p231_p8), %s922_s14, 0 }
  0x20   : > { %s1081_s29 = smov (!%p283_p9, %s751_s29), 287  ;;  %313 = sbr.rel (%p754_p10) target bundleno = 39 (0x27), region = 74 }
  0x21   : > { %s797_s4 = sshll.u32 %s1081_s29, 3  ;;  %v932_v2 = vmov (!%p754_p10), 0.0  }
  0x22   : > { %s1005_s7 = scalar_lea.vmem %s1071_s1, %s797_s4  ;;  %314 = vst [vmem:[#allocation2] sm:$0xff] (!%p754_p10), %v932_v2  ;;  %315 = vst [vmem:[#allocation2 + $0x8] sm:$0xff] (!%p754_p10), %v932_v2 }
  0x23   : > { %316 = vst [vmem:[#allocation2 + $0x10] sm:$0xff] (!%p754_p10), %v932_v2  ;;  %317 = vst [vmem:[#allocation2 + $0x18] sm:$0xff] (!%p754_p10), %v932_v2 }
  0x27 PF: > { %v841_v3 = vld [vmem:[%s1005_s7 + $0x4] ss:$8 sps:$4 sm:$0xff]   ;;  %v843_v4 = vld [vmem:[%s1005_s7] ss:$8 sps:$4 sm:$0xff]   ;;  %v844_v5 = vld [vmem:[%s1005_s7 + $0x14] ss:$8 sps:$4 sm:$0xff]  }
  0x28   : > { %526 = vmatprep.subr.bf16.mxu0 %v841_v3  ;;  %v846_v6 = vld [vmem:[%s1005_s7 + $0x10] ss:$8 sps:$4 sm:$0xff]   ;;  %v847_v7 = vld [vmem:[%s1005_s7 + $0x24] ss:$8 sps:$4 sm:$0xff]   ;;  %v849_v8 = vld [vmem:[%s1005_s7 + $0x20] ss:$8 sps:$4 sm:$0xff]  }
  0x29   : > { %527 = vmatpush1.bf16.msra.mxu0 %v843_v4  ;;  %v850_v9 = vld [vmem:[%s1005_s7 + $0x34] ss:$8 sps:$4 sm:$0xff]   ;;  %v852_v10 = vld [vmem:[%s1005_s7 + $0x30] ss:$8 sps:$4 sm:$0xff]   ;;  %v853_v11 = vld [vmem:[%s1005_s7 + $0x44] ss:$8 sps:$4 sm:$0xff]  }
  0x2a   : > { %528 = vmatprep.subr.bf16.mxu0 %v844_v5  ;;  %v855_v12 = vld [vmem:[%s1005_s7 + $0x40] ss:$8 sps:$4 sm:$0xff]   ;;  %v856_v13 = vld [vmem:[%s1005_s7 + $0x54] ss:$8 sps:$4 sm:$0xff]   ;;  %v858_v14 = vld [vmem:[%s1005_s7 + $0x50] ss:$8 sps:$4 sm:$0xff]  }
  0x2b   : > { %v859_v15 = vld [vmem:[%s1005_s7 + $0x64] ss:$8 sps:$4 sm:$0xff]   ;;  %v861_v17 = vld [vmem:[%s1005_s7 + $0x60] ss:$8 sps:$4 sm:$0xff]   ;;  %v862_v18 = vld [vmem:[%s1005_s7 + $0x74] ss:$8 sps:$4 sm:$0xff]  }
  0x2c   : > { %v891_v16 = vld [vmem:[%s239_s8 + $0x4] ss:$8 sps:$4 sm:$0xff]   ;;  %v864_v19 = vld [vmem:[%s1005_s7 + $0x70] ss:$8 sps:$4 sm:$0xff]   ;;  %v867_v21 = vld [vmem:[%s1005_s7 + $0x80] ss:$8 sps:$4 sm:$0xff]  }
  0x2d   : > { %529 = vmatpush1.bf16.msra.mxu0 %v846_v6  ;;  %558 = vmatprep.mubr.bf16.mxu0 %v891_v16  ;;  %v865_v20 = vld [vmem:[%s1005_s7 + $0x84] ss:$8 sps:$4 sm:$0xff]   ;;  %v868_v22 = vld [vmem:[%s1005_s7 + $0x94] ss:$8 sps:$4 sm:$0xff]   ;;  %v870_v23 = vld [vmem:[%s1005_s7 + $0x90] ss:$8 sps:$4 sm:$0xff]  }
  0x2e   : > { %530 = vmatprep.subr.bf16.mxu0 %v847_v7  ;;  %v871_v24 = vld [vmem:[%s1005_s7 + $0xa4] ss:$8 sps:$4 sm:$0xff]   ;;  %v873_v25 = vld [vmem:[%s1005_s7 + $0xa0] ss:$8 sps:$4 sm:$0xff]   ;;  %v874_v26 = vld [vmem:[%s1005_s7 + $0xb4] ss:$8 sps:$4 sm:$0xff]  }
  0x2f   : > { %v876_v27 = vld [vmem:[%s1005_s7 + $0xb0] ss:$8 sps:$4 sm:$0xff]   ;;  %v877_v28 = vld [vmem:[%s1005_s7 + $0xc4] ss:$8 sps:$4 sm:$0xff]   ;;  %v879_v29 = vld [vmem:[%s1005_s7 + $0xc0] ss:$8 sps:$4 sm:$0xff]  }
  0x30   : > { %v880_v30 = vld [vmem:[%s1005_s7 + $0xd4] ss:$8 sps:$4 sm:$0xff]   ;;  %v882_v31 = vld [vmem:[%s1005_s7 + $0xd0] ss:$8 sps:$4 sm:$0xff]   ;;  %v883_v32 = vld [vmem:[%s1005_s7 + $0xe4] ss:$8 sps:$4 sm:$0xff]  }
  0x31   : > { %531 = vmatpush1.bf16.msra.mxu0 %v849_v8  ;;  %v885_v33 = vld [vmem:[%s1005_s7 + $0xe0] ss:$8 sps:$4 sm:$0xff]   ;;  %v886_v34 = vld [vmem:[%s1005_s7 + $0xf4] ss:$8 sps:$4 sm:$0xff]   ;;  %v888_v35 = vld [vmem:[%s1005_s7 + $0xf0] ss:$8 sps:$4 sm:$0xff]  }
  0x32   : > { %532 = vmatprep.subr.bf16.mxu0 %v850_v9  ;;  %v889_v36 = vld [vmem:[%s239_s8] ss:$8 sps:$4 sm:$0xff]   ;;  %p789_p11 = scmp.ne.s32.totalorder %s922_s14, 8 }
  0x33   : > { %v318_v37 = vld [vmem:[#allocation2] sm:$0xff]  ;;  %v319_v38 = vld [vmem:[#allocation2 + $0x8] sm:$0xff]  ;;  %v320_v40 = vld [vmem:[#allocation2 + $0x10] sm:$0xff]  ;;  %v587_v49 = vlaneseq (!%p789_p11) }
  0x34   : > { %v321_v43 = vld [vmem:[#allocation2 + $0x18] sm:$0xff]  ;;  %v585_v51 = vld [vmem:[%s1072_s2] sm:$0x3] (!%p789_p11) }
  0x35   : > { %533 = vmatpush1.bf16.msra.mxu0 %v852_v10  ;;  %v588_v50 = vshrl.u32 (!%p789_p11), %v587_v49, 7 }
  0x36   : > { %534 = vmatprep.subr.bf16.mxu0 %v853_v11 }
  0x37   : > { %v589_v53 = vsub.s32 (!%p789_p11), 0, %v588_v50  ;;  %v593_v54 = vsub.s32 (!%p789_p11), 1, %v588_v50 }
  0x39   : > { %535 = vmatpush1.bf16.msra.mxu0 %v855_v12  ;;  %v590_v58 = vrot.slane (!%p789_p11), %v585_v51, %v589_v53  ;;  %v594_v59 = vrot.slane (!%p789_p11), %v585_v51, %v593_v54 }
  0x3a   : > { %536 = vmatprep.subr.bf16.mxu0 %v856_v13 }
  0x3d   : > { %537 = vmatpush1.bf16.msra.mxu0 %v858_v14 }
  0x3e   : > { %538 = vmatprep.subr.bf16.mxu0 %v859_v15 }
  0x41   : > { %539 = vmatpush1.bf16.msra.mxu0 %v861_v17 }
  0x42   : > { %540 = vmatprep.subr.bf16.mxu0 %v862_v18 }
  0x45   : > { %541 = vmatpush1.bf16.msra.mxu0 %v864_v19 }
  0x46   : > { %542 = vmatprep.subr.bf16.mxu0 %v865_v20 }
  0x49   : > { %543 = vmatpush1.bf16.msra.mxu0 %v867_v21 }
  0x4a   : > { %544 = vmatprep.subr.bf16.mxu0 %v868_v22 }
  0x4d   : > { %545 = vmatpush1.bf16.msra.mxu0 %v870_v23 }
  0x4e   : > { %546 = vmatprep.subr.bf16.mxu0 %v871_v24 }
  0x51   : > { %547 = vmatpush1.bf16.msra.mxu0 %v873_v25 }
  0x52   : > { %548 = vmatprep.subr.bf16.mxu0 %v874_v26 }
  0x55   : > { %549 = vmatpush1.bf16.msra.mxu0 %v876_v27 }
  0x56   : > { %550 = vmatprep.subr.bf16.mxu0 %v877_v28 }
  0x59   : > { %551 = vmatpush1.bf16.msra.mxu0 %v879_v29 }
  0x5a   : > { %552 = vmatprep.subr.bf16.mxu0 %v880_v30 }
  0x5d   : > { %553 = vmatpush1.bf16.msra.mxu0 %v882_v31 }
  0x5e   : > { %554 = vmatprep.subr.bf16.mxu0 %v883_v32 }
  0x61   : > { %555 = vmatpush1.bf16.msra.mxu0 %v885_v33 }
  0x62   : > { %556 = vmatprep.subr.bf16.mxu0 %v886_v34 }
  0x65   : > { %557 = vmatpush1.bf16.msra.mxu0 %v888_v35 }
  0x68   : > { %559 = vmatmul.mubr.bf16.vlgmr.msra.gmra.mrb[0].mxu0 %v889_v36 }
 0x13b   : > { %v560_v39 = vpop.f32.mrb[0].mxu0  ;;  %580 = sbr.rel (%p789_p11) target bundleno = 336 (0x150), region = 78 }
 0x13c   : > { %v569_v41 = vadd.f32 %v560_v39, %v318_v37  ;;  %v562_v42 = vpop.f32.mrb[1].mxu0 }
 0x13d   : > { %v570_v44 = vadd.f32 %v562_v42, %v319_v38  ;;  %v564_v45 = vpop.f32.mrb[2].mxu0 }
 0x13e   : > { %573 = vst [vmem:[#allocation2] sm:$0xff] %v569_v41  ;;  %v571_v46 = vadd.f32 %v564_v45, %v320_v40  ;;  %v566_v47 = vpop.f32.mrb[3].mxu0 }
 0x13f   : > { %574 = vst [vmem:[#allocation2 + $0x8] sm:$0xff] %v570_v44  ;;  %v572_v48 = vadd.f32 %v566_v47, %v321_v43 }
 0x140   : > { %575 = vst [vmem:[#allocation2 + $0x10] sm:$0xff] %v571_v46 }
 0x141   : > { %576 = vst [vmem:[#allocation2 + $0x18] sm:$0xff] %v572_v48 }
 0x145   : > { %v581_v52 = vld [vmem:[#allocation2] sm:$0xff] }
 0x146   : > { %v582_v55 = vld [vmem:[#allocation2 + $0x8] sm:$0xff]  ;;  %v597_v60 = vadd.f32 %v590_v58, %v581_v52 }
 0x147   : > { %v583_v56 = vld [vmem:[#allocation2 + $0x10] sm:$0xff]  ;;  %v598_v61 = vadd.f32 %v594_v59, %v582_v55 }
 0x148   : > { %v584_v57 = vld [vmem:[#allocation2 + $0x18] sm:$0xff]  ;;  %v599_v62 = vadd.f32 %v590_v58, %v583_v56  ;;  %v601_v0 = vmax.f32 %v597_v60, 0.0 }
 0x149   : > { %v600_v63 = vadd.f32 %v594_v59, %v584_v57  ;;  %v602_v1 = vmax.f32 %v598_v61, 0.0 }
 0x14a   : > { %v603_v2 = vmax.f32 %v599_v62, 0.0 }
 0x14b   : > { %v604_v3 = vmax.f32 %v600_v63, 0.0  ;;  %v798_v4 = vpack.c.bf16 %v602_v1, %v601_v0 }
 0x14d   : > { %v799_v5 = vpack.c.bf16 %v604_v3, %v603_v2  ;;  %617 = vst [vmem:[%s1073_s3] sm:$0xff] %v798_v4 }
 0x14f   : > { %618 = vst [vmem:[%s1073_s3 + $0x8] sm:$0xff] %v799_v5 }
 0x150 PF: > { %s13_s16 = sadd.s32 1, %s930_s16   ;;  %s1074_s12 = smov %s918_s13 }
 0x151   : > { %p10_p12 = scmp.ge.s32.totalorder %s13_s16, 11   ;;  %s1075_s13 = smov %s988_s20 }
 0x152   : > { %s1076_s14 = smov %s926_s15  ;;  %s1077_s15 = smov %s1079_s17 }
 0x153   :  { %12 = sbr.rel (!%p10_p12) target bundleno = 3 (0x3), region = 119 }

// kernel: resnet18_forward.37
= control target key start
LH: loop header
LB: loop body
LE: loop exit
PB: predicated region body
PF: predicated region fallthrough
CT: control target
= control target key end

     0   :  { %s1070_s12 = smov 0   ;;  %s1072_s13 = smov 0   ;;  %s1284_s0 = inlined_call_operand.vmem [shape: bf16[8,2304], index: 0, kind: input, shape index: {}]   ;;  %s1285_s1 = inlined_call_operand.vmem [shape: bf16[2304,512], index: 1, kind: input, shape index: {}]   ;;  %s1286_s2 = inlined_call_operand.vmem [shape: f32[1,512], index: 2, kind: input, shape index: {}]   ;;  %s1287_s3 = inlined_call_operand.vmem [shape: bf16[8,512], index: 3, kind: output, shape index: {}]  }
   0x1   :  { %s1074_s14 = smov 0   ;;  %s1076_s15 = smov 0  }
   0x2   :  { %s1078_s16 = smov 0   ;;  %s1080_s17 = smov 0  }
   0x3   :  { %s1082_s18 = smov 0  }
   0x4 LB: > { %s25_s19 = sadd.s32 1, %s1039_s16  ;;  %s28_s20 = sadd.s32 1, %s1043_s17  ;;  %s1047_s18 = sphi %s1082_s18, %s13_s18   ;;  %s1043_s17 = sphi %s1080_s17, %s1293_s17   ;;  %s1039_s16 = sphi %s1078_s16, %s1292_s16   ;;  %s1035_s15 = sphi %s1076_s15, %s1291_s15   ;;  %s1031_s14 = sphi %s1074_s14, %s1290_s14   ;;  %s1027_s13 = sphi %s1072_s13, %s1289_s13   ;;  %s1023_s12 = sphi %s1070_s12, %s1288_s12  }
   0x5   : > { %p26_p0 = scmp.ge.s32.totalorder %s25_s19, 9  ;;  %p76_p1 = scmp.ne.s32.totalorder %s1027_s13, %s1023_s12 }
   0x6   : > { %p77_p2 = scmp.eq.s32.totalorder %s1047_s18, 0  ;;  %s69_s24 = sadd.s32 1, %s1027_s13 }
   0x7   : > { %s1295_s19 = smov (%p26_p0, %s25_s19), 0  ;;  %s1297_s20 = smov (!%p26_p0, %s28_s20), %s1043_s17 }
   0x8   : > { %p78_p3 = por %p77_p2, %p76_p1  ;;  %p30_p4 = scmp.ge.s32.totalorder %s1297_s20, 2 }
   0x9   : > { %s64_s21 = ssub.s32 %s1039_s16, %s1295_s19  ;;  %p832_p6 = scmp.ge.s32.totalorder %s1047_s18, 18 }
   0xa   : > { %s1299_s20 = smov (%p30_p4, %s1297_s20), 0 }
   0xb   : > { %s65_s22 = ssub.s32 %s1043_s17, %s1299_s20  ;;  %156 = sbr.rel (%p832_p6) target bundleno = 41 (0x29), region = 16 }
   0xc   : > { %s66_s23 = sor.u32 %s65_s22, %s64_s21 }
   0xd   : > { %p67_p5 = scmp.eq.s32.totalorder %s66_s23, 0 }
   0xf   : > { %s1121_s25 = scalar_select %p67_p5, %s1027_s13, %s69_s24  }
  0x12   : > { %172 = sbr.rel (!%p78_p3) target bundleno = 41 (0x29), region = 24  ;;  %s174_s26 = sand.u32 (%p78_p3), 1, %s1027_s13  }
  0x13   : > { %s835_s27 = sshll.u32 (%p78_p3), %s1043_s17, 1  ;;  %s833_s28 = sshll.u32 (%p78_p3), %s174_s26, 8 }
  0x14   : > { %s884_s29 = sshll.u32 (%p78_p3), %s1039_s16, 7  ;;  %s1135_s8 = scalar_lea.vmem (%p78_p3), [#allocation3], %s833_s28 }
  0x15   : > { %s180_s30 = sadd.s32 (%p78_p3), %s884_s29, %s835_s27 }
  0x16   : > { %s837_s4 = sshll.u32 (%p78_p3), %s180_s30, 2 }
  0x17   : > { %s1130_s7 = scalar_lea.vmem (%p78_p3), %s1285_s1, %s837_s4 }
  0x18   : > { %v272_v0 = vld [vmem:[%s1130_s7] sm:$0xff] (%p78_p3)  ;;  %v274_v1 = vld [vmem:[%s1130_s7 + $0x10] sm:$0xff] (%p78_p3) }
  0x19   : > { %v276_v2 = vld [vmem:[%s1130_s7 + $0x20] sm:$0xff]  ;;  %273 = vst [vmem:[%s1135_s8] sm:$0xff] %v272_v0  ;;  %275 = vst [vmem:[%s1135_s8 + $0x8] sm:$0xff] %v274_v1  ;;  %v278_v3 = vld [vmem:[%s1130_s7 + $0x30] sm:$0xff] }
  0x1a   : > { %277 = vst [vmem:[%s1135_s8 + $0x10] sm:$0xff] %v276_v2  ;;  %v280_v4 = vld [vmem:[%s1130_s7 + $0x40] sm:$0xff]  ;;  %v282_v5 = vld [vmem:[%s1130_s7 + $0x50] sm:$0xff]  ;;  %279 = vst [vmem:[%s1135_s8 + $0x18] sm:$0xff] %v278_v3 }
  0x1b   : > { %281 = vst [vmem:[%s1135_s8 + $0x20] sm:$0xff] %v280_v4  ;;  %283 = vst [vmem:[%s1135_s8 + $0x28] sm:$0xff] %v282_v5  ;;  %v284_v6 = vld [vmem:[%s1130_s7 + $0x60] sm:$0xff]  ;;  %v286_v7 = vld [vmem:[%s1130_s7 + $0x70] sm:$0xff] }
  0x1c   : > { %v288_v8 = vld [vmem:[%s1130_s7 + $0x80] sm:$0xff]  ;;  %285 = vst [vmem:[%s1135_s8 + $0x30] sm:$0xff] %v284_v6  ;;  %287 = vst [vmem:[%s1135_s8 + $0x38] sm:$0xff] %v286_v7  ;;  %v290_v9 = vld [vmem:[%s1130_s7 + $0x90] sm:$0xff] }
  0x1d   : > { %289 = vst [vmem:[%s1135_s8 + $0x40] sm:$0xff] %v288_v8  ;;  %v292_v10 = vld [vmem:[%s1130_s7 + $0xa0] sm:$0xff]  ;;  %v294_v11 = vld [vmem:[%s1130_s7 + $0xb0] sm:$0xff]  ;;  %291 = vst [vmem:[%s1135_s8 + $0x48] sm:$0xff] %v290_v9 }
  0x1e   : > { %293 = vst [vmem:[%s1135_s8 + $0x50] sm:$0xff] %v292_v10  ;;  %295 = vst [vmem:[%s1135_s8 + $0x58] sm:$0xff] %v294_v11  ;;  %v296_v12 = vld [vmem:[%s1130_s7 + $0xc0] sm:$0xff]  ;;  %v298_v13 = vld [vmem:[%s1130_s7 + $0xd0] sm:$0xff] }
  0x1f   : > { %v300_v14 = vld [vmem:[%s1130_s7 + $0xe0] sm:$0xff]  ;;  %297 = vst [vmem:[%s1135_s8 + $0x60] sm:$0xff] %v296_v12  ;;  %299 = vst [vmem:[%s1135_s8 + $0x68] sm:$0xff] %v298_v13  ;;  %v302_v15 = vld [vmem:[%s1130_s7 + $0xf0] sm:$0xff] }
  0x20   : > { %301 = vst [vmem:[%s1135_s8 + $0x70] sm:$0xff] %v300_v14  ;;  %v304_v16 = vld [vmem:[%s1130_s7 + $0x100] sm:$0xff]  ;;  %v306_v17 = vld [vmem:[%s1130_s7 + $0x110] sm:$0xff]  ;;  %303 = vst [vmem:[%s1135_s8 + $0x78] sm:$0xff] %v302_v15 }
  0x21   : > { %305 = vst [vmem:[%s1135_s8 + $0x80] sm:$0xff] %v304_v16  ;;  %307 = vst [vmem:[%s1135_s8 + $0x88] sm:$0xff] %v306_v17  ;;  %v308_v18 = vld [vmem:[%s1130_s7 + $0x120] sm:$0xff]  ;;  %v310_v19 = vld [vmem:[%s1130_s7 + $0x130] sm:$0xff] }
  0x22   : > { %v312_v20 = vld [vmem:[%s1130_s7 + $0x140] sm:$0xff]  ;;  %309 = vst [vmem:[%s1135_s8 + $0x90] sm:$0xff] %v308_v18  ;;  %311 = vst [vmem:[%s1135_s8 + $0x98] sm:$0xff] %v310_v19  ;;  %v314_v21 = vld [vmem:[%s1130_s7 + $0x150] sm:$0xff] }
  0x23   : > { %313 = vst [vmem:[%s1135_s8 + $0xa0] sm:$0xff] %v312_v20  ;;  %v316_v22 = vld [vmem:[%s1130_s7 + $0x160] sm:$0xff]  ;;  %v318_v23 = vld [vmem:[%s1130_s7 + $0x170] sm:$0xff]  ;;  %315 = vst [vmem:[%s1135_s8 + $0xa8] sm:$0xff] %v314_v21 }
  0x24   : > { %317 = vst [vmem:[%s1135_s8 + $0xb0] sm:$0xff] %v316_v22  ;;  %319 = vst [vmem:[%s1135_s8 + $0xb8] sm:$0xff] %v318_v23  ;;  %v320_v24 = vld [vmem:[%s1130_s7 + $0x180] sm:$0xff]  ;;  %v322_v25 = vld [vmem:[%s1130_s7 + $0x190] sm:$0xff] }
  0x25   : > { %v324_v26 = vld [vmem:[%s1130_s7 + $0x1a0] sm:$0xff]  ;;  %321 = vst [vmem:[%s1135_s8 + $0xc0] sm:$0xff] %v320_v24  ;;  %323 = vst [vmem:[%s1135_s8 + $0xc8] sm:$0xff] %v322_v25  ;;  %v326_v27 = vld [vmem:[%s1130_s7 + $0x1b0] sm:$0xff] }
  0x26   : > { %325 = vst [vmem:[%s1135_s8 + $0xd0] sm:$0xff] %v324_v26  ;;  %v328_v28 = vld [vmem:[%s1130_s7 + $0x1c0] sm:$0xff]  ;;  %v330_v29 = vld [vmem:[%s1130_s7 + $0x1d0] sm:$0xff]  ;;  %327 = vst [vmem:[%s1135_s8 + $0xd8] sm:$0xff] %v326_v27 }
  0x27   : > { %329 = vst [vmem:[%s1135_s8 + $0xe0] sm:$0xff] %v328_v28  ;;  %331 = vst [vmem:[%s1135_s8 + $0xe8] sm:$0xff] %v330_v29  ;;  %v332_v30 = vld [vmem:[%s1130_s7 + $0x1e0] sm:$0xff]  ;;  %v334_v31 = vld [vmem:[%s1130_s7 + $0x1f0] sm:$0xff] }
  0x28   : > { %333 = vst [vmem:[%s1135_s8 + $0xf0] sm:$0xff] %v332_v30  ;;  %335 = vst [vmem:[%s1135_s8 + $0xf8] sm:$0xff] %v334_v31 }
  0x29 PF: > { %p838_p7 = scmp.ge.s32.totalorder %s1047_s18, 1  ;;  %p348_p8 = scmp.lt.s32.totalorder %s1047_s18, 19 }
  0x2b   : > { %p349_p9 = pnand %p838_p7, %p348_p8 }
  0x2c   : > { %s355_s9 = sand.u32 (!%p349_p9), 1, %s1023_s12   ;;  %s840_s10 = sshll.u32 (!%p349_p9), %s1031_s14, 1 }
  0x2d   : > { %352 = sbr.rel (%p349_p9) target bundleno = 357 (0x165), region = 66  ;;  %s839_s11 = sshll.u32 (!%p349_p9), %s355_s9, 8 }
  0x2e   : > { %p398_p10 = scmp.lt.s32.totalorder (!%p349_p9), %s840_s10, 17  ;;  %s842_s21 = sshll.u32 (!%p349_p9), %s1035_s15, 1 }
  0x2f   : > { %p408_p11 = scmp.lt.s32.totalorder (!%p349_p9), %s842_s21, 3  ;;  %s1220_s5 = scalar_lea.vmem (!%p349_p9), [#allocation3], %s839_s11 }
  0x30   : > { %p845_p12 = scmp.ne.s32.totalorder (!%p349_p9), %s1031_s14, 0 }
  0x34   : > { %s1301_s10 = smov (!%p398_p10, %s840_s10), 17  ;;  %s1303_s21 = smov (!%p408_p11, %s842_s21), 3 }
  0x35   : > { %s841_s22 = sshll.u32 %s1301_s10, 2  ;;  %s410_s12 = scalar_lea.vmem %s1286_s2, %s1303_s21  ;;  %v1049_v32 = vmov (!%p845_p12), 0.0  }
  0x36   : > { %s1206_s26 = scalar_lea.vmem %s1284_s0, %s841_s22  ;;  %s844_s29 = sshll.u32 %s1303_s21, 2  ;;  %426 = vst [vmem:[#allocation2] sm:$0xff] (!%p845_p12), %v1049_v32  ;;  %427 = vst [vmem:[#allocation2 + $0x8] sm:$0xff] (!%p845_p12), %v1049_v32 }
  0x37   : > { %s1218_s15 = scalar_lea.vmem %s1287_s3, %s844_s29  ;;  %425 = sbr.rel (%p845_p12) target bundleno = 62 (0x3e), region = 74 }
  0x3e PF: > { %v943_v33 = vld [vmem:[%s1220_s5 + $0x4] ss:$8 sps:$4 sm:$0xff]   ;;  %v945_v34 = vld [vmem:[%s1220_s5] ss:$8 sps:$4 sm:$0xff]   ;;  %v946_v35 = vld [vmem:[%s1220_s5 + $0x14] ss:$8 sps:$4 sm:$0xff]  }
  0x3f   : > { %630 = vmatprep.subr.bf16.mxu0 %v943_v33  ;;  %v948_v36 = vld [vmem:[%s1220_s5 + $0x10] ss:$8 sps:$4 sm:$0xff]   ;;  %v949_v37 = vld [vmem:[%s1220_s5 + $0x24] ss:$8 sps:$4 sm:$0xff]   ;;  %v951_v38 = vld [vmem:[%s1220_s5 + $0x20] ss:$8 sps:$4 sm:$0xff]  }
  0x40   : > { %631 = vmatpush1.bf16.msra.mxu0 %v945_v34  ;;  %v952_v39 = vld [vmem:[%s1220_s5 + $0x34] ss:$8 sps:$4 sm:$0xff]   ;;  %v954_v40 = vld [vmem:[%s1220_s5 + $0x30] ss:$8 sps:$4 sm:$0xff]   ;;  %v955_v41 = vld [vmem:[%s1220_s5 + $0x44] ss:$8 sps:$4 sm:$0xff]  }
  0x41   : > { %632 = vmatprep.subr.bf16.mxu0 %v946_v35  ;;  %v957_v42 = vld [vmem:[%s1220_s5 + $0x40] ss:$8 sps:$4 sm:$0xff]   ;;  %v958_v43 = vld [vmem:[%s1220_s5 + $0x54] ss:$8 sps:$4 sm:$0xff]   ;;  %v960_v44 = vld [vmem:[%s1220_s5 + $0x50] ss:$8 sps:$4 sm:$0xff]  }
  0x42   : > { %v961_v45 = vld [vmem:[%s1220_s5 + $0x64] ss:$8 sps:$4 sm:$0xff]   ;;  %v430_v46 = vld [vmem:[%s1206_s26] sm:$0xff]  ;;  %v963_v48 = vld [vmem:[%s1220_s5 + $0x60] ss:$8 sps:$4 sm:$0xff]   ;;  %p880_p13 = scmp.ne.s32.totalorder %s1031_s14, 8 }
  0x43   : > { %v847_v47 = vcombine.high %v430_v46, %v430_v46  ;;  %v964_v49 = vld [vmem:[%s1220_s5 + $0x74] ss:$8 sps:$4 sm:$0xff]   ;;  %v966_v50 = vld [vmem:[%s1220_s5 + $0x70] ss:$8 sps:$4 sm:$0xff]   ;;  %v967_v51 = vld [vmem:[%s1220_s5 + $0x84] ss:$8 sps:$4 sm:$0xff]   ;;  %v846_v3 = vcombine.low %v430_v46, %v430_v46  ;;  %v683_v12 = vlaneseq (!%p880_p13) }
  0x44   : > { %633 = vmatpush1.bf16.msra.mxu0 %v948_v36  ;;  %v969_v52 = vld [vmem:[%s1220_s5 + $0x80] ss:$8 sps:$4 sm:$0xff]   ;;  %v970_v53 = vld [vmem:[%s1220_s5 + $0x94] ss:$8 sps:$4 sm:$0xff]   ;;  %v972_v54 = vld [vmem:[%s1220_s5 + $0x90] ss:$8 sps:$4 sm:$0xff]  }
  0x45   : > { %634 = vmatprep.subr.bf16.mxu0 %v949_v37  ;;  %662 = vmatprep.mubr.bf16.mxu0 %v847_v47  ;;  %v973_v55 = vld [vmem:[%s1220_s5 + $0xa4] ss:$8 sps:$4 sm:$0xff]   ;;  %v975_v56 = vld [vmem:[%s1220_s5 + $0xa0] ss:$8 sps:$4 sm:$0xff]   ;;  %v976_v57 = vld [vmem:[%s1220_s5 + $0xb4] ss:$8 sps:$4 sm:$0xff]  }
  0x46   : > { %v978_v58 = vld [vmem:[%s1220_s5 + $0xb0] ss:$8 sps:$4 sm:$0xff]   ;;  %v979_v59 = vld [vmem:[%s1220_s5 + $0xc4] ss:$8 sps:$4 sm:$0xff]   ;;  %v981_v60 = vld [vmem:[%s1220_s5 + $0xc0] ss:$8 sps:$4 sm:$0xff]  }
  0x47   : > { %v982_v61 = vld [vmem:[%s1220_s5 + $0xd4] ss:$8 sps:$4 sm:$0xff]   ;;  %v984_v62 = vld [vmem:[%s1220_s5 + $0xd0] ss:$8 sps:$4 sm:$0xff]   ;;  %v985_v63 = vld [vmem:[%s1220_s5 + $0xe4] ss:$8 sps:$4 sm:$0xff]  }
  0x48   : > { %635 = vmatpush1.bf16.msra.mxu0 %v951_v38  ;;  %v987_v0 = vld [vmem:[%s1220_s5 + $0xe0] ss:$8 sps:$4 sm:$0xff]   ;;  %v988_v1 = vld [vmem:[%s1220_s5 + $0xf4] ss:$8 sps:$4 sm:$0xff]   ;;  %v990_v2 = vld [vmem:[%s1220_s5 + $0xf0] ss:$8 sps:$4 sm:$0xff]  }
  0x49   : > { %636 = vmatprep.subr.bf16.mxu0 %v952_v39  ;;  %v428_v4 = vld [vmem:[#allocation2] sm:$0xff]  ;;  %v429_v5 = vld [vmem:[#allocation2 + $0x8] sm:$0xff]  ;;  %v684_v13 = vshrl.u32 (!%p880_p13), %v683_v12, 7 }
  0x4a   : > { %v681_v14 = vld [vmem:[%s410_s12] sm:$0x3] (!%p880_p13) }
  0x4b   : > { %v685_v15 = vsub.s32 (!%p880_p13), 0, %v684_v13  ;;  %v689_v16 = vsub.s32 (!%p880_p13), 1, %v684_v13 }
  0x4c   : > { %637 = vmatpush1.bf16.msra.mxu0 %v954_v40 }
  0x4d   : > { %638 = vmatprep.subr.bf16.mxu0 %v955_v41  ;;  %v686_v19 = vrot.slane (!%p880_p13), %v681_v14, %v685_v15  ;;  %v690_v20 = vrot.slane (!%p880_p13), %v681_v14, %v689_v16 }
  0x50   : > { %639 = vmatpush1.bf16.msra.mxu0 %v957_v42 }
  0x51   : > { %640 = vmatprep.subr.bf16.mxu0 %v958_v43 }
  0x54   : > { %641 = vmatpush1.bf16.msra.mxu0 %v960_v44 }
  0x55   : > { %642 = vmatprep.subr.bf16.mxu0 %v961_v45 }
  0x58   : > { %643 = vmatpush1.bf16.msra.mxu0 %v963_v48 }
  0x59   : > { %644 = vmatprep.subr.bf16.mxu0 %v964_v49 }
  0x5c   : > { %645 = vmatpush1.bf16.msra.mxu0 %v966_v50 }
  0x5d   : > { %646 = vmatprep.subr.bf16.mxu0 %v967_v51 }
  0x60   : > { %647 = vmatpush1.bf16.msra.mxu0 %v969_v52 }
  0x61   : > { %648 = vmatprep.subr.bf16.mxu0 %v970_v53 }
  0x64   : > { %649 = vmatpush1.bf16.msra.mxu0 %v972_v54 }
  0x65   : > { %650 = vmatprep.subr.bf16.mxu0 %v973_v55 }
  0x68   : > { %651 = vmatpush1.bf16.msra.mxu0 %v975_v56 }
  0x69   : > { %652 = vmatprep.subr.bf16.mxu0 %v976_v57 }
  0x6c   : > { %653 = vmatpush1.bf16.msra.mxu0 %v978_v58 }
  0x6d   : > { %654 = vmatprep.subr.bf16.mxu0 %v979_v59 }
  0x70   : > { %655 = vmatpush1.bf16.msra.mxu0 %v981_v60 }
  0x71   : > { %656 = vmatprep.subr.bf16.mxu0 %v982_v61 }
  0x74   : > { %657 = vmatpush1.bf16.msra.mxu0 %v984_v62 }
  0x75   : > { %658 = vmatprep.subr.bf16.mxu0 %v985_v63 }
  0x78   : > { %659 = vmatpush1.bf16.msra.mxu0 %v987_v0 }
  0x79   : > { %660 = vmatprep.subr.bf16.mxu0 %v988_v1 }
  0x7c   : > { %661 = vmatpush1.bf16.msra.mxu0 %v990_v2 }
  0x7f   : > { %663 = vmatmul.mubr.bf16.vlgmr.msra.gmra.mrb[0].mxu0 %v846_v3 }
 0x150   : > { %678 = sbr.rel (%p880_p13) target bundleno = 357 (0x165), region = 78 }
 0x152   : > { %v664_v6 = vpop.f32.mrb[0].mxu0 }
 0x153   : > { %v671_v7 = vadd.f32 %v664_v6, %v428_v4  ;;  %v666_v8 = vpop.f32.mrb[1].mxu0 }
 0x154   : > { %v672_v9 = vadd.f32 %v666_v8, %v429_v5  ;;  %v668_v10 = vpop.f32.mrb[2].mxu0 }
 0x155   : > { %673 = vst [vmem:[#allocation2] sm:$0xff] %v671_v7  ;;  %v669_v11 = vpop.f32.mrb[3].mxu0 }
 0x156   : > { %674 = vst [vmem:[#allocation2 + $0x8] sm:$0xff] %v672_v9 }
 0x15c   : > { %v679_v17 = vld [vmem:[#allocation2] sm:$0xff] }
 0x15d   : > { %v680_v18 = vld [vmem:[#allocation2 + $0x8] sm:$0xff]  ;;  %v693_v21 = vadd.f32 %v686_v19, %v679_v17 }
 0x15e   : > { %v694_v22 = vadd.f32 %v690_v20, %v680_v18 }
 0x15f   : > { %v695_v23 = vmax.f32 %v693_v21, 0.0 }
 0x160   : > { %v696_v24 = vmax.f32 %v694_v22, 0.0 }
 0x162   : > { %v885_v25 = vpack.c.bf16 %v696_v24, %v695_v23 }
 0x164   : > { %705 = vst [vmem:[%s1218_s15] sm:$0xff] %v885_v25 }
 0x165 PF: > { %s13_s18 = sadd.s32 1, %s1047_s18   ;;  %s1288_s12 = smov %s1027_s13 }
 0x166   : > { %p10_p0 = scmp.ge.s32.totalorder %s13_s18, 20   ;;  %s1289_s13 = smov %s1121_s25 }
 0x167   : > { %s1290_s14 = smov %s1039_s16  ;;  %s1291_s15 = smov %s1043_s17 }
 0x168   : > { %s1292_s16 = smov %s1295_s19  ;;  %s1293_s17 = smov %s1299_s20 }
 0x169   :  { %12 = sbr.rel (!%p10_p0) target bundleno = 4 (0x4), region = 119 }

// kernel: resnet18_forward.38
= control target key start
LH: loop header
LB: loop body
LE: loop exit
PB: predicated region body
PF: predicated region fallthrough
CT: control target
= control target key end

     0   :  { %s1028_s12 = smov 0   ;;  %s1030_s13 = smov 0   ;;  %s1207_s0 = inlined_call_operand.vmem [shape: bf16[8,256], index: 0, kind: input, shape index: {}]   ;;  %s1208_s1 = inlined_call_operand.vmem [shape: bf16[256,512], index: 1, kind: input, shape index: {}]   ;;  %s1209_s2 = inlined_call_operand.vmem [shape: f32[1,512], index: 2, kind: input, shape index: {}]   ;;  %s1210_s3 = inlined_call_operand.vmem [shape: bf16[8,512], index: 3, kind: output, shape index: {}]  }
   0x1   :  { %s1032_s14 = smov 0   ;;  %s1034_s15 = smov 0  }
   0x2   :  { %s1036_s16 = smov 0  }
   0x3 LB: > { %s28_s17 = sadd.s32 1, %s1002_s15  ;;  %p76_p1 = scmp.ne.s32.totalorder %s994_s13, %s990_s12  ;;  %s1006_s16 = sphi %s1036_s16, %s13_s16   ;;  %s1002_s15 = sphi %s1034_s15, %s1214_s15   ;;  %s998_s14 = sphi %s1032_s14, %s1213_s14   ;;  %s994_s13 = sphi %s1030_s13, %s1212_s13   ;;  %s990_s12 = sphi %s1028_s12, %s1211_s12  }
   0x4   : > { %p30_p0 = scmp.ge.s32.totalorder %s28_s17, 2  ;;  %p77_p2 = scmp.eq.s32.totalorder %s1006_s16, 0 }
   0x5   : > { %s69_s19 = sadd.s32 1, %s994_s13  ;;  %p830_p5 = scmp.ge.s32.totalorder %s1006_s16, 2 }
   0x6   : > { %s1216_s17 = smov (%p30_p0, %s28_s17), 0  ;;  %p78_p3 = por %p77_p2, %p76_p1 }
   0x7   : > { %s65_s18 = ssub.s32 %s1002_s15, %s1216_s17  ;;  %169 = sbr.rel (%p830_p5) target bundleno = 34 (0x22), region = 20 }
   0x8   : > { %p67_p4 = scmp.eq.s32.totalorder %s65_s18, 0 }
   0xa   : > { %s1063_s20 = scalar_select %p67_p4, %s994_s13, %s69_s19  }
   0xe   : > { %172 = sbr.rel (!%p78_p3) target bundleno = 34 (0x22), region = 24  ;;  %s174_s21 = sand.u32 (%p78_p3), 1, %s994_s13  }
   0xf   : > { %s876_s22 = sshll.u32 (%p78_p3), %s1002_s15, 3  ;;  %s831_s23 = sshll.u32 (%p78_p3), %s174_s21, 8 }
  0x10   : > { %s1071_s26 = scalar_lea.vmem (%p78_p3), %s1208_s1, %s876_s22  ;;  %s1076_s27 = scalar_lea.vmem (%p78_p3), [#allocation3], %s831_s23 }
  0x11   : > { %v272_v0 = vld [vmem:[%s1071_s26] sm:$0xff] (%p78_p3)  ;;  %v274_v1 = vld [vmem:[%s1071_s26 + $0x10] sm:$0xff] (%p78_p3) }
  0x12   : > { %v276_v2 = vld [vmem:[%s1071_s26 + $0x20] sm:$0xff] (%p78_p3)  ;;  %273 = vst [vmem:[%s1076_s27] sm:$0xff] (%p78_p3), %v272_v0  ;;  %275 = vst [vmem:[%s1076_s27 + $0x8] sm:$0xff] (%p78_p3), %v274_v1  ;;  %v278_v3 = vld [vmem:[%s1071_s26 + $0x30] sm:$0xff] (%p78_p3) }
  0x13   : > { %277 = vst [vmem:[%s1076_s27 + $0x10] sm:$0xff] (%p78_p3), %v276_v2  ;;  %v280_v4 = vld [vmem:[%s1071_s26 + $0x40] sm:$0xff] (%p78_p3)  ;;  %v282_v5 = vld [vmem:[%s1071_s26 + $0x50] sm:$0xff] (%p78_p3)  ;;  %279 = vst [vmem:[%s1076_s27 + $0x18] sm:$0xff] (%p78_p3), %v278_v3 }
  0x14   : > { %281 = vst [vmem:[%s1076_s27 + $0x20] sm:$0xff] (%p78_p3), %v280_v4  ;;  %283 = vst [vmem:[%s1076_s27 + $0x28] sm:$0xff] (%p78_p3), %v282_v5  ;;  %v284_v6 = vld [vmem:[%s1071_s26 + $0x60] sm:$0xff] (%p78_p3)  ;;  %v286_v7 = vld [vmem:[%s1071_s26 + $0x70] sm:$0xff] (%p78_p3) }
  0x15   : > { %v288_v8 = vld [vmem:[%s1071_s26 + $0x80] sm:$0xff]  ;;  %285 = vst [vmem:[%s1076_s27 + $0x30] sm:$0xff] %v284_v6  ;;  %287 = vst [vmem:[%s1076_s27 + $0x38] sm:$0xff] %v286_v7  ;;  %v290_v9 = vld [vmem:[%s1071_s26 + $0x90] sm:$0xff] }
  0x16   : > { %289 = vst [vmem:[%s1076_s27 + $0x40] sm:$0xff] %v288_v8  ;;  %v292_v10 = vld [vmem:[%s1071_s26 + $0xa0] sm:$0xff]  ;;  %v294_v11 = vld [vmem:[%s1071_s26 + $0xb0] sm:$0xff]  ;;  %291 = vst [vmem:[%s1076_s27 + $0x48] sm:$0xff] %v290_v9 }
  0x17   : > { %293 = vst [vmem:[%s1076_s27 + $0x50] sm:$0xff] %v292_v10  ;;  %295 = vst [vmem:[%s1076_s27 + $0x58] sm:$0xff] %v294_v11  ;;  %v296_v12 = vld [vmem:[%s1071_s26 + $0xc0] sm:$0xff]  ;;  %v298_v13 = vld [vmem:[%s1071_s26 + $0xd0] sm:$0xff] }
  0x18   : > { %v300_v14 = vld [vmem:[%s1071_s26 + $0xe0] sm:$0xff]  ;;  %297 = vst [vmem:[%s1076_s27 + $0x60] sm:$0xff] %v296_v12  ;;  %299 = vst [vmem:[%s1076_s27 + $0x68] sm:$0xff] %v298_v13  ;;  %v302_v15 = vld [vmem:[%s1071_s26 + $0xf0] sm:$0xff] }
  0x19   : > { %301 = vst [vmem:[%s1076_s27 + $0x70] sm:$0xff] %v300_v14  ;;  %v304_v16 = vld [vmem:[%s1071_s26 + $0x100] sm:$0xff]  ;;  %v306_v17 = vld [vmem:[%s1071_s26 + $0x110] sm:$0xff]  ;;  %303 = vst [vmem:[%s1076_s27 + $0x78] sm:$0xff] %v302_v15 }
  0x1a   : > { %305 = vst [vmem:[%s1076_s27 + $0x80] sm:$0xff] %v304_v16  ;;  %307 = vst [vmem:[%s1076_s27 + $0x88] sm:$0xff] %v306_v17  ;;  %v308_v18 = vld [vmem:[%s1071_s26 + $0x120] sm:$0xff]  ;;  %v310_v19 = vld [vmem:[%s1071_s26 + $0x130] sm:$0xff] }
  0x1b   : > { %v312_v20 = vld [vmem:[%s1071_s26 + $0x140] sm:$0xff]  ;;  %309 = vst [vmem:[%s1076_s27 + $0x90] sm:$0xff] %v308_v18  ;;  %311 = vst [vmem:[%s1076_s27 + $0x98] sm:$0xff] %v310_v19  ;;  %v314_v21 = vld [vmem:[%s1071_s26 + $0x150] sm:$0xff] }
  0x1c   : > { %313 = vst [vmem:[%s1076_s27 + $0xa0] sm:$0xff] %v312_v20  ;;  %v316_v22 = vld [vmem:[%s1071_s26 + $0x160] sm:$0xff]  ;;  %v318_v23 = vld [vmem:[%s1071_s26 + $0x170] sm:$0xff]  ;;  %315 = vst [vmem:[%s1076_s27 + $0xa8] sm:$0xff] %v314_v21 }
  0x1d   : > { %317 = vst [vmem:[%s1076_s27 + $0xb0] sm:$0xff] %v316_v22  ;;  %319 = vst [vmem:[%s1076_s27 + $0xb8] sm:$0xff] %v318_v23  ;;  %v320_v24 = vld [vmem:[%s1071_s26 + $0x180] sm:$0xff]  ;;  %v322_v25 = vld [vmem:[%s1071_s26 + $0x190] sm:$0xff] }
  0x1e   : > { %v324_v26 = vld [vmem:[%s1071_s26 + $0x1a0] sm:$0xff]  ;;  %321 = vst [vmem:[%s1076_s27 + $0xc0] sm:$0xff] %v320_v24  ;;  %323 = vst [vmem:[%s1076_s27 + $0xc8] sm:$0xff] %v322_v25  ;;  %v326_v27 = vld [vmem:[%s1071_s26 + $0x1b0] sm:$0xff] }
  0x1f   : > { %325 = vst [vmem:[%s1076_s27 + $0xd0] sm:$0xff] %v324_v26  ;;  %v328_v28 = vld [vmem:[%s1071_s26 + $0x1c0] sm:$0xff]  ;;  %v330_v29 = vld [vmem:[%s1071_s26 + $0x1d0] sm:$0xff]  ;;  %327 = vst [vmem:[%s1076_s27 + $0xd8] sm:$0xff] %v326_v27 }
  0x20   : > { %329 = vst [vmem:[%s1076_s27 + $0xe0] sm:$0xff] %v328_v28  ;;  %331 = vst [vmem:[%s1076_s27 + $0xe8] sm:$0xff] %v330_v29  ;;  %v332_v30 = vld [vmem:[%s1071_s26 + $0x1e0] sm:$0xff]  ;;  %v334_v31 = vld [vmem:[%s1071_s26 + $0x1f0] sm:$0xff] }
  0x21   : > { %333 = vst [vmem:[%s1076_s27 + $0xf0] sm:$0xff] %v332_v30  ;;  %335 = vst [vmem:[%s1076_s27 + $0xf8] sm:$0xff] %v334_v31 }
  0x22 PF: > { %p834_p6 = scmp.ge.s32.totalorder %s1006_s16, 1  ;;  %p348_p7 = scmp.lt.s32.totalorder %s1006_s16, 3 }
  0x24   : > { %p349_p8 = pnand %p834_p6, %p348_p7 }
  0x25   : > { %s355_s28 = sand.u32 (!%p349_p8), 1, %s990_s12   ;;  %v1145_v32 = vld [vmem:[%s1207_s0] sm:$0xff] (!%p349_p8)  ;;  %s836_s6 = sshll.u32 (!%p349_p8), %s998_s14, 1  ;;  %v682_v3 = vlaneseq (!%p349_p8) }
  0x26   : > { %352 = sbr.rel (%p349_p8) target bundleno = 323 (0x143), region = 66  ;;  %s835_s4 = sshll.u32 (!%p349_p8), %s355_s28, 8  ;;  %v840_v33 = vcombine.high (!%p349_p8), %v1145_v32, %v1145_v32  ;;  %v839_v2 = vcombine.low (!%p349_p8), %v1145_v32, %v1145_v32 }
  0x27   : > { %s1149_s5 = scalar_lea.vmem (!%p349_p8), [#allocation3], %s835_s4  ;;  %p408_p9 = scmp.lt.s32.totalorder (!%p349_p8), %s836_s6, 3  ;;  %v683_v4 = vshrl.u32 (!%p349_p8), %v682_v3, 7 }
  0x28   : > { %v918_v34 = vld [vmem:[%s1149_s5 + $0x4] ss:$8 sps:$4 sm:$0xff] (!%p349_p8)   ;;  %662 = vmatprep.mubr.bf16.mxu0 (!%p349_p8), %v840_v33  ;;  %v920_v35 = vld [vmem:[%s1149_s5] ss:$8 sps:$4 sm:$0xff] (!%p349_p8)   ;;  %v921_v36 = vld [vmem:[%s1149_s5 + $0x14] ss:$8 sps:$4 sm:$0xff] (!%p349_p8)  }
  0x29   : > { %630 = vmatprep.subr.bf16.mxu0 (!%p349_p8), %v918_v34  ;;  %v923_v37 = vld [vmem:[%s1149_s5 + $0x10] ss:$8 sps:$4 sm:$0xff] (!%p349_p8)   ;;  %v924_v38 = vld [vmem:[%s1149_s5 + $0x24] ss:$8 sps:$4 sm:$0xff] (!%p349_p8)   ;;  %v926_v39 = vld [vmem:[%s1149_s5 + $0x20] ss:$8 sps:$4 sm:$0xff] (!%p349_p8)  }
  0x2a   : > { %631 = vmatpush1.bf16.msra.mxu0 (!%p349_p8), %v920_v35  ;;  %v927_v40 = vld [vmem:[%s1149_s5 + $0x34] ss:$8 sps:$4 sm:$0xff] (!%p349_p8)   ;;  %v929_v41 = vld [vmem:[%s1149_s5 + $0x30] ss:$8 sps:$4 sm:$0xff] (!%p349_p8)   ;;  %v930_v42 = vld [vmem:[%s1149_s5 + $0x44] ss:$8 sps:$4 sm:$0xff] (!%p349_p8)  }
  0x2b   : > { %632 = vmatprep.subr.bf16.mxu0 (!%p349_p8), %v921_v36  ;;  %v932_v43 = vld [vmem:[%s1149_s5 + $0x40] ss:$8 sps:$4 sm:$0xff] (!%p349_p8)   ;;  %v933_v44 = vld [vmem:[%s1149_s5 + $0x54] ss:$8 sps:$4 sm:$0xff] (!%p349_p8)   ;;  %v935_v45 = vld [vmem:[%s1149_s5 + $0x50] ss:$8 sps:$4 sm:$0xff] (!%p349_p8)  }
  0x2c   : > { %v936_v46 = vld [vmem:[%s1149_s5 + $0x64] ss:$8 sps:$4 sm:$0xff] (!%p349_p8)   ;;  %v938_v47 = vld [vmem:[%s1149_s5 + $0x60] ss:$8 sps:$4 sm:$0xff] (!%p349_p8)   ;;  %v939_v48 = vld [vmem:[%s1149_s5 + $0x74] ss:$8 sps:$4 sm:$0xff] (!%p349_p8)  }
  0x2d   : > { %v941_v49 = vld [vmem:[%s1149_s5 + $0x70] ss:$8 sps:$4 sm:$0xff]   ;;  %v942_v50 = vld [vmem:[%s1149_s5 + $0x84] ss:$8 sps:$4 sm:$0xff]   ;;  %v944_v51 = vld [vmem:[%s1149_s5 + $0x80] ss:$8 sps:$4 sm:$0xff]  }
  0x2e   : > { %633 = vmatpush1.bf16.msra.mxu0 %v923_v37  ;;  %v945_v52 = vld [vmem:[%s1149_s5 + $0x94] ss:$8 sps:$4 sm:$0xff]   ;;  %v947_v53 = vld [vmem:[%s1149_s5 + $0x90] ss:$8 sps:$4 sm:$0xff]   ;;  %v948_v54 = vld [vmem:[%s1149_s5 + $0xa4] ss:$8 sps:$4 sm:$0xff]  }
  0x2f   : > { %634 = vmatprep.subr.bf16.mxu0 %v924_v38  ;;  %v950_v55 = vld [vmem:[%s1149_s5 + $0xa0] ss:$8 sps:$4 sm:$0xff]   ;;  %v951_v56 = vld [vmem:[%s1149_s5 + $0xb4] ss:$8 sps:$4 sm:$0xff]   ;;  %v953_v57 = vld [vmem:[%s1149_s5 + $0xb0] ss:$8 sps:$4 sm:$0xff]  }
  0x30   : > { %v954_v58 = vld [vmem:[%s1149_s5 + $0xc4] ss:$8 sps:$4 sm:$0xff]   ;;  %v956_v59 = vld [vmem:[%s1149_s5 + $0xc0] ss:$8 sps:$4 sm:$0xff]   ;;  %v957_v60 = vld [vmem:[%s1149_s5 + $0xd4] ss:$8 sps:$4 sm:$0xff]  }
  0x31   : > { %v959_v61 = vld [vmem:[%s1149_s5 + $0xd0] ss:$8 sps:$4 sm:$0xff]   ;;  %v960_v62 = vld [vmem:[%s1149_s5 + $0xe4] ss:$8 sps:$4 sm:$0xff]   ;;  %v962_v63 = vld [vmem:[%s1149_s5 + $0xe0] ss:$8 sps:$4 sm:$0xff]  }
  0x32   : > { %635 = vmatpush1.bf16.msra.mxu0 %v926_v39  ;;  %v963_v0 = vld [vmem:[%s1149_s5 + $0xf4] ss:$8 sps:$4 sm:$0xff]   ;;  %v965_v1 = vld [vmem:[%s1149_s5 + $0xf0] ss:$8 sps:$4 sm:$0xff]   ;;  %s1218_s6 = smov (!%p408_p9, %s836_s6), 3  ;;  %v684_v5 = vsub.s32 0, %v683_v4 }
  0x33   : > { %636 = vmatprep.subr.bf16.mxu0 %v927_v40  ;;  %s410_s9 = scalar_lea.vmem %s1209_s2, %s1218_s6  ;;  %v688_v7 = vsub.s32 1, %v683_v4  ;;  %s838_s10 = sshll.u32 %s1218_s6, 2 }
  0x34   : > { %v680_v6 = vld [vmem:[%s410_s9] sm:$0x3]  ;;  %s420_s14 = scalar_lea.vmem %s1210_s3, %s838_s10 }
  0x35   : > { %v685_v8 = vrot.slane %v680_v6, %v684_v5  ;;  %v689_v9 = vrot.slane %v680_v6, %v688_v7 }
  0x36   : > { %637 = vmatpush1.bf16.msra.mxu0 %v929_v41 }
  0x37   : > { %638 = vmatprep.subr.bf16.mxu0 %v930_v42 }
  0x3a   : > { %639 = vmatpush1.bf16.msra.mxu0 %v932_v43 }
  0x3b   : > { %640 = vmatprep.subr.bf16.mxu0 %v933_v44 }
  0x3e   : > { %641 = vmatpush1.bf16.msra.mxu0 %v935_v45 }
  0x3f   : > { %642 = vmatprep.subr.bf16.mxu0 %v936_v46 }
  0x42   : > { %643 = vmatpush1.bf16.msra.mxu0 %v938_v47 }
  0x43   : > { %644 = vmatprep.subr.bf16.mxu0 %v939_v48 }
  0x46   : > { %645 = vmatpush1.bf16.msra.mxu0 %v941_v49 }
  0x47   : > { %646 = vmatprep.subr.bf16.mxu0 %v942_v50 }
  0x4a   : > { %647 = vmatpush1.bf16.msra.mxu0 %v944_v51 }
  0x4b   : > { %648 = vmatprep.subr.bf16.mxu0 %v945_v52 }
  0x4e   : > { %649 = vmatpush1.bf16.msra.mxu0 %v947_v53 }
  0x4f   : > { %650 = vmatprep.subr.bf16.mxu0 %v948_v54 }
  0x52   : > { %651 = vmatpush1.bf16.msra.mxu0 %v950_v55 }
  0x53   : > { %652 = vmatprep.subr.bf16.mxu0 %v951_v56 }
  0x56   : > { %653 = vmatpush1.bf16.msra.mxu0 %v953_v57 }
  0x57   : > { %654 = vmatprep.subr.bf16.mxu0 %v954_v58 }
  0x5a   : > { %655 = vmatpush1.bf16.msra.mxu0 %v956_v59 }
  0x5b   : > { %656 = vmatprep.subr.bf16.mxu0 %v957_v60 }
  0x5e   : > { %657 = vmatpush1.bf16.msra.mxu0 %v959_v61 }
  0x5f   : > { %658 = vmatprep.subr.bf16.mxu0 %v960_v62 }
  0x62   : > { %659 = vmatpush1.bf16.msra.mxu0 %v962_v63 }
  0x63   : > { %660 = vmatprep.subr.bf16.mxu0 %v963_v0 }
  0x66   : > { %661 = vmatpush1.bf16.msra.mxu0 %v965_v1 }
  0x69   : > { %663 = vmatmul.mubr.bf16.vlgmr.msra.gmra.mrb[0].mxu0 %v839_v2 }
 0x13c   : > { %v664_v10 = vpop.f32.mrb[0].mxu0 }
 0x13d   : > { %v692_v11 = vadd.f32 %v685_v8, %v664_v10  ;;  %v666_v12 = vpop.f32.mrb[1].mxu0 }
 0x13e   : > { %v693_v13 = vadd.f32 %v689_v9, %v666_v12  ;;  %v668_v14 = vpop.f32.mrb[2].mxu0 }
 0x13f   : > { %v669_v15 = vpop.f32.mrb[3].mxu0 }
 0x140   : > { %v877_v16 = vpack.c.bf16 %v693_v13, %v692_v11 }
 0x142   : > { %702 = vst [vmem:[%s420_s14] sm:$0xff] %v877_v16 }
 0x143 PF: > { %s13_s16 = sadd.s32 1, %s1006_s16   ;;  %s1211_s12 = smov %s994_s13 }
 0x144   : > { %p10_p10 = scmp.ge.s32.totalorder %s13_s16, 4   ;;  %s1212_s13 = smov %s1063_s20 }
 0x145   : > { %s1213_s14 = smov %s1002_s15  ;;  %s1214_s15 = smov %s1216_s17 }
 0x146   :  { %12 = sbr.rel (!%p10_p10) target bundleno = 3 (0x3), region = 119 }

// kernel: resnet18_forward.39
= control target key start
LH: loop header
LB: loop body
LE: loop exit
PB: predicated region body
PF: predicated region fallthrough
CT: control target
= control target key end

     0   :  { %s1163_s15 = smov 0   ;;  %s1165_s16 = smov 0   ;;  %s1383_s0 = inlined_call_operand.vmem [shape: bf16[8,4608], index: 0, kind: input, shape index: {}]   ;;  %s1384_s1 = inlined_call_operand.vmem [shape: bf16[4608,512], index: 1, kind: input, shape index: {}]   ;;  %s1385_s2 = inlined_call_operand.vmem [shape: f32[1,512], index: 2, kind: input, shape index: {}]   ;;  %s1386_s3 = inlined_call_operand.vmem [shape: bf16[8,512], index: 3, kind: input, shape index: {}]   ;;  %s1387_s4 = inlined_call_operand.vmem [shape: bf16[8,512], index: 4, kind: output, shape index: {}]  }
   0x1   :  { %s1167_s17 = smov 0   ;;  %s1169_s18 = smov 0  }
   0x2   :  { %s1171_s19 = smov 0   ;;  %s1173_s20 = smov 0  }
   0x3   :  { %s1175_s21 = smov 0  }
   0x4 LB: > { %s26_s22 = sadd.s32 1, %s1127_s19  ;;  %s29_s23 = sadd.s32 1, %s1131_s20  ;;  %s1135_s21 = sphi %s1175_s21, %s14_s21   ;;  %s1131_s20 = sphi %s1173_s20, %s1393_s20   ;;  %s1127_s19 = sphi %s1171_s19, %s1392_s19   ;;  %s1123_s18 = sphi %s1169_s18, %s1391_s18   ;;  %s1119_s17 = sphi %s1167_s17, %s1390_s17   ;;  %s1115_s16 = sphi %s1165_s16, %s1389_s16   ;;  %s1111_s15 = sphi %s1163_s15, %s1388_s15  }
   0x5   : > { %p27_p0 = scmp.ge.s32.totalorder %s26_s22, 18  ;;  %p77_p1 = scmp.ne.s32.totalorder %s1115_s16, %s1111_s15 }
   0x6   : > { %p78_p2 = scmp.eq.s32.totalorder %s1135_s21, 0  ;;  %s70_s27 = sadd.s32 1, %s1115_s16 }
   0x7   : > { %s1395_s22 = smov (%p27_p0, %s26_s22), 0  ;;  %s1397_s23 = smov (!%p27_p0, %s29_s23), %s1131_s20 }
   0x8   : > { %p79_p3 = por %p78_p2, %p77_p1  ;;  %p31_p4 = scmp.ge.s32.totalorder %s1397_s23, 2 }
   0x9   : > { %s65_s24 = ssub.s32 %s1127_s19, %s1395_s22  ;;  %p918_p6 = scmp.ge.s32.totalorder %s1135_s21, 36 }
   0xa   : > { %s1399_s23 = smov (%p31_p4, %s1397_s23), 0 }
   0xb   : > { %s66_s25 = ssub.s32 %s1131_s20, %s1399_s23  ;;  %185 = sbr.rel (%p918_p6) target bundleno = 41 (0x29), region = 16 }
   0xc   : > { %s67_s26 = sor.u32 %s66_s25, %s65_s24 }
   0xd   : > { %p68_p5 = scmp.eq.s32.totalorder %s67_s26, 0 }
   0xf   : > { %s1214_s28 = scalar_select %p68_p5, %s1115_s16, %s70_s27  }
  0x12   : > { %201 = sbr.rel (!%p79_p3) target bundleno = 41 (0x29), region = 24  ;;  %s203_s29 = sand.u32 (%p79_p3), 1, %s1115_s16  }
  0x13   : > { %s921_s30 = sshll.u32 (%p79_p3), %s1131_s20, 1  ;;  %s919_s5 = sshll.u32 (%p79_p3), %s203_s29, 8 }
  0x14   : > { %s972_s6 = sshll.u32 (%p79_p3), %s1127_s19, 7  ;;  %s1228_s12 = scalar_lea.vmem (%p79_p3), [#allocation3], %s919_s5 }
  0x15   : > { %s209_s7 = sadd.s32 (%p79_p3), %s972_s6, %s921_s30 }
  0x16   : > { %s923_s8 = sshll.u32 (%p79_p3), %s209_s7, 2 }
  0x17   : > { %s1223_s11 = scalar_lea.vmem (%p79_p3), %s1384_s1, %s923_s8 }
  0x18   : > { %v301_v0 = vld [vmem:[%s1223_s11] sm:$0xff] (%p79_p3)  ;;  %v303_v1 = vld [vmem:[%s1223_s11 + $0x10] sm:$0xff] (%p79_p3) }
  0x19   : > { %v305_v2 = vld [vmem:[%s1223_s11 + $0x20] sm:$0xff]  ;;  %302 = vst [vmem:[%s1228_s12] sm:$0xff] %v301_v0  ;;  %304 = vst [vmem:[%s1228_s12 + $0x8] sm:$0xff] %v303_v1  ;;  %v307_v3 = vld [vmem:[%s1223_s11 + $0x30] sm:$0xff] }
  0x1a   : > { %306 = vst [vmem:[%s1228_s12 + $0x10] sm:$0xff] %v305_v2  ;;  %v309_v4 = vld [vmem:[%s1223_s11 + $0x40] sm:$0xff]  ;;  %v311_v5 = vld [vmem:[%s1223_s11 + $0x50] sm:$0xff]  ;;  %308 = vst [vmem:[%s1228_s12 + $0x18] sm:$0xff] %v307_v3 }
  0x1b   : > { %310 = vst [vmem:[%s1228_s12 + $0x20] sm:$0xff] %v309_v4  ;;  %312 = vst [vmem:[%s1228_s12 + $0x28] sm:$0xff] %v311_v5  ;;  %v313_v6 = vld [vmem:[%s1223_s11 + $0x60] sm:$0xff]  ;;  %v315_v7 = vld [vmem:[%s1223_s11 + $0x70] sm:$0xff] }
  0x1c   : > { %v317_v8 = vld [vmem:[%s1223_s11 + $0x80] sm:$0xff]  ;;  %314 = vst [vmem:[%s1228_s12 + $0x30] sm:$0xff] %v313_v6  ;;  %316 = vst [vmem:[%s1228_s12 + $0x38] sm:$0xff] %v315_v7  ;;  %v319_v9 = vld [vmem:[%s1223_s11 + $0x90] sm:$0xff] }
  0x1d   : > { %318 = vst [vmem:[%s1228_s12 + $0x40] sm:$0xff] %v317_v8  ;;  %v321_v10 = vld [vmem:[%s1223_s11 + $0xa0] sm:$0xff]  ;;  %v323_v11 = vld [vmem:[%s1223_s11 + $0xb0] sm:$0xff]  ;;  %320 = vst [vmem:[%s1228_s12 + $0x48] sm:$0xff] %v319_v9 }
  0x1e   : > { %322 = vst [vmem:[%s1228_s12 + $0x50] sm:$0xff] %v321_v10  ;;  %324 = vst [vmem:[%s1228_s12 + $0x58] sm:$0xff] %v323_v11  ;;  %v325_v12 = vld [vmem:[%s1223_s11 + $0xc0] sm:$0xff]  ;;  %v327_v13 = vld [vmem:[%s1223_s11 + $0xd0] sm:$0xff] }
  0x1f   : > { %v329_v14 = vld [vmem:[%s1223_s11 + $0xe0] sm:$0xff]  ;;  %326 = vst [vmem:[%s1228_s12 + $0x60] sm:$0xff] %v325_v12  ;;  %328 = vst [vmem:[%s1228_s12 + $0x68] sm:$0xff] %v327_v13  ;;  %v331_v15 = vld [vmem:[%s1223_s11 + $0xf0] sm:$0xff] }
  0x20   : > { %330 = vst [vmem:[%s1228_s12 + $0x70] sm:$0xff] %v329_v14  ;;  %v333_v16 = vld [vmem:[%s1223_s11 + $0x100] sm:$0xff]  ;;  %v335_v17 = vld [vmem:[%s1223_s11 + $0x110] sm:$0xff]  ;;  %332 = vst [vmem:[%s1228_s12 + $0x78] sm:$0xff] %v331_v15 }
  0x21   : > { %334 = vst [vmem:[%s1228_s12 + $0x80] sm:$0xff] %v333_v16  ;;  %336 = vst [vmem:[%s1228_s12 + $0x88] sm:$0xff] %v335_v17  ;;  %v337_v18 = vld [vmem:[%s1223_s11 + $0x120] sm:$0xff]  ;;  %v339_v19 = vld [vmem:[%s1223_s11 + $0x130] sm:$0xff] }
  0x22   : > { %v341_v20 = vld [vmem:[%s1223_s11 + $0x140] sm:$0xff]  ;;  %338 = vst [vmem:[%s1228_s12 + $0x90] sm:$0xff] %v337_v18  ;;  %340 = vst [vmem:[%s1228_s12 + $0x98] sm:$0xff] %v339_v19  ;;  %v343_v21 = vld [vmem:[%s1223_s11 + $0x150] sm:$0xff] }
  0x23   : > { %342 = vst [vmem:[%s1228_s12 + $0xa0] sm:$0xff] %v341_v20  ;;  %v345_v22 = vld [vmem:[%s1223_s11 + $0x160] sm:$0xff]  ;;  %v347_v23 = vld [vmem:[%s1223_s11 + $0x170] sm:$0xff]  ;;  %344 = vst [vmem:[%s1228_s12 + $0xa8] sm:$0xff] %v343_v21 }
  0x24   : > { %346 = vst [vmem:[%s1228_s12 + $0xb0] sm:$0xff] %v345_v22  ;;  %348 = vst [vmem:[%s1228_s12 + $0xb8] sm:$0xff] %v347_v23  ;;  %v349_v24 = vld [vmem:[%s1223_s11 + $0x180] sm:$0xff]  ;;  %v351_v25 = vld [vmem:[%s1223_s11 + $0x190] sm:$0xff] }
  0x25   : > { %v353_v26 = vld [vmem:[%s1223_s11 + $0x1a0] sm:$0xff]  ;;  %350 = vst [vmem:[%s1228_s12 + $0xc0] sm:$0xff] %v349_v24  ;;  %352 = vst [vmem:[%s1228_s12 + $0xc8] sm:$0xff] %v351_v25  ;;  %v355_v27 = vld [vmem:[%s1223_s11 + $0x1b0] sm:$0xff] }
  0x26   : > { %354 = vst [vmem:[%s1228_s12 + $0xd0] sm:$0xff] %v353_v26  ;;  %v357_v28 = vld [vmem:[%s1223_s11 + $0x1c0] sm:$0xff]  ;;  %v359_v29 = vld [vmem:[%s1223_s11 + $0x1d0] sm:$0xff]  ;;  %356 = vst [vmem:[%s1228_s12 + $0xd8] sm:$0xff] %v355_v27 }
  0x27   : > { %358 = vst [vmem:[%s1228_s12 + $0xe0] sm:$0xff] %v357_v28  ;;  %360 = vst [vmem:[%s1228_s12 + $0xe8] sm:$0xff] %v359_v29  ;;  %v361_v30 = vld [vmem:[%s1223_s11 + $0x1e0] sm:$0xff]  ;;  %v363_v31 = vld [vmem:[%s1223_s11 + $0x1f0] sm:$0xff] }
  0x28   : > { %362 = vst [vmem:[%s1228_s12 + $0xf0] sm:$0xff] %v361_v30  ;;  %364 = vst [vmem:[%s1228_s12 + $0xf8] sm:$0xff] %v363_v31 }
  0x29 PF: > { %p924_p7 = scmp.ge.s32.totalorder %s1135_s21, 1  ;;  %p390_p8 = scmp.lt.s32.totalorder %s1135_s21, 37 }
  0x2b   : > { %p391_p9 = pnand %p924_p7, %p390_p8 }
  0x2c   : > { %s397_s13 = sand.u32 (!%p391_p9), 1, %s1111_s15   ;;  %s926_s14 = sshll.u32 (!%p391_p9), %s1119_s17, 1 }
  0x2d   : > { %394 = sbr.rel (%p391_p9) target bundleno = 360 (0x168), region = 70  ;;  %s925_s24 = sshll.u32 (!%p391_p9), %s397_s13, 8 }
  0x2e   : > { %p451_p10 = scmp.lt.s32.totalorder (!%p391_p9), %s926_s14, 35  ;;  %s928_s25 = sshll.u32 (!%p391_p9), %s1123_s18, 1 }
  0x2f   : > { %p461_p11 = scmp.lt.s32.totalorder (!%p391_p9), %s928_s25, 3  ;;  %s1318_s13 = scalar_lea.vmem (!%p391_p9), [#allocation3], %s925_s24 }
  0x30   : > { %p933_p12 = scmp.ne.s32.totalorder (!%p391_p9), %s1119_s17, 0 }
  0x34   : > { %s1401_s14 = smov (!%p451_p10, %s926_s14), 35  ;;  %s1403_s25 = smov (!%p461_p11, %s928_s25), 3 }
  0x35   : > { %s927_s26 = sshll.u32 %s1401_s14, 2  ;;  %s463_s15 = scalar_lea.vmem %s1385_s2, %s1403_s25  ;;  %v1137_v32 = vmov (!%p933_p12), 0.0  }
  0x36   : > { %s1299_s30 = scalar_lea.vmem %s1383_s0, %s927_s26  ;;  %s930_s7 = sshll.u32 %s1403_s25, 2  ;;  %489 = vst [vmem:[#allocation2] sm:$0xff] (!%p933_p12), %v1137_v32  ;;  %490 = vst [vmem:[#allocation2 + $0x8] sm:$0xff] (!%p933_p12), %v1137_v32 }
  0x37   : > { %s1311_s18 = scalar_lea.vmem %s1386_s3, %s930_s7  ;;  %s1316_s12 = scalar_lea.vmem %s1387_s4, %s930_s7 }
  0x38   : > { %488 = sbr.rel (%p933_p12) target bundleno = 63 (0x3f), region = 78 }
  0x3f PF: > { %v1031_v33 = vld [vmem:[%s1318_s13 + $0x4] ss:$8 sps:$4 sm:$0xff]   ;;  %v1033_v34 = vld [vmem:[%s1318_s13] ss:$8 sps:$4 sm:$0xff]   ;;  %v1034_v35 = vld [vmem:[%s1318_s13 + $0x14] ss:$8 sps:$4 sm:$0xff]  }
  0x40   : > { %693 = vmatprep.subr.bf16.mxu0 %v1031_v33  ;;  %v1036_v36 = vld [vmem:[%s1318_s13 + $0x10] ss:$8 sps:$4 sm:$0xff]   ;;  %v1037_v37 = vld [vmem:[%s1318_s13 + $0x24] ss:$8 sps:$4 sm:$0xff]   ;;  %v1039_v38 = vld [vmem:[%s1318_s13 + $0x20] ss:$8 sps:$4 sm:$0xff]  }
  0x41   : > { %694 = vmatpush1.bf16.msra.mxu0 %v1033_v34  ;;  %v1040_v39 = vld [vmem:[%s1318_s13 + $0x34] ss:$8 sps:$4 sm:$0xff]   ;;  %v1042_v40 = vld [vmem:[%s1318_s13 + $0x30] ss:$8 sps:$4 sm:$0xff]   ;;  %v1043_v41 = vld [vmem:[%s1318_s13 + $0x44] ss:$8 sps:$4 sm:$0xff]  }
  0x42   : > { %695 = vmatprep.subr.bf16.mxu0 %v1034_v35  ;;  %v1045_v42 = vld [vmem:[%s1318_s13 + $0x40] ss:$8 sps:$4 sm:$0xff]   ;;  %v1046_v43 = vld [vmem:[%s1318_s13 + $0x54] ss:$8 sps:$4 sm:$0xff]   ;;  %v1048_v44 = vld [vmem:[%s1318_s13 + $0x50] ss:$8 sps:$4 sm:$0xff]  }
  0x43   : > { %v1049_v45 = vld [vmem:[%s1318_s13 + $0x64] ss:$8 sps:$4 sm:$0xff]   ;;  %v493_v46 = vld [vmem:[%s1299_s30] sm:$0xff]  ;;  %v1051_v48 = vld [vmem:[%s1318_s13 + $0x60] ss:$8 sps:$4 sm:$0xff]   ;;  %p968_p13 = scmp.ne.s32.totalorder %s1119_s17, 17 }
  0x44   : > { %v935_v47 = vcombine.high %v493_v46, %v493_v46  ;;  %v1052_v49 = vld [vmem:[%s1318_s13 + $0x74] ss:$8 sps:$4 sm:$0xff]   ;;  %v1054_v50 = vld [vmem:[%s1318_s13 + $0x70] ss:$8 sps:$4 sm:$0xff]   ;;  %v1055_v51 = vld [vmem:[%s1318_s13 + $0x84] ss:$8 sps:$4 sm:$0xff]   ;;  %v934_v3 = vcombine.low %v493_v46, %v493_v46  ;;  %v746_v12 = vlaneseq (!%p968_p13) }
  0x45   : > { %696 = vmatpush1.bf16.msra.mxu0 %v1036_v36  ;;  %v1057_v52 = vld [vmem:[%s1318_s13 + $0x80] ss:$8 sps:$4 sm:$0xff]   ;;  %v1058_v53 = vld [vmem:[%s1318_s13 + $0x94] ss:$8 sps:$4 sm:$0xff]   ;;  %v1060_v54 = vld [vmem:[%s1318_s13 + $0x90] ss:$8 sps:$4 sm:$0xff]  }
  0x46   : > { %697 = vmatprep.subr.bf16.mxu0 %v1037_v37  ;;  %725 = vmatprep.mubr.bf16.mxu0 %v935_v47  ;;  %v1061_v55 = vld [vmem:[%s1318_s13 + $0xa4] ss:$8 sps:$4 sm:$0xff]   ;;  %v1063_v56 = vld [vmem:[%s1318_s13 + $0xa0] ss:$8 sps:$4 sm:$0xff]   ;;  %v1064_v57 = vld [vmem:[%s1318_s13 + $0xb4] ss:$8 sps:$4 sm:$0xff]  }
  0x47   : > { %v1066_v58 = vld [vmem:[%s1318_s13 + $0xb0] ss:$8 sps:$4 sm:$0xff]   ;;  %v1067_v59 = vld [vmem:[%s1318_s13 + $0xc4] ss:$8 sps:$4 sm:$0xff]   ;;  %v1069_v60 = vld [vmem:[%s1318_s13 + $0xc0] ss:$8 sps:$4 sm:$0xff]  }
  0x48   : > { %v1070_v61 = vld [vmem:[%s1318_s13 + $0xd4] ss:$8 sps:$4 sm:$0xff]   ;;  %v1072_v62 = vld [vmem:[%s1318_s13 + $0xd0] ss:$8 sps:$4 sm:$0xff]   ;;  %v1073_v63 = vld [vmem:[%s1318_s13 + $0xe4] ss:$8 sps:$4 sm:$0xff]  }
  0x49   : > { %698 = vmatpush1.bf16.msra.mxu0 %v1039_v38  ;;  %v1075_v0 = vld [vmem:[%s1318_s13 + $0xe0] ss:$8 sps:$4 sm:$0xff]   ;;  %v1076_v1 = vld [vmem:[%s1318_s13 + $0xf4] ss:$8 sps:$4 sm:$0xff]   ;;  %v1078_v2 = vld [vmem:[%s1318_s13 + $0xf0] ss:$8 sps:$4 sm:$0xff]  }
  0x4a   : > { %699 = vmatprep.subr.bf16.mxu0 %v1040_v39  ;;  %v491_v4 = vld [vmem:[#allocation2] sm:$0xff]  ;;  %v492_v5 = vld [vmem:[#allocation2 + $0x8] sm:$0xff]  ;;  %v747_v13 = vshrl.u32 (!%p968_p13), %v746_v12, 7 }
  0x4b   : > { %v744_v14 = vld [vmem:[%s463_s15] sm:$0x3] (!%p968_p13) }
  0x4c   : > { %v758_v15 = vld [vmem:[%s1311_s18] sm:$0xff] (!%p968_p13)  ;;  %v748_v16 = vsub.s32 (!%p968_p13), 0, %v747_v13  ;;  %v752_v17 = vsub.s32 (!%p968_p13), 1, %v747_v13 }
  0x4d   : > { %700 = vmatpush1.bf16.msra.mxu0 %v1042_v40  ;;  %v759_v22 = vunpack.c.l.bf16 (!%p968_p13), %v758_v15  ;;  %v760_v23 = vunpack.c.h.bf16 (!%p968_p13), %v758_v15 }
  0x4e   : > { %701 = vmatprep.subr.bf16.mxu0 %v1043_v41  ;;  %v749_v20 = vrot.slane (!%p968_p13), %v744_v14, %v748_v16  ;;  %v753_v21 = vrot.slane (!%p968_p13), %v744_v14, %v752_v17 }
  0x51   : > { %702 = vmatpush1.bf16.msra.mxu0 %v1045_v42 }
  0x52   : > { %703 = vmatprep.subr.bf16.mxu0 %v1046_v43 }
  0x55   : > { %704 = vmatpush1.bf16.msra.mxu0 %v1048_v44 }
  0x56   : > { %705 = vmatprep.subr.bf16.mxu0 %v1049_v45 }
  0x59   : > { %706 = vmatpush1.bf16.msra.mxu0 %v1051_v48 }
  0x5a   : > { %707 = vmatprep.subr.bf16.mxu0 %v1052_v49 }
  0x5d   : > { %708 = vmatpush1.bf16.msra.mxu0 %v1054_v50 }
  0x5e   : > { %709 = vmatprep.subr.bf16.mxu0 %v1055_v51 }
  0x61   : > { %710 = vmatpush1.bf16.msra.mxu0 %v1057_v52 }
  0x62   : > { %711 = vmatprep.subr.bf16.mxu0 %v1058_v53 }
  0x65   : > { %712 = vmatpush1.bf16.msra.mxu0 %v1060_v54 }
  0x66   : > { %713 = vmatprep.subr.bf16.mxu0 %v1061_v55 }
  0x69   : > { %714 = vmatpush1.bf16.msra.mxu0 %v1063_v56 }
  0x6a   : > { %715 = vmatprep.subr.bf16.mxu0 %v1064_v57 }
  0x6d   : > { %716 = vmatpush1.bf16.msra.mxu0 %v1066_v58 }
  0x6e   : > { %717 = vmatprep.subr.bf16.mxu0 %v1067_v59 }
  0x71   : > { %718 = vmatpush1.bf16.msra.mxu0 %v1069_v60 }
  0x72   : > { %719 = vmatprep.subr.bf16.mxu0 %v1070_v61 }
  0x75   : > { %720 = vmatpush1.bf16.msra.mxu0 %v1072_v62 }
  0x76   : > { %721 = vmatprep.subr.bf16.mxu0 %v1073_v63 }
  0x79   : > { %722 = vmatpush1.bf16.msra.mxu0 %v1075_v0 }
  0x7a   : > { %723 = vmatprep.subr.bf16.mxu0 %v1076_v1 }
  0x7d   : > { %724 = vmatpush1.bf16.msra.mxu0 %v1078_v2 }
  0x80   : > { %726 = vmatmul.mubr.bf16.vlgmr.msra.gmra.mrb[0].mxu0 %v934_v3 }
 0x151   : > { %741 = sbr.rel (%p968_p13) target bundleno = 360 (0x168), region = 82 }
 0x153   : > { %v727_v6 = vpop.f32.mrb[0].mxu0 }
 0x154   : > { %v734_v7 = vadd.f32 %v727_v6, %v491_v4  ;;  %v729_v8 = vpop.f32.mrb[1].mxu0 }
 0x155   : > { %v735_v9 = vadd.f32 %v729_v8, %v492_v5  ;;  %v731_v10 = vpop.f32.mrb[2].mxu0 }
 0x156   : > { %736 = vst [vmem:[#allocation2] sm:$0xff] %v734_v7  ;;  %v732_v11 = vpop.f32.mrb[3].mxu0 }
 0x157   : > { %737 = vst [vmem:[#allocation2 + $0x8] sm:$0xff] %v735_v9 }
 0x15d   : > { %v742_v18 = vld [vmem:[#allocation2] sm:$0xff] }
 0x15e   : > { %v743_v19 = vld [vmem:[#allocation2 + $0x8] sm:$0xff]  ;;  %v756_v24 = vadd.f32 %v749_v20, %v742_v18 }
 0x15f   : > { %v757_v25 = vadd.f32 %v753_v21, %v743_v19 }
 0x160   : > { %v761_v26 = vadd.f32 %v759_v22, %v756_v24 }
 0x161   : > { %v762_v27 = vadd.f32 %v760_v23, %v757_v25 }
 0x162   : > { %v763_v28 = vmax.f32 %v761_v26, 0.0 }
 0x163   : > { %v764_v29 = vmax.f32 %v762_v27, 0.0 }
 0x165   : > { %v973_v30 = vpack.c.bf16 %v764_v29, %v763_v28 }
 0x167   : > { %773 = vst [vmem:[%s1316_s12] sm:$0xff] %v973_v30 }
 0x168 PF: > { %s14_s21 = sadd.s32 1, %s1135_s21   ;;  %s1388_s15 = smov %s1115_s16 }
 0x169   : > { %p11_p0 = scmp.ge.s32.totalorder %s14_s21, 38   ;;  %s1389_s16 = smov %s1214_s28 }
 0x16a   : > { %s1390_s17 = smov %s1127_s19  ;;  %s1391_s18 = smov %s1131_s20 }
 0x16b   : > { %s1392_s19 = smov %s1395_s22  ;;  %s1393_s20 = smov %s1399_s23 }
 0x16c   :  { %13 = sbr.rel (!%p11_p0) target bundleno = 4 (0x4), region = 126 }

// kernel: resnet18_forward.40
= control target key start
LH: loop header
LB: loop body
LE: loop exit
PB: predicated region body
PF: predicated region fallthrough
CT: control target
= control target key end

     0   :  { %s1070_s12 = smov 0   ;;  %s1072_s13 = smov 0   ;;  %s1284_s0 = inlined_call_operand.vmem [shape: bf16[8,4608], index: 0, kind: input, shape index: {}]   ;;  %s1285_s1 = inlined_call_operand.vmem [shape: bf16[4608,512], index: 1, kind: input, shape index: {}]   ;;  %s1286_s2 = inlined_call_operand.vmem [shape: f32[1,512], index: 2, kind: input, shape index: {}]   ;;  %s1287_s3 = inlined_call_operand.vmem [shape: bf16[8,512], index: 3, kind: output, shape index: {}]  }
   0x1   :  { %s1074_s14 = smov 0   ;;  %s1076_s15 = smov 0  }
   0x2   :  { %s1078_s16 = smov 0   ;;  %s1080_s17 = smov 0  }
   0x3   :  { %s1082_s18 = smov 0  }
   0x4 LB: > { %s25_s19 = sadd.s32 1, %s1039_s16  ;;  %s28_s20 = sadd.s32 1, %s1043_s17  ;;  %s1047_s18 = sphi %s1082_s18, %s13_s18   ;;  %s1043_s17 = sphi %s1080_s17, %s1293_s17   ;;  %s1039_s16 = sphi %s1078_s16, %s1292_s16   ;;  %s1035_s15 = sphi %s1076_s15, %s1291_s15   ;;  %s1031_s14 = sphi %s1074_s14, %s1290_s14   ;;  %s1027_s13 = sphi %s1072_s13, %s1289_s13   ;;  %s1023_s12 = sphi %s1070_s12, %s1288_s12  }
   0x5   : > { %p26_p0 = scmp.ge.s32.totalorder %s25_s19, 18  ;;  %p76_p1 = scmp.ne.s32.totalorder %s1027_s13, %s1023_s12 }
   0x6   : > { %p77_p2 = scmp.eq.s32.totalorder %s1047_s18, 0  ;;  %s69_s24 = sadd.s32 1, %s1027_s13 }
   0x7   : > { %s1295_s19 = smov (%p26_p0, %s25_s19), 0  ;;  %s1297_s20 = smov (!%p26_p0, %s28_s20), %s1043_s17 }
   0x8   : > { %p78_p3 = por %p77_p2, %p76_p1  ;;  %p30_p4 = scmp.ge.s32.totalorder %s1297_s20, 2 }
   0x9   : > { %s64_s21 = ssub.s32 %s1039_s16, %s1295_s19  ;;  %p832_p6 = scmp.ge.s32.totalorder %s1047_s18, 36 }
   0xa   : > { %s1299_s20 = smov (%p30_p4, %s1297_s20), 0 }
   0xb   : > { %s65_s22 = ssub.s32 %s1043_s17, %s1299_s20  ;;  %156 = sbr.rel (%p832_p6) target bundleno = 41 (0x29), region = 16 }
   0xc   : > { %s66_s23 = sor.u32 %s65_s22, %s64_s21 }
   0xd   : > { %p67_p5 = scmp.eq.s32.totalorder %s66_s23, 0 }
   0xf   : > { %s1121_s25 = scalar_select %p67_p5, %s1027_s13, %s69_s24  }
  0x12   : > { %172 = sbr.rel (!%p78_p3) target bundleno = 41 (0x29), region = 24  ;;  %s174_s26 = sand.u32 (%p78_p3), 1, %s1027_s13  }
  0x13   : > { %s835_s27 = sshll.u32 (%p78_p3), %s1043_s17, 1  ;;  %s833_s28 = sshll.u32 (%p78_p3), %s174_s26, 8 }
  0x14   : > { %s884_s29 = sshll.u32 (%p78_p3), %s1039_s16, 7  ;;  %s1135_s8 = scalar_lea.vmem (%p78_p3), [#allocation3], %s833_s28 }
  0x15   : > { %s180_s30 = sadd.s32 (%p78_p3), %s884_s29, %s835_s27 }
  0x16   : > { %s837_s4 = sshll.u32 (%p78_p3), %s180_s30, 2 }
  0x17   : > { %s1130_s7 = scalar_lea.vmem (%p78_p3), %s1285_s1, %s837_s4 }
  0x18   : > { %v272_v0 = vld [vmem:[%s1130_s7] sm:$0xff] (%p78_p3)  ;;  %v274_v1 = vld [vmem:[%s1130_s7 + $0x10] sm:$0xff] (%p78_p3) }
  0x19   : > { %v276_v2 = vld [vmem:[%s1130_s7 + $0x20] sm:$0xff]  ;;  %273 = vst [vmem:[%s1135_s8] sm:$0xff] %v272_v0  ;;  %275 = vst [vmem:[%s1135_s8 + $0x8] sm:$0xff] %v274_v1  ;;  %v278_v3 = vld [vmem:[%s1130_s7 + $0x30] sm:$0xff] }
  0x1a   : > { %277 = vst [vmem:[%s1135_s8 + $0x10] sm:$0xff] %v276_v2  ;;  %v280_v4 = vld [vmem:[%s1130_s7 + $0x40] sm:$0xff]  ;;  %v282_v5 = vld [vmem:[%s1130_s7 + $0x50] sm:$0xff]  ;;  %279 = vst [vmem:[%s1135_s8 + $0x18] sm:$0xff] %v278_v3 }
  0x1b   : > { %281 = vst [vmem:[%s1135_s8 + $0x20] sm:$0xff] %v280_v4  ;;  %283 = vst [vmem:[%s1135_s8 + $0x28] sm:$0xff] %v282_v5  ;;  %v284_v6 = vld [vmem:[%s1130_s7 + $0x60] sm:$0xff]  ;;  %v286_v7 = vld [vmem:[%s1130_s7 + $0x70] sm:$0xff] }
  0x1c   : > { %v288_v8 = vld [vmem:[%s1130_s7 + $0x80] sm:$0xff]  ;;  %285 = vst [vmem:[%s1135_s8 + $0x30] sm:$0xff] %v284_v6  ;;  %287 = vst [vmem:[%s1135_s8 + $0x38] sm:$0xff] %v286_v7  ;;  %v290_v9 = vld [vmem:[%s1130_s7 + $0x90] sm:$0xff] }
  0x1d   : > { %289 = vst [vmem:[%s1135_s8 + $0x40] sm:$0xff] %v288_v8  ;;  %v292_v10 = vld [vmem:[%s1130_s7 + $0xa0] sm:$0xff]  ;;  %v294_v11 = vld [vmem:[%s1130_s7 + $0xb0] sm:$0xff]  ;;  %291 = vst [vmem:[%s1135_s8 + $0x48] sm:$0xff] %v290_v9 }
  0x1e   : > { %293 = vst [vmem:[%s1135_s8 + $0x50] sm:$0xff] %v292_v10  ;;  %295 = vst [vmem:[%s1135_s8 + $0x58] sm:$0xff] %v294_v11  ;;  %v296_v12 = vld [vmem:[%s1130_s7 + $0xc0] sm:$0xff]  ;;  %v298_v13 = vld [vmem:[%s1130_s7 + $0xd0] sm:$0xff] }
  0x1f   : > { %v300_v14 = vld [vmem:[%s1130_s7 + $0xe0] sm:$0xff]  ;;  %297 = vst [vmem:[%s1135_s8 + $0x60] sm:$0xff] %v296_v12  ;;  %299 = vst [vmem:[%s1135_s8 + $0x68] sm:$0xff] %v298_v13  ;;  %v302_v15 = vld [vmem:[%s1130_s7 + $0xf0] sm:$0xff] }
  0x20   : > { %301 = vst [vmem:[%s1135_s8 + $0x70] sm:$0xff] %v300_v14  ;;  %v304_v16 = vld [vmem:[%s1130_s7 + $0x100] sm:$0xff]  ;;  %v306_v17 = vld [vmem:[%s1130_s7 + $0x110] sm:$0xff]  ;;  %303 = vst [vmem:[%s1135_s8 + $0x78] sm:$0xff] %v302_v15 }
  0x21   : > { %305 = vst [vmem:[%s1135_s8 + $0x80] sm:$0xff] %v304_v16  ;;  %307 = vst [vmem:[%s1135_s8 + $0x88] sm:$0xff] %v306_v17  ;;  %v308_v18 = vld [vmem:[%s1130_s7 + $0x120] sm:$0xff]  ;;  %v310_v19 = vld [vmem:[%s1130_s7 + $0x130] sm:$0xff] }
  0x22   : > { %v312_v20 = vld [vmem:[%s1130_s7 + $0x140] sm:$0xff]  ;;  %309 = vst [vmem:[%s1135_s8 + $0x90] sm:$0xff] %v308_v18  ;;  %311 = vst [vmem:[%s1135_s8 + $0x98] sm:$0xff] %v310_v19  ;;  %v314_v21 = vld [vmem:[%s1130_s7 + $0x150] sm:$0xff] }
  0x23   : > { %313 = vst [vmem:[%s1135_s8 + $0xa0] sm:$0xff] %v312_v20  ;;  %v316_v22 = vld [vmem:[%s1130_s7 + $0x160] sm:$0xff]  ;;  %v318_v23 = vld [vmem:[%s1130_s7 + $0x170] sm:$0xff]  ;;  %315 = vst [vmem:[%s1135_s8 + $0xa8] sm:$0xff] %v314_v21 }
  0x24   : > { %317 = vst [vmem:[%s1135_s8 + $0xb0] sm:$0xff] %v316_v22  ;;  %319 = vst [vmem:[%s1135_s8 + $0xb8] sm:$0xff] %v318_v23  ;;  %v320_v24 = vld [vmem:[%s1130_s7 + $0x180] sm:$0xff]  ;;  %v322_v25 = vld [vmem:[%s1130_s7 + $0x190] sm:$0xff] }
  0x25   : > { %v324_v26 = vld [vmem:[%s1130_s7 + $0x1a0] sm:$0xff]  ;;  %321 = vst [vmem:[%s1135_s8 + $0xc0] sm:$0xff] %v320_v24  ;;  %323 = vst [vmem:[%s1135_s8 + $0xc8] sm:$0xff] %v322_v25  ;;  %v326_v27 = vld [vmem:[%s1130_s7 + $0x1b0] sm:$0xff] }
  0x26   : > { %325 = vst [vmem:[%s1135_s8 + $0xd0] sm:$0xff] %v324_v26  ;;  %v328_v28 = vld [vmem:[%s1130_s7 + $0x1c0] sm:$0xff]  ;;  %v330_v29 = vld [vmem:[%s1130_s7 + $0x1d0] sm:$0xff]  ;;  %327 = vst [vmem:[%s1135_s8 + $0xd8] sm:$0xff] %v326_v27 }
  0x27   : > { %329 = vst [vmem:[%s1135_s8 + $0xe0] sm:$0xff] %v328_v28  ;;  %331 = vst [vmem:[%s1135_s8 + $0xe8] sm:$0xff] %v330_v29  ;;  %v332_v30 = vld [vmem:[%s1130_s7 + $0x1e0] sm:$0xff]  ;;  %v334_v31 = vld [vmem:[%s1130_s7 + $0x1f0] sm:$0xff] }
  0x28   : > { %333 = vst [vmem:[%s1135_s8 + $0xf0] sm:$0xff] %v332_v30  ;;  %335 = vst [vmem:[%s1135_s8 + $0xf8] sm:$0xff] %v334_v31 }
  0x29 PF: > { %p838_p7 = scmp.ge.s32.totalorder %s1047_s18, 1  ;;  %p348_p8 = scmp.lt.s32.totalorder %s1047_s18, 37 }
  0x2b   : > { %p349_p9 = pnand %p838_p7, %p348_p8 }
  0x2c   : > { %s355_s9 = sand.u32 (!%p349_p9), 1, %s1023_s12   ;;  %s840_s10 = sshll.u32 (!%p349_p9), %s1031_s14, 1 }
  0x2d   : > { %352 = sbr.rel (%p349_p9) target bundleno = 357 (0x165), region = 66  ;;  %s839_s11 = sshll.u32 (!%p349_p9), %s355_s9, 8 }
  0x2e   : > { %p398_p10 = scmp.lt.s32.totalorder (!%p349_p9), %s840_s10, 35  ;;  %s842_s21 = sshll.u32 (!%p349_p9), %s1035_s15, 1 }
  0x2f   : > { %p408_p11 = scmp.lt.s32.totalorder (!%p349_p9), %s842_s21, 3  ;;  %s1220_s5 = scalar_lea.vmem (!%p349_p9), [#allocation3], %s839_s11 }
  0x30   : > { %p845_p12 = scmp.ne.s32.totalorder (!%p349_p9), %s1031_s14, 0 }
  0x34   : > { %s1301_s10 = smov (!%p398_p10, %s840_s10), 35  ;;  %s1303_s21 = smov (!%p408_p11, %s842_s21), 3 }
  0x35   : > { %s841_s22 = sshll.u32 %s1301_s10, 2  ;;  %s410_s12 = scalar_lea.vmem %s1286_s2, %s1303_s21  ;;  %v1049_v32 = vmov (!%p845_p12), 0.0  }
  0x36   : > { %s1206_s26 = scalar_lea.vmem %s1284_s0, %s841_s22  ;;  %s844_s29 = sshll.u32 %s1303_s21, 2  ;;  %426 = vst [vmem:[#allocation2] sm:$0xff] (!%p845_p12), %v1049_v32  ;;  %427 = vst [vmem:[#allocation2 + $0x8] sm:$0xff] (!%p845_p12), %v1049_v32 }
  0x37   : > { %s1218_s15 = scalar_lea.vmem %s1287_s3, %s844_s29  ;;  %425 = sbr.rel (%p845_p12) target bundleno = 62 (0x3e), region = 74 }
  0x3e PF: > { %v943_v33 = vld [vmem:[%s1220_s5 + $0x4] ss:$8 sps:$4 sm:$0xff]   ;;  %v945_v34 = vld [vmem:[%s1220_s5] ss:$8 sps:$4 sm:$0xff]   ;;  %v946_v35 = vld [vmem:[%s1220_s5 + $0x14] ss:$8 sps:$4 sm:$0xff]  }
  0x3f   : > { %630 = vmatprep.subr.bf16.mxu0 %v943_v33  ;;  %v948_v36 = vld [vmem:[%s1220_s5 + $0x10] ss:$8 sps:$4 sm:$0xff]   ;;  %v949_v37 = vld [vmem:[%s1220_s5 + $0x24] ss:$8 sps:$4 sm:$0xff]   ;;  %v951_v38 = vld [vmem:[%s1220_s5 + $0x20] ss:$8 sps:$4 sm:$0xff]  }
  0x40   : > { %631 = vmatpush1.bf16.msra.mxu0 %v945_v34  ;;  %v952_v39 = vld [vmem:[%s1220_s5 + $0x34] ss:$8 sps:$4 sm:$0xff]   ;;  %v954_v40 = vld [vmem:[%s1220_s5 + $0x30] ss:$8 sps:$4 sm:$0xff]   ;;  %v955_v41 = vld [vmem:[%s1220_s5 + $0x44] ss:$8 sps:$4 sm:$0xff]  }
  0x41   : > { %632 = vmatprep.subr.bf16.mxu0 %v946_v35  ;;  %v957_v42 = vld [vmem:[%s1220_s5 + $0x40] ss:$8 sps:$4 sm:$0xff]   ;;  %v958_v43 = vld [vmem:[%s1220_s5 + $0x54] ss:$8 sps:$4 sm:$0xff]   ;;  %v960_v44 = vld [vmem:[%s1220_s5 + $0x50] ss:$8 sps:$4 sm:$0xff]  }
  0x42   : > { %v961_v45 = vld [vmem:[%s1220_s5 + $0x64] ss:$8 sps:$4 sm:$0xff]   ;;  %v430_v46 = vld [vmem:[%s1206_s26] sm:$0xff]  ;;  %v963_v48 = vld [vmem:[%s1220_s5 + $0x60] ss:$8 sps:$4 sm:$0xff]   ;;  %p880_p13 = scmp.ne.s32.totalorder %s1031_s14, 17 }
  0x43   : > { %v847_v47 = vcombine.high %v430_v46, %v430_v46  ;;  %v964_v49 = vld [vmem:[%s1220_s5 + $0x74] ss:$8 sps:$4 sm:$0xff]   ;;  %v966_v50 = vld [vmem:[%s1220_s5 + $0x70] ss:$8 sps:$4 sm:$0xff]   ;;  %v967_v51 = vld [vmem:[%s1220_s5 + $0x84] ss:$8 sps:$4 sm:$0xff]   ;;  %v846_v3 = vcombine.low %v430_v46, %v430_v46  ;;  %v683_v12 = vlaneseq (!%p880_p13) }
  0x44   : > { %633 = vmatpush1.bf16.msra.mxu0 %v948_v36  ;;  %v969_v52 = vld [vmem:[%s1220_s5 + $0x80] ss:$8 sps:$4 sm:$0xff]   ;;  %v970_v53 = vld [vmem:[%s1220_s5 + $0x94] ss:$8 sps:$4 sm:$0xff]   ;;  %v972_v54 = vld [vmem:[%s1220_s5 + $0x90] ss:$8 sps:$4 sm:$0xff]  }
  0x45   : > { %634 = vmatprep.subr.bf16.mxu0 %v949_v37  ;;  %662 = vmatprep.mubr.bf16.mxu0 %v847_v47  ;;  %v973_v55 = vld [vmem:[%s1220_s5 + $0xa4] ss:$8 sps:$4 sm:$0xff]   ;;  %v975_v56 = vld [vmem:[%s1220_s5 + $0xa0] ss:$8 sps:$4 sm:$0xff]   ;;  %v976_v57 = vld [vmem:[%s1220_s5 + $0xb4] ss:$8 sps:$4 sm:$0xff]  }
  0x46   : > { %v978_v58 = vld [vmem:[%s1220_s5 + $0xb0] ss:$8 sps:$4 sm:$0xff]   ;;  %v979_v59 = vld [vmem:[%s1220_s5 + $0xc4] ss:$8 sps:$4 sm:$0xff]   ;;  %v981_v60 = vld [vmem:[%s1220_s5 + $0xc0] ss:$8 sps:$4 sm:$0xff]  }
  0x47   : > { %v982_v61 = vld [vmem:[%s1220_s5 + $0xd4] ss:$8 sps:$4 sm:$0xff]   ;;  %v984_v62 = vld [vmem:[%s1220_s5 + $0xd0] ss:$8 sps:$4 sm:$0xff]   ;;  %v985_v63 = vld [vmem:[%s1220_s5 + $0xe4] ss:$8 sps:$4 sm:$0xff]  }
  0x48   : > { %635 = vmatpush1.bf16.msra.mxu0 %v951_v38  ;;  %v987_v0 = vld [vmem:[%s1220_s5 + $0xe0] ss:$8 sps:$4 sm:$0xff]   ;;  %v988_v1 = vld [vmem:[%s1220_s5 + $0xf4] ss:$8 sps:$4 sm:$0xff]   ;;  %v990_v2 = vld [vmem:[%s1220_s5 + $0xf0] ss:$8 sps:$4 sm:$0xff]  }
  0x49   : > { %636 = vmatprep.subr.bf16.mxu0 %v952_v39  ;;  %v428_v4 = vld [vmem:[#allocation2] sm:$0xff]  ;;  %v429_v5 = vld [vmem:[#allocation2 + $0x8] sm:$0xff]  ;;  %v684_v13 = vshrl.u32 (!%p880_p13), %v683_v12, 7 }
  0x4a   : > { %v681_v14 = vld [vmem:[%s410_s12] sm:$0x3] (!%p880_p13) }
  0x4b   : > { %v685_v15 = vsub.s32 (!%p880_p13), 0, %v684_v13  ;;  %v689_v16 = vsub.s32 (!%p880_p13), 1, %v684_v13 }
  0x4c   : > { %637 = vmatpush1.bf16.msra.mxu0 %v954_v40 }
  0x4d   : > { %638 = vmatprep.subr.bf16.mxu0 %v955_v41  ;;  %v686_v19 = vrot.slane (!%p880_p13), %v681_v14, %v685_v15  ;;  %v690_v20 = vrot.slane (!%p880_p13), %v681_v14, %v689_v16 }
  0x50   : > { %639 = vmatpush1.bf16.msra.mxu0 %v957_v42 }
  0x51   : > { %640 = vmatprep.subr.bf16.mxu0 %v958_v43 }
  0x54   : > { %641 = vmatpush1.bf16.msra.mxu0 %v960_v44 }
  0x55   : > { %642 = vmatprep.subr.bf16.mxu0 %v961_v45 }
  0x58   : > { %643 = vmatpush1.bf16.msra.mxu0 %v963_v48 }
  0x59   : > { %644 = vmatprep.subr.bf16.mxu0 %v964_v49 }
  0x5c   : > { %645 = vmatpush1.bf16.msra.mxu0 %v966_v50 }
  0x5d   : > { %646 = vmatprep.subr.bf16.mxu0 %v967_v51 }
  0x60   : > { %647 = vmatpush1.bf16.msra.mxu0 %v969_v52 }
  0x61   : > { %648 = vmatprep.subr.bf16.mxu0 %v970_v53 }
  0x64   : > { %649 = vmatpush1.bf16.msra.mxu0 %v972_v54 }
  0x65   : > { %650 = vmatprep.subr.bf16.mxu0 %v973_v55 }
  0x68   : > { %651 = vmatpush1.bf16.msra.mxu0 %v975_v56 }
  0x69   : > { %652 = vmatprep.subr.bf16.mxu0 %v976_v57 }
  0x6c   : > { %653 = vmatpush1.bf16.msra.mxu0 %v978_v58 }
  0x6d   : > { %654 = vmatprep.subr.bf16.mxu0 %v979_v59 }
  0x70   : > { %655 = vmatpush1.bf16.msra.mxu0 %v981_v60 }
  0x71   : > { %656 = vmatprep.subr.bf16.mxu0 %v982_v61 }
  0x74   : > { %657 = vmatpush1.bf16.msra.mxu0 %v984_v62 }
  0x75   : > { %658 = vmatprep.subr.bf16.mxu0 %v985_v63 }
  0x78   : > { %659 = vmatpush1.bf16.msra.mxu0 %v987_v0 }
  0x79   : > { %660 = vmatprep.subr.bf16.mxu0 %v988_v1 }
  0x7c   : > { %661 = vmatpush1.bf16.msra.mxu0 %v990_v2 }
  0x7f   : > { %663 = vmatmul.mubr.bf16.vlgmr.msra.gmra.mrb[0].mxu0 %v846_v3 }
 0x150   : > { %678 = sbr.rel (%p880_p13) target bundleno = 357 (0x165), region = 78 }
 0x152   : > { %v664_v6 = vpop.f32.mrb[0].mxu0 }
 0x153   : > { %v671_v7 = vadd.f32 %v664_v6, %v428_v4  ;;  %v666_v8 = vpop.f32.mrb[1].mxu0 }
 0x154   : > { %v672_v9 = vadd.f32 %v666_v8, %v429_v5  ;;  %v668_v10 = vpop.f32.mrb[2].mxu0 }
 0x155   : > { %673 = vst [vmem:[#allocation2] sm:$0xff] %v671_v7  ;;  %v669_v11 = vpop.f32.mrb[3].mxu0 }
 0x156   : > { %674 = vst [vmem:[#allocation2 + $0x8] sm:$0xff] %v672_v9 }
 0x15c   : > { %v679_v17 = vld [vmem:[#allocation2] sm:$0xff] }
 0x15d   : > { %v680_v18 = vld [vmem:[#allocation2 + $0x8] sm:$0xff]  ;;  %v693_v21 = vadd.f32 %v686_v19, %v679_v17 }
 0x15e   : > { %v694_v22 = vadd.f32 %v690_v20, %v680_v18 }
 0x15f   : > { %v695_v23 = vmax.f32 %v693_v21, 0.0 }
 0x160   : > { %v696_v24 = vmax.f32 %v694_v22, 0.0 }
 0x162   : > { %v885_v25 = vpack.c.bf16 %v696_v24, %v695_v23 }
 0x164   : > { %705 = vst [vmem:[%s1218_s15] sm:$0xff] %v885_v25 }
 0x165 PF: > { %s13_s18 = sadd.s32 1, %s1047_s18   ;;  %s1288_s12 = smov %s1027_s13 }
 0x166   : > { %p10_p0 = scmp.ge.s32.totalorder %s13_s18, 38   ;;  %s1289_s13 = smov %s1121_s25 }
 0x167   : > { %s1290_s14 = smov %s1039_s16  ;;  %s1291_s15 = smov %s1043_s17 }
 0x168   : > { %s1292_s16 = smov %s1295_s19  ;;  %s1293_s17 = smov %s1299_s20 }
 0x169   :  { %12 = sbr.rel (!%p10_p0) target bundleno = 4 (0x4), region = 119 }

</bundles_post_ra>
